<compile_context>
chip_gen: v5e
topology: v5e:2x2
jax: 0.10.0
libtpu: 0.0.40
codegen_flags: <defaults>
</compile_context>

<pallas_src>
import functools

import jax
import jax.numpy as jnp
from jax.experimental import pallas as pl
from jax.experimental.pallas import tpu as pltpu

# ---------------- synthetic (scaled-down) model dimensions ----------------
B_DEFAULT  = 2
C_IN       = 3                  # RGB channels
IMG        = 32                 # input spatial size
PATCH      = 8                  # conv1 kernel == stride (stand-in for 32)
GRID       = IMG // PATCH       # 4
N_TOK      = GRID * GRID        # 16 patch tokens
SEQ        = N_TOK + 1          # 17 real tokens (cls + patches)
S_PAD      = 24                 # padded sequence length (multiple of 8)
D_CLIP     = 64                 # CLIP visual width (stand-in for 768)
H_CLIP     = 4                  # CLIP attention heads
MLP_CLIP   = 4 * D_CLIP         # 256
N_LAYERS   = 4                  # CLIP transformer depth (stand-in for 12)
EXTRACT    = (1, 2, 3)          # stand-in for (3, 6, 9) — contiguous
COND_LAYER = 0
PROJ_DIM   = 32                 # CLIP visual projection dim (stand-in for 512)
COND_DIM   = 32                 # conditional vector dim (stand-in for 512)
REDUCE_DIM = 32                 # decoder d_model
H_DEC      = 4                  # decoder heads
FF_DEC     = 64                 # decoder feed-forward (stand-in for 2048)
EPS        = 1e-5
PATCH_FEAT = C_IN * PATCH * PATCH   # 192
NEG_INF    = -1e9               # finite: keeps fully-masked rows NaN-free


# ------------------------------ kernel helpers -----------------------------


def _layernorm(x, g, b):
    m = jnp.mean(x, axis=-1, keepdims=True)
    v = jnp.mean((x - m) ** 2, axis=-1, keepdims=True)
    return (x - m) * jax.lax.rsqrt(v + EPS) * g + b


def _masked_softmax(scores, key_bias):
    s = scores + key_bias
    m = jnp.max(s, axis=-1, keepdims=True)
    e = jnp.exp(s - m)
    denom = jnp.sum(e, axis=-1, keepdims=True)
    # divide on the (otherwise idle) EUP slot
    return e * pl.reciprocal(denom, approx=True)


def _mha(x, w_qkv, b_qkv, w_out, b_out, num_heads, batch, key_bias):
    """Multi-head self-attention for `batch` examples folded into the rows.

    x: (B*S, d) f32.  w_qkv/w_out: bf16 weights (f32 accumulation on the MXU).
    Attention (scores / softmax / ctx) is done per batch element so tokens
    never attend across examples; per-head contexts are lane-concatenated and
    ONE (B*S, d)@(d, d) output projection is issued."""
    bs, d = x.shape
    s = bs // batch
    hd = d // num_heads
    scale = float(hd) ** -0.5
    qkv = jnp.dot(x.astype(jnp.bfloat16), w_qkv,
                  preferred_element_type=jnp.float32) + b_qkv      # (B*S, 3d) f32
    ctx_rows = []
    for b in range(batch):                                         # static, small
        qkv_b = qkv[b * s:(b + 1) * s, :]                          # (S, 3d)
        heads = []
        for h in range(num_heads):                                 # static, small
            q = qkv_b[:, h * hd:(h + 1) * hd] * scale
            k = qkv_b[:, d + h * hd: d + (h + 1) * hd]
            v = qkv_b[:, 2 * d + h * hd: 2 * d + (h + 1) * hd]
            sc = jnp.einsum('qd,kd->qk', q, k,
                            preferred_element_type=jnp.float32)    # (S, S)
            pr = _masked_softmax(sc, key_bias)
            heads.append(jnp.dot(pr, v, preferred_element_type=jnp.float32))
        ctx_rows.append(jnp.concatenate(heads, axis=-1))           # (S, d)
    ctx = jnp.concatenate(ctx_rows, axis=0)                        # (B*S, d)
    return jnp.dot(ctx.astype(jnp.bfloat16), w_out,
                   preferred_element_type=jnp.float32) + b_out


# ------------------------------ Pallas kernels -----------------------------


def _clip_layers_kernel(patches_ref, wc_ref, pos_ref, lnpre_g, lnpre_b, kb_ref,
                        ln1g, ln1b, wqkv, bqkv, wo, bo,
                        ln2g, ln2b, wfc, bfc, wpr, bpr,
                        acts_ref, x_scr, *, num_heads, batch):
    """grid = (layer,).  Batch is folded into the (B*S_PAD, D) activation slab.

    Layer 0 additionally runs the fused embed (conv1-as-matmul + cls/pos emb +
    ln_pre) into the VMEM scratch.  Only EXTRACT layers store to the stacked
    activations output (slot = layer - EXTRACT[0])."""
    l = pl.program_id(0)

    @pl.when(l == 0)
    def _():
        # patch row 0 is zero, so the dot contributes nothing there and
        # pos row 0 (= class_embedding + pos_emb[0]) supplies the cls token.
        p = patches_ref[...].reshape(batch * S_PAD, PATCH_FEAT)
        x0 = jnp.dot(p.astype(jnp.bfloat16), wc_ref[...],
                     preferred_element_type=jnp.float32)
        pos = jnp.concatenate([pos_ref[...]] * batch, axis=0)      # (B*S, D)
        x_scr[...] = _layernorm(x0 + pos, lnpre_g[...], lnpre_b[...])

    key_bias = kb_ref[...]                                         # (1, S_PAD)
    x = x_scr[...]                                                 # (B*S, D)
    # pre-LN attention
    xn = _layernorm(x, ln1g[0], ln1b[0])
    x = x + _mha(xn, wqkv[0], bqkv[0], wo[0], bo[0], num_heads, batch, key_bias)
    # pre-LN MLP with QuickGELU
    xn2 = _layernorm(x, ln2g[0], ln2b[0])
    h = jnp.dot(xn2.astype(jnp.bfloat16), wfc[0],
                preferred_element_type=jnp.float32) + bfc[0]
    h = h * jax.nn.sigmoid(1.702 * h)
    x = x + jnp.dot(h.astype(jnp.bfloat16), wpr[0],
                    preferred_element_type=jnp.float32) + bpr[0]
    x_scr[...] = x

    @pl.when(jnp.logical_and(l >= EXTRACT[0], l <= EXTRACT[-1]))
    def _():
        acts_ref[0] = x.reshape(batch, S_PAD, D_CLIP)


def _decoder_kernel(acts_ref, cond_ref, kb_ref, wfm, bfm, wfa, bfa,
                    wred, bred, wqkv, bqkv, wo, bo, ln1g, ln1b,
                    wfc, bfc, wpr, bpr, ln2g, ln2b, wt_ref, bt_ref,
                    out_ref, a_scr, *, num_heads, batch):
    """grid = (stage,), batch folded into the (B*S_PAD, R) accumulator scratch.

    Each stage: reduce (+ FiLM at stage 0, residual add otherwise) + one
    post-norm nn.TransformerEncoderLayer (ReLU, eval-mode dropout=identity).
    The ConvTranspose2d head (kernel == stride => per-token linear) is fused
    into the last stage so the accumulator never round-trips to HBM."""
    i = pl.program_id(0)
    key_bias = kb_ref[...]

    act = acts_ref[0].reshape(batch * S_PAD, D_CLIP)
    r = jnp.dot(act.astype(jnp.bfloat16), wred[0],
                preferred_element_type=jnp.float32) + bred[0]      # (B*S, R)

    @pl.when(i == 0)
    def _():
        c = cond_ref[...]                                          # (B, COND_DIM)
        fm = jnp.dot(c, wfm[...], preferred_element_type=jnp.float32) + bfm[...]
        fa = jnp.dot(c, wfa[...], preferred_element_type=jnp.float32) + bfa[...]
        rows = []
        for b in range(batch):                                     # static, small
            rb = r[b * S_PAD:(b + 1) * S_PAD, :]
            rows.append(fm[b:b + 1, :] * rb + fa[b:b + 1, :])      # FiLM, cond_layer==0
        a_scr[...] = jnp.concatenate(rows, axis=0)

    @pl.when(i > 0)
    def _():
        a_scr[...] = r + a_scr[...]

    a = a_scr[...]
    # post-norm transformer encoder layer
    a = _layernorm(a + _mha(a, wqkv[0], bqkv[0], wo[0], bo[0],
                            num_heads, batch, key_bias),
                   ln1g[0], ln1b[0])
    h = jax.nn.relu(jnp.dot(a.astype(jnp.bfloat16), wfc[0],
                            preferred_element_type=jnp.float32) + bfc[0])
    h = jnp.dot(h.astype(jnp.bfloat16), wpr[0],
                preferred_element_type=jnp.float32) + bpr[0]
    a = _layernorm(a + h, ln2g[0], ln2b[0])
    a_scr[...] = a

    @pl.when(i == pl.num_programs(0) - 1)
    def _():
        out_ref[...] = (jnp.dot(a, wt_ref[...], preferred_element_type=jnp.float32)
                        + bt_ref[...])


# ------------------------------ pallas_call glue ----------------------------


def _const_spec(arr):
    nd = arr.ndim

    def imap(l):
        return (0,) * nd

    return pl.BlockSpec(arr.shape, imap)


def _clip_transformer_call(patches_pad, w_conv, pos_bias, key_bias, params):
    Bb = patches_pad.shape[0]
    L = N_LAYERS
    n_ext = len(EXTRACT)
    tf = params['tf']

    def lspec(arr):
        return pl.BlockSpec((1,) + arr.shape[1:], lambda l: (l, 0, 0))

    w_order = ('ln1_g', 'ln1_b', 'w_qkv', 'b_qkv', 'w_out', 'b_out',
               'ln2_g', 'ln2_b', 'w_fc', 'b_fc', 'w_proj', 'b_proj')
    weights = [tf[k] for k in w_order]

    flops_layer = Bb * (2 * S_PAD * D_CLIP * 3 * D_CLIP         # qkv projection
                        + 4 * S_PAD * S_PAD * D_CLIP            # scores + context
                        + 2 * S_PAD * D_CLIP * D_CLIP           # output projection
                        + 4 * S_PAD * D_CLIP * MLP_CLIP)        # MLP
    flops_embed = Bb * 2 * S_PAD * PATCH_FEAT * D_CLIP
    trans_layer = Bb * (H_CLIP * S_PAD * S_PAD + S_PAD * MLP_CLIP)
    w_bytes = sum(int(w.size) * w.dtype.itemsize for w in weights)
    cost = pl.CostEstimate(
        flops=int(L * flops_layer + flops_embed),
        transcendentals=int(L * trans_layer),
        bytes_accessed=int(w_bytes + Bb * S_PAD * PATCH_FEAT * 4
                           + n_ext * Bb * S_PAD * D_CLIP * 4),
    )

    # contiguous EXTRACT: layer l -> slot clamp(l - EXTRACT[0], 0, n_ext-1);
    # non-extracted steps are clamped but never store, so the slot's final
    # content always comes from its extracted layer.
    def out_map(l):
        return (jnp.clip(l - EXTRACT[0], 0, n_ext - 1), 0, 0, 0)

    kernel = functools.partial(_clip_layers_kernel, num_heads=H_CLIP, batch=Bb)
    return pl.pallas_call(
        kernel,
        out_shape=jax.ShapeDtypeStruct((n_ext, Bb, S_PAD, D_CLIP), jnp.float32),
        grid=(L,),
        in_specs=([_const_spec(patches_pad), _const_spec(w_conv),
                   _const_spec(pos_bias),
                   _const_spec(params['ln_pre_g']), _const_spec(params['ln_pre_b']),
                   _const_spec(key_bias)]
                  + [lspec(w) for w in weights]),
        out_specs=pl.BlockSpec((1, Bb, S_PAD, D_CLIP), out_map),
        scratch_shapes=[pltpu.VMEM((Bb * S_PAD, D_CLIP), jnp.float32)],
        compiler_params=pltpu.CompilerParams(
            dimension_semantics=("arbitrary",),
            vmem_limit_bytes=32 * 1024 * 1024),
        cost_estimate=cost,
    )(patches_pad, w_conv, pos_bias, params['ln_pre_g'], params['ln_pre_b'],
      key_bias, *weights)


def _decoder_call(acts, cond, key_bias, params):
    n_ext, Bb = acts.shape[0], acts.shape[1]
    n_stage = len(EXTRACT)
    dec = params['dec']

    def sspec(arr):
        return pl.BlockSpec((1,) + arr.shape[1:], lambda i: (i, 0, 0))

    wt = params['trans_conv_w'].reshape(REDUCE_DIM, PATCH * PATCH)
    bt = params['trans_conv_b'].reshape(1, 1)

    d_order = ('w_red', 'b_red', 'w_qkv', 'b_qkv', 'w_out', 'b_out',
               'ln1_g', 'ln1_b', 'w_fc', 'b_fc', 'w_pr', 'b_pr', 'ln2_g', 'ln2_b')
    dweights = [dec[k] for k in d_order]

    flops_stage = Bb * (2 * S_PAD * D_CLIP * REDUCE_DIM
                        + 2 * S_PAD * REDUCE_DIM * 3 * REDUCE_DIM
                        + 4 * S_PAD * S_PAD * REDUCE_DIM
                        + 2 * S_PAD * REDUCE_DIM * REDUCE_DIM
                        + 4 * S_PAD * REDUCE_DIM * FF_DEC)
    flops_head = Bb * 2 * S_PAD * REDUCE_DIM * PATCH * PATCH
    trans_stage = Bb * H_DEC * S_PAD * S_PAD
    w_bytes = (sum(int(w.size) * w.dtype.itemsize for w in dweights)
               + int(wt.size) * 4)
    cost = pl.CostEstimate(
        flops=int(n_stage * flops_stage + flops_head),
        transcendentals=int(n_stage * trans_stage),
        bytes_accessed=int(w_bytes + n_stage * Bb * S_PAD * D_CLIP * 4
                           + Bb * S_PAD * PATCH * PATCH * 4),
    )

    kernel = functools.partial(_decoder_kernel, num_heads=H_DEC, batch=Bb)
    in_specs = (
        # stage i consumes extract slot (n_ext - 1 - i)   (rev_activations=False)
        [pl.BlockSpec((1, Bb, S_PAD, D_CLIP), lambda i: (n_ext - 1 - i, 0, 0, 0)),
         _const_spec(cond), _const_spec(key_bias),
         _const_spec(params['film_mul_w']), _const_spec(params['film_mul_b']),
         _const_spec(params['film_add_w']), _const_spec(params['film_add_b'])]
        + [sspec(w) for w in dweights]
        + [_const_spec(wt), _const_spec(bt)]
    )
    return pl.pallas_call(
        kernel,
        out_shape=jax.ShapeDtypeStruct((Bb * S_PAD, PATCH * PATCH), jnp.float32),
        grid=(n_stage,),
        in_specs=in_specs,
        out_specs=pl.BlockSpec((Bb * S_PAD, PATCH * PATCH), lambda i: (0, 0)),
        scratch_shapes=[pltpu.VMEM((Bb * S_PAD, REDUCE_DIM), jnp.float32)],
        compiler_params=pltpu.CompilerParams(
            dimension_semantics=("arbitrary",),
            vmem_limit_bytes=32 * 1024 * 1024),
        cost_estimate=cost,
    )(acts, cond, key_bias,
      params['film_mul_w'], params['film_mul_b'],
      params['film_add_w'], params['film_add_b'],
      *dweights, wt, bt)


# ------------------------------ parameters ---------------------------------
# Linear weights are stored pre-transposed to (in, out) so kernels do x @ W.
# Per-layer/per-stage weights are stacked along a leading axis and streamed
# through the layer/stage grid BlockSpecs.  Large matmul weights are bf16
# (MXU-native); biases / LayerNorm params / FiLM / trans_conv stay f32.


def init_params(key):
    ks = iter(jax.random.split(key, 64))
    BF = jnp.bfloat16

    def W(*shape, std=0.02, dtype=jnp.float32):
        return (std * jax.random.normal(next(ks), shape)).astype(dtype)

    def Z(*shape):
        return jnp.zeros(shape, jnp.float32)

    def O(*shape):
        return jnp.ones(shape, jnp.float32)

    L, nd = N_LAYERS, len(EXTRACT)
    p = {}
    # CLIP visual backbone (conv1 has no bias in CLIP)
    p['conv1_w'] = W(D_CLIP, C_IN, PATCH, PATCH)
    p['class_embedding'] = W(D_CLIP)
    p['pos_emb'] = W(SEQ, D_CLIP)
    p['ln_pre_g'], p['ln_pre_b'] = O(1, D_CLIP), Z(1, D_CLIP)
    p['tf'] = dict(
        ln1_g=O(L, 1, D_CLIP), ln1_b=Z(L, 1, D_CLIP),
        w_qkv=W(L, D_CLIP, 3 * D_CLIP, dtype=BF), b_qkv=W(L, 1, 3 * D_CLIP),
        w_out=W(L, D_CLIP, D_CLIP, dtype=BF), b_out=W(L, 1, D_CLIP),
        ln2_g=O(L, 1, D_CLIP), ln2_b=Z(L, 1, D_CLIP),
        w_fc=W(L, D_CLIP, MLP_CLIP, dtype=BF), b_fc=W(L, 1, MLP_CLIP),
        w_proj=W(L, MLP_CLIP, D_CLIP, dtype=BF), b_proj=W(L, 1, D_CLIP),
    )
    # ln_post / proj only feed the (dead) visual_q / return_features path;
    # kept for parameter parity, never used in forward().
    p['ln_post_g'], p['ln_post_b'] = O(1, D_CLIP), Z(1, D_CLIP)
    p['proj'] = W(D_CLIP, PROJ_DIM)
    # CLIPDensePredT decoder
    p['film_mul_w'], p['film_mul_b'] = W(COND_DIM, REDUCE_DIM), W(1, REDUCE_DIM)
    p['film_add_w'], p['film_add_b'] = W(COND_DIM, REDUCE_DIM), W(1, REDUCE_DIM)
    p['dec'] = dict(
        w_red=W(nd, D_CLIP, REDUCE_DIM, dtype=BF), b_red=W(nd, 1, REDUCE_DIM),
        w_qkv=W(nd, REDUCE_DIM, 3 * REDUCE_DIM, dtype=BF), b_qkv=W(nd, 1, 3 * REDUCE_DIM),
        w_out=W(nd, REDUCE_DIM, REDUCE_DIM, dtype=BF), b_out=W(nd, 1, REDUCE_DIM),
        ln1_g=O(nd, 1, REDUCE_DIM), ln1_b=Z(nd, 1, REDUCE_DIM),
        w_fc=W(nd, REDUCE_DIM, FF_DEC, dtype=BF), b_fc=W(nd, 1, FF_DEC),
        w_pr=W(nd, FF_DEC, REDUCE_DIM, dtype=BF), b_pr=W(nd, 1, REDUCE_DIM),
        ln2_g=O(nd, 1, REDUCE_DIM), ln2_b=Z(nd, 1, REDUCE_DIM),
    )
    p['trans_conv_w'] = W(REDUCE_DIM, 1, PATCH, PATCH)      # ConvTranspose2d weight
    p['trans_conv_b'] = W(1)
    return p


# ------------------------------ forward ------------------------------------


@jax.jit
def clip_dense_pred_t_forward(params, inp_image, conditional):
    """Mirrors CLIPDensePredT.forward(inp_image, conditional) with the
    conditional given as a 2-D tensor (B, COND_DIM), return_features=False,
    mask=None, eval mode."""
    Bb = inp_image.shape[0]
    gh = inp_image.shape[2] // PATCH
    gw = inp_image.shape[3] // PATCH
    T = gh * gw

    cond = conditional                                      # get_cond_vec, tensor branch

    # im2col for conv1-as-matmul; token rows = [cls(zero), patch_0..patch_{T-1}, pad]
    patches = inp_image.reshape(Bb, C_IN, gh, PATCH, gw, PATCH)
    patches = patches.transpose(0, 2, 4, 1, 3, 5).reshape(Bb, T, PATCH_FEAT)
    patches_pad = jnp.pad(patches, ((0, 0), (1, S_PAD - 1 - T), (0, 0)))
    w_conv = params['conv1_w'].reshape(D_CLIP, PATCH_FEAT).T.astype(jnp.bfloat16)
    pos_bias = jnp.pad(params['pos_emb'], ((0, S_PAD - SEQ), (0, 0)))
    pos_bias = pos_bias.at[0].add(params['class_embedding'])
    # key-padding bias (constant, hoisted out of the kernels)
    key_bias = jnp.where(jnp.arange(S_PAD)[None, :] < SEQ, 0.0,
                         NEG_INF).astype(jnp.float32)

    # fused embed + CLIP transformer; emits only EXTRACT-layer activations
    acts = _clip_transformer_call(patches_pad, w_conv, pos_bias, key_bias, params)

    # visual_q (ln_post on the cls token + proj) is dead for
    # return_features=False, so it is not computed at all.

    # fused decoder (reduce + FiLM + 3 encoder layers + trans_conv head)
    out_tok = _decoder_call(acts, cond, key_bias, params)   # (B*S_PAD, P*P)
    out_tok = out_tok.reshape(Bb, S_PAD, PATCH * PATCH)

    # drop cls + pad rows; ConvTranspose2d(R, 1, P, stride=P) == per-token
    # linear already applied in-kernel -> just reassemble the image (NCHW).
    out = out_tok[:, 1:1 + T, :]
    out = out.reshape(Bb, gh, gw, PATCH, PATCH).transpose(0, 1, 3, 2, 4)
    out = out.reshape(Bb, 1, gh * PATCH, gw * PATCH)
    return (out,)


# ------------------------------ main ----------------------------------------

if __name__ == "__main__":
    key = jax.random.PRNGKey(0)
    pkey, xkey, ckey = jax.random.split(key, 3)
    params = init_params(pkey)
    x = jax.random.normal(xkey, (B_DEFAULT, C_IN, IMG, IMG), dtype=jnp.float32)
    cond = jax.random.normal(ckey, (B_DEFAULT, COND_DIM), dtype=jnp.float32)

    (a,) = clip_dense_pred_t_forward(params, x, cond)
    a = jax.block_until_ready(a)
    assert a.shape == (B_DEFAULT, 1, IMG, IMG), a.shape
    assert bool(jnp.all(jnp.isfinite(a)))
    print("KERNEL_OK")
</pallas_src>

<mosaic_0001>
module attributes {stable_mosaic.version = 11 : i64} {
  func.func @_clip_layers_kernel(%arg0: i32, %arg1: memref<2x24x192xf32, #tpu.memory_space<vmem>>, %arg2: memref<192x64xbf16, #tpu.memory_space<vmem>>, %arg3: memref<24x64xf32, #tpu.memory_space<vmem>>, %arg4: memref<1x64xf32, #tpu.memory_space<vmem>>, %arg5: memref<1x64xf32, #tpu.memory_space<vmem>>, %arg6: memref<1x24xf32, #tpu.memory_space<vmem>>, %arg7: memref<1x1x64xf32, #tpu.memory_space<vmem>>, %arg8: memref<1x1x64xf32, #tpu.memory_space<vmem>>, %arg9: memref<1x64x192xbf16, #tpu.memory_space<vmem>>, %arg10: memref<1x1x192xf32, #tpu.memory_space<vmem>>, %arg11: memref<1x64x64xbf16, #tpu.memory_space<vmem>>, %arg12: memref<1x1x64xf32, #tpu.memory_space<vmem>>, %arg13: memref<1x1x64xf32, #tpu.memory_space<vmem>>, %arg14: memref<1x1x64xf32, #tpu.memory_space<vmem>>, %arg15: memref<1x64x256xbf16, #tpu.memory_space<vmem>>, %arg16: memref<1x1x256xf32, #tpu.memory_space<vmem>>, %arg17: memref<1x256x64xbf16, #tpu.memory_space<vmem>>, %arg18: memref<1x1x64xf32, #tpu.memory_space<vmem>>, %arg19: memref<1x2x24x64xf32, #tpu.memory_space<vmem>>, %arg20: memref<48x64xf32, #tpu.memory_space<vmem>>) attributes {dimension_semantics = [#tpu.dimension_semantics<arbitrary>], iteration_bounds = array<i64: 4>, scalar_prefetch = 0 : i64, scratch_operands = 1 : i64, tpu.core_type = #tpu.core_type<tc>, window_params = [{pipeline_mode = #tpu.pipeline_mode<synchronous>, transform_indices = @transform_0, window_bounds = array<i64: 2, 24, 192>}, {pipeline_mode = #tpu.pipeline_mode<synchronous>, transform_indices = @transform_1, window_bounds = array<i64: 192, 64>}, {pipeline_mode = #tpu.pipeline_mode<synchronous>, transform_indices = @transform_2, window_bounds = array<i64: 24, 64>}, {pipeline_mode = #tpu.pipeline_mode<synchronous>, transform_indices = @transform_3, window_bounds = array<i64: 1, 64>}, {pipeline_mode = #tpu.pipeline_mode<synchronous>, transform_indices = @transform_4, window_bounds = array<i64: 1, 64>}, {pipeline_mode = #tpu.pipeline_mode<synchronous>, transform_indices = @transform_5, window_bounds = array<i64: 1, 24>}, {transform_indices = @transform_6, window_bounds = array<i64: 1, 1, 64>}, {transform_indices = @transform_7, window_bounds = array<i64: 1, 1, 64>}, {transform_indices = @transform_8, window_bounds = array<i64: 1, 64, 192>}, {transform_indices = @transform_9, window_bounds = array<i64: 1, 1, 192>}, {transform_indices = @transform_10, window_bounds = array<i64: 1, 64, 64>}, {transform_indices = @transform_11, window_bounds = array<i64: 1, 1, 64>}, {transform_indices = @transform_12, window_bounds = array<i64: 1, 1, 64>}, {transform_indices = @transform_13, window_bounds = array<i64: 1, 1, 64>}, {transform_indices = @transform_14, window_bounds = array<i64: 1, 64, 256>}, {transform_indices = @transform_15, window_bounds = array<i64: 1, 1, 256>}, {transform_indices = @transform_16, window_bounds = array<i64: 1, 256, 64>}, {transform_indices = @transform_17, window_bounds = array<i64: 1, 1, 64>}, {transform_indices = @transform_18, window_bounds = array<i64: 1, 2, 24, 64>}]} {
    %c0_i32 = arith.constant 0 : i32
    %0 = arith.cmpi eq, %arg0, %c0_i32 : i32
    %1 = arith.extui %0 : i1 to i32
    %c0_i32_0 = arith.constant 0 : i32
    %2 = arith.cmpi ne, %1, %c0_i32_0 : i32
    scf.if %2 {
      %c0_98 = arith.constant 0 : index
      %c0_99 = arith.constant 0 : index
      %c0_100 = arith.constant 0 : index
      %262 = vector.load %arg1[%c0_98, %c0_99, %c0_100] : memref<2x24x192xf32, #tpu.memory_space<vmem>>, vector<2x24x192xf32>
      %263 = vector.shape_cast %262 : vector<2x24x192xf32> to vector<48x192xf32>
      %264 = arith.truncf %263 : vector<48x192xf32> to vector<48x192xbf16>
      %c0_101 = arith.constant 0 : index
      %c0_102 = arith.constant 0 : index
      %265 = vector.load %arg2[%c0_101, %c0_102] : memref<192x64xbf16, #tpu.memory_space<vmem>>, vector<192x64xbf16>
      %cst_103 = arith.constant dense<0.000000e+00> : vector<48x64xf32>
      %266 = tpu.matmul %264, %265, %cst_103 {dimension_numbers = #tpu.dot_dimension_numbers<[1], [0], [0], [1], [0, 0, 1, 1], [], []>} : vector<48x192xbf16>, vector<192x64xbf16>, vector<48x64xf32> -> vector<48x64xf32>
      %c0_104 = arith.constant 0 : index
      %c0_105 = arith.constant 0 : index
      %267 = vector.load %arg3[%c0_104, %c0_105] : memref<24x64xf32, #tpu.memory_space<vmem>>, vector<24x64xf32>
      %268 = tpu.concatenate %267, %267 in 0 : vector<24x64xf32>, vector<24x64xf32> -> vector<48x64xf32>
      %269 = arith.addf %266, %268 : vector<48x64xf32>
      %c0_106 = arith.constant 0 : index
      %c0_107 = arith.constant 0 : index
      %270 = vector.load %arg4[%c0_106, %c0_107] : memref<1x64xf32, #tpu.memory_space<vmem>>, vector<1x64xf32>
      %c0_108 = arith.constant 0 : index
      %c0_109 = arith.constant 0 : index
      %271 = vector.load %arg5[%c0_108, %c0_109] : memref<1x64xf32, #tpu.memory_space<vmem>>, vector<1x64xf32>
      %cst_110 = arith.constant dense<0.000000e+00> : vector<48xf32>
      %272 = vector.multi_reduction <add>, %269, %cst_110 [1] : vector<48x64xf32> to vector<48xf32>
      %273 = vector.shape_cast %272 : vector<48xf32> to vector<48x1xf32>
      %cst_111 = arith.constant 6.400000e+01 : f32
      %274 = vector.broadcast %cst_111 : f32 to vector<48x1xf32>
      %275 = arith.divf %273, %274 : vector<48x1xf32>
      %276 = vector.broadcast %275 : vector<48x1xf32> to vector<48x64xf32>
      %277 = arith.subf %269, %276 : vector<48x64xf32>
      %278 = arith.mulf %277, %277 : vector<48x64xf32>
      %cst_112 = arith.constant dense<0.000000e+00> : vector<48xf32>
      %279 = vector.multi_reduction <add>, %278, %cst_112 [1] : vector<48x64xf32> to vector<48xf32>
      %280 = vector.shape_cast %279 : vector<48xf32> to vector<48x1xf32>
      %cst_113 = arith.constant 6.400000e+01 : f32
      %281 = vector.broadcast %cst_113 : f32 to vector<48x1xf32>
      %282 = arith.divf %280, %281 : vector<48x1xf32>
      %283 = vector.broadcast %275 : vector<48x1xf32> to vector<48x64xf32>
      %284 = arith.subf %269, %283 : vector<48x64xf32>
      %cst_114 = arith.constant 9.99999974E-6 : f32
      %285 = vector.broadcast %cst_114 : f32 to vector<48x1xf32>
      %286 = arith.addf %282, %285 : vector<48x1xf32>
      %287 = math.rsqrt %286 : vector<48x1xf32>
      %288 = vector.broadcast %287 : vector<48x1xf32> to vector<48x64xf32>
      %289 = arith.mulf %284, %288 : vector<48x64xf32>
      %290 = vector.broadcast %270 : vector<1x64xf32> to vector<48x64xf32>
      %291 = arith.mulf %289, %290 : vector<48x64xf32>
      %292 = vector.broadcast %271 : vector<1x64xf32> to vector<48x64xf32>
      %293 = arith.addf %291, %292 : vector<48x64xf32>
      %c0_115 = arith.constant 0 : index
      %c0_116 = arith.constant 0 : index
      %294 = vector.load %arg20[%c0_115, %c0_116] : memref<48x64xf32, #tpu.memory_space<vmem>>, vector<48x64xf32>
      tpu.vector_store %arg20[%c0_115, %c0_116], %293 {strides = array<i32>} : memref<48x64xf32, #tpu.memory_space<vmem>>, vector<48x64xf32>,
    } else {
    }
    %c0 = arith.constant 0 : index
    %c0_1 = arith.constant 0 : index
    %3 = vector.load %arg6[%c0, %c0_1] : memref<1x24xf32, #tpu.memory_space<vmem>>, vector<1x24xf32>
    %c0_2 = arith.constant 0 : index
    %c0_3 = arith.constant 0 : index
    %4 = vector.load %arg20[%c0_2, %c0_3] : memref<48x64xf32, #tpu.memory_space<vmem>>, vector<48x64xf32>
    %c0_4 = arith.constant 0 : index
    %c0_5 = arith.constant 0 : index
    %c0_6 = arith.constant 0 : index
    %5 = vector.load %arg7[%c0_4, %c0_5, %c0_6] : memref<1x1x64xf32, #tpu.memory_space<vmem>>, vector<1x1x64xf32>
    %6 = vector.shape_cast %5 : vector<1x1x64xf32> to vector<1x64xf32>
    %c0_7 = arith.constant 0 : index
    %c0_8 = arith.constant 0 : index
    %c0_9 = arith.constant 0 : index
    %7 = vector.load %arg8[%c0_7, %c0_8, %c0_9] : memref<1x1x64xf32, #tpu.memory_space<vmem>>, vector<1x1x64xf32>
    %8 = vector.shape_cast %7 : vector<1x1x64xf32> to vector<1x64xf32>
    %cst = arith.constant dense<0.000000e+00> : vector<48xf32>
    %9 = vector.multi_reduction <add>, %4, %cst [1] : vector<48x64xf32> to vector<48xf32>
    %10 = vector.shape_cast %9 : vector<48xf32> to vector<48x1xf32>
    %cst_10 = arith.constant 6.400000e+01 : f32
    %11 = vector.broadcast %cst_10 : f32 to vector<48x1xf32>
    %12 = arith.divf %10, %11 : vector<48x1xf32>
    %13 = vector.broadcast %12 : vector<48x1xf32> to vector<48x64xf32>
    %14 = arith.subf %4, %13 : vector<48x64xf32>
    %15 = arith.mulf %14, %14 : vector<48x64xf32>
    %cst_11 = arith.constant dense<0.000000e+00> : vector<48xf32>
    %16 = vector.multi_reduction <add>, %15, %cst_11 [1] : vector<48x64xf32> to vector<48xf32>
    %17 = vector.shape_cast %16 : vector<48xf32> to vector<48x1xf32>
    %cst_12 = arith.constant 6.400000e+01 : f32
    %18 = vector.broadcast %cst_12 : f32 to vector<48x1xf32>
    %19 = arith.divf %17, %18 : vector<48x1xf32>
    %20 = vector.broadcast %12 : vector<48x1xf32> to vector<48x64xf32>
    %21 = arith.subf %4, %20 : vector<48x64xf32>
    %cst_13 = arith.constant 9.99999974E-6 : f32
    %22 = vector.broadcast %cst_13 : f32 to vector<48x1xf32>
    %23 = arith.addf %19, %22 : vector<48x1xf32>
    %24 = math.rsqrt %23 : vector<48x1xf32>
    %25 = vector.broadcast %24 : vector<48x1xf32> to vector<48x64xf32>
    %26 = arith.mulf %21, %25 : vector<48x64xf32>
    %27 = vector.broadcast %6 : vector<1x64xf32> to vector<48x64xf32>
    %28 = arith.mulf %26, %27 : vector<48x64xf32>
    %29 = vector.broadcast %8 : vector<1x64xf32> to vector<48x64xf32>
    %30 = arith.addf %28, %29 : vector<48x64xf32>
    %c0_14 = arith.constant 0 : index
    %c0_15 = arith.constant 0 : index
    %c0_16 = arith.constant 0 : index
    %31 = vector.load %arg9[%c0_14, %c0_15, %c0_16] : memref<1x64x192xbf16, #tpu.memory_space<vmem>>, vector<1x64x192xbf16>
    %32 = vector.shape_cast %31 : vector<1x64x192xbf16> to vector<64x192xbf16>
    %c0_17 = arith.constant 0 : index
    %c0_18 = arith.constant 0 : index
    %c0_19 = arith.constant 0 : index
    %33 = vector.load %arg10[%c0_17, %c0_18, %c0_19] : memref<1x1x192xf32, #tpu.memory_space<vmem>>, vector<1x1x192xf32>
    %34 = vector.shape_cast %33 : vector<1x1x192xf32> to vector<1x192xf32>
    %c0_20 = arith.constant 0 : index
    %c0_21 = arith.constant 0 : index
    %c0_22 = arith.constant 0 : index
    %35 = vector.load %arg11[%c0_20, %c0_21, %c0_22] : memref<1x64x64xbf16, #tpu.memory_space<vmem>>, vector<1x64x64xbf16>
    %36 = vector.shape_cast %35 : vector<1x64x64xbf16> to vector<64x64xbf16>
    %c0_23 = arith.constant 0 : index
    %c0_24 = arith.constant 0 : index
    %c0_25 = arith.constant 0 : index
    %37 = vector.load %arg12[%c0_23, %c0_24, %c0_25] : memref<1x1x64xf32, #tpu.memory_space<vmem>>, vector<1x1x64xf32>
    %38 = vector.shape_cast %37 : vector<1x1x64xf32> to vector<1x64xf32>
    %39 = arith.truncf %30 : vector<48x64xf32> to vector<48x64xbf16>
    %cst_26 = arith.constant dense<0.000000e+00> : vector<48x192xf32>
    %40 = tpu.matmul %39, %32, %cst_26 {dimension_numbers = #tpu.dot_dimension_numbers<[1], [0], [0], [1], [0, 0, 1, 1], [], []>} : vector<48x64xbf16>, vector<64x192xbf16>, vector<48x192xf32> -> vector<48x192xf32>
    %41 = vector.broadcast %34 : vector<1x192xf32> to vector<48x192xf32>
    %42 = arith.addf %40, %41 : vector<48x192xf32>
    %43 = vector.extract_strided_slice %42 {offsets = [0, 0], sizes = [24, 192], strides = [1, 1]} : vector<48x192xf32> to vector<24x192xf32>
    %44 = vector.extract_strided_slice %43 {offsets = [0, 0], sizes = [24, 16], strides = [1, 1]} : vector<24x192xf32> to vector<24x16xf32>
    %cst_27 = arith.constant 2.500000e-01 : f32
    %45 = vector.broadcast %cst_27 : f32 to vector<24x16xf32>
    %46 = arith.mulf %44, %45 : vector<24x16xf32>
    %47 = vector.extract_strided_slice %43 {offsets = [0, 64], sizes = [24, 16], strides = [1, 1]} : vector<24x192xf32> to vector<24x16xf32>
    %48 = vector.extract_strided_slice %43 {offsets = [0, 128], sizes = [24, 16], strides = [1, 1]} : vector<24x192xf32> to vector<24x16xf32>
    "tpu.trace_start"() <{level = 10 : i32, message = "qd,kd->qk"}> : () -> ()
    %cst_28 = arith.constant dense<0.000000e+00> : vector<24x24xf32>
    %49 = tpu.matmul %46, %47, %cst_28 {dimension_numbers = #tpu.dot_dimension_numbers<[1], [1], [0], [0], [0, 0, 1, 0], [], []>} : vector<24x16xf32>, vector<24x16xf32>, vector<24x24xf32> -> vector<24x24xf32>
    "tpu.trace_stop"() : () -> ()
    %50 = vector.broadcast %3 : vector<1x24xf32> to vector<24x24xf32>
    %51 = arith.addf %49, %50 : vector<24x24xf32>
    %cst_29 = arith.constant dense<0xFF800000> : vector<24xf32>
    %52 = vector.multi_reduction <maximumf>, %51, %cst_29 [1] : vector<24x24xf32> to vector<24xf32>
    %53 = vector.shape_cast %52 : vector<24xf32> to vector<24x1xf32>
    %54 = vector.broadcast %53 : vector<24x1xf32> to vector<24x24xf32>
    %55 = arith.subf %51, %54 : vector<24x24xf32>
    %56 = math.exp %55 : vector<24x24xf32>
    %cst_30 = arith.constant dense<0.000000e+00> : vector<24xf32>
    %57 = vector.multi_reduction <add>, %56, %cst_30 [1] : vector<24x24xf32> to vector<24xf32>
    %58 = vector.shape_cast %57 : vector<24xf32> to vector<24x1xf32>
    %59 = tpu.reciprocal %58 {approx = true} : vector<24x1xf32> -> vector<24x1xf32>
    %60 = vector.broadcast %59 : vector<24x1xf32> to vector<24x24xf32>
    %61 = arith.mulf %56, %60 : vector<24x24xf32>
    %cst_31 = arith.constant dense<0.000000e+00> : vector<24x16xf32>
    %62 = tpu.matmul %61, %48, %cst_31 {dimension_numbers = #tpu.dot_dimension_numbers<[1], [0], [0], [1], [0, 0, 1, 1], [], []>} : vector<24x24xf32>, vector<24x16xf32>, vector<24x16xf32> -> vector<24x16xf32>
    %63 = vector.extract_strided_slice %43 {offsets = [0, 16], sizes = [24, 16], strides = [1, 1]} : vector<24x192xf32> to vector<24x16xf32>
    %cst_32 = arith.constant 2.500000e-01 : f32
    %64 = vector.broadcast %cst_32 : f32 to vector<24x16xf32>
    %65 = arith.mulf %63, %64 : vector<24x16xf32>
    %66 = vector.extract_strided_slice %43 {offsets = [0, 80], sizes = [24, 16], strides = [1, 1]} : vector<24x192xf32> to vector<24x16xf32>
    %67 = vector.extract_strided_slice %43 {offsets = [0, 144], sizes = [24, 16], strides = [1, 1]} : vector<24x192xf32> to vector<24x16xf32>
    "tpu.trace_start"() <{level = 10 : i32, message = "qd,kd->qk"}> : () -> ()
    %cst_33 = arith.constant dense<0.000000e+00> : vector<24x24xf32>
    %68 = tpu.matmul %65, %66, %cst_33 {dimension_numbers = #tpu.dot_dimension_numbers<[1], [1], [0], [0], [0, 0, 1, 0], [], []>} : vector<24x16xf32>, vector<24x16xf32>, vector<24x24xf32> -> vector<24x24xf32>
    "tpu.trace_stop"() : () -> ()
    %69 = vector.broadcast %3 : vector<1x24xf32> to vector<24x24xf32>
    %70 = arith.addf %68, %69 : vector<24x24xf32>
    %cst_34 = arith.constant dense<0xFF800000> : vector<24xf32>
    %71 = vector.multi_reduction <maximumf>, %70, %cst_34 [1] : vector<24x24xf32> to vector<24xf32>
    %72 = vector.shape_cast %71 : vector<24xf32> to vector<24x1xf32>
    %73 = vector.broadcast %72 : vector<24x1xf32> to vector<24x24xf32>
    %74 = arith.subf %70, %73 : vector<24x24xf32>
    %75 = math.exp %74 : vector<24x24xf32>
    %cst_35 = arith.constant dense<0.000000e+00> : vector<24xf32>
    %76 = vector.multi_reduction <add>, %75, %cst_35 [1] : vector<24x24xf32> to vector<24xf32>
    %77 = vector.shape_cast %76 : vector<24xf32> to vector<24x1xf32>
    %78 = tpu.reciprocal %77 {approx = true} : vector<24x1xf32> -> vector<24x1xf32>
    %79 = vector.broadcast %78 : vector<24x1xf32> to vector<24x24xf32>
    %80 = arith.mulf %75, %79 : vector<24x24xf32>
    %cst_36 = arith.constant dense<0.000000e+00> : vector<24x16xf32>
    %81 = tpu.matmul %80, %67, %cst_36 {dimension_numbers = #tpu.dot_dimension_numbers<[1], [0], [0], [1], [0, 0, 1, 1], [], []>} : vector<24x24xf32>, vector<24x16xf32>, vector<24x16xf32> -> vector<24x16xf32>
    %82 = vector.extract_strided_slice %43 {offsets = [0, 32], sizes = [24, 16], strides = [1, 1]} : vector<24x192xf32> to vector<24x16xf32>
    %cst_37 = arith.constant 2.500000e-01 : f32
    %83 = vector.broadcast %cst_37 : f32 to vector<24x16xf32>
    %84 = arith.mulf %82, %83 : vector<24x16xf32>
    %85 = vector.extract_strided_slice %43 {offsets = [0, 96], sizes = [24, 16], strides = [1, 1]} : vector<24x192xf32> to vector<24x16xf32>
    %86 = vector.extract_strided_slice %43 {offsets = [0, 160], sizes = [24, 16], strides = [1, 1]} : vector<24x192xf32> to vector<24x16xf32>
    "tpu.trace_start"() <{level = 10 : i32, message = "qd,kd->qk"}> : () -> ()
    %cst_38 = arith.constant dense<0.000000e+00> : vector<24x24xf32>
    %87 = tpu.matmul %84, %85, %cst_38 {dimension_numbers = #tpu.dot_dimension_numbers<[1], [1], [0], [0], [0, 0, 1, 0], [], []>} : vector<24x16xf32>, vector<24x16xf32>, vector<24x24xf32> -> vector<24x24xf32>
    "tpu.trace_stop"() : () -> ()
    %88 = vector.broadcast %3 : vector<1x24xf32> to vector<24x24xf32>
    %89 = arith.addf %87, %88 : vector<24x24xf32>
    %cst_39 = arith.constant dense<0xFF800000> : vector<24xf32>
    %90 = vector.multi_reduction <maximumf>, %89, %cst_39 [1] : vector<24x24xf32> to vector<24xf32>
    %91 = vector.shape_cast %90 : vector<24xf32> to vector<24x1xf32>
    %92 = vector.broadcast %91 : vector<24x1xf32> to vector<24x24xf32>
    %93 = arith.subf %89, %92 : vector<24x24xf32>
    %94 = math.exp %93 : vector<24x24xf32>
    %cst_40 = arith.constant dense<0.000000e+00> : vector<24xf32>
    %95 = vector.multi_reduction <add>, %94, %cst_40 [1] : vector<24x24xf32> to vector<24xf32>
    %96 = vector.shape_cast %95 : vector<24xf32> to vector<24x1xf32>
    %97 = tpu.reciprocal %96 {approx = true} : vector<24x1xf32> -> vector<24x1xf32>
    %98 = vector.broadcast %97 : vector<24x1xf32> to vector<24x24xf32>
    %99 = arith.mulf %94, %98 : vector<24x24xf32>
    %cst_41 = arith.constant dense<0.000000e+00> : vector<24x16xf32>
    %100 = tpu.matmul %99, %86, %cst_41 {dimension_numbers = #tpu.dot_dimension_numbers<[1], [0], [0], [1], [0, 0, 1, 1], [], []>} : vector<24x24xf32>, vector<24x16xf32>, vector<24x16xf32> -> vector<24x16xf32>
    %101 = vector.extract_strided_slice %43 {offsets = [0, 48], sizes = [24, 16], strides = [1, 1]} : vector<24x192xf32> to vector<24x16xf32>
    %cst_42 = arith.constant 2.500000e-01 : f32
    %102 = vector.broadcast %cst_42 : f32 to vector<24x16xf32>
    %103 = arith.mulf %101, %102 : vector<24x16xf32>
    %104 = vector.extract_strided_slice %43 {offsets = [0, 112], sizes = [24, 16], strides = [1, 1]} : vector<24x192xf32> to vector<24x16xf32>
    %105 = vector.extract_strided_slice %43 {offsets = [0, 176], sizes = [24, 16], strides = [1, 1]} : vector<24x192xf32> to vector<24x16xf32>
    "tpu.trace_start"() <{level = 10 : i32, message = "qd,kd->qk"}> : () -> ()
    %cst_43 = arith.constant dense<0.000000e+00> : vector<24x24xf32>
    %106 = tpu.matmul %103, %104, %cst_43 {dimension_numbers = #tpu.dot_dimension_numbers<[1], [1], [0], [0], [0, 0, 1, 0], [], []>} : vector<24x16xf32>, vector<24x16xf32>, vector<24x24xf32> -> vector<24x24xf32>
    "tpu.trace_stop"() : () -> ()
    %107 = vector.broadcast %3 : vector<1x24xf32> to vector<24x24xf32>
    %108 = arith.addf %106, %107 : vector<24x24xf32>
    %cst_44 = arith.constant dense<0xFF800000> : vector<24xf32>
    %109 = vector.multi_reduction <maximumf>, %108, %cst_44 [1] : vector<24x24xf32> to vector<24xf32>
    %110 = vector.shape_cast %109 : vector<24xf32> to vector<24x1xf32>
    %111 = vector.broadcast %110 : vector<24x1xf32> to vector<24x24xf32>
    %112 = arith.subf %108, %111 : vector<24x24xf32>
    %113 = math.exp %112 : vector<24x24xf32>
    %cst_45 = arith.constant dense<0.000000e+00> : vector<24xf32>
    %114 = vector.multi_reduction <add>, %113, %cst_45 [1] : vector<24x24xf32> to vector<24xf32>
    %115 = vector.shape_cast %114 : vector<24xf32> to vector<24x1xf32>
    %116 = tpu.reciprocal %115 {approx = true} : vector<24x1xf32> -> vector<24x1xf32>
    %117 = vector.broadcast %116 : vector<24x1xf32> to vector<24x24xf32>
    %118 = arith.mulf %113, %117 : vector<24x24xf32>
    %cst_46 = arith.constant dense<0.000000e+00> : vector<24x16xf32>
    %119 = tpu.matmul %118, %105, %cst_46 {dimension_numbers = #tpu.dot_dimension_numbers<[1], [0], [0], [1], [0, 0, 1, 1], [], []>} : vector<24x24xf32>, vector<24x16xf32>, vector<24x16xf32> -> vector<24x16xf32>
    %120 = tpu.concatenate %62, %81, %100, %119 in 1 : vector<24x16xf32>, vector<24x16xf32>, vector<24x16xf32>, vector<24x16xf32> -> vector<24x64xf32>
    %121 = vector.extract_strided_slice %42 {offsets = [24, 0], sizes = [24, 192], strides = [1, 1]} : vector<48x192xf32> to vector<24x192xf32>
    %122 = vector.extract_strided_slice %121 {offsets = [0, 0], sizes = [24, 16], strides = [1, 1]} : vector<24x192xf32> to vector<24x16xf32>
    %cst_47 = arith.constant 2.500000e-01 : f32
    %123 = vector.broadcast %cst_47 : f32 to vector<24x16xf32>
    %124 = arith.mulf %122, %123 : vector<24x16xf32>
    %125 = vector.extract_strided_slice %121 {offsets = [0, 64], sizes = [24, 16], strides = [1, 1]} : vector<24x192xf32> to vector<24x16xf32>
    %126 = vector.extract_strided_slice %121 {offsets = [0, 128], sizes = [24, 16], strides = [1, 1]} : vector<24x192xf32> to vector<24x16xf32>
    "tpu.trace_start"() <{level = 10 : i32, message = "qd,kd->qk"}> : () -> ()
    %cst_48 = arith.constant dense<0.000000e+00> : vector<24x24xf32>
    %127 = tpu.matmul %124, %125, %cst_48 {dimension_numbers = #tpu.dot_dimension_numbers<[1], [1], [0], [0], [0, 0, 1, 0], [], []>} : vector<24x16xf32>, vector<24x16xf32>, vector<24x24xf32> -> vector<24x24xf32>
    "tpu.trace_stop"() : () -> ()
    %128 = vector.broadcast %3 : vector<1x24xf32> to vector<24x24xf32>
    %129 = arith.addf %127, %128 : vector<24x24xf32>
    %cst_49 = arith.constant dense<0xFF800000> : vector<24xf32>
    %130 = vector.multi_reduction <maximumf>, %129, %cst_49 [1] : vector<24x24xf32> to vector<24xf32>
    %131 = vector.shape_cast %130 : vector<24xf32> to vector<24x1xf32>
    %132 = vector.broadcast %131 : vector<24x1xf32> to vector<24x24xf32>
    %133 = arith.subf %129, %132 : vector<24x24xf32>
    %134 = math.exp %133 : vector<24x24xf32>
    %cst_50 = arith.constant dense<0.000000e+00> : vector<24xf32>
    %135 = vector.multi_reduction <add>, %134, %cst_50 [1] : vector<24x24xf32> to vector<24xf32>
    %136 = vector.shape_cast %135 : vector<24xf32> to vector<24x1xf32>
    %137 = tpu.reciprocal %136 {approx = true} : vector<24x1xf32> -> vector<24x1xf32>
    %138 = vector.broadcast %137 : vector<24x1xf32> to vector<24x24xf32>
    %139 = arith.mulf %134, %138 : vector<24x24xf32>
    %cst_51 = arith.constant dense<0.000000e+00> : vector<24x16xf32>
    %140 = tpu.matmul %139, %126, %cst_51 {dimension_numbers = #tpu.dot_dimension_numbers<[1], [0], [0], [1], [0, 0, 1, 1], [], []>} : vector<24x24xf32>, vector<24x16xf32>, vector<24x16xf32> -> vector<24x16xf32>
    %141 = vector.extract_strided_slice %121 {offsets = [0, 16], sizes = [24, 16], strides = [1, 1]} : vector<24x192xf32> to vector<24x16xf32>
    %cst_52 = arith.constant 2.500000e-01 : f32
    %142 = vector.broadcast %cst_52 : f32 to vector<24x16xf32>
    %143 = arith.mulf %141, %142 : vector<24x16xf32>
    %144 = vector.extract_strided_slice %121 {offsets = [0, 80], sizes = [24, 16], strides = [1, 1]} : vector<24x192xf32> to vector<24x16xf32>
    %145 = vector.extract_strided_slice %121 {offsets = [0, 144], sizes = [24, 16], strides = [1, 1]} : vector<24x192xf32> to vector<24x16xf32>
    "tpu.trace_start"() <{level = 10 : i32, message = "qd,kd->qk"}> : () -> ()
    %cst_53 = arith.constant dense<0.000000e+00> : vector<24x24xf32>
    %146 = tpu.matmul %143, %144, %cst_53 {dimension_numbers = #tpu.dot_dimension_numbers<[1], [1], [0], [0], [0, 0, 1, 0], [], []>} : vector<24x16xf32>, vector<24x16xf32>, vector<24x24xf32> -> vector<24x24xf32>
    "tpu.trace_stop"() : () -> ()
    %147 = vector.broadcast %3 : vector<1x24xf32> to vector<24x24xf32>
    %148 = arith.addf %146, %147 : vector<24x24xf32>
    %cst_54 = arith.constant dense<0xFF800000> : vector<24xf32>
    %149 = vector.multi_reduction <maximumf>, %148, %cst_54 [1] : vector<24x24xf32> to vector<24xf32>
    %150 = vector.shape_cast %149 : vector<24xf32> to vector<24x1xf32>
    %151 = vector.broadcast %150 : vector<24x1xf32> to vector<24x24xf32>
    %152 = arith.subf %148, %151 : vector<24x24xf32>
    %153 = math.exp %152 : vector<24x24xf32>
    %cst_55 = arith.constant dense<0.000000e+00> : vector<24xf32>
    %154 = vector.multi_reduction <add>, %153, %cst_55 [1] : vector<24x24xf32> to vector<24xf32>
    %155 = vector.shape_cast %154 : vector<24xf32> to vector<24x1xf32>
    %156 = tpu.reciprocal %155 {approx = true} : vector<24x1xf32> -> vector<24x1xf32>
    %157 = vector.broadcast %156 : vector<24x1xf32> to vector<24x24xf32>
    %158 = arith.mulf %153, %157 : vector<24x24xf32>
    %cst_56 = arith.constant dense<0.000000e+00> : vector<24x16xf32>
    %159 = tpu.matmul %158, %145, %cst_56 {dimension_numbers = #tpu.dot_dimension_numbers<[1], [0], [0], [1], [0, 0, 1, 1], [], []>} : vector<24x24xf32>, vector<24x16xf32>, vector<24x16xf32> -> vector<24x16xf32>
    %160 = vector.extract_strided_slice %121 {offsets = [0, 32], sizes = [24, 16], strides = [1, 1]} : vector<24x192xf32> to vector<24x16xf32>
    %cst_57 = arith.constant 2.500000e-01 : f32
    %161 = vector.broadcast %cst_57 : f32 to vector<24x16xf32>
    %162 = arith.mulf %160, %161 : vector<24x16xf32>
    %163 = vector.extract_strided_slice %121 {offsets = [0, 96], sizes = [24, 16], strides = [1, 1]} : vector<24x192xf32> to vector<24x16xf32>
    %164 = vector.extract_strided_slice %121 {offsets = [0, 160], sizes = [24, 16], strides = [1, 1]} : vector<24x192xf32> to vector<24x16xf32>
    "tpu.trace_start"() <{level = 10 : i32, message = "qd,kd->qk"}> : () -> ()
    %cst_58 = arith.constant dense<0.000000e+00> : vector<24x24xf32>
    %165 = tpu.matmul %162, %163, %cst_58 {dimension_numbers = #tpu.dot_dimension_numbers<[1], [1], [0], [0], [0, 0, 1, 0], [], []>} : vector<24x16xf32>, vector<24x16xf32>, vector<24x24xf32> -> vector<24x24xf32>
    "tpu.trace_stop"() : () -> ()
    %166 = vector.broadcast %3 : vector<1x24xf32> to vector<24x24xf32>
    %167 = arith.addf %165, %166 : vector<24x24xf32>
    %cst_59 = arith.constant dense<0xFF800000> : vector<24xf32>
    %168 = vector.multi_reduction <maximumf>, %167, %cst_59 [1] : vector<24x24xf32> to vector<24xf32>
    %169 = vector.shape_cast %168 : vector<24xf32> to vector<24x1xf32>
    %170 = vector.broadcast %169 : vector<24x1xf32> to vector<24x24xf32>
    %171 = arith.subf %167, %170 : vector<24x24xf32>
    %172 = math.exp %171 : vector<24x24xf32>
    %cst_60 = arith.constant dense<0.000000e+00> : vector<24xf32>
    %173 = vector.multi_reduction <add>, %172, %cst_60 [1] : vector<24x24xf32> to vector<24xf32>
    %174 = vector.shape_cast %173 : vector<24xf32> to vector<24x1xf32>
    %175 = tpu.reciprocal %174 {approx = true} : vector<24x1xf32> -> vector<24x1xf32>
    %176 = vector.broadcast %175 : vector<24x1xf32> to vector<24x24xf32>
    %177 = arith.mulf %172, %176 : vector<24x24xf32>
    %cst_61 = arith.constant dense<0.000000e+00> : vector<24x16xf32>
    %178 = tpu.matmul %177, %164, %cst_61 {dimension_numbers = #tpu.dot_dimension_numbers<[1], [0], [0], [1], [0, 0, 1, 1], [], []>} : vector<24x24xf32>, vector<24x16xf32>, vector<24x16xf32> -> vector<24x16xf32>
    %179 = vector.extract_strided_slice %121 {offsets = [0, 48], sizes = [24, 16], strides = [1, 1]} : vector<24x192xf32> to vector<24x16xf32>
    %cst_62 = arith.constant 2.500000e-01 : f32
    %180 = vector.broadcast %cst_62 : f32 to vector<24x16xf32>
    %181 = arith.mulf %179, %180 : vector<24x16xf32>
    %182 = vector.extract_strided_slice %121 {offsets = [0, 112], sizes = [24, 16], strides = [1, 1]} : vector<24x192xf32> to vector<24x16xf32>
    %183 = vector.extract_strided_slice %121 {offsets = [0, 176], sizes = [24, 16], strides = [1, 1]} : vector<24x192xf32> to vector<24x16xf32>
    "tpu.trace_start"() <{level = 10 : i32, message = "qd,kd->qk"}> : () -> ()
    %cst_63 = arith.constant dense<0.000000e+00> : vector<24x24xf32>
    %184 = tpu.matmul %181, %182, %cst_63 {dimension_numbers = #tpu.dot_dimension_numbers<[1], [1], [0], [0], [0, 0, 1, 0], [], []>} : vector<24x16xf32>, vector<24x16xf32>, vector<24x24xf32> -> vector<24x24xf32>
    "tpu.trace_stop"() : () -> ()
    %185 = vector.broadcast %3 : vector<1x24xf32> to vector<24x24xf32>
    %186 = arith.addf %184, %185 : vector<24x24xf32>
    %cst_64 = arith.constant dense<0xFF800000> : vector<24xf32>
    %187 = vector.multi_reduction <maximumf>, %186, %cst_64 [1] : vector<24x24xf32> to vector<24xf32>
    %188 = vector.shape_cast %187 : vector<24xf32> to vector<24x1xf32>
    %189 = vector.broadcast %188 : vector<24x1xf32> to vector<24x24xf32>
    %190 = arith.subf %186, %189 : vector<24x24xf32>
    %191 = math.exp %190 : vector<24x24xf32>
    %cst_65 = arith.constant dense<0.000000e+00> : vector<24xf32>
    %192 = vector.multi_reduction <add>, %191, %cst_65 [1] : vector<24x24xf32> to vector<24xf32>
    %193 = vector.shape_cast %192 : vector<24xf32> to vector<24x1xf32>
    %194 = tpu.reciprocal %193 {approx = true} : vector<24x1xf32> -> vector<24x1xf32>
    %195 = vector.broadcast %194 : vector<24x1xf32> to vector<24x24xf32>
    %196 = arith.mulf %191, %195 : vector<24x24xf32>
    %cst_66 = arith.constant dense<0.000000e+00> : vector<24x16xf32>
    %197 = tpu.matmul %196, %183, %cst_66 {dimension_numbers = #tpu.dot_dimension_numbers<[1], [0], [0], [1], [0, 0, 1, 1], [], []>} : vector<24x24xf32>, vector<24x16xf32>, vector<24x16xf32> -> vector<24x16xf32>
    %198 = tpu.concatenate %140, %159, %178, %197 in 1 : vector<24x16xf32>, vector<24x16xf32>, vector<24x16xf32>, vector<24x16xf32> -> vector<24x64xf32>
    %199 = tpu.concatenate %120, %198 in 0 : vector<24x64xf32>, vector<24x64xf32> -> vector<48x64xf32>
    %200 = arith.truncf %199 : vector<48x64xf32> to vector<48x64xbf16>
    %cst_67 = arith.constant dense<0.000000e+00> : vector<48x64xf32>
    %201 = tpu.matmul %200, %36, %cst_67 {dimension_numbers = #tpu.dot_dimension_numbers<[1], [0], [0], [1], [0, 0, 1, 1], [], []>} : vector<48x64xbf16>, vector<64x64xbf16>, vector<48x64xf32> -> vector<48x64xf32>
    %202 = vector.broadcast %38 : vector<1x64xf32> to vector<48x64xf32>
    %203 = arith.addf %201, %202 : vector<48x64xf32>
    %204 = arith.addf %4, %203 : vector<48x64xf32>
    %c0_68 = arith.constant 0 : index
    %c0_69 = arith.constant 0 : index
    %c0_70 = arith.constant 0 : index
    %205 = vector.load %arg13[%c0_68, %c0_69, %c0_70] : memref<1x1x64xf32, #tpu.memory_space<vmem>>, vector<1x1x64xf32>
    %206 = vector.shape_cast %205 : vector<1x1x64xf32> to vector<1x64xf32>
    %c0_71 = arith.constant 0 : index
    %c0_72 = arith.constant 0 : index
    %c0_73 = arith.constant 0 : index
    %207 = vector.load %arg14[%c0_71, %c0_72, %c0_73] : memref<1x1x64xf32, #tpu.memory_space<vmem>>, vector<1x1x64xf32>
    %208 = vector.shape_cast %207 : vector<1x1x64xf32> to vector<1x64xf32>
    %cst_74 = arith.constant dense<0.000000e+00> : vector<48xf32>
    %209 = vector.multi_reduction <add>, %204, %cst_74 [1] : vector<48x64xf32> to vector<48xf32>
    %210 = vector.shape_cast %209 : vector<48xf32> to vector<48x1xf32>
    %cst_75 = arith.constant 6.400000e+01 : f32
    %211 = vector.broadcast %cst_75 : f32 to vector<48x1xf32>
    %212 = arith.divf %210, %211 : vector<48x1xf32>
    %213 = vector.broadcast %212 : vector<48x1xf32> to vector<48x64xf32>
    %214 = arith.subf %204, %213 : vector<48x64xf32>
    %215 = arith.mulf %214, %214 : vector<48x64xf32>
    %cst_76 = arith.constant dense<0.000000e+00> : vector<48xf32>
    %216 = vector.multi_reduction <add>, %215, %cst_76 [1] : vector<48x64xf32> to vector<48xf32>
    %217 = vector.shape_cast %216 : vector<48xf32> to vector<48x1xf32>
    %cst_77 = arith.constant 6.400000e+01 : f32
    %218 = vector.broadcast %cst_77 : f32 to vector<48x1xf32>
    %219 = arith.divf %217, %218 : vector<48x1xf32>
    %220 = vector.broadcast %212 : vector<48x1xf32> to vector<48x64xf32>
    %221 = arith.subf %204, %220 : vector<48x64xf32>
    %cst_78 = arith.constant 9.99999974E-6 : f32
    %222 = vector.broadcast %cst_78 : f32 to vector<48x1xf32>
    %223 = arith.addf %219, %222 : vector<48x1xf32>
    %224 = math.rsqrt %223 : vector<48x1xf32>
    %225 = vector.broadcast %224 : vector<48x1xf32> to vector<48x64xf32>
    %226 = arith.mulf %221, %225 : vector<48x64xf32>
    %227 = vector.broadcast %206 : vector<1x64xf32> to vector<48x64xf32>
    %228 = arith.mulf %226, %227 : vector<48x64xf32>
    %229 = vector.broadcast %208 : vector<1x64xf32> to vector<48x64xf32>
    %230 = arith.addf %228, %229 : vector<48x64xf32>
    %231 = arith.truncf %230 : vector<48x64xf32> to vector<48x64xbf16>
    %c0_79 = arith.constant 0 : index
    %c0_80 = arith.constant 0 : index
    %c0_81 = arith.constant 0 : index
    %232 = vector.load %arg15[%c0_79, %c0_80, %c0_81] : memref<1x64x256xbf16, #tpu.memory_space<vmem>>, vector<1x64x256xbf16>
    %233 = vector.shape_cast %232 : vector<1x64x256xbf16> to vector<64x256xbf16>
    %cst_82 = arith.constant dense<0.000000e+00> : vector<48x256xf32>
    %234 = tpu.matmul %231, %233, %cst_82 {dimension_numbers = #tpu.dot_dimension_numbers<[1], [0], [0], [1], [0, 0, 1, 1], [], []>} : vector<48x64xbf16>, vector<64x256xbf16>, vector<48x256xf32> -> vector<48x256xf32>
    %c0_83 = arith.constant 0 : index
    %c0_84 = arith.constant 0 : index
    %c0_85 = arith.constant 0 : index
    %235 = vector.load %arg16[%c0_83, %c0_84, %c0_85] : memref<1x1x256xf32, #tpu.memory_space<vmem>>, vector<1x1x256xf32>
    %236 = vector.shape_cast %235 : vector<1x1x256xf32> to vector<1x256xf32>
    %237 = vector.broadcast %236 : vector<1x256xf32> to vector<48x256xf32>
    %238 = arith.addf %234, %237 : vector<48x256xf32>
    %cst_86 = arith.constant 1.702000e+00 : f32
    %239 = vector.broadcast %cst_86 : f32 to vector<48x256xf32>
    %240 = arith.mulf %239, %238 : vector<48x256xf32>
    %241 = arith.negf %240 : vector<48x256xf32>
    %242 = math.exp %241 : vector<48x256xf32>
    %cst_87 = arith.constant 1.000000e+00 : f32
    %243 = vector.broadcast %cst_87 : f32 to vector<48x256xf32>
    %244 = arith.addf %243, %242 : vector<48x256xf32>
    %245 = arith.divf %243, %244 : vector<48x256xf32>
    %246 = arith.mulf %238, %245 : vector<48x256xf32>
    %247 = arith.truncf %246 : vector<48x256xf32> to vector<48x256xbf16>
    %c0_88 = arith.constant 0 : index
    %c0_89 = arith.constant 0 : index
    %c0_90 = arith.constant 0 : index
    %248 = vector.load %arg17[%c0_88, %c0_89, %c0_90] : memref<1x256x64xbf16, #tpu.memory_space<vmem>>, vector<1x256x64xbf16>
    %249 = vector.shape_cast %248 : vector<1x256x64xbf16> to vector<256x64xbf16>
    %cst_91 = arith.constant dense<0.000000e+00> : vector<48x64xf32>
    %250 = tpu.matmul %247, %249, %cst_91 {dimension_numbers = #tpu.dot_dimension_numbers<[1], [0], [0], [1], [0, 0, 1, 1], [], []>} : vector<48x256xbf16>, vector<256x64xbf16>, vector<48x64xf32> -> vector<48x64xf32>
    %251 = arith.addf %204, %250 : vector<48x64xf32>
    %c0_92 = arith.constant 0 : index
    %c0_93 = arith.constant 0 : index
    %c0_94 = arith.constant 0 : index
    %252 = vector.load %arg18[%c0_92, %c0_93, %c0_94] : memref<1x1x64xf32, #tpu.memory_space<vmem>>, vector<1x1x64xf32>
    %253 = vector.shape_cast %252 : vector<1x1x64xf32> to vector<1x64xf32>
    %254 = vector.broadcast %253 : vector<1x64xf32> to vector<48x64xf32>
    %255 = arith.addf %251, %254 : vector<48x64xf32>
    %c0_95 = arith.constant 0 : index
    %c0_96 = arith.constant 0 : index
    %256 = vector.load %arg20[%c0_95, %c0_96] : memref<48x64xf32, #tpu.memory_space<vmem>>, vector<48x64xf32>
    tpu.vector_store %arg20[%c0_95, %c0_96], %255 {strides = array<i32>} : memref<48x64xf32, #tpu.memory_space<vmem>>, vector<48x64xf32>,
    %c1_i32 = arith.constant 1 : i32
    %257 = arith.cmpi sge, %arg0, %c1_i32 : i32
    %c3_i32 = arith.constant 3 : i32
    %258 = arith.cmpi sle, %arg0, %c3_i32 : i32
    %259 = arith.andi %257, %258 : i1
    %260 = arith.extui %259 : i1 to i32
    %c0_i32_97 = arith.constant 0 : i32
    %261 = arith.cmpi ne, %260, %c0_i32_97 : i32
    scf.if %261 {
      %262 = vector.shape_cast %255 : vector<48x64xf32> to vector<2x24x64xf32>
      %c0_98 = arith.constant 0 : index
      %c0_99 = arith.constant 0 : index
      %c0_100 = arith.constant 0 : index
      %c0_101 = arith.constant 0 : index
      %263 = vector.load %arg19[%c0_98, %c0_99, %c0_100, %c0_101] : memref<1x2x24x64xf32, #tpu.memory_space<vmem>>, vector<1x2x24x64xf32>
      %264 = vector.shape_cast %263 : vector<1x2x24x64xf32> to vector<2x24x64xf32>
      %265 = vector.shape_cast %262 : vector<2x24x64xf32> to vector<1x2x24x64xf32>
      tpu.vector_store %arg19[%c0_98, %c0_99, %c0_100, %c0_101], %265 {strides = array<i32>} : memref<1x2x24x64xf32, #tpu.memory_space<vmem>>, vector<1x2x24x64xf32>,
    } else {
    }
    return
  }
  func.func @transform_0(%arg0: i32) -> (i32, i32, i32) {
    %c0_i32 = arith.constant 0 : i32
    %c0_i32_0 = arith.constant 0 : i32
    %c0_i32_1 = arith.constant 0 : i32
    %c0_i32_2 = arith.constant 0 : i32
    return %c0_i32, %c0_i32_0, %c0_i32_1 : i32, i32, i32
  }
  func.func @transform_1(%arg0: i32) -> (i32, i32) {
    %c0_i32 = arith.constant 0 : i32
    %c0_i32_0 = arith.constant 0 : i32
    %c0_i32_1 = arith.constant 0 : i32
    return %c0_i32, %c0_i32_0 : i32, i32
  }
  func.func @transform_2(%arg0: i32) -> (i32, i32) {
    %c0_i32 = arith.constant 0 : i32
    %c0_i32_0 = arith.constant 0 : i32
    %c0_i32_1 = arith.constant 0 : i32
    return %c0_i32, %c0_i32_0 : i32, i32
  }
  func.func @transform_3(%arg0: i32) -> (i32, i32) {
    %c0_i32 = arith.constant 0 : i32
    %c0_i32_0 = arith.constant 0 : i32
    %c0_i32_1 = arith.constant 0 : i32
    return %c0_i32, %c0_i32_0 : i32, i32
  }
  func.func @transform_4(%arg0: i32) -> (i32, i32) {
    %c0_i32 = arith.constant 0 : i32
    %c0_i32_0 = arith.constant 0 : i32
    %c0_i32_1 = arith.constant 0 : i32
    return %c0_i32, %c0_i32_0 : i32, i32
  }
  func.func @transform_5(%arg0: i32) -> (i32, i32) {
    %c0_i32 = arith.constant 0 : i32
    %c0_i32_0 = arith.constant 0 : i32
    %c0_i32_1 = arith.constant 0 : i32
    return %c0_i32, %c0_i32_0 : i32, i32
  }
  func.func @transform_6(%arg0: i32) -> (i32, i32, i32) {
    %c0_i32 = arith.constant 0 : i32
    %c0_i32_0 = arith.constant 0 : i32
    %c0_i32_1 = arith.constant 0 : i32
    return %arg0, %c0_i32, %c0_i32_0 : i32, i32, i32
  }
  func.func @transform_7(%arg0: i32) -> (i32, i32, i32) {
    %c0_i32 = arith.constant 0 : i32
    %c0_i32_0 = arith.constant 0 : i32
    %c0_i32_1 = arith.constant 0 : i32
    return %arg0, %c0_i32, %c0_i32_0 : i32, i32, i32
  }
  func.func @transform_8(%arg0: i32) -> (i32, i32, i32) {
    %c0_i32 = arith.constant 0 : i32
    %c0_i32_0 = arith.constant 0 : i32
    %c0_i32_1 = arith.constant 0 : i32
    return %arg0, %c0_i32, %c0_i32_0 : i32, i32, i32
  }
  func.func @transform_9(%arg0: i32) -> (i32, i32, i32) {
    %c0_i32 = arith.constant 0 : i32
    %c0_i32_0 = arith.constant 0 : i32
    %c0_i32_1 = arith.constant 0 : i32
    return %arg0, %c0_i32, %c0_i32_0 : i32, i32, i32
  }
  func.func @transform_10(%arg0: i32) -> (i32, i32, i32) {
    %c0_i32 = arith.constant 0 : i32
    %c0_i32_0 = arith.constant 0 : i32
    %c0_i32_1 = arith.constant 0 : i32
    return %arg0, %c0_i32, %c0_i32_0 : i32, i32, i32
  }
  func.func @transform_11(%arg0: i32) -> (i32, i32, i32) {
    %c0_i32 = arith.constant 0 : i32
    %c0_i32_0 = arith.constant 0 : i32
    %c0_i32_1 = arith.constant 0 : i32
    return %arg0, %c0_i32, %c0_i32_0 : i32, i32, i32
  }
  func.func @transform_12(%arg0: i32) -> (i32, i32, i32) {
    %c0_i32 = arith.constant 0 : i32
    %c0_i32_0 = arith.constant 0 : i32
    %c0_i32_1 = arith.constant 0 : i32
    return %arg0, %c0_i32, %c0_i32_0 : i32, i32, i32
  }
  func.func @transform_13(%arg0: i32) -> (i32, i32, i32) {
    %c0_i32 = arith.constant 0 : i32
    %c0_i32_0 = arith.constant 0 : i32
    %c0_i32_1 = arith.constant 0 : i32
    return %arg0, %c0_i32, %c0_i32_0 : i32, i32, i32
  }
  func.func @transform_14(%arg0: i32) -> (i32, i32, i32) {
    %c0_i32 = arith.constant 0 : i32
    %c0_i32_0 = arith.constant 0 : i32
    %c0_i32_1 = arith.constant 0 : i32
    return %arg0, %c0_i32, %c0_i32_0 : i32, i32, i32
  }
  func.func @transform_15(%arg0: i32) -> (i32, i32, i32) {
    %c0_i32 = arith.constant 0 : i32
    %c0_i32_0 = arith.constant 0 : i32
    %c0_i32_1 = arith.constant 0 : i32
    return %arg0, %c0_i32, %c0_i32_0 : i32, i32, i32
  }
  func.func @transform_16(%arg0: i32) -> (i32, i32, i32) {
    %c0_i32 = arith.constant 0 : i32
    %c0_i32_0 = arith.constant 0 : i32
    %c0_i32_1 = arith.constant 0 : i32
    return %arg0, %c0_i32, %c0_i32_0 : i32, i32, i32
  }
  func.func @transform_17(%arg0: i32) -> (i32, i32, i32) {
    %c0_i32 = arith.constant 0 : i32
    %c0_i32_0 = arith.constant 0 : i32
    %c0_i32_1 = arith.constant 0 : i32
    return %arg0, %c0_i32, %c0_i32_0 : i32, i32, i32
  }
  func.func @transform_18(%arg0: i32) -> (i32, i32, i32, i32) {
    %c1_i32 = arith.constant 1 : i32
    %0 = arith.subi %arg0, %c1_i32 : i32
    %c0_i32 = arith.constant 0 : i32
    %c2_i32 = arith.constant 2 : i32
    %1 = arith.maxsi %c0_i32, %0 : i32
    %2 = arith.minsi %c2_i32, %1 : i32
    %c0_i32_0 = arith.constant 0 : i32
    %c0_i32_1 = arith.constant 0 : i32
    %c0_i32_2 = arith.constant 0 : i32
    %c0_i32_3 = arith.constant 0 : i32
    return %2, %c0_i32_0, %c0_i32_1, %c0_i32_2 : i32, i32, i32, i32
  }
}

module attributes {stable_mosaic.version = 11 : i64} {
  func.func @_decoder_kernel(%arg0: i32, %arg1: memref<1x2x24x64xf32, #tpu.memory_space<vmem>>, %arg2: memref<2x32xf32, #tpu.memory_space<vmem>>, %arg3: memref<1x24xf32, #tpu.memory_space<vmem>>, %arg4: memref<32x32xf32, #tpu.memory_space<vmem>>, %arg5: memref<1x32xf32, #tpu.memory_space<vmem>>, %arg6: memref<32x32xf32, #tpu.memory_space<vmem>>, %arg7: memref<1x32xf32, #tpu.memory_space<vmem>>, %arg8: memref<1x64x32xbf16, #tpu.memory_space<vmem>>, %arg9: memref<1x1x32xf32, #tpu.memory_space<vmem>>, %arg10: memref<1x32x96xbf16, #tpu.memory_space<vmem>>, %arg11: memref<1x1x96xf32, #tpu.memory_space<vmem>>, %arg12: memref<1x32x32xbf16, #tpu.memory_space<vmem>>, %arg13: memref<1x1x32xf32, #tpu.memory_space<vmem>>, %arg14: memref<1x1x32xf32, #tpu.memory_space<vmem>>, %arg15: memref<1x1x32xf32, #tpu.memory_space<vmem>>, %arg16: memref<1x32x64xbf16, #tpu.memory_space<vmem>>, %arg17: memref<1x1x64xf32, #tpu.memory_space<vmem>>, %arg18: memref<1x64x32xbf16, #tpu.memory_space<vmem>>, %arg19: memref<1x1x32xf32, #tpu.memory_space<vmem>>, %arg20: memref<1x1x32xf32, #tpu.memory_space<vmem>>, %arg21: memref<1x1x32xf32, #tpu.memory_space<vmem>>, %arg22: memref<32x64xf32, #tpu.memory_space<vmem>>, %arg23: memref<1x1xf32, #tpu.memory_space<vmem>>, %arg24: memref<48x64xf32, #tpu.memory_space<vmem>>, %arg25: memref<48x32xf32, #tpu.memory_space<vmem>>) attributes {dimension_semantics = [#tpu.dimension_semantics<arbitrary>], iteration_bounds = array<i64: 3>, scalar_prefetch = 0 : i64, scratch_operands = 1 : i64, tpu.core_type = #tpu.core_type<tc>, window_params = [{transform_indices = @transform_0, window_bounds = array<i64: 1, 2, 24, 64>}, {pipeline_mode = #tpu.pipeline_mode<synchronous>, transform_indices = @transform_1, window_bounds = array<i64: 2, 32>}, {pipeline_mode = #tpu.pipeline_mode<synchronous>, transform_indices = @transform_2, window_bounds = array<i64: 1, 24>}, {pipeline_mode = #tpu.pipeline_mode<synchronous>, transform_indices = @transform_3, window_bounds = array<i64: 32, 32>}, {pipeline_mode = #tpu.pipeline_mode<synchronous>, transform_indices = @transform_4, window_bounds = array<i64: 1, 32>}, {pipeline_mode = #tpu.pipeline_mode<synchronous>, transform_indices = @transform_5, window_bounds = array<i64: 32, 32>}, {pipeline_mode = #tpu.pipeline_mode<synchronous>, transform_indices = @transform_6, window_bounds = array<i64: 1, 32>}, {transform_indices = @transform_7, window_bounds = array<i64: 1, 64, 32>}, {transform_indices = @transform_8, window_bounds = array<i64: 1, 1, 32>}, {transform_indices = @transform_9, window_bounds = array<i64: 1, 32, 96>}, {transform_indices = @transform_10, window_bounds = array<i64: 1, 1, 96>}, {transform_indices = @transform_11, window_bounds = array<i64: 1, 32, 32>}, {transform_indices = @transform_12, window_bounds = array<i64: 1, 1, 32>}, {transform_indices = @transform_13, window_bounds = array<i64: 1, 1, 32>}, {transform_indices = @transform_14, window_bounds = array<i64: 1, 1, 32>}, {transform_indices = @transform_15, window_bounds = array<i64: 1, 32, 64>}, {transform_indices = @transform_16, window_bounds = array<i64: 1, 1, 64>}, {transform_indices = @transform_17, window_bounds = array<i64: 1, 64, 32>}, {transform_indices = @transform_18, window_bounds = array<i64: 1, 1, 32>}, {transform_indices = @transform_19, window_bounds = array<i64: 1, 1, 32>}, {transform_indices = @transform_20, window_bounds = array<i64: 1, 1, 32>}, {pipeline_mode = #tpu.pipeline_mode<synchronous>, transform_indices = @transform_21, window_bounds = array<i64: 32, 64>}, {pipeline_mode = #tpu.pipeline_mode<synchronous>, transform_indices = @transform_22, window_bounds = array<i64: 1, 1>}, {pipeline_mode = #tpu.pipeline_mode<synchronous>, transform_indices = @transform_23, window_bounds = array<i64: 48, 64>}]} {
    %c0 = arith.constant 0 : index
    %c0_0 = arith.constant 0 : index
    %0 = vector.load %arg3[%c0, %c0_0] : memref<1x24xf32, #tpu.memory_space<vmem>>, vector<1x24xf32>
    %c0_1 = arith.constant 0 : index
    %c0_2 = arith.constant 0 : index
    %c0_3 = arith.constant 0 : index
    %c0_4 = arith.constant 0 : index
    %1 = vector.load %arg1[%c0_1, %c0_2, %c0_3, %c0_4] : memref<1x2x24x64xf32, #tpu.memory_space<vmem>>, vector<1x2x24x64xf32>
    %2 = vector.shape_cast %1 : vector<1x2x24x64xf32> to vector<2x24x64xf32>
    %3 = vector.shape_cast %2 : vector<2x24x64xf32> to vector<48x64xf32>
    %4 = arith.truncf %3 : vector<48x64xf32> to vector<48x64xbf16>
    %c0_5 = arith.constant 0 : index
    %c0_6 = arith.constant 0 : index
    %c0_7 = arith.constant 0 : index
    %5 = vector.load %arg8[%c0_5, %c0_6, %c0_7] : memref<1x64x32xbf16, #tpu.memory_space<vmem>>, vector<1x64x32xbf16>
    %6 = vector.shape_cast %5 : vector<1x64x32xbf16> to vector<64x32xbf16>
    %cst = arith.constant dense<0.000000e+00> : vector<48x32xf32>
    %7 = tpu.matmul %4, %6, %cst {dimension_numbers = #tpu.dot_dimension_numbers<[1], [0], [0], [1], [0, 0, 1, 1], [], []>} : vector<48x64xbf16>, vector<64x32xbf16>, vector<48x32xf32> -> vector<48x32xf32>
    %c0_8 = arith.constant 0 : index
    %c0_9 = arith.constant 0 : index
    %c0_10 = arith.constant 0 : index
    %8 = vector.load %arg9[%c0_8, %c0_9, %c0_10] : memref<1x1x32xf32, #tpu.memory_space<vmem>>, vector<1x1x32xf32>
    %9 = vector.shape_cast %8 : vector<1x1x32xf32> to vector<1x32xf32>
    %10 = vector.broadcast %9 : vector<1x32xf32> to vector<48x32xf32>
    %11 = arith.addf %7, %10 : vector<48x32xf32>
    %c0_i32 = arith.constant 0 : i32
    %12 = arith.cmpi eq, %arg0, %c0_i32 : i32
    %13 = arith.extui %12 : i1 to i32
    %c0_i32_11 = arith.constant 0 : i32
    %14 = arith.cmpi ne, %13, %c0_i32_11 : i32
    scf.if %14 {
      %c0_110 = arith.constant 0 : index
      %c0_111 = arith.constant 0 : index
      %268 = vector.load %arg2[%c0_110, %c0_111] : memref<2x32xf32, #tpu.memory_space<vmem>>, vector<2x32xf32>
      %c0_112 = arith.constant 0 : index
      %c0_113 = arith.constant 0 : index
      %269 = vector.load %arg4[%c0_112, %c0_113] : memref<32x32xf32, #tpu.memory_space<vmem>>, vector<32x32xf32>
      %cst_114 = arith.constant dense<0.000000e+00> : vector<2x32xf32>
      %270 = tpu.matmul %268, %269, %cst_114 {dimension_numbers = #tpu.dot_dimension_numbers<[1], [0], [0], [1], [0, 0, 1, 1], [], []>} : vector<2x32xf32>, vector<32x32xf32>, vector<2x32xf32> -> vector<2x32xf32>
      %c0_115 = arith.constant 0 : index
      %c0_116 = arith.constant 0 : index
      %271 = vector.load %arg5[%c0_115, %c0_116] : memref<1x32xf32, #tpu.memory_space<vmem>>, vector<1x32xf32>
      %272 = vector.broadcast %271 : vector<1x32xf32> to vector<2x32xf32>
      %273 = arith.addf %270, %272 : vector<2x32xf32>
      %c0_117 = arith.constant 0 : index
      %c0_118 = arith.constant 0 : index
      %274 = vector.load %arg6[%c0_117, %c0_118] : memref<32x32xf32, #tpu.memory_space<vmem>>, vector<32x32xf32>
      %cst_119 = arith.constant dense<0.000000e+00> : vector<2x32xf32>
      %275 = tpu.matmul %268, %274, %cst_119 {dimension_numbers = #tpu.dot_dimension_numbers<[1], [0], [0], [1], [0, 0, 1, 1], [], []>} : vector<2x32xf32>, vector<32x32xf32>, vector<2x32xf32> -> vector<2x32xf32>
      %c0_120 = arith.constant 0 : index
      %c0_121 = arith.constant 0 : index
      %276 = vector.load %arg7[%c0_120, %c0_121] : memref<1x32xf32, #tpu.memory_space<vmem>>, vector<1x32xf32>
      %277 = vector.broadcast %276 : vector<1x32xf32> to vector<2x32xf32>
      %278 = arith.addf %275, %277 : vector<2x32xf32>
      %279 = vector.extract_strided_slice %11 {offsets = [0, 0], sizes = [24, 32], strides = [1, 1]} : vector<48x32xf32> to vector<24x32xf32>
      %280 = vector.extract_strided_slice %273 {offsets = [0, 0], sizes = [1, 32], strides = [1, 1]} : vector<2x32xf32> to vector<1x32xf32>
      %281 = vector.broadcast %280 : vector<1x32xf32> to vector<24x32xf32>
      %282 = arith.mulf %281, %279 : vector<24x32xf32>
      %283 = vector.extract_strided_slice %278 {offsets = [0, 0], sizes = [1, 32], strides = [1, 1]} : vector<2x32xf32> to vector<1x32xf32>
      %284 = vector.broadcast %283 : vector<1x32xf32> to vector<24x32xf32>
      %285 = arith.addf %282, %284 : vector<24x32xf32>
      %286 = vector.extract_strided_slice %11 {offsets = [24, 0], sizes = [24, 32], strides = [1, 1]} : vector<48x32xf32> to vector<24x32xf32>
      %287 = vector.extract_strided_slice %273 {offsets = [1, 0], sizes = [1, 32], strides = [1, 1]} : vector<2x32xf32> to vector<1x32xf32>
      %288 = vector.broadcast %287 : vector<1x32xf32> to vector<24x32xf32>
      %289 = arith.mulf %288, %286 : vector<24x32xf32>
      %290 = vector.extract_strided_slice %278 {offsets = [1, 0], sizes = [1, 32], strides = [1, 1]} : vector<2x32xf32> to vector<1x32xf32>
      %291 = vector.broadcast %290 : vector<1x32xf32> to vector<24x32xf32>
      %292 = arith.addf %289, %291 : vector<24x32xf32>
      %293 = tpu.concatenate %285, %292 in 0 : vector<24x32xf32>, vector<24x32xf32> -> vector<48x32xf32>
      %c0_122 = arith.constant 0 : index
      %c0_123 = arith.constant 0 : index
      %294 = vector.load %arg25[%c0_122, %c0_123] : memref<48x32xf32, #tpu.memory_space<vmem>>, vector<48x32xf32>
      tpu.vector_store %arg25[%c0_122, %c0_123], %293 {strides = array<i32>} : memref<48x32xf32, #tpu.memory_space<vmem>>, vector<48x32xf32>,
    } else {
    }
    %c0_i32_12 = arith.constant 0 : i32
    %15 = arith.cmpi sgt, %arg0, %c0_i32_12 : i32
    %16 = arith.extui %15 : i1 to i32
    %c0_i32_13 = arith.constant 0 : i32
    %17 = arith.cmpi ne, %16, %c0_i32_13 : i32
    scf.if %17 {
      %c0_110 = arith.constant 0 : index
      %c0_111 = arith.constant 0 : index
      %268 = vector.load %arg25[%c0_110, %c0_111] : memref<48x32xf32, #tpu.memory_space<vmem>>, vector<48x32xf32>
      %269 = arith.addf %11, %268 : vector<48x32xf32>
      %c0_112 = arith.constant 0 : index
      %c0_113 = arith.constant 0 : index
      %270 = vector.load %arg25[%c0_112, %c0_113] : memref<48x32xf32, #tpu.memory_space<vmem>>, vector<48x32xf32>
      tpu.vector_store %arg25[%c0_112, %c0_113], %269 {strides = array<i32>} : memref<48x32xf32, #tpu.memory_space<vmem>>, vector<48x32xf32>,
    } else {
    }
    %c0_14 = arith.constant 0 : index
    %c0_15 = arith.constant 0 : index
    %18 = vector.load %arg25[%c0_14, %c0_15] : memref<48x32xf32, #tpu.memory_space<vmem>>, vector<48x32xf32>
    %c0_16 = arith.constant 0 : index
    %c0_17 = arith.constant 0 : index
    %c0_18 = arith.constant 0 : index
    %19 = vector.load %arg10[%c0_16, %c0_17, %c0_18] : memref<1x32x96xbf16, #tpu.memory_space<vmem>>, vector<1x32x96xbf16>
    %20 = vector.shape_cast %19 : vector<1x32x96xbf16> to vector<32x96xbf16>
    %c0_19 = arith.constant 0 : index
    %c0_20 = arith.constant 0 : index
    %c0_21 = arith.constant 0 : index
    %21 = vector.load %arg11[%c0_19, %c0_20, %c0_21] : memref<1x1x96xf32, #tpu.memory_space<vmem>>, vector<1x1x96xf32>
    %22 = vector.shape_cast %21 : vector<1x1x96xf32> to vector<1x96xf32>
    %c0_22 = arith.constant 0 : index
    %c0_23 = arith.constant 0 : index
    %c0_24 = arith.constant 0 : index
    %23 = vector.load %arg12[%c0_22, %c0_23, %c0_24] : memref<1x32x32xbf16, #tpu.memory_space<vmem>>, vector<1x32x32xbf16>
    %24 = vector.shape_cast %23 : vector<1x32x32xbf16> to vector<32x32xbf16>
    %c0_25 = arith.constant 0 : index
    %c0_26 = arith.constant 0 : index
    %c0_27 = arith.constant 0 : index
    %25 = vector.load %arg13[%c0_25, %c0_26, %c0_27] : memref<1x1x32xf32, #tpu.memory_space<vmem>>, vector<1x1x32xf32>
    %26 = vector.shape_cast %25 : vector<1x1x32xf32> to vector<1x32xf32>
    %27 = arith.truncf %18 : vector<48x32xf32> to vector<48x32xbf16>
    %cst_28 = arith.constant dense<0.000000e+00> : vector<48x96xf32>
    %28 = tpu.matmul %27, %20, %cst_28 {dimension_numbers = #tpu.dot_dimension_numbers<[1], [0], [0], [1], [0, 0, 1, 1], [], []>} : vector<48x32xbf16>, vector<32x96xbf16>, vector<48x96xf32> -> vector<48x96xf32>
    %29 = vector.broadcast %22 : vector<1x96xf32> to vector<48x96xf32>
    %30 = arith.addf %28, %29 : vector<48x96xf32>
    %31 = vector.extract_strided_slice %30 {offsets = [0, 0], sizes = [24, 96], strides = [1, 1]} : vector<48x96xf32> to vector<24x96xf32>
    %32 = vector.extract_strided_slice %31 {offsets = [0, 0], sizes = [24, 8], strides = [1, 1]} : vector<24x96xf32> to vector<24x8xf32>
    %cst_29 = arith.constant 0.353553385 : f32
    %33 = vector.broadcast %cst_29 : f32 to vector<24x8xf32>
    %34 = arith.mulf %32, %33 : vector<24x8xf32>
    %35 = vector.extract_strided_slice %31 {offsets = [0, 32], sizes = [24, 8], strides = [1, 1]} : vector<24x96xf32> to vector<24x8xf32>
    %36 = vector.extract_strided_slice %31 {offsets = [0, 64], sizes = [24, 8], strides = [1, 1]} : vector<24x96xf32> to vector<24x8xf32>
    "tpu.trace_start"() <{level = 10 : i32, message = "qd,kd->qk"}> : () -> ()
    %cst_30 = arith.constant dense<0.000000e+00> : vector<24x24xf32>
    %37 = tpu.matmul %34, %35, %cst_30 {dimension_numbers = #tpu.dot_dimension_numbers<[1], [1], [0], [0], [0, 0, 1, 0], [], []>} : vector<24x8xf32>, vector<24x8xf32>, vector<24x24xf32> -> vector<24x24xf32>
    "tpu.trace_stop"() : () -> ()
    %38 = vector.broadcast %0 : vector<1x24xf32> to vector<24x24xf32>
    %39 = arith.addf %37, %38 : vector<24x24xf32>
    %cst_31 = arith.constant dense<0xFF800000> : vector<24xf32>
    %40 = vector.multi_reduction <maximumf>, %39, %cst_31 [1] : vector<24x24xf32> to vector<24xf32>
    %41 = vector.shape_cast %40 : vector<24xf32> to vector<24x1xf32>
    %42 = vector.broadcast %41 : vector<24x1xf32> to vector<24x24xf32>
    %43 = arith.subf %39, %42 : vector<24x24xf32>
    %44 = math.exp %43 : vector<24x24xf32>
    %cst_32 = arith.constant dense<0.000000e+00> : vector<24xf32>
    %45 = vector.multi_reduction <add>, %44, %cst_32 [1] : vector<24x24xf32> to vector<24xf32>
    %46 = vector.shape_cast %45 : vector<24xf32> to vector<24x1xf32>
    %47 = tpu.reciprocal %46 {approx = true} : vector<24x1xf32> -> vector<24x1xf32>
    %48 = vector.broadcast %47 : vector<24x1xf32> to vector<24x24xf32>
    %49 = arith.mulf %44, %48 : vector<24x24xf32>
    %cst_33 = arith.constant dense<0.000000e+00> : vector<24x8xf32>
    %50 = tpu.matmul %49, %36, %cst_33 {dimension_numbers = #tpu.dot_dimension_numbers<[1], [0], [0], [1], [0, 0, 1, 1], [], []>} : vector<24x24xf32>, vector<24x8xf32>, vector<24x8xf32> -> vector<24x8xf32>
    %51 = vector.extract_strided_slice %31 {offsets = [0, 8], sizes = [24, 8], strides = [1, 1]} : vector<24x96xf32> to vector<24x8xf32>
    %cst_34 = arith.constant 0.353553385 : f32
    %52 = vector.broadcast %cst_34 : f32 to vector<24x8xf32>
    %53 = arith.mulf %51, %52 : vector<24x8xf32>
    %54 = vector.extract_strided_slice %31 {offsets = [0, 40], sizes = [24, 8], strides = [1, 1]} : vector<24x96xf32> to vector<24x8xf32>
    %55 = vector.extract_strided_slice %31 {offsets = [0, 72], sizes = [24, 8], strides = [1, 1]} : vector<24x96xf32> to vector<24x8xf32>
    "tpu.trace_start"() <{level = 10 : i32, message = "qd,kd->qk"}> : () -> ()
    %cst_35 = arith.constant dense<0.000000e+00> : vector<24x24xf32>
    %56 = tpu.matmul %53, %54, %cst_35 {dimension_numbers = #tpu.dot_dimension_numbers<[1], [1], [0], [0], [0, 0, 1, 0], [], []>} : vector<24x8xf32>, vector<24x8xf32>, vector<24x24xf32> -> vector<24x24xf32>
    "tpu.trace_stop"() : () -> ()
    %57 = vector.broadcast %0 : vector<1x24xf32> to vector<24x24xf32>
    %58 = arith.addf %56, %57 : vector<24x24xf32>
    %cst_36 = arith.constant dense<0xFF800000> : vector<24xf32>
    %59 = vector.multi_reduction <maximumf>, %58, %cst_36 [1] : vector<24x24xf32> to vector<24xf32>
    %60 = vector.shape_cast %59 : vector<24xf32> to vector<24x1xf32>
    %61 = vector.broadcast %60 : vector<24x1xf32> to vector<24x24xf32>
    %62 = arith.subf %58, %61 : vector<24x24xf32>
    %63 = math.exp %62 : vector<24x24xf32>
    %cst_37 = arith.constant dense<0.000000e+00> : vector<24xf32>
    %64 = vector.multi_reduction <add>, %63, %cst_37 [1] : vector<24x24xf32> to vector<24xf32>
    %65 = vector.shape_cast %64 : vector<24xf32> to vector<24x1xf32>
    %66 = tpu.reciprocal %65 {approx = true} : vector<24x1xf32> -> vector<24x1xf32>
    %67 = vector.broadcast %66 : vector<24x1xf32> to vector<24x24xf32>
    %68 = arith.mulf %63, %67 : vector<24x24xf32>
    %cst_38 = arith.constant dense<0.000000e+00> : vector<24x8xf32>
    %69 = tpu.matmul %68, %55, %cst_38 {dimension_numbers = #tpu.dot_dimension_numbers<[1], [0], [0], [1], [0, 0, 1, 1], [], []>} : vector<24x24xf32>, vector<24x8xf32>, vector<24x8xf32> -> vector<24x8xf32>
    %70 = vector.extract_strided_slice %31 {offsets = [0, 16], sizes = [24, 8], strides = [1, 1]} : vector<24x96xf32> to vector<24x8xf32>
    %cst_39 = arith.constant 0.353553385 : f32
    %71 = vector.broadcast %cst_39 : f32 to vector<24x8xf32>
    %72 = arith.mulf %70, %71 : vector<24x8xf32>
    %73 = vector.extract_strided_slice %31 {offsets = [0, 48], sizes = [24, 8], strides = [1, 1]} : vector<24x96xf32> to vector<24x8xf32>
    %74 = vector.extract_strided_slice %31 {offsets = [0, 80], sizes = [24, 8], strides = [1, 1]} : vector<24x96xf32> to vector<24x8xf32>
    "tpu.trace_start"() <{level = 10 : i32, message = "qd,kd->qk"}> : () -> ()
    %cst_40 = arith.constant dense<0.000000e+00> : vector<24x24xf32>
    %75 = tpu.matmul %72, %73, %cst_40 {dimension_numbers = #tpu.dot_dimension_numbers<[1], [1], [0], [0], [0, 0, 1, 0], [], []>} : vector<24x8xf32>, vector<24x8xf32>, vector<24x24xf32> -> vector<24x24xf32>
    "tpu.trace_stop"() : () -> ()
    %76 = vector.broadcast %0 : vector<1x24xf32> to vector<24x24xf32>
    %77 = arith.addf %75, %76 : vector<24x24xf32>
    %cst_41 = arith.constant dense<0xFF800000> : vector<24xf32>
    %78 = vector.multi_reduction <maximumf>, %77, %cst_41 [1] : vector<24x24xf32> to vector<24xf32>
    %79 = vector.shape_cast %78 : vector<24xf32> to vector<24x1xf32>
    %80 = vector.broadcast %79 : vector<24x1xf32> to vector<24x24xf32>
    %81 = arith.subf %77, %80 : vector<24x24xf32>
    %82 = math.exp %81 : vector<24x24xf32>
    %cst_42 = arith.constant dense<0.000000e+00> : vector<24xf32>
    %83 = vector.multi_reduction <add>, %82, %cst_42 [1] : vector<24x24xf32> to vector<24xf32>
    %84 = vector.shape_cast %83 : vector<24xf32> to vector<24x1xf32>
    %85 = tpu.reciprocal %84 {approx = true} : vector<24x1xf32> -> vector<24x1xf32>
    %86 = vector.broadcast %85 : vector<24x1xf32> to vector<24x24xf32>
    %87 = arith.mulf %82, %86 : vector<24x24xf32>
    %cst_43 = arith.constant dense<0.000000e+00> : vector<24x8xf32>
    %88 = tpu.matmul %87, %74, %cst_43 {dimension_numbers = #tpu.dot_dimension_numbers<[1], [0], [0], [1], [0, 0, 1, 1], [], []>} : vector<24x24xf32>, vector<24x8xf32>, vector<24x8xf32> -> vector<24x8xf32>
    %89 = vector.extract_strided_slice %31 {offsets = [0, 24], sizes = [24, 8], strides = [1, 1]} : vector<24x96xf32> to vector<24x8xf32>
    %cst_44 = arith.constant 0.353553385 : f32
    %90 = vector.broadcast %cst_44 : f32 to vector<24x8xf32>
    %91 = arith.mulf %89, %90 : vector<24x8xf32>
    %92 = vector.extract_strided_slice %31 {offsets = [0, 56], sizes = [24, 8], strides = [1, 1]} : vector<24x96xf32> to vector<24x8xf32>
    %93 = vector.extract_strided_slice %31 {offsets = [0, 88], sizes = [24, 8], strides = [1, 1]} : vector<24x96xf32> to vector<24x8xf32>
    "tpu.trace_start"() <{level = 10 : i32, message = "qd,kd->qk"}> : () -> ()
    %cst_45 = arith.constant dense<0.000000e+00> : vector<24x24xf32>
    %94 = tpu.matmul %91, %92, %cst_45 {dimension_numbers = #tpu.dot_dimension_numbers<[1], [1], [0], [0], [0, 0, 1, 0], [], []>} : vector<24x8xf32>, vector<24x8xf32>, vector<24x24xf32> -> vector<24x24xf32>
    "tpu.trace_stop"() : () -> ()
    %95 = vector.broadcast %0 : vector<1x24xf32> to vector<24x24xf32>
    %96 = arith.addf %94, %95 : vector<24x24xf32>
    %cst_46 = arith.constant dense<0xFF800000> : vector<24xf32>
    %97 = vector.multi_reduction <maximumf>, %96, %cst_46 [1] : vector<24x24xf32> to vector<24xf32>
    %98 = vector.shape_cast %97 : vector<24xf32> to vector<24x1xf32>
    %99 = vector.broadcast %98 : vector<24x1xf32> to vector<24x24xf32>
    %100 = arith.subf %96, %99 : vector<24x24xf32>
    %101 = math.exp %100 : vector<24x24xf32>
    %cst_47 = arith.constant dense<0.000000e+00> : vector<24xf32>
    %102 = vector.multi_reduction <add>, %101, %cst_47 [1] : vector<24x24xf32> to vector<24xf32>
    %103 = vector.shape_cast %102 : vector<24xf32> to vector<24x1xf32>
    %104 = tpu.reciprocal %103 {approx = true} : vector<24x1xf32> -> vector<24x1xf32>
    %105 = vector.broadcast %104 : vector<24x1xf32> to vector<24x24xf32>
    %106 = arith.mulf %101, %105 : vector<24x24xf32>
    %cst_48 = arith.constant dense<0.000000e+00> : vector<24x8xf32>
    %107 = tpu.matmul %106, %93, %cst_48 {dimension_numbers = #tpu.dot_dimension_numbers<[1], [0], [0], [1], [0, 0, 1, 1], [], []>} : vector<24x24xf32>, vector<24x8xf32>, vector<24x8xf32> -> vector<24x8xf32>
    %108 = tpu.concatenate %50, %69, %88, %107 in 1 : vector<24x8xf32>, vector<24x8xf32>, vector<24x8xf32>, vector<24x8xf32> -> vector<24x32xf32>
    %109 = vector.extract_strided_slice %30 {offsets = [24, 0], sizes = [24, 96], strides = [1, 1]} : vector<48x96xf32> to vector<24x96xf32>
    %110 = vector.extract_strided_slice %109 {offsets = [0, 0], sizes = [24, 8], strides = [1, 1]} : vector<24x96xf32> to vector<24x8xf32>
    %cst_49 = arith.constant 0.353553385 : f32
    %111 = vector.broadcast %cst_49 : f32 to vector<24x8xf32>
    %112 = arith.mulf %110, %111 : vector<24x8xf32>
    %113 = vector.extract_strided_slice %109 {offsets = [0, 32], sizes = [24, 8], strides = [1, 1]} : vector<24x96xf32> to vector<24x8xf32>
    %114 = vector.extract_strided_slice %109 {offsets = [0, 64], sizes = [24, 8], strides = [1, 1]} : vector<24x96xf32> to vector<24x8xf32>
    "tpu.trace_start"() <{level = 10 : i32, message = "qd,kd->qk"}> : () -> ()
    %cst_50 = arith.constant dense<0.000000e+00> : vector<24x24xf32>
    %115 = tpu.matmul %112, %113, %cst_50 {dimension_numbers = #tpu.dot_dimension_numbers<[1], [1], [0], [0], [0, 0, 1, 0], [], []>} : vector<24x8xf32>, vector<24x8xf32>, vector<24x24xf32> -> vector<24x24xf32>
    "tpu.trace_stop"() : () -> ()
    %116 = vector.broadcast %0 : vector<1x24xf32> to vector<24x24xf32>
    %117 = arith.addf %115, %116 : vector<24x24xf32>
    %cst_51 = arith.constant dense<0xFF800000> : vector<24xf32>
    %118 = vector.multi_reduction <maximumf>, %117, %cst_51 [1] : vector<24x24xf32> to vector<24xf32>
    %119 = vector.shape_cast %118 : vector<24xf32> to vector<24x1xf32>
    %120 = vector.broadcast %119 : vector<24x1xf32> to vector<24x24xf32>
    %121 = arith.subf %117, %120 : vector<24x24xf32>
    %122 = math.exp %121 : vector<24x24xf32>
    %cst_52 = arith.constant dense<0.000000e+00> : vector<24xf32>
    %123 = vector.multi_reduction <add>, %122, %cst_52 [1] : vector<24x24xf32> to vector<24xf32>
    %124 = vector.shape_cast %123 : vector<24xf32> to vector<24x1xf32>
    %125 = tpu.reciprocal %124 {approx = true} : vector<24x1xf32> -> vector<24x1xf32>
    %126 = vector.broadcast %125 : vector<24x1xf32> to vector<24x24xf32>
    %127 = arith.mulf %122, %126 : vector<24x24xf32>
    %cst_53 = arith.constant dense<0.000000e+00> : vector<24x8xf32>
    %128 = tpu.matmul %127, %114, %cst_53 {dimension_numbers = #tpu.dot_dimension_numbers<[1], [0], [0], [1], [0, 0, 1, 1], [], []>} : vector<24x24xf32>, vector<24x8xf32>, vector<24x8xf32> -> vector<24x8xf32>
    %129 = vector.extract_strided_slice %109 {offsets = [0, 8], sizes = [24, 8], strides = [1, 1]} : vector<24x96xf32> to vector<24x8xf32>
    %cst_54 = arith.constant 0.353553385 : f32
    %130 = vector.broadcast %cst_54 : f32 to vector<24x8xf32>
    %131 = arith.mulf %129, %130 : vector<24x8xf32>
    %132 = vector.extract_strided_slice %109 {offsets = [0, 40], sizes = [24, 8], strides = [1, 1]} : vector<24x96xf32> to vector<24x8xf32>
    %133 = vector.extract_strided_slice %109 {offsets = [0, 72], sizes = [24, 8], strides = [1, 1]} : vector<24x96xf32> to vector<24x8xf32>
    "tpu.trace_start"() <{level = 10 : i32, message = "qd,kd->qk"}> : () -> ()
    %cst_55 = arith.constant dense<0.000000e+00> : vector<24x24xf32>
    %134 = tpu.matmul %131, %132, %cst_55 {dimension_numbers = #tpu.dot_dimension_numbers<[1], [1], [0], [0], [0, 0, 1, 0], [], []>} : vector<24x8xf32>, vector<24x8xf32>, vector<24x24xf32> -> vector<24x24xf32>
    "tpu.trace_stop"() : () -> ()
    %135 = vector.broadcast %0 : vector<1x24xf32> to vector<24x24xf32>
    %136 = arith.addf %134, %135 : vector<24x24xf32>
    %cst_56 = arith.constant dense<0xFF800000> : vector<24xf32>
    %137 = vector.multi_reduction <maximumf>, %136, %cst_56 [1] : vector<24x24xf32> to vector<24xf32>
    %138 = vector.shape_cast %137 : vector<24xf32> to vector<24x1xf32>
    %139 = vector.broadcast %138 : vector<24x1xf32> to vector<24x24xf32>
    %140 = arith.subf %136, %139 : vector<24x24xf32>
    %141 = math.exp %140 : vector<24x24xf32>
    %cst_57 = arith.constant dense<0.000000e+00> : vector<24xf32>
    %142 = vector.multi_reduction <add>, %141, %cst_57 [1] : vector<24x24xf32> to vector<24xf32>
    %143 = vector.shape_cast %142 : vector<24xf32> to vector<24x1xf32>
    %144 = tpu.reciprocal %143 {approx = true} : vector<24x1xf32> -> vector<24x1xf32>
    %145 = vector.broadcast %144 : vector<24x1xf32> to vector<24x24xf32>
    %146 = arith.mulf %141, %145 : vector<24x24xf32>
    %cst_58 = arith.constant dense<0.000000e+00> : vector<24x8xf32>
    %147 = tpu.matmul %146, %133, %cst_58 {dimension_numbers = #tpu.dot_dimension_numbers<[1], [0], [0], [1], [0, 0, 1, 1], [], []>} : vector<24x24xf32>, vector<24x8xf32>, vector<24x8xf32> -> vector<24x8xf32>
    %148 = vector.extract_strided_slice %109 {offsets = [0, 16], sizes = [24, 8], strides = [1, 1]} : vector<24x96xf32> to vector<24x8xf32>
    %cst_59 = arith.constant 0.353553385 : f32
    %149 = vector.broadcast %cst_59 : f32 to vector<24x8xf32>
    %150 = arith.mulf %148, %149 : vector<24x8xf32>
    %151 = vector.extract_strided_slice %109 {offsets = [0, 48], sizes = [24, 8], strides = [1, 1]} : vector<24x96xf32> to vector<24x8xf32>
    %152 = vector.extract_strided_slice %109 {offsets = [0, 80], sizes = [24, 8], strides = [1, 1]} : vector<24x96xf32> to vector<24x8xf32>
    "tpu.trace_start"() <{level = 10 : i32, message = "qd,kd->qk"}> : () -> ()
    %cst_60 = arith.constant dense<0.000000e+00> : vector<24x24xf32>
    %153 = tpu.matmul %150, %151, %cst_60 {dimension_numbers = #tpu.dot_dimension_numbers<[1], [1], [0], [0], [0, 0, 1, 0], [], []>} : vector<24x8xf32>, vector<24x8xf32>, vector<24x24xf32> -> vector<24x24xf32>
    "tpu.trace_stop"() : () -> ()
    %154 = vector.broadcast %0 : vector<1x24xf32> to vector<24x24xf32>
    %155 = arith.addf %153, %154 : vector<24x24xf32>
    %cst_61 = arith.constant dense<0xFF800000> : vector<24xf32>
    %156 = vector.multi_reduction <maximumf>, %155, %cst_61 [1] : vector<24x24xf32> to vector<24xf32>
    %157 = vector.shape_cast %156 : vector<24xf32> to vector<24x1xf32>
    %158 = vector.broadcast %157 : vector<24x1xf32> to vector<24x24xf32>
    %159 = arith.subf %155, %158 : vector<24x24xf32>
    %160 = math.exp %159 : vector<24x24xf32>
    %cst_62 = arith.constant dense<0.000000e+00> : vector<24xf32>
    %161 = vector.multi_reduction <add>, %160, %cst_62 [1] : vector<24x24xf32> to vector<24xf32>
    %162 = vector.shape_cast %161 : vector<24xf32> to vector<24x1xf32>
    %163 = tpu.reciprocal %162 {approx = true} : vector<24x1xf32> -> vector<24x1xf32>
    %164 = vector.broadcast %163 : vector<24x1xf32> to vector<24x24xf32>
    %165 = arith.mulf %160, %164 : vector<24x24xf32>
    %cst_63 = arith.constant dense<0.000000e+00> : vector<24x8xf32>
    %166 = tpu.matmul %165, %152, %cst_63 {dimension_numbers = #tpu.dot_dimension_numbers<[1], [0], [0], [1], [0, 0, 1, 1], [], []>} : vector<24x24xf32>, vector<24x8xf32>, vector<24x8xf32> -> vector<24x8xf32>
    %167 = vector.extract_strided_slice %109 {offsets = [0, 24], sizes = [24, 8], strides = [1, 1]} : vector<24x96xf32> to vector<24x8xf32>
    %cst_64 = arith.constant 0.353553385 : f32
    %168 = vector.broadcast %cst_64 : f32 to vector<24x8xf32>
    %169 = arith.mulf %167, %168 : vector<24x8xf32>
    %170 = vector.extract_strided_slice %109 {offsets = [0, 56], sizes = [24, 8], strides = [1, 1]} : vector<24x96xf32> to vector<24x8xf32>
    %171 = vector.extract_strided_slice %109 {offsets = [0, 88], sizes = [24, 8], strides = [1, 1]} : vector<24x96xf32> to vector<24x8xf32>
    "tpu.trace_start"() <{level = 10 : i32, message = "qd,kd->qk"}> : () -> ()
    %cst_65 = arith.constant dense<0.000000e+00> : vector<24x24xf32>
    %172 = tpu.matmul %169, %170, %cst_65 {dimension_numbers = #tpu.dot_dimension_numbers<[1], [1], [0], [0], [0, 0, 1, 0], [], []>} : vector<24x8xf32>, vector<24x8xf32>, vector<24x24xf32> -> vector<24x24xf32>
    "tpu.trace_stop"() : () -> ()
    %173 = vector.broadcast %0 : vector<1x24xf32> to vector<24x24xf32>
    %174 = arith.addf %172, %173 : vector<24x24xf32>
    %cst_66 = arith.constant dense<0xFF800000> : vector<24xf32>
    %175 = vector.multi_reduction <maximumf>, %174, %cst_66 [1] : vector<24x24xf32> to vector<24xf32>
    %176 = vector.shape_cast %175 : vector<24xf32> to vector<24x1xf32>
    %177 = vector.broadcast %176 : vector<24x1xf32> to vector<24x24xf32>
    %178 = arith.subf %174, %177 : vector<24x24xf32>
    %179 = math.exp %178 : vector<24x24xf32>
    %cst_67 = arith.constant dense<0.000000e+00> : vector<24xf32>
    %180 = vector.multi_reduction <add>, %179, %cst_67 [1] : vector<24x24xf32> to vector<24xf32>
    %181 = vector.shape_cast %180 : vector<24xf32> to vector<24x1xf32>
    %182 = tpu.reciprocal %181 {approx = true} : vector<24x1xf32> -> vector<24x1xf32>
    %183 = vector.broadcast %182 : vector<24x1xf32> to vector<24x24xf32>
    %184 = arith.mulf %179, %183 : vector<24x24xf32>
    %cst_68 = arith.constant dense<0.000000e+00> : vector<24x8xf32>
    %185 = tpu.matmul %184, %171, %cst_68 {dimension_numbers = #tpu.dot_dimension_numbers<[1], [0], [0], [1], [0, 0, 1, 1], [], []>} : vector<24x24xf32>, vector<24x8xf32>, vector<24x8xf32> -> vector<24x8xf32>
    %186 = tpu.concatenate %128, %147, %166, %185 in 1 : vector<24x8xf32>, vector<24x8xf32>, vector<24x8xf32>, vector<24x8xf32> -> vector<24x32xf32>
    %187 = tpu.concatenate %108, %186 in 0 : vector<24x32xf32>, vector<24x32xf32> -> vector<48x32xf32>
    %188 = arith.truncf %187 : vector<48x32xf32> to vector<48x32xbf16>
    %cst_69 = arith.constant dense<0.000000e+00> : vector<48x32xf32>
    %189 = tpu.matmul %188, %24, %cst_69 {dimension_numbers = #tpu.dot_dimension_numbers<[1], [0], [0], [1], [0, 0, 1, 1], [], []>} : vector<48x32xbf16>, vector<32x32xbf16>, vector<48x32xf32> -> vector<48x32xf32>
    %190 = vector.broadcast %26 : vector<1x32xf32> to vector<48x32xf32>
    %191 = arith.addf %189, %190 : vector<48x32xf32>
    %192 = arith.addf %18, %191 : vector<48x32xf32>
    %c0_70 = arith.constant 0 : index
    %c0_71 = arith.constant 0 : index
    %c0_72 = arith.constant 0 : index
    %193 = vector.load %arg14[%c0_70, %c0_71, %c0_72] : memref<1x1x32xf32, #tpu.memory_space<vmem>>, vector<1x1x32xf32>
    %194 = vector.shape_cast %193 : vector<1x1x32xf32> to vector<1x32xf32>
    %c0_73 = arith.constant 0 : index
    %c0_74 = arith.constant 0 : index
    %c0_75 = arith.constant 0 : index
    %195 = vector.load %arg15[%c0_73, %c0_74, %c0_75] : memref<1x1x32xf32, #tpu.memory_space<vmem>>, vector<1x1x32xf32>
    %196 = vector.shape_cast %195 : vector<1x1x32xf32> to vector<1x32xf32>
    %cst_76 = arith.constant dense<0.000000e+00> : vector<48xf32>
    %197 = vector.multi_reduction <add>, %192, %cst_76 [1] : vector<48x32xf32> to vector<48xf32>
    %198 = vector.shape_cast %197 : vector<48xf32> to vector<48x1xf32>
    %cst_77 = arith.constant 3.200000e+01 : f32
    %199 = vector.broadcast %cst_77 : f32 to vector<48x1xf32>
    %200 = arith.divf %198, %199 : vector<48x1xf32>
    %201 = vector.broadcast %200 : vector<48x1xf32> to vector<48x32xf32>
    %202 = arith.subf %192, %201 : vector<48x32xf32>
    %203 = arith.mulf %202, %202 : vector<48x32xf32>
    %cst_78 = arith.constant dense<0.000000e+00> : vector<48xf32>
    %204 = vector.multi_reduction <add>, %203, %cst_78 [1] : vector<48x32xf32> to vector<48xf32>
    %205 = vector.shape_cast %204 : vector<48xf32> to vector<48x1xf32>
    %cst_79 = arith.constant 3.200000e+01 : f32
    %206 = vector.broadcast %cst_79 : f32 to vector<48x1xf32>
    %207 = arith.divf %205, %206 : vector<48x1xf32>
    %208 = vector.broadcast %200 : vector<48x1xf32> to vector<48x32xf32>
    %209 = arith.subf %192, %208 : vector<48x32xf32>
    %cst_80 = arith.constant 9.99999974E-6 : f32
    %210 = vector.broadcast %cst_80 : f32 to vector<48x1xf32>
    %211 = arith.addf %207, %210 : vector<48x1xf32>
    %212 = math.rsqrt %211 : vector<48x1xf32>
    %213 = vector.broadcast %212 : vector<48x1xf32> to vector<48x32xf32>
    %214 = arith.mulf %209, %213 : vector<48x32xf32>
    %215 = vector.broadcast %194 : vector<1x32xf32> to vector<48x32xf32>
    %216 = arith.mulf %214, %215 : vector<48x32xf32>
    %217 = vector.broadcast %196 : vector<1x32xf32> to vector<48x32xf32>
    %218 = arith.addf %216, %217 : vector<48x32xf32>
    %219 = arith.truncf %218 : vector<48x32xf32> to vector<48x32xbf16>
    %c0_81 = arith.constant 0 : index
    %c0_82 = arith.constant 0 : index
    %c0_83 = arith.constant 0 : index
    %220 = vector.load %arg16[%c0_81, %c0_82, %c0_83] : memref<1x32x64xbf16, #tpu.memory_space<vmem>>, vector<1x32x64xbf16>
    %221 = vector.shape_cast %220 : vector<1x32x64xbf16> to vector<32x64xbf16>
    %cst_84 = arith.constant dense<0.000000e+00> : vector<48x64xf32>
    %222 = tpu.matmul %219, %221, %cst_84 {dimension_numbers = #tpu.dot_dimension_numbers<[1], [0], [0], [1], [0, 0, 1, 1], [], []>} : vector<48x32xbf16>, vector<32x64xbf16>, vector<48x64xf32> -> vector<48x64xf32>
    %c0_85 = arith.constant 0 : index
    %c0_86 = arith.constant 0 : index
    %c0_87 = arith.constant 0 : index
    %223 = vector.load %arg17[%c0_85, %c0_86, %c0_87] : memref<1x1x64xf32, #tpu.memory_space<vmem>>, vector<1x1x64xf32>
    %224 = vector.shape_cast %223 : vector<1x1x64xf32> to vector<1x64xf32>
    %225 = vector.broadcast %224 : vector<1x64xf32> to vector<48x64xf32>
    %226 = arith.addf %222, %225 : vector<48x64xf32>
    %cst_88 = arith.constant 0.000000e+00 : f32
    %227 = vector.broadcast %cst_88 : f32 to vector<48x64xf32>
    %228 = arith.maximumf %226, %227 : vector<48x64xf32>
    %229 = arith.truncf %228 : vector<48x64xf32> to vector<48x64xbf16>
    %c0_89 = arith.constant 0 : index
    %c0_90 = arith.constant 0 : index
    %c0_91 = arith.constant 0 : index
    %230 = vector.load %arg18[%c0_89, %c0_90, %c0_91] : memref<1x64x32xbf16, #tpu.memory_space<vmem>>, vector<1x64x32xbf16>
    %231 = vector.shape_cast %230 : vector<1x64x32xbf16> to vector<64x32xbf16>
    %cst_92 = arith.constant dense<0.000000e+00> : vector<48x32xf32>
    %232 = tpu.matmul %229, %231, %cst_92 {dimension_numbers = #tpu.dot_dimension_numbers<[1], [0], [0], [1], [0, 0, 1, 1], [], []>} : vector<48x64xbf16>, vector<64x32xbf16>, vector<48x32xf32> -> vector<48x32xf32>
    %c0_93 = arith.constant 0 : index
    %c0_94 = arith.constant 0 : index
    %c0_95 = arith.constant 0 : index
    %233 = vector.load %arg19[%c0_93, %c0_94, %c0_95] : memref<1x1x32xf32, #tpu.memory_space<vmem>>, vector<1x1x32xf32>
    %234 = vector.shape_cast %233 : vector<1x1x32xf32> to vector<1x32xf32>
    %235 = vector.broadcast %234 : vector<1x32xf32> to vector<48x32xf32>
    %236 = arith.addf %232, %235 : vector<48x32xf32>
    %237 = arith.addf %218, %236 : vector<48x32xf32>
    %c0_96 = arith.constant 0 : index
    %c0_97 = arith.constant 0 : index
    %c0_98 = arith.constant 0 : index
    %238 = vector.load %arg20[%c0_96, %c0_97, %c0_98] : memref<1x1x32xf32, #tpu.memory_space<vmem>>, vector<1x1x32xf32>
    %239 = vector.shape_cast %238 : vector<1x1x32xf32> to vector<1x32xf32>
    %c0_99 = arith.constant 0 : index
    %c0_100 = arith.constant 0 : index
    %c0_101 = arith.constant 0 : index
    %240 = vector.load %arg21[%c0_99, %c0_100, %c0_101] : memref<1x1x32xf32, #tpu.memory_space<vmem>>, vector<1x1x32xf32>
    %241 = vector.shape_cast %240 : vector<1x1x32xf32> to vector<1x32xf32>
    %cst_102 = arith.constant dense<0.000000e+00> : vector<48xf32>
    %242 = vector.multi_reduction <add>, %237, %cst_102 [1] : vector<48x32xf32> to vector<48xf32>
    %243 = vector.shape_cast %242 : vector<48xf32> to vector<48x1xf32>
    %cst_103 = arith.constant 3.200000e+01 : f32
    %244 = vector.broadcast %cst_103 : f32 to vector<48x1xf32>
    %245 = arith.divf %243, %244 : vector<48x1xf32>
    %246 = vector.broadcast %245 : vector<48x1xf32> to vector<48x32xf32>
    %247 = arith.subf %237, %246 : vector<48x32xf32>
    %248 = arith.mulf %247, %247 : vector<48x32xf32>
    %cst_104 = arith.constant dense<0.000000e+00> : vector<48xf32>
    %249 = vector.multi_reduction <add>, %248, %cst_104 [1] : vector<48x32xf32> to vector<48xf32>
    %250 = vector.shape_cast %249 : vector<48xf32> to vector<48x1xf32>
    %cst_105 = arith.constant 3.200000e+01 : f32
    %251 = vector.broadcast %cst_105 : f32 to vector<48x1xf32>
    %252 = arith.divf %250, %251 : vector<48x1xf32>
    %253 = vector.broadcast %245 : vector<48x1xf32> to vector<48x32xf32>
    %254 = arith.subf %237, %253 : vector<48x32xf32>
    %cst_106 = arith.constant 9.99999974E-6 : f32
    %255 = vector.broadcast %cst_106 : f32 to vector<48x1xf32>
    %256 = arith.addf %252, %255 : vector<48x1xf32>
    %257 = math.rsqrt %256 : vector<48x1xf32>
    %258 = vector.broadcast %257 : vector<48x1xf32> to vector<48x32xf32>
    %259 = arith.mulf %254, %258 : vector<48x32xf32>
    %260 = vector.broadcast %239 : vector<1x32xf32> to vector<48x32xf32>
    %261 = arith.mulf %259, %260 : vector<48x32xf32>
    %262 = vector.broadcast %241 : vector<1x32xf32> to vector<48x32xf32>
    %263 = arith.addf %261, %262 : vector<48x32xf32>
    %c0_107 = arith.constant 0 : index
    %c0_108 = arith.constant 0 : index
    %264 = vector.load %arg25[%c0_107, %c0_108] : memref<48x32xf32, #tpu.memory_space<vmem>>, vector<48x32xf32>
    tpu.vector_store %arg25[%c0_107, %c0_108], %263 {strides = array<i32>} : memref<48x32xf32, #tpu.memory_space<vmem>>, vector<48x32xf32>,
    %c2_i32 = arith.constant 2 : i32
    %265 = arith.cmpi eq, %arg0, %c2_i32 : i32
    %266 = arith.extui %265 : i1 to i32
    %c0_i32_109 = arith.constant 0 : i32
    %267 = arith.cmpi ne, %266, %c0_i32_109 : i32
    scf.if %267 {
      %c0_110 = arith.constant 0 : index
      %c0_111 = arith.constant 0 : index
      %268 = vector.load %arg22[%c0_110, %c0_111] : memref<32x64xf32, #tpu.memory_space<vmem>>, vector<32x64xf32>
      %cst_112 = arith.constant dense<0.000000e+00> : vector<48x64xf32>
      %269 = tpu.matmul %263, %268, %cst_112 {dimension_numbers = #tpu.dot_dimension_numbers<[1], [0], [0], [1], [0, 0, 1, 1], [], []>} : vector<48x32xf32>, vector<32x64xf32>, vector<48x64xf32> -> vector<48x64xf32>
      %c0_113 = arith.constant 0 : index
      %c0_114 = arith.constant 0 : index
      %270 = vector.load %arg23[%c0_113, %c0_114] : memref<1x1xf32, #tpu.memory_space<vmem>>, vector<1x1xf32>
      %271 = vector.broadcast %270 : vector<1x1xf32> to vector<48x64xf32>
      %272 = arith.addf %269, %271 : vector<48x64xf32>
      %c0_115 = arith.constant 0 : index
      %c0_116 = arith.constant 0 : index
      %273 = vector.load %arg24[%c0_115, %c0_116] : memref<48x64xf32, #tpu.memory_space<vmem>>, vector<48x64xf32>
      tpu.vector_store %arg24[%c0_115, %c0_116], %272 {strides = array<i32>} : memref<48x64xf32, #tpu.memory_space<vmem>>, vector<48x64xf32>,
    } else {
    }
    return
  }
  func.func @transform_0(%arg0: i32) -> (i32, i32, i32, i32) {
    %c2_i32 = arith.constant 2 : i32
    %0 = arith.subi %c2_i32, %arg0 : i32
    %c0_i32 = arith.constant 0 : i32
    %c0_i32_0 = arith.constant 0 : i32
    %c0_i32_1 = arith.constant 0 : i32
    %c0_i32_2 = arith.constant 0 : i32
    return %0, %c0_i32, %c0_i32_0, %c0_i32_1 : i32, i32, i32, i32
  }
  func.func @transform_1(%arg0: i32) -> (i32, i32) {
    %c0_i32 = arith.constant 0 : i32
    %c0_i32_0 = arith.constant 0 : i32
    %c0_i32_1 = arith.constant 0 : i32
    return %c0_i32, %c0_i32_0 : i32, i32
  }
  func.func @transform_2(%arg0: i32) -> (i32, i32) {
    %c0_i32 = arith.constant 0 : i32
    %c0_i32_0 = arith.constant 0 : i32
    %c0_i32_1 = arith.constant 0 : i32
    return %c0_i32, %c0_i32_0 : i32, i32
  }
  func.func @transform_3(%arg0: i32) -> (i32, i32) {
    %c0_i32 = arith.constant 0 : i32
    %c0_i32_0 = arith.constant 0 : i32
    %c0_i32_1 = arith.constant 0 : i32
    return %c0_i32, %c0_i32_0 : i32, i32
  }
  func.func @transform_4(%arg0: i32) -> (i32, i32) {
    %c0_i32 = arith.constant 0 : i32
    %c0_i32_0 = arith.constant 0 : i32
    %c0_i32_1 = arith.constant 0 : i32
    return %c0_i32, %c0_i32_0 : i32, i32
  }
  func.func @transform_5(%arg0: i32) -> (i32, i32) {
    %c0_i32 = arith.constant 0 : i32
    %c0_i32_0 = arith.constant 0 : i32
    %c0_i32_1 = arith.constant 0 : i32
    return %c0_i32, %c0_i32_0 : i32, i32
  }
  func.func @transform_6(%arg0: i32) -> (i32, i32) {
    %c0_i32 = arith.constant 0 : i32
    %c0_i32_0 = arith.constant 0 : i32
    %c0_i32_1 = arith.constant 0 : i32
    return %c0_i32, %c0_i32_0 : i32, i32
  }
  func.func @transform_7(%arg0: i32) -> (i32, i32, i32) {
    %c0_i32 = arith.constant 0 : i32
    %c0_i32_0 = arith.constant 0 : i32
    %c0_i32_1 = arith.constant 0 : i32
    return %arg0, %c0_i32, %c0_i32_0 : i32, i32, i32
  }
  func.func @transform_8(%arg0: i32) -> (i32, i32, i32) {
    %c0_i32 = arith.constant 0 : i32
    %c0_i32_0 = arith.constant 0 : i32
    %c0_i32_1 = arith.constant 0 : i32
    return %arg0, %c0_i32, %c0_i32_0 : i32, i32, i32
  }
  func.func @transform_9(%arg0: i32) -> (i32, i32, i32) {
    %c0_i32 = arith.constant 0 : i32
    %c0_i32_0 = arith.constant 0 : i32
    %c0_i32_1 = arith.constant 0 : i32
    return %arg0, %c0_i32, %c0_i32_0 : i32, i32, i32
  }
  func.func @transform_10(%arg0: i32) -> (i32, i32, i32) {
    %c0_i32 = arith.constant 0 : i32
    %c0_i32_0 = arith.constant 0 : i32
    %c0_i32_1 = arith.constant 0 : i32
    return %arg0, %c0_i32, %c0_i32_0 : i32, i32, i32
  }
  func.func @transform_11(%arg0: i32) -> (i32, i32, i32) {
    %c0_i32 = arith.constant 0 : i32
    %c0_i32_0 = arith.constant 0 : i32
    %c0_i32_1 = arith.constant 0 : i32
    return %arg0, %c0_i32, %c0_i32_0 : i32, i32, i32
  }
  func.func @transform_12(%arg0: i32) -> (i32, i32, i32) {
    %c0_i32 = arith.constant 0 : i32
    %c0_i32_0 = arith.constant 0 : i32
    %c0_i32_1 = arith.constant 0 : i32
    return %arg0, %c0_i32, %c0_i32_0 : i32, i32, i32
  }
  func.func @transform_13(%arg0: i32) -> (i32, i32, i32) {
    %c0_i32 = arith.constant 0 : i32
    %c0_i32_0 = arith.constant 0 : i32
    %c0_i32_1 = arith.constant 0 : i32
    return %arg0, %c0_i32, %c0_i32_0 : i32, i32, i32
  }
  func.func @transform_14(%arg0: i32) -> (i32, i32, i32) {
    %c0_i32 = arith.constant 0 : i32
    %c0_i32_0 = arith.constant 0 : i32
    %c0_i32_1 = arith.constant 0 : i32
    return %arg0, %c0_i32, %c0_i32_0 : i32, i32, i32
  }
  func.func @transform_15(%arg0: i32) -> (i32, i32, i32) {
    %c0_i32 = arith.constant 0 : i32
    %c0_i32_0 = arith.constant 0 : i32
    %c0_i32_1 = arith.constant 0 : i32
    return %arg0, %c0_i32, %c0_i32_0 : i32, i32, i32
  }
  func.func @transform_16(%arg0: i32) -> (i32, i32, i32) {
    %c0_i32 = arith.constant 0 : i32
    %c0_i32_0 = arith.constant 0 : i32
    %c0_i32_1 = arith.constant 0 : i32
    return %arg0, %c0_i32, %c0_i32_0 : i32, i32, i32
  }
  func.func @transform_17(%arg0: i32) -> (i32, i32, i32) {
    %c0_i32 = arith.constant 0 : i32
    %c0_i32_0 = arith.constant 0 : i32
    %c0_i32_1 = arith.constant 0 : i32
    return %arg0, %c0_i32, %c0_i32_0 : i32, i32, i32
  }
  func.func @transform_18(%arg0: i32) -> (i32, i32, i32) {
    %c0_i32 = arith.constant 0 : i32
    %c0_i32_0 = arith.constant 0 : i32
    %c0_i32_1 = arith.constant 0 : i32
    return %arg0, %c0_i32, %c0_i32_0 : i32, i32, i32
  }
  func.func @transform_19(%arg0: i32) -> (i32, i32, i32) {
    %c0_i32 = arith.constant 0 : i32
    %c0_i32_0 = arith.constant 0 : i32
    %c0_i32_1 = arith.constant 0 : i32
    return %arg0, %c0_i32, %c0_i32_0 : i32, i32, i32
  }
  func.func @transform_20(%arg0: i32) -> (i32, i32, i32) {
    %c0_i32 = arith.constant 0 : i32
    %c0_i32_0 = arith.constant 0 : i32
    %c0_i32_1 = arith.constant 0 : i32
    return %arg0, %c0_i32, %c0_i32_0 : i32, i32, i32
  }
  func.func @transform_21(%arg0: i32) -> (i32, i32) {
    %c0_i32 = arith.constant 0 : i32
    %c0_i32_0 = arith.constant 0 : i32
    %c0_i32_1 = arith.constant 0 : i32
    return %c0_i32, %c0_i32_0 : i32, i32
  }
  func.func @transform_22(%arg0: i32) -> (i32, i32) {
    %c0_i32 = arith.constant 0 : i32
    %c0_i32_0 = arith.constant 0 : i32
    %c0_i32_1 = arith.constant 0 : i32
    return %c0_i32, %c0_i32_0 : i32, i32
  }
  func.func @transform_23(%arg0: i32) -> (i32, i32) {
    %c0_i32 = arith.constant 0 : i32
    %c0_i32_0 = arith.constant 0 : i32
    %c0_i32_1 = arith.constant 0 : i32
    return %c0_i32, %c0_i32_0 : i32, i32
  }
}

</mosaic_0001>

<bundles_post_ra>
// kernel: clip_dense_pred_t_forward.3
= control target key start
LH: loop header
LB: loop body
LE: loop exit
PB: predicated region body
PF: predicated region fallthrough
CT: control target
= control target key end

     0   :  { %s3683_s24 = smov 0   ;;  %s4676_s0 = inlined_call_operand.vmem [shape: f32[3,2,24,64], index: 0, kind: input, shape index: {}]   ;;  %s4677_s1 = inlined_call_operand.vmem [shape: f32[2,32], index: 1, kind: input, shape index: {}]   ;;  %s4678_s2 = inlined_call_operand.vmem [shape: f32[1,24], index: 2, kind: input, shape index: {}]   ;;  %s4679_s3 = inlined_call_operand.vmem [shape: f32[32,32], index: 3, kind: input, shape index: {}]   ;;  %s4680_s4 = inlined_call_operand.vmem [shape: f32[1,32], index: 4, kind: input, shape index: {}]   ;;  %s4681_s5 = inlined_call_operand.vmem [shape: f32[32,32], index: 5, kind: input, shape index: {}]   ;;  %s4682_s6 = inlined_call_operand.vmem [shape: f32[1,32], index: 6, kind: input, shape index: {}]   ;;  %s4683_s7 = inlined_call_operand.vmem [shape: bf16[3,64,32], index: 7, kind: input, shape index: {}]   ;;  %s4684_s8 = inlined_call_operand.vmem [shape: f32[3,1,32], index: 8, kind: input, shape index: {}]   ;;  %s4685_s9 = inlined_call_operand.vmem [shape: bf16[3,32,96], index: 9, kind: input, shape index: {}]   ;;  %s4686_s10 = inlined_call_operand.vmem [shape: f32[3,1,96], index: 10, kind: input, shape index: {}]   ;;  %s4687_s11 = inlined_call_operand.vmem [shape: bf16[3,32,32], index: 11, kind: input, shape index: {}]   ;;  %s4688_s12 = inlined_call_operand.vmem [shape: f32[3,1,32], index: 12, kind: input, shape index: {}]   ;;  %s4689_s13 = inlined_call_operand.vmem [shape: f32[3,1,32], index: 13, kind: input, shape index: {}]   ;;  %s4690_s14 = inlined_call_operand.vmem [shape: f32[3,1,32], index: 14, kind: input, shape index: {}]   ;;  %s4691_s15 = inlined_call_operand.vmem [shape: bf16[3,32,64], index: 15, kind: input, shape index: {}]   ;;  %s4692_s16 = inlined_call_operand.vmem [shape: f32[3,1,64], index: 16, kind: input, shape index: {}]   ;;  %s4693_s17 = inlined_call_operand.vmem [shape: bf16[3,64,32], index: 17, kind: input, shape index: {}]   ;;  %s4694_s18 = inlined_call_operand.vmem [shape: f32[3,1,32], index: 18, kind: input, shape index: {}]   ;;  %s4695_s19 = inlined_call_operand.vmem [shape: f32[3,1,32], index: 19, kind: input, shape index: {}]   ;;  %s4696_s20 = inlined_call_operand.vmem [shape: f32[3,1,32], index: 20, kind: input, shape index: {}]   ;;  %s4697_s21 = inlined_call_operand.vmem [shape: f32[32,64], index: 21, kind: input, shape index: {}]   ;;  %s4698_s22 = inlined_call_operand.<no memory space> [shape: f32[1,1], index: 22, kind: input, shape index: {}]   ;;  %s4699_s23 = inlined_call_operand.vmem [shape: f32[48,64], index: 23, kind: output, shape index: {}]  }
   0x1   :  { %4707 = sst [smem:[#allocation7_spill]] %s4676_s0  ;;  %v28_v0 = vstv %s4698_s22 }
   0x2   :  { %4708 = sst [smem:[#allocation8_spill]] %s4677_s1  ;;  %29 = vst [vmem:[#allocation3] sm:$0x1] %v28_v0 }
   0x3   :  { %4709 = sst [smem:[#allocation9_spill]] %s4678_s2 }
   0x4   :  { %4710 = sst [smem:[#allocation10_spill]] %s4679_s3 }
   0x5   :  { %4711 = sst [smem:[#allocation11_spill]] %s4680_s4 }
   0x6   :  { %4712 = sst [smem:[#allocation12_spill]] %s4681_s5 }
   0x7   :  { %4713 = sst [smem:[#allocation13_spill]] %s4682_s6 }
   0x8   :  { %4714 = sst [smem:[#allocation14_spill]] %s4683_s7 }
   0x9   :  { %4715 = sst [smem:[#allocation15_spill]] %s4685_s9 }
   0xa   :  { %4716 = sst [smem:[#allocation16_spill]] %s4687_s11 }
   0xb   :  { %4717 = sst [smem:[#allocation17_spill]] %s4691_s15 }
   0xc   :  { %4718 = sst [smem:[#allocation18_spill]] %s4697_s21 }
   0xd   :  { %4719 = sst [smem:[#allocation19_spill]] %s4699_s23 }
   0xe LB: > { %4720 = sst [smem:[#allocation4_spill]] %s3542_s24  ;;  %s3689_s25 = sadd.s32 4294967295, %s3542_s24   ;;  %s3542_s24 = sphi %s3683_s24, %s35_s24  }
   0xf   : > { %4721 = sst [smem:[#allocation5_spill]] %s3689_s25  ;;  %p3068_p0 = scmp.ge.s32.totalorder %s3542_s24, 1 }
  0x10   : > { %p760_p1 = scmp.lt.s32.totalorder %s3542_s24, 4 }
  0x12   : > { %p761_p2 = pnand %p3068_p0, %p760_p1 }
  0x14   : > { %764 = sbr.rel (%p761_p2) target bundleno = 2964 (0xb94), region = 112 }
  0x19   : > { %p879_p3 = scmp.lt.s32.totalorder %s3689_s25, 2  ;;  %s4722_s1 = sld [smem:[#allocation9_spill]]  ;;  %vm978_vm0 = vcmask 523264  }
  0x1a   : > { %s872_s26 = ssub.s32 2, %s3689_s25  ;;  %s4723_s29 = sld [smem:[#allocation14_spill]] }
  0x1b   : > { %p873_p4 = scmp.lt.s32.totalorder %s872_s26, 2  ;;  %s4724_s9 = sld [smem:[#allocation15_spill]] }
  0x1c   : > { %s3701_s2 = scalar_select %p879_p3, %s3689_s25, 2 }
  0x1d   : > { %s4747_s26 = smov (!%p873_p4, %s872_s26), 2  ;;  %s4726_s11 = sld [smem:[#allocation16_spill]] }
  0x1e   : > { %s3236_s6 = sshll.u32 %s3701_s2, 5  ;;  %s3237_s27 = sshll.u32 %s3701_s2, 4 }
  0x1f   : > { %v3697_v1 = vld [vmem:[%s4722_s1] sm:$0x1]  ;;  %s4727_s15 = sld [smem:[#allocation17_spill]]  ;;  %s916_s28 = scalar_lea.vmem %s4692_s16, %s3701_s2 }
  0x20   : > { %s883_s3 = scalar_lea.vmem %s4723_s29, %s3236_s6  ;;  %s3746_s0 = scalar_lea.vmem %s4693_s17, %s3236_s6 }
  0x21   : > { %s3711_s30 = scalar_lea.vmem %s4724_s9, %s3237_s27  ;;  %v3244_v2 = vld [vmem:[%s883_s3 + $0x18] sm:$0xff]  ;;  %v3243_v3 = vld [vmem:[%s883_s3 + $0x10] sm:$0xff]  ;;  %s927_s5 = scalar_lea.vmem %s4695_s19, %s3701_s2  ;;  %v3242_v4 = vld [vmem:[%s883_s3 + $0x8] sm:$0xff] }
  0x22   : > { %4725 = sst [smem:[#allocation6_spill]] %s3711_s30  ;;  %992 = vmatpush.bf16.msra.mxu0 %v3244_v2  ;;  %3255 = vmatpush.bf16.msra.mxu1 %v3244_v2  ;;  %s3275_s24 = smul.u32 48, %s4747_s26  ;;  %v3241_v5 = vld [vmem:[%s883_s3] sm:$0xff] }
  0x23   : > { %s3720_s21 = scalar_lea.vmem %s4726_s11, %s3237_s27  ;;  %3256 = vmatpush.bf16.msra.mxu2 %v3244_v2  ;;  %s886_s7 = scalar_lea.vmem %s4684_s8, %s3701_s2 }
  0x24   : > { %s4728_s30 = sld [smem:[#allocation7_spill]]  ;;  %v3300_v15 = vld [vmem:[%s886_s7] ss:$0 sm:$0xff] }
  0x25   : > { %s3737_s23 = scalar_lea.vmem %s4727_s15, %s3237_s27  ;;  %s930_s15 = scalar_lea.vmem %s4696_s20, %s3701_s2 }
  0x26   : > { %993 = vmatpush.bf16.msra.mxu0 %v3243_v3  ;;  %3257 = vmatpush.bf16.msra.mxu1 %v3243_v3  ;;  %s4729_s11 = sld [smem:[#allocation5_spill]] }
  0x27   : > { %3258 = vmatpush.bf16.msra.mxu2 %v3243_v3 }
  0x2a   : > { %s877_s22 = scalar_lea.vmem %s4728_s30, %s3275_s24  ;;  %994 = vmatpush.bf16.msra.mxu0 %v3242_v4  ;;  %3259 = vmatpush.bf16.msra.mxu1 %v3242_v4 }
  0x2b   : > { %v933_v6 = vld [vmem:[%s877_s22] sm:$0xff]  ;;  %v934_v7 = vld [vmem:[%s877_s22 + $0x8] sm:$0xff]  ;;  %v935_v8 = vld [vmem:[%s877_s22 + $0x10] sm:$0xff]  ;;  %3260 = vmatpush.bf16.msra.mxu2 %v3242_v4 }
  0x2c   : > { %v936_v9 = vld [vmem:[%s877_s22 + $0x18] sm:$0xff]  ;;  %v937_v10 = vld [vmem:[%s877_s22 + $0x20] sm:$0xff]  ;;  %v938_v11 = vld [vmem:[%s877_s22 + $0x28] sm:$0xff]  ;;  %v939_v12 = vpack.c.bf16 %v934_v7, %v933_v6  ;;  %p3099_p5 = scmp.ne.s32.totalorder %s4729_s11, 0 }
  0x2d   : > { %v940_v13 = vpack.c.bf16 %v936_v9, %v935_v8  ;;  %v941_v14 = vpack.c.bf16 %v938_v11, %v937_v10  ;;  %s4730_s4 = sld [smem:[#allocation10_spill]] (!%p3099_p5) }
  0x2e   : > { %995 = vmatpush.bf16.msra.mxu0 %v3241_v5  ;;  %3261 = vmatpush.bf16.msra.mxu1 %v3241_v5  ;;  %s4731_s29 = sld [smem:[#allocation12_spill]] (!%p3099_p5) }
  0x2f   : > { %3262 = vmatpush.bf16.msra.mxu2 %v3241_v5  ;;  %s4732_s6 = sld [smem:[#allocation8_spill]] (!%p3099_p5) }
  0x30   : > { %s4733_s9 = sld [smem:[#allocation11_spill]] (!%p3099_p5) }
  0x31   : > { %3096 = vmatmul.msk.bf16.vlgmr.msra.gmra.mxu0 %vm978_vm0, %v939_v12  ;;  %3097 = vmatmul.msk.bf16.vlgmr.msra.gmra.mxu1 %vm978_vm0, %v940_v13  ;;  %s4734_s26 = sld [smem:[#allocation13_spill]] (!%p3099_p5) }
  0x32   : > { %3098 = vmatmul.msk.bf16.vlgmr.msra.gmra.mxu2 %vm978_vm0, %v941_v14 }
  0xae   : > { %v997_v16 = vpop.f32.mrf.mxu0  ;;  %v1002_v17 = vpop.f32.mrf.mxu1 }
  0xaf   : > { %v3770_v18 = vadd.f32 %v3300_v15, %v997_v16  ;;  %v3772_v19 = vadd.f32 %v3300_v15, %v1002_v17 }
  0xb5   : > { %v1007_v20 = vpop.f32.mrf.mxu2 }
  0xb6   : > { %v3774_v21 = vadd.f32 %v3300_v15, %v1007_v20  ;;  %v999_v22 = vpop.f32.mrf.mxu0  ;;  %v1004_v23 = vpop.f32.mrf.mxu1 }
  0xb7   : > { %v1000_v24 = vadd.f32 %v3300_v15, %v999_v22  ;;  %v3776_v25 = vadd.f32 %v3300_v15, %v1004_v23 }
  0xba   : > { %1015 = sbr.rel (%p3099_p5) target bundleno = 339 (0x153), region = 116 }
  0xbd   : > { %v1009_v26 = vpop.f32.mrf.mxu2 }
  0xbe   : > { %v3778_v27 = vadd.f32 %v3300_v15, %v1009_v26 }
  0xbf   : > { %v1020_v28 = vld [vmem:[%s4730_s4 + $0x18] sm:$0xff]  ;;  %v1019_v29 = vld [vmem:[%s4730_s4 + $0x10] sm:$0xff]  ;;  %v1018_v32 = vld [vmem:[%s4730_s4 + $0x8] sm:$0xff]  ;;  %vm1025_vm1 = vcmask 261120  }
  0xc0   : > { %v1052_v30 = vld [vmem:[%s4731_s29 + $0x18] sm:$0xff]  ;;  %1041 = vmatpush.msra.mxu0 %v1020_v28  ;;  %v1051_v31 = vld [vmem:[%s4731_s29 + $0x10] sm:$0xff]  ;;  %v1050_v33 = vld [vmem:[%s4731_s29 + $0x8] sm:$0xff] }
  0xc1   : > { %1069 = vmatpush.msra.mxu1 %v1052_v30  ;;  %v1017_v34 = vld [vmem:[%s4730_s4] sm:$0xff] }
  0xc2   : > { %1042 = vmatpush.msra.mxu0 %v1019_v29  ;;  %v1049_v35 = vld [vmem:[%s4731_s29] sm:$0xff] }
  0xc3   : > { %1070 = vmatpush.msra.mxu1 %v1051_v31  ;;  %v1016_v36 = vld [vmem:[%s4732_s6] sm:$0x3] }
  0xc4   : > { %1043 = vmatpush.msra.mxu0 %v1018_v32  ;;  %v3301_v37 = vld [vmem:[%s4733_s9] ss:$0 sm:$0xff] }
  0xc5   : > { %1071 = vmatpush.msra.mxu1 %v1050_v33  ;;  %v3302_v38 = vld [vmem:[%s4734_s26] ss:$0 sm:$0xff] }
  0xc6   : > { %1044 = vmatpush.msra.mxu0 %v1017_v34 }
  0xc7   : > { %1072 = vmatpush.msra.mxu1 %v1049_v35  ;;  %3100 = vmatmul.msk.f32.vlgmr.msra.gmra.mxu0 %vm1025_vm1, %v1016_v36 }
  0xc8   : > { %3101 = vmatmul.msk.f32.vlgmr.msra.gmra.mxu1 %vm1025_vm1, %v1016_v36 }
 0x144   : > { %v1046_v39 = vpop.f32.mrf.mxu0 }
 0x145   : > { %v1074_v40 = vpop.f32.mrf.mxu1  ;;  %v1047_v41 = vadd.f32 %v3301_v37, %v1046_v39 }
 0x146   : > { %v1075_v42 = vadd.f32 %v3302_v38, %v1074_v40 }
 0x147   : > { %v1077_v43 = vperm.slane %v1047_v41, 0  ;;  %v1085_v44 = vperm.slane %v1047_v41, 1 }
 0x148   : > { %v1081_v45 = vperm.slane %v1075_v42, 0  ;;  %v1089_v46 = vperm.slane %v1075_v42, 1 }
 0x149   : > { %v1078_v47 = vmul.f32 %v1077_v43, %v3770_v18  ;;  %v1079_v48 = vmul.f32 %v1077_v43, %v1000_v24  ;;  %v1080_v49 = vmul.f32 %v1077_v43, %v3772_v19  ;;  %v1086_v50 = vmul.f32 %v1085_v44, %v3776_v25 }
 0x14a   : > { %v1087_v51 = vmul.f32 %v1085_v44, %v3774_v21  ;;  %v1088_v52 = vmul.f32 %v1085_v44, %v3778_v27 }
 0x14b   : > { %v1082_v53 = vadd.f32 %v1081_v45, %v1078_v47  ;;  %v1083_v54 = vadd.f32 %v1081_v45, %v1079_v48  ;;  %v1084_v55 = vadd.f32 %v1081_v45, %v1080_v49  ;;  %v1090_v56 = vadd.f32 %v1089_v46, %v1086_v50 }
 0x14c   : > { %v1091_v57 = vadd.f32 %v1089_v46, %v1087_v51  ;;  %v1092_v58 = vadd.f32 %v1089_v46, %v1088_v52 }
 0x14d   : > { %1093 = vst.msk [vmem:[#allocation2] sm:$0xff] %vm1025_vm1, %v1082_v53 }
 0x14e   : > { %1094 = vst.msk [vmem:[#allocation2 + $0x8] sm:$0xff] %vm1025_vm1, %v1083_v54 }
 0x14f   : > { %1095 = vst.msk [vmem:[#allocation2 + $0x10] sm:$0xff] %vm1025_vm1, %v1084_v55 }
 0x150   : > { %1096 = vst.msk [vmem:[#allocation2 + $0x18] sm:$0xff] %vm1025_vm1, %v1090_v56 }
 0x151   : > { %1097 = vst.msk [vmem:[#allocation2 + $0x20] sm:$0xff] %vm1025_vm1, %v1091_v57 }
 0x152   : > { %1098 = vst.msk [vmem:[#allocation2 + $0x28] sm:$0xff] %vm1025_vm1, %v1092_v58 }
 0x153 PF: > { %s4735_s3 = sld [smem:[#allocation5_spill]] }
 0x159   : > { %p3102_p6 = scmp.le.s32.totalorder %s4735_s3, 0 }
 0x15b   : > { %1102 = sbr.rel (%p3102_p6) target bundleno = 361 (0x169), region = 120 }
 0x160   : > { %v1103_v59 = vld [vmem:[#allocation2] sm:$0xff]  ;;  %vm1115_vm2 = vcmask 261120   ;;  %v1104_v60 = vld [vmem:[#allocation2 + $0x8] sm:$0xff]  ;;  %v1105_v61 = vld [vmem:[#allocation2 + $0x10] sm:$0xff] }
 0x161   : > { %v1109_v62 = vadd.f32 %v1103_v59, %v3770_v18  ;;  %v1110_v63 = vadd.f32 %v1104_v60, %v1000_v24  ;;  %v1111_v0 = vadd.f32 %v1105_v61, %v3772_v19  ;;  %v1106_v2 = vld [vmem:[#allocation2 + $0x18] sm:$0xff]  ;;  %v1107_v3 = vld [vmem:[#allocation2 + $0x20] sm:$0xff]  ;;  %v1108_v4 = vld [vmem:[#allocation2 + $0x28] sm:$0xff] }
 0x162   : > { %v1112_v5 = vadd.f32 %v1106_v2, %v3776_v25  ;;  %v1113_v6 = vadd.f32 %v1107_v3, %v3774_v21  ;;  %v1114_v7 = vadd.f32 %v1108_v4, %v3778_v27 }
 0x163   : > { %1116 = vst.msk [vmem:[#allocation2] sm:$0xff] %vm1115_vm2, %v1109_v62 }
 0x164   : > { %1117 = vst.msk [vmem:[#allocation2 + $0x8] sm:$0xff] %vm1115_vm2, %v1110_v63 }
 0x165   : > { %1118 = vst.msk [vmem:[#allocation2 + $0x10] sm:$0xff] %vm1115_vm2, %v1111_v0 }
 0x166   : > { %1119 = vst.msk [vmem:[#allocation2 + $0x18] sm:$0xff] %vm1115_vm2, %v1112_v5 }
 0x167   : > { %1120 = vst.msk [vmem:[#allocation2 + $0x20] sm:$0xff] %vm1115_vm2, %v1113_v6 }
 0x168   : > { %1121 = vst.msk [vmem:[#allocation2 + $0x28] sm:$0xff] %vm1115_vm2, %v1114_v7 }
 0x169 PF: > { %s4736_s22 = sld [smem:[#allocation6_spill]]  ;;  %vm1156_vm3 = vcmask 261120   ;;  %s4737_s24 = scalar_lea.vmem %s4686_s10, %s3701_s2  ;;  %vm1205_vm4 = vcmask 64512   ;;  %vm1247_vm5 = vcmask 195584   ;;  %vm1745_vm6 = vcmask 130048  }
 0x16a   : > { %v1122_v10 = vld [vmem:[#allocation2] sm:$0xff]  ;;  %s3544_s6 = smov 88   ;;  %s3545_s7 = smov 120  }
 0x16b   : > { %v1123_v11 = vld [vmem:[#allocation2 + $0x8] sm:$0xff]  ;;  %v3398_v19 = vld [vmem:[%s4737_s24] ss:$0 sm:$0xff]  ;;  %s3546_s25 = smov 96   ;;  %s3547_s9 = smov 80  }
 0x16c   : > { %v1138_v12 = vpack.c.bf16 %v1123_v11, %v1122_v10  ;;  %v1124_v13 = vld [vmem:[#allocation2 + $0x10] sm:$0xff]  ;;  %s3548_s30 = smov 56   ;;  %s3549_s11 = smov 104  }
 0x16d   : > { %v1125_v14 = vld [vmem:[#allocation2 + $0x18] sm:$0xff]  ;;  %s3550_s26 = smov 112   ;;  %s3551_s3 = smov 72  }
 0x16e   : > { %v1139_v15 = vpack.c.bf16 %v1125_v14, %v1124_v13  ;;  %v1126_v16 = vld [vmem:[#allocation2 + $0x20] sm:$0xff]  ;;  %v4001_v13 = vperm.slane %v3697_v1, 0  ;;  %s3553_s1 = smov 48   ;;  %s3554_s27 = smov 40  }
 0x16f   : > { %v3246_v8 = vld [vmem:[%s4736_s22 + $0x8] sm:$0xff]  ;;  %v3245_v9 = vld [vmem:[%s4736_s22] sm:$0xff]  ;;  %s3552_s22 = smov 64   ;;  %s3555_s24 = smov 8  }
 0x170   : > { %1172 = vmatpush.bf16.msra.mxu0 %v3246_v8  ;;  %v1127_v17 = vld [vmem:[#allocation2 + $0x28] sm:$0xff] }
 0x171   : > { %v1140_v18 = vpack.c.bf16 %v1127_v17, %v1126_v16 }
 0x174   : > { %1173 = vmatpush.bf16.msra.mxu0 %v3245_v9 }
 0x177   : > { %3111 = vmatmul.msk.bf16.vlgmr.msra.gmra.mxu0 %vm1156_vm3, %v1138_v12 }
 0x187   : > { %3112 = vmatmul.msk.bf16.gmra.mxu0 %vm1156_vm3, %v1139_v15 }
 0x197   : > { %3113 = vmatmul.msk.bf16.gmra.mxu0 %vm1156_vm3, %v1140_v18 }
 0x1f4   : > { %v1175_v20 = vpop.f32.mrf.mxu0 }
 0x1f5   : > { %v3849_v21 = vadd.f32 %v3398_v19, %v1175_v20 }
 0x1f7   : > { %1331 = vrot.lane.b32.xlu1 %v3849_v21, %s3544_s6  ;;  %v3854_v24 = vmul.f32 0.35355338, %v3849_v21 }
 0x1fc   : > { %v1177_v22 = vpop.f32.mrf.mxu0 }
 0x1fd   : > { %v1178_v23 = vadd.f32 %v3398_v19, %v1177_v22 }
 0x1ff   : > { %1325 = vrot.lane.b32.xlu1 %v3854_v24, %s3545_s7  ;;  %v3858_v25 = vmul.f32 0.35355338, %v1178_v23 }
 0x201   : > { %1327 = vrot.lane.b32.xlu2 %v3858_v25, %s3545_s7 }
 0x204   : > { %v1180_v26 = vpop.f32.mrf.mxu0 }
 0x205   : > { %v1181_v27 = vadd.f32 %v3398_v19, %v1180_v26 }
 0x207   : > { %1335 = vrot.lane.b32.xlu0 %v1181_v27, %s3544_s6  ;;  %1201 = vrot.lane.b32.xlu1 %v1178_v23, %s3546_s25  ;;  %v3864_v28 = vmul.f32 0.35355338, %v1181_v27  ;;  %v3866_v29 = vpack.i.bf16 %v1178_v23, %v1181_v27 }
 0x209   : > { %1329 = vrot.lane.b32.xlu2 %v3864_v28, %s3545_s7 }
 0x20c   : > { %v1182_v30 = vpop.f32.mrf.mxu0 }
 0x20d   : > { %v3880_v31 = vadd.f32 %v3398_v19, %v1182_v30 }
 0x20f   : > { %1333 = vrot.lane.b32.xlu0 %v1178_v23, %s3544_s6  ;;  %1458 = vrot.lane.b32.xlu1 %v3849_v21, %s3547_s9  ;;  %v3931_v41 = vmul.f32 0.35355338, %v3880_v31 }
 0x211   : > { %1203 = vrot.lane.b32.xlu2 %v1181_v27, %s3546_s25 }
 0x214   : > { %v1185_v32 = vpop.f32.mrf.mxu0 }
 0x215   : > { %v3891_v33 = vadd.f32 %v3398_v19, %v1185_v32 }
 0x217   : > { %3304 = vrot.lane.b32.xlu0 %v3866_v29, %s3548_s30  ;;  %1583 = vrot.lane.b32.xlu1 %v3864_v28, %s3549_s11  ;;  %v3896_v34 = vmul.f32 0.35355338, %v3891_v33 }
 0x219   : > { %1199 = vrot.lane.b32.xlu2 %v3849_v21, %s3546_s25 }
 0x21c   : > { %v1187_v35 = vpop.f32.mrf.mxu0 }
 0x21d   : > { %v3903_v36 = vadd.f32 %v3398_v19, %v1187_v35 }
 0x21f   : > { %1408 = vrot.lane.b32.xlu0 %v3849_v21, %s3548_s30  ;;  %1758 = vrot.lane.b32.xlu1 %v3880_v31, %s3546_s25  ;;  %v3979_v6 = vmul.f32 0.35355338, %v3903_v36 }
 0x221   : > { %1452 = vrot.lane.b32.xlu2 %v3854_v24, %s3550_s26 }
 0x227   : > { %1462 = vrot.lane.b32.xlu0 %v1181_v27, %s3547_s9  ;;  %2015 = vrot.lane.b32.xlu1 %v3880_v31, %s3547_s9 }
 0x229   : > { %1888 = vrot.lane.b32.xlu2 %v3880_v31, %s3544_s6 }
 0x22f   : > { %1589 = vrot.lane.b32.xlu0 %v1181_v27, %s3551_s3  ;;  %1884 = vrot.lane.b32.xlu1 %v3896_v34, %s3545_s7 }
 0x231   : > { %2142 = vrot.lane.b32.xlu2 %v3880_v31, %s3551_s3 }
 0x237   : > { %1460 = vrot.lane.b32.xlu0 %v1178_v23, %s3547_s9  ;;  %1762 = vrot.lane.b32.xlu1 %v3903_v36, %s3546_s25 }
 0x239   : > { %1760 = vrot.lane.b32.xlu2 %v3891_v33, %s3546_s25 }
 0x23f   : > { %1587 = vrot.lane.b32.xlu0 %v1178_v23, %s3551_s3  ;;  %1886 = vrot.lane.b32.xlu1 %v3979_v6, %s3545_s7 }
 0x241   : > { %2017 = vrot.lane.b32.xlu2 %v3891_v33, %s3547_s9 }
 0x247   : > { %1585 = vrot.lane.b32.xlu0 %v3849_v21, %s3551_s3 }
 0x249   : > { %1892 = vrot.lane.b32.xlu2 %v3903_v36, %s3544_s6 }
 0x24f   : > { %1579 = vrot.lane.b32.xlu0 %v3854_v24, %s3549_s11 }
 0x251   : > { %2019 = vrot.lane.b32.xlu2 %v3903_v36, %s3547_s9  ;;  %s4738_s9 = scalar_lea.vmem %s4688_s12, %s3701_s2 }
 0x257   : > { %1454 = vrot.lane.b32.xlu0 %v3858_v25, %s3550_s26 }
 0x259   : > { %2011 = vrot.lane.b32.xlu2 %v3896_v34, %s3550_s26 }
 0x25b   : > { %v1328_v37 = vpop.permute.xlu2 %1327 }
 0x25f   : > { %1581 = vrot.lane.b32.xlu0 %v3858_v25, %s3549_s11 }
 0x263   : > { %v1330_v38 = vpop.permute.xlu2 %1329 }
 0x267   : > { %1456 = vrot.lane.b32.xlu0 %v3864_v28, %s3550_s26 }
 0x269   : > { %v1332_v39 = vpop.permute.xlu1 %1331 }
 0x26b   : > { %v1204_v40 = vpop.permute.xlu2 %1203 }
 0x26c   : > { %3114 = vmatpush.xpose.msk.msra.mxu1 %vm1205_vm4, %v1204_v40 }
 0x26f   : > { %1882 = vrot.lane.b32.xlu0 %v3931_v41, %s3545_s7  ;;  %s3557_s7 = smov 24  }
 0x271   : > { %v1326_v42 = vpop.permute.xlu1 %1325 }
 0x273   : > { %v1200_v43 = vpop.permute.xlu2 %1199 }
 0x277   : > { %2009 = vrot.lane.b32.xlu0 %v3931_v41, %s3550_s26 }
 0x279   : > { %v1336_v44 = vpop.permute.xlu0 %1335  ;;  %v1202_v45 = vpop.permute.xlu1 %1201 }
 0x27a   : > { %3115 = vmatpush.xpose.msk.msra.mxu1 %vm1205_vm4, %v1202_v45  ;;  %3123 = vmatpush.xpose.msk.msra.mxu3 %vm1205_vm4, %v1336_v44 }
 0x27b   : > { %v1453_v46 = vpop.permute.xlu2 %1452 }
 0x27e   : > { %3116 = vmatpush.xpose.msk.msra.mxu1 %vm1205_vm4, %v1200_v43 }
 0x27f   : > { %1890 = vrot.lane.b32.xlu0 %v3891_v33, %s3544_s6  ;;  %s3556_s6 = smov 16  }
 0x281   : > { %v1334_v47 = vpop.permute.xlu0 %1333  ;;  %3117 = vmatmul.msk.f32.vlgmr.msra.gmra.mxu1 %vm1205_vm4, %v3854_v24  ;;  %v1459_v48 = vpop.permute.xlu1 %1458 }
 0x282   : > { %3124 = vmatpush.xpose.msk.msra.mxu3 %vm1205_vm4, %v1334_v47 }
 0x283   : > { %v3945_v49 = vpop.permute.xlu2 %1888 }
 0x286   : > { %3125 = vmatpush.xpose.msk.msra.mxu3 %vm1205_vm4, %v1332_v39 }
 0x287   : > { %2144 = vrot.lane.b32.xlu0 %v3891_v33, %s3551_s3 }
 0x289   : > { %v3305_v50 = vpop.permute.xlu0 %3304  ;;  %3118 = vmatmul.msk.f32.gmra.mxu1 %vm1205_vm4, %v3858_v25  ;;  %3126 = vmatmul.msk.f32.vlgmr.msra.gmra.mxu3 %vm1205_vm4, %v1326_v42  ;;  %v3953_v51 = vpop.permute.xlu1 %1583 }
 0x28a   : > { %v3306_v52 = vunpack.i.l.bf16 %v3305_v50  ;;  %v3307_v53 = vunpack.i.h.bf16 %v3305_v50 }
 0x28b   : > { %v3955_v54 = vpop.permute.xlu2 %2142 }
 0x28c   : > { %1439 = vmatpush.msra.mxu2 %v3306_v52 }
 0x28e   : > { %1440 = vmatpush.msra.mxu2 %v3307_v53 }
 0x28f   : > { %2146 = vrot.lane.b32.xlu0 %v3903_v36, %s3551_s3 }
 0x291   : > { %v1409_v55 = vpop.permute.xlu0 %1408  ;;  %3119 = vmatmul.msk.f32.gmra.mxu1 %vm1205_vm4, %v3864_v28  ;;  %3127 = vmatmul.msk.f32.gmra.mxu3 %vm1205_vm4, %v1328_v37  ;;  %v1759_v56 = vpop.permute.xlu1 %1758 }
 0x292   : > { %1441 = vmatpush.msra.mxu2 %v1409_v55 }
 0x293   : > { %v1761_v57 = vpop.permute.xlu2 %1760 }
 0x299   : > { %v1463_v58 = vpop.permute.xlu0 %1462  ;;  %3128 = vmatmul.msk.f32.gmra.mxu3 %vm1205_vm4, %v1330_v38  ;;  %v2016_v59 = vpop.permute.xlu1 %2015 }
 0x29a   : > { %3132 = vmatpush.xpose.msk.msrb.mxu1 %vm1205_vm4, %v1463_v58 }
 0x29b   : > { %v2018_v61 = vpop.permute.xlu2 %2017 }
 0x2a1   : > { %v1590_v60 = vpop.permute.xlu0 %1589  ;;  %v3965_v62 = vpop.permute.xlu1 %1884 }
 0x2a2   : > { %3141 = vmatpush.xpose.msk.msrb.mxu2 %vm1205_vm4, %v1590_v60 }
 0x2a3   : > { %v3968_v0 = vpop.permute.xlu2 %1892 }
 0x2a9   : > { %v1461_v63 = vpop.permute.xlu0 %1460  ;;  %v1763_v2 = vpop.permute.xlu1 %1762 }
 0x2aa   : > { %3133 = vmatpush.xpose.msk.msrb.mxu1 %vm1205_vm4, %v1461_v63 }
 0x2ab   : > { %v2020_v4 = vpop.permute.xlu2 %2019 }
 0x2ae   : > { %3134 = vmatpush.xpose.msk.msrb.mxu1 %vm1205_vm4, %v1459_v48 }
 0x2b1   : > { %v1588_v3 = vpop.permute.xlu0 %1587  ;;  %3135 = vmatmul.msk.f32.vlgmr.msrb.gmra.mxu1 %vm1205_vm4, %v1453_v46  ;;  %v4029_v40 = vpop.permute.xlu1 %1886 }
 0x2b2   : > { %3150 = vmatpush.xpose.msk.msra.mxu1 %vm1205_vm4, %v1763_v2  ;;  %3142 = vmatpush.xpose.msk.msrb.mxu2 %vm1205_vm4, %v1588_v3 }
 0x2b3   : > { %v2012_v17 = vpop.permute.xlu2 %2011 }
 0x2b6   : > { %3151 = vmatpush.xpose.msk.msra.mxu1 %vm1205_vm4, %v1761_v57 }
 0x2b9   : > { %v1586_v5 = vpop.permute.xlu0 %1585 }
 0x2ba   : > { %3152 = vmatpush.xpose.msk.msra.mxu1 %vm1205_vm4, %v1759_v56  ;;  %3143 = vmatpush.xpose.msk.msrb.mxu2 %vm1205_vm4, %v1586_v5 }
 0x2be   : > { %3168 = vmatpush.xpose.msk.msrb.mxu1 %vm1205_vm4, %v2020_v4 }
 0x2c1   : > { %v3985_v7 = vpop.permute.xlu0 %1579 }
 0x2c2   : > { %3169 = vmatpush.xpose.msk.msrb.mxu1 %vm1205_vm4, %v2018_v61 }
 0x2c6   : > { %3170 = vmatpush.xpose.msk.msrb.mxu1 %vm1205_vm4, %v2016_v59 }
 0x2c9   : > { %v1455_v8 = vpop.permute.xlu0 %1454 }
 0x2ca   : > { %3136 = vmatmul.msk.f32.gmra.mxu1 %vm1205_vm4, %v1455_v8 }
 0x2d1   : > { %v3988_v9 = vpop.permute.xlu0 %1581 }
 0x2d9   : > { %v1457_v10 = vpop.permute.xlu0 %1456 }
 0x2da   : > { %3137 = vmatmul.msk.f32.gmra.mxu1 %vm1205_vm4, %v1457_v10 }
 0x2e1   : > { %v3995_v11 = vpop.permute.xlu0 %1882 }
 0x2e2   : > { %3153 = vmatmul.msk.f32.vlgmr.msra.gmra.mxu1 %vm1205_vm4, %v3931_v41 }
 0x2e9   : > { %v2010_v12 = vpop.permute.xlu0 %2009 }
 0x2ea   : > { %3154 = vmatmul.msk.f32.gmra.mxu1 %vm1205_vm4, %v3896_v34 }
 0x2f2   : > { %3155 = vmatmul.msk.f32.gmra.mxu1 %vm1205_vm4, %v3979_v6 }
 0x2fa   : > { %3171 = vmatmul.msk.f32.vlgmr.msrb.gmra.mxu1 %vm1205_vm4, %v2010_v12 }
 0x2fe   : > { %v1238_v24 = vpop.f32.mrf.mxu1 }
 0x2ff   : > { %v1239_v52 = vadd.f32 %v1238_v24, %v4001_v13  ;;  %v3323_v24 = vpack.i.bf16 %v3903_v36, %v3849_v21 }
 0x301   : > { %v1248_v59 = vsel %vm1247_vm5, %v1239_v52, -inf }
 0x302   : > { %3172 = vmatmul.msk.f32.gmra.mxu1 %vm1205_vm4, %v2012_v17 }
 0x306   : > { %v1241_v25 = vpop.f32.mrf.mxu1 }
 0x30c   : > { %v1366_v14 = vpop.f32.mrf.mxu3 }
 0x30d   : > { %v1367_v15 = vadd.f32 %v1366_v14, %v4001_v13 }
 0x30e   : > { %v1244_v26 = vpop.f32.mrf.mxu1 }
 0x30f   : > { %v1375_v16 = vsel %vm1247_vm5, %v1367_v15, -inf  ;;  %v1245_v28 = vadd.f32 %v1244_v26, %v4001_v13 }
 0x310   : > { %1376 = vmax.xlane.f32.xlu0 %v1375_v16  ;;  %v4058_v16 = vadd.f32 %v1241_v25, %v4001_v13 }
 0x311   : > { %v1254_v30 = vsel %vm1247_vm5, %v1245_v28, -inf }
 0x314   : > { %v1369_v18 = vpop.f32.mrf.mxu3 }
 0x315   : > { %v1370_v19 = vadd.f32 %v1369_v18, %v4001_v13  ;;  %v1251_v18 = vsel %vm1247_vm5, %v4058_v16, -inf }
 0x317   : > { %v1378_v20 = vsel %vm1247_vm5, %v1370_v19, -inf }
 0x318   : > { %1379 = vmax.xlane.f32.xlu1 %v1378_v20 }
 0x31c   : > { %v1372_v22 = vpop.f32.mrf.mxu3 }
 0x31d   : > { %v1373_v1 = vadd.f32 %v1372_v22, %v4001_v13 }
 0x31f   : > { %v1381_v23 = vsel %vm1247_vm5, %v1373_v1, -inf }
 0x320   : > { %1382 = vmax.xlane.f32.xlu2 %v1381_v23 }
 0x324   : > { %2138 = vrot.lane.b32.xlu0 %v3896_v34, %s3549_s11  ;;  %v4021_v34 = vpop.permute.xlu0 %1890 }
 0x32c   : > { %v4025_v38 = vpop.permute.xlu0 %2144 }
 0x32e   : > { %v1493_v27 = vpop.f32.mrf.mxu1 }
 0x32f   : > { %v4036_v61 = vadd.f32 %v1493_v27, %v4001_v13 }
 0x331   : > { %2136 = vrot.lane.b32.xlu1 %v3931_v41, %s3549_s11  ;;  %v1502_v3 = vsel %vm1247_vm5, %v4036_v61, -inf }
 0x334   : > { %v4027_v39 = vpop.permute.xlu0 %2146 }
 0x338   : > { %2140 = vrot.lane.b32.xlu2 %v3979_v6, %s3549_s11  ;;  %s4739_s11 = scalar_lea.vmem %s4689_s13, %s3701_s2 }
 0x347   : > { %v1496_v32 = vpop.f32.mrf.mxu1 }
 0x348   : > { %v4019_v35 = vadd.f32 %v1496_v32, %v4001_v13 }
 0x34a   : > { %v1505_v37 = vsel %vm1247_vm5, %v4019_v35, -inf }
 0x357   : > { %v1499_v45 = vpop.f32.mrf.mxu1 }
 0x358   : > { %v4063_v20 = vadd.f32 %v1499_v45, %v4001_v13 }
 0x35f   : > { %v1796_v57 = vpop.f32.mrf.mxu1 }
 0x360   : > { %v4042_v5 = vadd.f32 %v1796_v57, %v4001_v13 }
 0x361   : > { %1255 = vmax.xlane.f32.xlu2 %v1254_v30 }
 0x362   : > { %v1805_v12 = vsel %vm1247_vm5, %v4042_v5, -inf }
 0x367   : > { %v1799_v4 = vpop.f32.mrf.mxu1 }
 0x368   : > { %v4045_v8 = vadd.f32 %v1799_v4, %v4001_v13  ;;  %v4145_v4 = vpack.i.bf16 %v3891_v33, %v3903_v36 }
 0x369   : > { %1506 = vmax.xlane.f32.xlu2 %v1505_v37 }
 0x36a   : > { %v1808_v10 = vsel %vm1247_vm5, %v4045_v8, -inf }
 0x383   : > { %v1377_v41 = vpop.xlane.xlu0 %1376 }
 0x384   : > { %v1384_v42 = vsub.f32 %v1367_v15, %v1377_v41 }
 0x386   : > { %v1387_v43 = vmul.f32 1.442695, %v1384_v42 }
 0x388   : > { %3406 = vpow2.f32 %v1387_v43 }
 0x38b   : > { %v1380_v44 = vpop.xlane.xlu1 %1379 }
 0x38c   : > { %v1385_v46 = vsub.f32 %v1370_v19, %v1380_v44 }
 0x38e   : > { %v3407_v47 = vpop.eup %3406  ;;  %v1389_v48 = vmul.f32 1.442695, %v1385_v46 }
 0x38f   : > { %v1393_v50 = vsel %vm1247_vm5, %v3407_v47, 0.0 }
 0x390   : > { %3408 = vpow2.f32 %v1389_v48  ;;  %1394 = vadd.xlane.f32.xlu0 %v1393_v50  ;;  %v1802_v48 = vpop.f32.mrf.mxu1 }
 0x391   : > { %v4091_v50 = vadd.f32 %v1802_v48, %v4001_v13 }
 0x393   : > { %v1383_v53 = vpop.xlane.xlu2 %1382 }
 0x394   : > { %v1386_v55 = vsub.f32 %v1373_v1, %v1383_v53  ;;  %v1811_v53 = vsel %vm1247_vm5, %v4091_v50, -inf }
 0x396   : > { %v3409_v56 = vpop.eup %3408  ;;  %v1391_v58 = vmul.f32 1.442695, %v1386_v55  ;;  %v4071_v23 = vpop.permute.xlu0 %2138 }
 0x397   : > { %v1396_v60 = vsel %vm1247_vm5, %v3409_v56, 0.0 }
 0x398   : > { %3410 = vpow2.f32 %v1391_v58  ;;  %1249 = vmax.xlane.f32.xlu0 %v1248_v59  ;;  %1397 = vadd.xlane.f32.xlu1 %v1396_v60  ;;  %v2050_v58 = vpop.f32.mrf.mxu1 }
 0x39b   : > { %v4055_v14 = vpop.permute.xlu2 %2140 }
 0x39e   : > { %v3411_v63 = vpop.eup %3410 }
 0x39f   : > { %v1399_v2 = vsel %vm1247_vm5, %v3411_v63, 0.0 }
 0x3a0   : > { %1400 = vadd.xlane.f32.xlu2 %v1399_v2  ;;  %1503 = vmax.xlane.f32.xlu0 %v1502_v3  ;;  %v2053_v60 = vpop.f32.mrf.mxu1 }
 0x3a1   : > { %v4139_v2 = vadd.f32 %v2053_v60, %v4001_v13 }
 0x3a3   : > { %v2137_v25 = vpop.permute.xlu1 %2136  ;;  %v2062_v3 = vsel %vm1247_vm5, %v4139_v2, -inf }
 0x3a8   : > { %1809 = vmax.xlane.f32.xlu2 %v1808_v10  ;;  %1806 = vmax.xlane.f32.xlu0 %v1805_v12 }
 0x3b1   : > { %2013 = vrot.lane.b32.xlu1 %v3979_v6, %s3550_s26  ;;  %v1508_v6 = vsel %vm1247_vm5, %v4063_v20, -inf }
 0x3c0   : > { %3309 = vrot.lane.b32.xlu2 %v3866_v29, %s3552_s22 }
 0x3d4   : > { %v1256_v15 = vpop.xlane.xlu2 %1255 }
 0x3d5   : > { %v1259_v17 = vsub.f32 %v1245_v28, %v1256_v15 }
 0x3d7   : > { %v1264_v19 = vmul.f32 1.442695, %v1259_v17 }
 0x3d9   : > { %3412 = vpow2.f32 %v1264_v19 }
 0x3db   : > { %1252 = vmax.xlane.f32.xlu1 %v1251_v18 }
 0x3dc   : > { %v4076_v28 = vpop.xlane.xlu2 %1506 }
 0x3df   : > { %v4067_v22 = vpop.eup %3412 }
 0x3e0   : > { %v1272_v1 = vsel %vm1247_vm5, %v4067_v22, 0.0 }
 0x3e3   : > { %1509 = vmax.xlane.f32.xlu1 %v1508_v6 }
 0x3e9   : > { %1273 = vadd.xlane.f32.xlu2 %v1272_v1 }
 0x401   : > { %3324 = vrot.lane.b32.xlu2 %v3323_v24, %s3553_s1 }
 0x403   : > { %v1395_v26 = vpop.xlane.xlu0 %1394 }
 0x404   : > { %3414 = vrcp.f32 %v1395_v26 }
 0x40a   : > { %v3415_v27 = vpop.eup %3414 }
 0x40b   : > { %v1250_v30 = vpop.xlane.xlu0 %1249  ;;  %v1398_v32 = vpop.xlane.xlu1 %1397  ;;  %v1405_v37 = vmul.f32 %v3415_v27, %v3407_v47  ;;  %v1512_v27 = vsub.f32 %v4019_v35, %v4076_v28 }
 0x40c   : > { %v1257_v41 = vsub.f32 %v1239_v52, %v1250_v30  ;;  %3416 = vrcp.f32 %v1398_v32 }
 0x40d   : > { %3129 = vmatmul.msk.f32.vlgmr.msra.gmra.mxu2 %vm1247_vm5, %v1405_v37  ;;  %v1516_v32 = vmul.f32 1.442695, %v1512_v27 }
 0x40e   : > { %v1260_v42 = vmul.f32 1.442695, %v1257_v41  ;;  %3159 = vmatpush.xpose.msk.msra.mxu2 %vm1205_vm4, %v3968_v0 }
 0x410   : > { %3418 = vpow2.f32 %v1260_v42 }
 0x412   : > { %v3417_v43 = vpop.eup %3416  ;;  %3160 = vmatpush.xpose.msk.msra.mxu2 %vm1205_vm4, %v4021_v34 }
 0x413   : > { %v1401_v44 = vpop.xlane.xlu2 %1400  ;;  %v1406_v45 = vmul.f32 %v3417_v43, %v3409_v56 }
 0x414   : > { %3420 = vrcp.f32 %v1401_v44 }
 0x415   : > { %3130 = vmatmul.msk.f32.gmra.mxu2 %vm1247_vm5, %v1406_v45 }
 0x416   : > { %v4084_v46 = vpop.eup %3418  ;;  %3161 = vmatpush.xpose.msk.msra.mxu2 %vm1205_vm4, %v3945_v49 }
 0x417   : > { %v1266_v47 = vsel %vm1247_vm5, %v4084_v46, 0.0 }
 0x418   : > { %1267 = vadd.xlane.f32.xlu0 %v1266_v47 }
 0x41a   : > { %v3421_v0 = vpop.eup %3420 }
 0x41b   : > { %v1810_v34 = vpop.xlane.xlu2 %1809  ;;  %v1407_v52 = vmul.f32 %v3421_v0, %v3411_v63  ;;  %v4188_v0 = vpack.i.bf16 %v3880_v31, %v3891_v33 }
 0x41d   : > { %3131 = vmatmul.msk.f32.gmra.mxu2 %vm1247_vm5, %v1407_v52 }
 0x420   : > { %1812 = vmax.xlane.f32.xlu0 %v1811_v53 }
 0x423   : > { %v3310_v55 = vpop.permute.xlu2 %3309  ;;  %v2014_v56 = vpop.permute.xlu1 %2013 }
 0x424   : > { %3173 = vmatmul.msk.f32.gmra.mxu1 %vm1205_vm4, %v2014_v56  ;;  %v3311_v49 = vunpack.i.l.bf16 %v3310_v55  ;;  %v3312_v57 = vunpack.i.h.bf16 %v3310_v55 }
 0x425   : > { %3144 = vmatmul.msk.f32.vlgmr.msrb.gmra.mxu2 %vm1205_vm4, %v3985_v7 }
 0x426   : > { %3177 = vmatpush.xpose.msk.msrb.mxu2 %vm1205_vm4, %v4027_v39  ;;  %1312 = vmatpush.msrb.mxu0 %v3311_v49 }
 0x428   : > { %1313 = vmatpush.msrb.mxu0 %v3312_v57 }
 0x42a   : > { %3178 = vmatpush.xpose.msk.msrb.mxu2 %vm1205_vm4, %v4025_v38 }
 0x42d   : > { %3145 = vmatmul.msk.f32.gmra.mxu2 %vm1205_vm4, %v3988_v9 }
 0x42e   : > { %3179 = vmatpush.xpose.msk.msrb.mxu2 %vm1205_vm4, %v3955_v54 }
 0x434   : > { %3314 = vrot.lane.b32.xlu0 %v3323_v24, %s3552_s22 }
 0x435   : > { %3146 = vmatmul.msk.f32.gmra.mxu2 %vm1205_vm4, %v3953_v51  ;;  %v1815_v51 = vsub.f32 %v4045_v8, %v1810_v34  ;;  %v1504_v8 = vpop.xlane.xlu0 %1503 }
 0x437   : > { %v1819_v38 = vmul.f32 1.442695, %v1815_v51 }
 0x43c   : > { %3329 = vrot.lane.b32.xlu0 %v3866_v29, %s3554_s27 }
 0x43d   : > { %3162 = vmatmul.msk.f32.vlgmr.msra.gmra.mxu2 %vm1205_vm4, %v3995_v11  ;;  %v1807_v10 = vpop.xlane.xlu0 %1806 }
 0x43e   : > { %v1814_v53 = vsub.f32 %v4042_v5, %v1807_v10 }
 0x440   : > { %v1817_v56 = vmul.f32 1.442695, %v1814_v53 }
 0x445   : > { %3163 = vmatmul.msk.f32.gmra.mxu2 %vm1205_vm4, %v3965_v62  ;;  %v4128_v62 = vadd.f32 %v2050_v58, %v4001_v13 }
 0x447   : > { %v2059_v59 = vsel %vm1247_vm5, %v4128_v62, -inf }
 0x44d   : > { %3164 = vmatmul.msk.f32.gmra.mxu2 %vm1205_vm4, %v4029_v40 }
 0x44e   : > { %v1253_v7 = vpop.xlane.xlu1 %1252 }
 0x44f   : > { %v1258_v54 = vsub.f32 %v4058_v16, %v1253_v7 }
 0x451   : > { %v1262_v9 = vmul.f32 1.442695, %v1258_v54 }
 0x453   : > { %3422 = vpow2.f32 %v1262_v9 }
 0x454   : > { %3424 = vpow2.f32 %v1819_v38 }
 0x455   : > { %3180 = vmatmul.msk.f32.vlgmr.msrb.gmra.mxu2 %vm1205_vm4, %v2137_v25 }
 0x456   : > { %v1510_v41 = vpop.xlane.xlu1 %1509 }
 0x457   : > { %v1513_v35 = vsub.f32 %v4063_v20, %v1510_v41 }
 0x459   : > { %v4121_v39 = vpop.eup %3422 }
 0x45a   : > { %v1269_v11 = vsel %vm1247_vm5, %v4121_v39, 0.0  ;;  %v4130_v40 = vpop.eup %3424 }
 0x45b   : > { %1270 = vadd.xlane.f32.xlu1 %v1269_v11  ;;  %v1826_v63 = vsel %vm1247_vm5, %v4130_v40, 0.0 }
 0x45c   : > { %v1274_v38 = vpop.xlane.xlu2 %1273 }
 0x45d   : > { %3181 = vmatmul.msk.f32.gmra.mxu2 %vm1205_vm4, %v4071_v23 }
 0x463   : > { %2060 = vmax.xlane.f32.xlu1 %v2059_v59 }
 0x465   : > { %3182 = vmatmul.msk.f32.gmra.mxu2 %vm1205_vm4, %v4055_v14 }
 0x466   : > { %1827 = vadd.xlane.f32.xlu0 %v1826_v63 }
 0x46b   : > { %2063 = vmax.xlane.f32.xlu1 %v2062_v3 }
 0x47a   : > { %3339 = vrot.lane.b32.xlu0 %v4145_v4, %s3548_s30 }
 0x484   : > { %3319 = vrot.lane.b32.xlu1 %v3866_v29, %s3553_s1  ;;  %v1511_v29 = vsub.f32 %v4036_v61, %v1504_v8 }
 0x486   : > { %v1514_v24 = vmul.f32 1.442695, %v1511_v29 }
 0x48b   : > { %v1268_v14 = vpop.xlane.xlu0 %1267 }
 0x48c   : > { %1662 = vrot.lane.b32.xlu1 %v3849_v21, %s3554_s27  ;;  %3426 = vrcp.f32 %v1268_v14 }
 0x48d   : > { %3428 = vpow2.f32 %v1514_v24 }
 0x48e   : > { %3430 = vpow2.f32 %v1516_v32 }
 0x490   : > { %v4153_v12 = vpop.f32.mrf.mxu2 }
 0x492   : > { %v3427_v6 = vpop.eup %3426 }
 0x493   : > { %v1813_v16 = vpop.xlane.xlu0 %1812  ;;  %v1278_v26 = vmul.f32 %v3427_v6, %v4084_v46  ;;  %v4177_v44 = vpop.eup %3428  ;;  %v1518_v46 = vmul.f32 1.442695, %v1513_v35 }
 0x494   : > { %v1520_v28 = vsel %vm1247_vm5, %v4177_v44, 0.0  ;;  %v4184_v48 = vpop.eup %3430  ;;  %v1816_v57 = vsub.f32 %v4091_v50, %v1813_v16  ;;  %v3325_v35 = vpop.permute.xlu2 %3324 }
 0x495   : > { %3432 = vpow2.f32 %v1518_v46  ;;  %v1523_v20 = vsel %vm1247_vm5, %v4184_v48, 0.0 }
 0x496   : > { %3434 = vpow2.f32 %v1817_v56  ;;  %v1821_v54 = vmul.f32 1.442695, %v1816_v57 }
 0x498   : > { %v4155_v15 = vpop.f32.mrf.mxu2 }
 0x499   : > { %v3353_v36 = vpack.i.bf16 %v4155_v15, %v4153_v12 }
 0x49b   : > { %v4194_v52 = vpop.eup %3432 }
 0x49c   : > { %v1526_v55 = vsel %vm1247_vm5, %v4194_v52, 0.0  ;;  %v4207_v51 = vpop.eup %3434 }
 0x49d   : > { %v1823_v58 = vsel %vm1247_vm5, %v4207_v51, 0.0 }
 0x4a0   : > { %v4159_v17 = vpop.f32.mrf.mxu2 }
 0x4a1   : > { %v2056_v18 = vpop.f32.mrf.mxu1 }
 0x4a2   : > { %v4162_v19 = vadd.f32 %v2056_v18, %v4001_v13 }
 0x4a4   : > { %v2065_v21 = vsel %vm1247_vm5, %v4162_v19, -inf }
 0x4a5   : > { %2066 = vmax.xlane.f32.xlu2 %v2065_v21 }
 0x4a6   : > { %v4167_v1 = vpop.permute.xlu0 %3314 }
 0x4a7   : > { %v3316_v23 = vunpack.i.l.bf16 %v4167_v1 }
 0x4a8   : > { %v1620_v25 = vpop.f32.mrf.mxu2 }
 0x4a9   : > { %1314 = vmatpush.msrb.mxu0 %v3316_v23  ;;  %v4202_v49 = vadd.f32 %v1620_v25, %v4001_v13 }
 0x4aa   : > { %3120 = vmatmul.msk.f32.vlgmr.msrb.gmra.mxu0 %vm1247_vm5, %v1278_v26 }
 0x4ab   : > { %v1629_v7 = vsel %vm1247_vm5, %v4202_v49, -inf }
 0x4ae   : > { %v3330_v61 = vpop.permute.xlu0 %3329 }
 0x4af   : > { %v3331_v30 = vunpack.i.l.bf16 %v3330_v61  ;;  %v3332_v42 = vunpack.i.h.bf16 %v3330_v61 }
 0x4b0   : > { %v1623_v37 = vpop.f32.mrf.mxu2 }
 0x4b1   : > { %v4175_v43 = vadd.f32 %v1623_v37, %v4001_v13  ;;  %1693 = vmatpush.msra.mxu0 %v3331_v30 }
 0x4b3   : > { %1694 = vmatpush.msra.mxu0 %v3332_v42  ;;  %v1632_v45 = vsel %vm1247_vm5, %v4175_v43, -inf }
 0x4b4   : > { %1633 = vmax.xlane.f32.xlu0 %v1632_v45 }
 0x4b6   : > { %1521 = vadd.xlane.f32.xlu1 %v1520_v28 }
 0x4b8   : > { %v1626_v47 = vpop.f32.mrf.mxu2 }
 0x4bd   : > { %3334 = vrot.lane.b32.xlu2 %v4188_v0, %s3552_s22  ;;  %s4740_s22 = scalar_lea.vmem %s4690_s14, %s3701_s2 }
 0x4be   : > { %1524 = vadd.xlane.f32.xlu1 %v1523_v20  ;;  %v3326_v20 = vunpack.i.l.bf16 %v3325_v35 }
 0x4c0   : > { %v1923_v34 = vpop.f32.mrf.mxu2 }
 0x4c1   : > { %v4224_v18 = vadd.f32 %v1923_v34, %v4001_v13  ;;  %v3317_v34 = vunpack.i.h.bf16 %v4167_v1 }
 0x4c3   : > { %v1932_v6 = vsel %vm1247_vm5, %v4224_v18, -inf }
 0x4c6   : > { %1527 = vadd.xlane.f32.xlu1 %v1526_v55 }
 0x4c8   : > { %v1926_v33 = vpop.f32.mrf.mxu2  ;;  %1965 = vrot.lane.b32.xlu0 %v3880_v31, %s3548_s30 }
 0x4ce   : > { %1630 = vmax.xlane.f32.xlu1 %v1629_v7  ;;  %v1271_v5 = vpop.xlane.xlu1 %1270 }
 0x4cf   : > { %3436 = vrcp.f32 %v1271_v5 }
 0x4d0   : > { %v1929_v9 = vpop.f32.mrf.mxu2  ;;  %3438 = vpow2.f32 %v1821_v54 }
 0x4d1   : > { %3440 = vrcp.f32 %v1274_v38  ;;  %v4245_v61 = vadd.f32 %v1929_v9, %v4001_v13 }
 0x4d3   : > { %v1938_v41 = vsel %vm1247_vm5, %v4245_v61, -inf }
 0x4d5   : > { %v3437_v11 = vpop.eup %3436 }
 0x4d6   : > { %1824 = vadd.xlane.f32.xlu1 %v1823_v58  ;;  %v1279_v50 = vmul.f32 %v3437_v11, %v4121_v39  ;;  %v4213_v60 = vpop.eup %3438  ;;  %v2061_v3 = vpop.xlane.xlu1 %2060  ;;  %v4221_v39 = vadd.f32 %v1626_v47, %v4001_v13 }
 0x4d7   : > { %v3441_v63 = vpop.eup %3440  ;;  %v1829_v8 = vsel %vm1247_vm5, %v4213_v60, 0.0  ;;  %v2068_v14 = vsub.f32 %v4128_v62, %v2061_v3  ;;  %v4231_v62 = vadd.f32 %v1926_v33, %v4001_v13  ;;  %v3327_v3 = vunpack.i.h.bf16 %v3325_v35 }
 0x4d8   : > { %3121 = vmatmul.msk.f32.gmra.mxu0 %vm1247_vm5, %v1279_v50  ;;  %v2177_v59 = vpop.f32.mrf.mxu2  ;;  %v1280_v10 = vmul.f32 %v3441_v63, %v4067_v22  ;;  %v1635_v21 = vsel %vm1247_vm5, %v4221_v39, -inf }
 0x4d9   : > { %v2071_v29 = vmul.f32 1.442695, %v2068_v14  ;;  %v1935_v25 = vsel %vm1247_vm5, %v4231_v62, -inf  ;;  %v4249_v32 = vpop.xlane.xlu0 %1827  ;;  %v4252_v37 = vadd.f32 %v2177_v59, %v4001_v13 }
 0x4db   : > { %3442 = vpow2.f32 %v2071_v29  ;;  %v2186_v28 = vsel %vm1247_vm5, %v4252_v37, -inf }
 0x4de   : > { %1830 = vadd.xlane.f32.xlu1 %v1829_v8  ;;  %v4242_v27 = vpop.xlane.xlu1 %2063 }
 0x4e0   : > { %3122 = vmatmul.msk.f32.gmra.mxu0 %vm1247_vm5, %v1280_v10  ;;  %v2180_v16 = vpop.f32.mrf.mxu2 }
 0x4e1   : > { %v4240_v26 = vpop.eup %3442  ;;  %v4260_v53 = vadd.f32 %v2180_v16, %v4001_v13 }
 0x4e2   : > { %v2077_v30 = vsel %vm1247_vm5, %v4240_v26, 0.0 }
 0x4e3   : > { %v2189_v57 = vsel %vm1247_vm5, %v4260_v53, -inf }
 0x4e6   : > { %1636 = vmax.xlane.f32.xlu2 %v1635_v21  ;;  %1933 = vmax.xlane.f32.xlu1 %v1932_v6 }
 0x4e8   : > { %v2183_v22 = vpop.f32.mrf.mxu2 }
 0x4e9   : > { %v4234_v23 = vadd.f32 %v2183_v22, %v4001_v13 }
 0x4eb   : > { %v2192_v24 = vsel %vm1247_vm5, %v4234_v23, -inf }
 0x4ec   : > { %v3340_v47 = vpop.permute.xlu0 %3339 }
 0x4ed   : > { %v3341_v55 = vunpack.i.l.bf16 %v3340_v47  ;;  %v3342_v33 = vunpack.i.h.bf16 %v3340_v47 }
 0x4ee   : > { %2193 = vmax.xlane.f32.xlu2 %v2192_v24  ;;  %1936 = vmax.xlane.f32.xlu1 %v1935_v25 }
 0x4f2   : > { %2078 = vadd.xlane.f32.xlu0 %v2077_v30 }
 0x4f6   : > { %1939 = vmax.xlane.f32.xlu1 %v1938_v41  ;;  %v3320_v42 = vpop.permute.xlu1 %3319 }
 0x4f7   : > { %v3321_v45 = vunpack.i.l.bf16 %v3320_v42  ;;  %v3322_v46 = vunpack.i.h.bf16 %v3320_v42 }
 0x4f9   : > { %1566 = vmatpush.msrb.mxu3 %v3321_v45 }
 0x4fa   : > { %2187 = vmax.xlane.f32.xlu0 %v2186_v28 }
 0x4fb   : > { %1567 = vmatpush.msrb.mxu3 %v3322_v46 }
 0x4fd   : > { %1568 = vmatpush.msrb.mxu3 %v3326_v20 }
 0x4fe   : > { %v1663_v56 = vpop.permute.xlu1 %1662 }
 0x4ff   : > { %1869 = vmatpush.msra.mxu3 %v3317_v34  ;;  %1695 = vmatpush.msra.mxu0 %v1663_v56 }
 0x501   : > { %1996 = vmatpush.msrb.mxu0 %v3341_v55 }
 0x502   : > { %2190 = vmax.xlane.f32.xlu0 %v2189_v57 }
 0x503   : > { %1997 = vmatpush.msrb.mxu0 %v3342_v33 }
 0x518   : > { %v4264_v7 = vpop.xlane.xlu2 %2066 }
 0x520   : > { %v3335_v5 = vpop.permute.xlu2 %3334 }
 0x521   : > { %v3336_v54 = vunpack.i.l.bf16 %v3335_v5  ;;  %v3337_v1 = vunpack.i.h.bf16 %v3335_v5 }
 0x523   : > { %1870 = vmatpush.msra.mxu3 %v3336_v54 }
 0x525   : > { %1871 = vmatpush.msra.mxu3 %v3337_v1 }
 0x527   : > { %v1634_v13 = vpop.xlane.xlu0 %1633 }
 0x528   : > { %v1639_v9 = vsub.f32 %v4175_v43, %v1634_v13 }
 0x529   : > { %v1522_v38 = vpop.xlane.xlu1 %1521 }
 0x52a   : > { %v1643_v11 = vmul.f32 1.442695, %v1639_v9  ;;  %3444 = vrcp.f32 %v1522_v38 }
 0x52c   : > { %3446 = vpow2.f32 %v1643_v11 }
 0x530   : > { %v3445_v58 = vpop.eup %3444 }
 0x531   : > { %v1525_v50 = vpop.xlane.xlu1 %1524  ;;  %v1532_v59 = vmul.f32 %v3445_v58, %v4177_v44 }
 0x532   : > { %v4268_v63 = vpop.eup %3446  ;;  %3448 = vrcp.f32 %v1525_v50 }
 0x533   : > { %3138 = vmatmul.msk.f32.vlgmr.msrb.gmra.mxu3 %vm1247_vm5, %v1532_v59  ;;  %v1650_v8 = vsel %vm1247_vm5, %v4268_v63, 0.0 }
 0x534   : > { %2123 = vmatpush.msrb.mxu3 %v3327_v3  ;;  %1651 = vadd.xlane.f32.xlu0 %v1650_v8 }
 0x538   : > { %v3449_v43 = vpop.eup %3448 }
 0x539   : > { %v1528_v10 = vpop.xlane.xlu1 %1527  ;;  %v1533_v14 = vmul.f32 %v3449_v43, %v4184_v48 }
 0x53a   : > { %3450 = vrcp.f32 %v1528_v10  ;;  %v1966_v16 = vpop.permute.xlu0 %1965 }
 0x53b   : > { %3139 = vmatmul.msk.f32.gmra.mxu3 %vm1247_vm5, %v1533_v14  ;;  %1998 = vmatpush.msrb.mxu0 %v1966_v16 }
 0x540   : > { %v3451_v44 = vpop.eup %3450 }
 0x541   : > { %v1631_v29 = vpop.xlane.xlu1 %1630  ;;  %v1534_v21 = vmul.f32 %v3451_v44, %v4194_v52 }
 0x542   : > { %v1638_v6 = vsub.f32 %v4202_v49, %v1631_v29 }
 0x543   : > { %3140 = vmatmul.msk.f32.gmra.mxu3 %vm1247_vm5, %v1534_v21 }
 0x544   : > { %v1641_v22 = vmul.f32 1.442695, %v1638_v6 }
 0x546   : > { %3452 = vpow2.f32 %v1641_v22 }
 0x549   : > { %v1825_v24 = vpop.xlane.xlu1 %1824 }
 0x54a   : > { %3454 = vrcp.f32 %v1825_v24 }
 0x54b   : > { %3456 = vrcp.f32 %v4249_v32 }
 0x54c   : > { %v4278_v25 = vpop.eup %3452 }
 0x54d   : > { %v1647_v48 = vsel %vm1247_vm5, %v4278_v25, 0.0 }
 0x54e   : > { %1648 = vadd.xlane.f32.xlu2 %v1647_v48 }
 0x550   : > { %v3455_v30 = vpop.eup %3454 }
 0x551   : > { %v1835_v41 = vmul.f32 %v3455_v30, %v4207_v51  ;;  %v1831_v52 = vpop.xlane.xlu1 %1830  ;;  %v3457_v49 = vpop.eup %3456 }
 0x552   : > { %3458 = vrcp.f32 %v1831_v52  ;;  %v1836_v35 = vmul.f32 %v3457_v49, %v4130_v40  ;;  %v2070_v40 = vsub.f32 %v4162_v19, %v4264_v7 }
 0x553   : > { %3156 = vmatmul.msk.f32.vlgmr.msra.gmra.mxu3 %vm1247_vm5, %v1835_v41 }
 0x558   : > { %v3459_v20 = vpop.eup %3458 }
 0x559   : > { %v1637_v42 = vpop.xlane.xlu2 %1636  ;;  %v1934_v45 = vpop.xlane.xlu1 %1933  ;;  %v1837_v34 = vmul.f32 %v3459_v20, %v4213_v60  ;;  %v2075_v60 = vmul.f32 1.442695, %v2070_v40 }
 0x55a   : > { %v1640_v28 = vsub.f32 %v4221_v39, %v1637_v42  ;;  %v1941_v47 = vsub.f32 %v4224_v18, %v1934_v45  ;;  %v2069_v18 = vsub.f32 %v4139_v2, %v4242_v27 }
 0x55b   : > { %3157 = vmatmul.msk.f32.gmra.mxu3 %vm1247_vm5, %v1836_v35 }
 0x55c   : > { %v1645_v46 = vmul.f32 1.442695, %v1640_v28  ;;  %v1944_v32 = vmul.f32 1.442695, %v1941_v47 }
 0x55e   : > { %3460 = vpow2.f32 %v1645_v46 }
 0x55f   : > { %3462 = vpow2.f32 %v1944_v32 }
 0x561   : > { %v1937_v51 = vpop.xlane.xlu1 %1936  ;;  %v2194_v14 = vpop.xlane.xlu2 %2193 }
 0x562   : > { %v1942_v55 = vsub.f32 %v4231_v62, %v1937_v51  ;;  %v2073_v62 = vmul.f32 1.442695, %v2069_v18  ;;  %v2197_v44 = vsub.f32 %v4234_v23, %v2194_v14 }
 0x563   : > { %3158 = vmatmul.msk.f32.gmra.mxu3 %vm1247_vm5, %v1837_v34 }
 0x564   : > { %v4292_v56 = vpop.eup %3460  ;;  %v1946_v39 = vmul.f32 1.442695, %v1942_v55 }
 0x565   : > { %v4298_v33 = vpop.xlane.xlu0 %2078  ;;  %v1653_v57 = vsel %vm1247_vm5, %v4292_v56, 0.0  ;;  %v4302_v54 = vpop.eup %3462 }
 0x566   : > { %1654 = vadd.xlane.f32.xlu0 %v1653_v57  ;;  %3464 = vpow2.f32 %v1946_v39  ;;  %v1950_v27 = vsel %vm1247_vm5, %v4302_v54, 0.0 }
 0x567   : > { %3466 = vpow2.f32 %v2075_v60 }
 0x568   : > { %3468 = vpow2.f32 %v2073_v62 }
 0x569   : > { %v1940_v5 = vpop.xlane.xlu1 %1939 }
 0x56a   : > { %v1943_v1 = vsub.f32 %v4245_v61, %v1940_v5 }
 0x56c   : > { %v1948_v19 = vmul.f32 1.442695, %v1943_v1  ;;  %v4305_v7 = vpop.eup %3464 }
 0x56d   : > { %v2188_v2 = vpop.xlane.xlu0 %2187  ;;  %v1953_v9 = vsel %vm1247_vm5, %v4305_v7, 0.0  ;;  %v4312_v11 = vpop.eup %3466 }
 0x56e   : > { %3470 = vpow2.f32 %v1948_v19  ;;  %v2195_v13 = vsub.f32 %v4252_v37, %v2188_v2  ;;  %1951 = vadd.xlane.f32.xlu0 %v1950_v27  ;;  %1954 = vadd.xlane.f32.xlu2 %v1953_v9  ;;  %v4314_v61 = vpop.eup %3468  ;;  %v2083_v50 = vsel %vm1247_vm5, %v4312_v11, 0.0  ;;  %v1316_v27 = vpop.f32.mrf.mxu0 }
 0x56f   : > { %v2080_v37 = vsel %vm1247_vm5, %v4314_v61, 0.0 }
 0x570   : > { %v2198_v38 = vmul.f32 1.442695, %v2195_v13 }
 0x572   : > { %3472 = vpow2.f32 %v2198_v38 }
 0x574   : > { %v4316_v58 = vpop.eup %3470 }
 0x575   : > { %v1956_v59 = vsel %vm1247_vm5, %v4316_v58, 0.0  ;;  %v2191_v43 = vpop.xlane.xlu0 %2190 }
 0x576   : > { %2084 = vadd.xlane.f32.xlu0 %v2083_v50  ;;  %1957 = vadd.xlane.f32.xlu1 %v1956_v59  ;;  %v2196_v10 = vsub.f32 %v4260_v53, %v2191_v43  ;;  %v1319_v38 = vpop.f32.mrf.mxu0 }
 0x577   : > { %2081 = vadd.xlane.f32.xlu2 %v2080_v37 }
 0x578   : > { %v4324_v3 = vpop.eup %3472  ;;  %v2200_v16 = vmul.f32 1.442695, %v2196_v10 }
 0x579   : > { %v2204_v8 = vsel %vm1247_vm5, %v4324_v3, 0.0 }
 0x57a   : > { %3474 = vpow2.f32 %v2200_v16 }
 0x57e   : > { %v1322_v50 = vpop.f32.mrf.mxu0 }
 0x57f   : > { %2205 = vadd.xlane.f32.xlu2 %v2204_v8 }
 0x580   : > { %v4340_v29 = vpop.eup %3474 }
 0x58a   : > { %2219 = vrot.lane.b32.xlu0 %v3880_v31, %s3554_s27  ;;  %v2202_v31 = vmul.f32 1.442695, %v2197_v44 }
 0x58c   : > { %3476 = vpow2.f32 %v2202_v31 }
 0x58f   : > { %3344 = vrot.lane.b32.xlu1 %v4188_v0, %s3553_s1  ;;  %v2207_v0 = vsel %vm1247_vm5, %v4340_v29, 0.0 }
 0x592   : > { %3354 = vrot.lane.b32.xlu0 %v3353_v36, %s3555_s24  ;;  %v4344_v12 = vpop.eup %3476 }
 0x597   : > { %3349 = vrot.lane.b32.xlu2 %v4145_v4, %s3554_s27  ;;  %v2210_v4 = vsel %vm1247_vm5, %v4344_v12, 0.0 }
 0x5a7   : > { %v1652_v53 = vpop.xlane.xlu0 %1651 }
 0x5b6   : > { %v1570_v36 = vpop.f32.mrf.mxu3 }
 0x5b9   : > { %2208 = vadd.xlane.f32.xlu1 %v2207_v0 }
 0x5be   : > { %v1573_v6 = vpop.f32.mrf.mxu3 }
 0x5bf   : > { %v3358_v24 = vpack.i.bf16 %v1573_v6, %v1570_v36  ;;  %v3247_v6 = vld [vmem:[%s3720_s21] sm:$0xff] }
 0x5c0   : > { %2211 = vadd.xlane.f32.xlu2 %v2210_v4 }
 0x5c1   : > { %v1649_v15 = vpop.xlane.xlu2 %1648 }
 0x5c2   : > { %3478 = vrcp.f32 %v1649_v15 }
 0x5c3   : > { %3480 = vrcp.f32 %v1652_v53 }
 0x5c6   : > { %v1576_v8 = vpop.f32.mrf.mxu3 }
 0x5c8   : > { %v3479_v23 = vpop.eup %3478 }
 0x5c9   : > { %v1659_v21 = vmul.f32 %v3479_v23, %v4278_v25  ;;  %v3481_v22 = vpop.eup %3480 }
 0x5ca   : > { %v1660_v48 = vmul.f32 %v3481_v22, %v4268_v63 }
 0x5cb   : > { %3147 = vmatmul.msk.f32.vlgmr.msra.gmra.mxu0 %vm1247_vm5, %v1659_v21  ;;  %v3248_v21 = vld [vmem:[%s3720_s21 + $0x8] sm:$0xff] }
 0x5cc   : > { %2341 = vmatpush.bf16.msra.mxu1 %v3248_v21 }
 0x5d0   : > { %2342 = vmatpush.bf16.msra.mxu1 %v3247_v6 }
 0x5d2   : > { %3359 = vrot.lane.b32.xlu1 %v3358_v24, %s3556_s6 }
 0x5d3   : > { %3148 = vmatmul.msk.f32.gmra.mxu0 %vm1247_vm5, %v1660_v48 }
 0x5d6   : > { %v1873_v14 = vpop.f32.mrf.mxu3 }
 0x5d9   : > { %v1655_v30 = vpop.xlane.xlu0 %1654 }
 0x5da   : > { %3482 = vrcp.f32 %v1655_v30 }
 0x5de   : > { %v4377_v44 = vpop.f32.mrf.mxu3 }
 0x5e0   : > { %v3483_v41 = vpop.eup %3482 }
 0x5e1   : > { %v1952_v52 = vpop.xlane.xlu0 %1951  ;;  %v1661_v49 = vmul.f32 %v3483_v41, %v4292_v56  ;;  %v1955_v25 = vpop.xlane.xlu2 %1954 }
 0x5e2   : > { %3484 = vrcp.f32 %v1952_v52 }
 0x5e3   : > { %3149 = vmatmul.msk.f32.gmra.mxu0 %vm1247_vm5, %v1661_v49  ;;  %3486 = vrcp.f32 %v1955_v25 }
 0x5e6   : > { %v1879_v4 = vpop.f32.mrf.mxu3 }
 0x5e8   : > { %v3485_v42 = vpop.eup %3484 }
 0x5e9   : > { %v1962_v45 = vmul.f32 %v3485_v42, %v4302_v54  ;;  %v1958_v35 = vpop.xlane.xlu1 %1957  ;;  %v3487_v28 = vpop.eup %3486 }
 0x5ea   : > { %v2082_v63 = vpop.xlane.xlu2 %2081  ;;  %3488 = vrcp.f32 %v1958_v35  ;;  %v1963_v46 = vmul.f32 %v3487_v28, %v4305_v7  ;;  %v2085_v32 = vpop.xlane.xlu0 %2084 }
 0x5eb   : > { %3165 = vmatmul.msk.f32.vlgmr.msrb.gmra.mxu0 %vm1247_vm5, %v1962_v45 }
 0x5f0   : > { %v3489_v20 = vpop.eup %3488 }
 0x5f1   : > { %v1964_v51 = vmul.f32 %v3489_v20, %v4316_v58 }
 0x5f2   : > { %v2206_v47 = vpop.xlane.xlu2 %2205 }
 0x5f3   : > { %3166 = vmatmul.msk.f32.gmra.mxu0 %vm1247_vm5, %v1963_v46  ;;  %3490 = vrcp.f32 %v2206_v47 }
 0x5f4   : > { %3492 = vrcp.f32 %v4298_v33 }
 0x5f5   : > { %3494 = vrcp.f32 %v2082_v63 }
 0x5f6   : > { %3496 = vrcp.f32 %v2085_v32 }
 0x5f9   : > { %v3491_v40 = vpop.eup %3490 }
 0x5fa   : > { %v3350_v34 = vpop.permute.xlu2 %3349  ;;  %v2216_v18 = vmul.f32 %v3491_v40, %v4324_v3  ;;  %v3493_v60 = vpop.eup %3492 }
 0x5fb   : > { %v3351_v55 = vunpack.i.l.bf16 %v3350_v34  ;;  %3167 = vmatmul.msk.f32.gmra.mxu0 %vm1247_vm5, %v1964_v51  ;;  %v3352_v56 = vunpack.i.h.bf16 %v3350_v34  ;;  %v2089_v54 = vmul.f32 %v3493_v60, %v4240_v26  ;;  %v3495_v33 = vpop.eup %3494 }
 0x5fc   : > { %v2220_v39 = vpop.permute.xlu0 %2219  ;;  %v2090_v1 = vmul.f32 %v3495_v33, %v4314_v61  ;;  %v3497_v19 = vpop.eup %3496 }
 0x5fd   : > { %2250 = vmatpush.msra.mxu0 %v3351_v55  ;;  %v2091_v7 = vmul.f32 %v3497_v19, %v4312_v11 }
 0x5ff   : > { %2251 = vmatpush.msra.mxu0 %v3352_v56 }
 0x601   : > { %2252 = vmatpush.msra.mxu0 %v2220_v39  ;;  %v3345_v57 = vpop.permute.xlu1 %3344 }
 0x602   : > { %v3346_v62 = vunpack.i.l.bf16 %v3345_v57  ;;  %v3347_v5 = vunpack.i.h.bf16 %v3345_v57 }
 0x603   : > { %3183 = vmatmul.msk.f32.vlgmr.msra.gmra.mxu0 %vm1247_vm5, %v2216_v18 }
 0x604   : > { %2124 = vmatpush.msrb.mxu3 %v3346_v62  ;;  %v3355_v30 = vpop.permute.xlu0 %3354 }
 0x605   : > { %v3357_v52 = vunpack.i.h.bf16 %v3355_v30  ;;  %v3356_v49 = vunpack.i.l.bf16 %v3355_v30 }
 0x606   : > { %2125 = vmatpush.msrb.mxu3 %v3347_v5 }
 0x607   : > { %3174 = vmatmul.msk.f32.vlgmr.msrb.gmra.mxu3 %vm1247_vm5, %v2089_v54  ;;  %v1743_v63 = vsel %vm1205_vm4, %v1319_v38, %v3357_v52  ;;  %v1742_v35 = vsel %vm1205_vm4, %v1316_v27, %v3356_v49  ;;  %v3531_v52 = vld [vmem:[#allocation2 + $0x18] sm:$0xff] }
 0x60f   : > { %3175 = vmatmul.msk.f32.gmra.mxu3 %vm1247_vm5, %v2090_v1 }
 0x617   : > { %3176 = vmatmul.msk.f32.gmra.mxu3 %vm1247_vm5, %v2091_v7 }
 0x62c   : > { %v2209_v2 = vpop.xlane.xlu1 %2208 }
 0x62d   : > { %3498 = vrcp.f32 %v2209_v2 }
 0x633   : > { %v3499_v13 = vpop.eup %3498  ;;  %v2212_v9 = vpop.xlane.xlu2 %2211 }
 0x634   : > { %3500 = vrcp.f32 %v2212_v9  ;;  %v2217_v26 = vmul.f32 %v3499_v13, %v4340_v29 }
 0x636   : > { %3184 = vmatmul.msk.f32.gmra.mxu0 %vm1247_vm5, %v2217_v26 }
 0x63a   : > { %v3501_v58 = vpop.eup %3500 }
 0x63b   : > { %v2218_v61 = vmul.f32 %v3501_v58, %v4344_v12 }
 0x63e   : > { %3185 = vmatmul.msk.f32.gmra.mxu0 %vm1247_vm5, %v2218_v61 }
 0x644   : > { %v3360_v41 = vpop.permute.xlu1 %3359 }
 0x645   : > { %v3362_v25 = vunpack.i.h.bf16 %v3360_v41  ;;  %v3361_v42 = vunpack.i.l.bf16 %v3360_v41 }
 0x647   : > { %v1747_v47 = vsel %vm1745_vm6, %v1743_v63, %v3362_v25  ;;  %v1746_v20 = vsel %vm1745_vm6, %v1742_v35, %v3361_v42  ;;  %v3558_v42 = vmov 32.0  }
 0x648   : > { %v1697_v11 = vpop.f32.mrf.mxu0  ;;  %3502 = vrcp.f32 %v3558_v42 }
 0x650   : > { %v1700_v59 = vpop.f32.mrf.mxu0 }
 0x651   : > { %v3363_v37 = vpack.i.bf16 %v1700_v59, %v1697_v11 }
 0x653   : > { %3364 = vrot.lane.b32.xlu0 %v3363_v37, %s3557_s7 }
 0x660   : > { %v1703_v3 = vpop.f32.mrf.mxu0 }
 0x668   : > { %v2000_v43 = vpop.f32.mrf.mxu0 }
 0x669   : > { %v3368_v10 = vpack.i.bf16 %v2000_v43, %v4159_v17 }
 0x66b   : > { %3369 = vrot.lane.b32.xlu0 %v3368_v10, %s3555_s24 }
 0x670   : > { %v2003_v16 = vpop.f32.mrf.mxu0 }
 0x678   : > { %v2006_v31 = vpop.f32.mrf.mxu0 }
 0x679   : > { %v3383_v29 = vpack.i.bf16 %v2006_v31, %v2003_v16 }
 0x67b   : > { %3384 = vrot.lane.b32.xlu1 %v3383_v29, %s3555_s24  ;;  %s4741_s24 = scalar_lea.vmem %s4694_s18, %s3701_s2 }
 0x680   : > { %v2254_v0 = vpop.f32.mrf.mxu0 }
 0x681   : > { %v3378_v12 = vpack.i.bf16 %v2254_v0, %v1703_v3  ;;  %v3528_v0 = vld [vmem:[#allocation2] sm:$0xff] }
 0x683   : > { %3379 = vrot.lane.b32.xlu2 %v3378_v12, %s3557_s7 }
 0x68a   : > { %v2127_v15 = vpop.f32.mrf.mxu3 }
 0x68b   : > { %v3373_v36 = vpack.i.bf16 %v2127_v15, %v1576_v8 }
 0x68d   : > { %3374 = vrot.lane.b32.xlu0 %v3373_v36, %s3556_s6 }
 0x692   : > { %v2130_v17 = vpop.f32.mrf.mxu3 }
 0x69a   : > { %v2133_v53 = vpop.f32.mrf.mxu3 }
 0x69b   : > { %v3388_v23 = vpack.i.bf16 %v2133_v53, %v2130_v17  ;;  %v3529_v17 = vld [vmem:[#allocation2 + $0x8] sm:$0xff] }
 0x69d   : > { %3389 = vrot.lane.b32.xlu0 %v3388_v23, %s3556_s6 }
 0x6b3   : > { %v2257_v22 = vpop.f32.mrf.mxu0 }
 0x6bb   : > { %v2260_v24 = vpop.f32.mrf.mxu0 }
 0x6bc   : > { %v3393_v48 = vpack.i.bf16 %v2260_v24, %v2257_v22  ;;  %v3530_v22 = vld [vmem:[#allocation2 + $0x10] sm:$0xff] }
 0x6be   : > { %3394 = vrot.lane.b32.xlu1 %v3393_v48, %s3557_s7 }
 0x6c5   : > { %v3365_v45 = vpop.permute.xlu0 %3364 }
 0x6c6   : > { %v3367_v28 = vunpack.i.h.bf16 %v3365_v45  ;;  %v3366_v46 = vunpack.i.l.bf16 %v3365_v45  ;;  %v3503_v45 = vpop.eup %3502 }
 0x6c7   : > { %v2386_v63 = vmul.f32 32.0, %v3503_v45  ;;  %vm2390_vm7 = vweird.f32 %v3503_v45 }
 0x6c8   : > { %v1749_v32 = vsel %vm1247_vm5, %v1746_v20, %v3366_v46  ;;  %v1750_v51 = vsel %vm1247_vm5, %v1747_v47, %v3367_v28  ;;  %v3532_v47 = vld [vmem:[#allocation2 + $0x20] sm:$0xff] }
 0x6c9   : > { %v2308_v34 = vpack.c.bf16 %v1750_v51, %v1749_v32  ;;  %v2387_v28 = vsub.f32 1.0, %v2386_v63 }
 0x6cb   : > { %3194 = vmatmul.msk.bf16.vlgmr.msra.gmra.mxu1 %vm1156_vm3, %v2308_v34  ;;  %v2388_v32 = vmul.f32 %v3503_v45, %v2387_v28 }
 0x6dd   : > { %v3370_v55 = vpop.permute.xlu0 %3369  ;;  %v3380_v39 = vpop.permute.xlu2 %3379 }
 0x6de   : > { %v3372_v56 = vunpack.i.h.bf16 %v3370_v55  ;;  %v3371_v40 = vunpack.i.l.bf16 %v3370_v55  ;;  %v3382_v54 = vunpack.i.h.bf16 %v3380_v39  ;;  %v3381_v33 = vunpack.i.l.bf16 %v3380_v39 }
 0x6df   : > { %v2389_v55 = vadd.f32 %v3503_v45, %v2388_v32 }
 0x6e0   : > { %v1744_v62 = vsel %vm1205_vm4, %v1322_v50, %v3371_v40  ;;  %v2299_v5 = vsel %vm1205_vm4, %v1873_v14, %v3372_v56  ;;  %v3533_v40 = vld [vmem:[#allocation2 + $0x28] sm:$0xff] }
 0x6ed   : > { %v3385_v13 = vpop.permute.xlu1 %3384 }
 0x6ee   : > { %v3387_v26 = vunpack.i.h.bf16 %v3385_v13  ;;  %v3386_v38 = vunpack.i.l.bf16 %v3385_v13 }
 0x6f0   : > { %v2300_v11 = vsel %vm1205_vm4, %v4377_v44, %v3386_v38  ;;  %v2301_v59 = vsel %vm1205_vm4, %v1879_v4, %v3387_v26  ;;  %v3399_v44 = vld [vmem:[%s4738_s9] ss:$0 sm:$0xff] }
 0x6ff   : > { %v3375_v18 = vpop.permute.xlu0 %3374 }
 0x700   : > { %v3377_v57 = vunpack.i.h.bf16 %v3375_v18  ;;  %v3376_v60 = vunpack.i.l.bf16 %v3375_v18  ;;  %v4418_v18 = vsel %vm2390_vm7, %v3503_v45, %v2389_v55 }
 0x702   : > { %v2302_v1 = vsel %vm1745_vm6, %v2299_v5, %v3377_v57  ;;  %v1748_v19 = vsel %vm1745_vm6, %v1744_v62, %v3376_v60 }
 0x703   : > { %v1751_v7 = vsel %vm1247_vm5, %v1748_v19, %v3381_v33  ;;  %v2305_v2 = vsel %vm1247_vm5, %v2302_v1, %v3382_v54 }
 0x704   : > { %v2309_v27 = vpack.c.bf16 %v2305_v2, %v1751_v7 }
 0x706   : > { %3195 = vmatmul.msk.bf16.gmra.mxu1 %vm1156_vm3, %v2309_v27 }
 0x70f   : > { %v3390_v9 = vpop.permute.xlu0 %3389 }
 0x710   : > { %v3392_v58 = vunpack.i.h.bf16 %v3390_v9  ;;  %v3391_v61 = vunpack.i.l.bf16 %v3390_v9 }
 0x712   : > { %v2304_v8 = vsel %vm1745_vm6, %v2301_v59, %v3392_v58  ;;  %v2303_v43 = vsel %vm1745_vm6, %v2300_v11, %v3391_v61 }
 0x730   : > { %v3395_v50 = vpop.permute.xlu1 %3394 }
 0x731   : > { %v3397_v37 = vunpack.i.h.bf16 %v3395_v50  ;;  %v3396_v3 = vunpack.i.l.bf16 %v3395_v50 }
 0x733   : > { %v2306_v10 = vsel %vm1247_vm5, %v2303_v43, %v3396_v3  ;;  %v2307_v14 = vsel %vm1247_vm5, %v2304_v8, %v3397_v37 }
 0x734   : > { %v2310_v16 = vpack.c.bf16 %v2307_v14, %v2306_v10 }
 0x736   : > { %3196 = vmatmul.msk.bf16.gmra.mxu1 %vm1156_vm3, %v2310_v16 }
 0x748   : > { %v2344_v31 = vpop.f32.mrf.mxu1 }
 0x749   : > { %v2345_v29 = vadd.f32 %v3399_v44, %v2344_v31 }
 0x74b   : > { %v2359_v12 = vadd.f32 %v3528_v0, %v2345_v29 }
 0x74d   : > { %v2367_v4 = vsel %vm1156_vm3, %v2359_v12, 0.0 }
 0x74e   : > { %2368 = vadd.xlane.f32.xlu0 %v2367_v4  ;;  %v3250_v4 = vld [vmem:[%s3737_s23 + $0x8] sm:$0xff] }
 0x74f   : > { %2562 = vmatpush.bf16.msra.mxu3 %v3250_v4 }
 0x750   : > { %v2346_v15 = vpop.f32.mrf.mxu1 }
 0x751   : > { %v2347_v36 = vadd.f32 %v3399_v44, %v2346_v15 }
 0x753   : > { %v2360_v53 = vadd.f32 %v3529_v17, %v2347_v36  ;;  %v3249_v17 = vld [vmem:[%s3737_s23] sm:$0xff] }
 0x754   : > { %2563 = vmatpush.bf16.msra.mxu3 %v3249_v17 }
 0x755   : > { %v2370_v23 = vsel %vm1156_vm3, %v2360_v53, 0.0 }
 0x756   : > { %2371 = vadd.xlane.f32.xlu1 %v2370_v23 }
 0x783   : > { %v2349_v21 = vpop.f32.mrf.mxu1 }
 0x784   : > { %v2350_v6 = vadd.f32 %v3399_v44, %v2349_v21 }
 0x786   : > { %v2361_v24 = vadd.f32 %v3530_v22, %v2350_v6 }
 0x788   : > { %v2373_v48 = vsel %vm1156_vm3, %v2361_v24, 0.0 }
 0x789   : > { %2374 = vadd.xlane.f32.xlu2 %v2373_v48 }
 0x78b   : > { %v2351_v30 = vpop.f32.mrf.mxu1 }
 0x78c   : > { %v2352_v41 = vadd.f32 %v3399_v44, %v2351_v30 }
 0x78e   : > { %v2362_v49 = vadd.f32 %v3531_v52, %v2352_v41 }
 0x790   : > { %v2376_v25 = vsel %vm1156_vm3, %v2362_v49, 0.0 }
 0x791   : > { %2377 = vadd.xlane.f32.xlu0 %v2376_v25 }
 0x7b3   : > { %v2354_v35 = vpop.f32.mrf.mxu1 }
 0x7b4   : > { %v2355_v46 = vadd.f32 %v3399_v44, %v2354_v35  ;;  %v4466_v35 = vld [vmem:[%s4739_s11] ss:$0 sm:$0xff] }
 0x7b6   : > { %v2363_v20 = vadd.f32 %v3532_v47, %v2355_v46 }
 0x7b8   : > { %v2379_v51 = vsel %vm1156_vm3, %v2363_v20, 0.0 }
 0x7b9   : > { %2380 = vadd.xlane.f32.xlu1 %v2379_v51 }
 0x7bb   : > { %v2356_v34 = vpop.f32.mrf.mxu1 }
 0x7bc   : > { %v2357_v56 = vadd.f32 %v3399_v44, %v2356_v34 }
 0x7be   : > { %v2364_v39 = vadd.f32 %v3533_v40, %v2357_v56 }
 0x7c0   : > { %v2382_v57 = vsel %vm1156_vm3, %v2364_v39, 0.0 }
 0x7c1   : > { %v2369_v60 = vpop.xlane.xlu0 %2368  ;;  %2383 = vadd.xlane.f32.xlu0 %v2382_v57 }
 0x7c2   : > { %v2392_v62 = vmul.f32 %v4418_v18, %v2369_v60 }
 0x7c4   : > { %v4422_v5 = vsub.f32 %v2359_v12, %v2392_v62 }
 0x7c6   : > { %v2404_v54 = vmul.f32 %v4422_v5, %v4422_v5 }
 0x7c8   : > { %v2410_v33 = vsel %vm1156_vm3, %v2404_v54, 0.0 }
 0x7c9   : > { %v2372_v1 = vpop.xlane.xlu1 %2371  ;;  %2411 = vadd.xlane.f32.xlu2 %v2410_v33 }
 0x7ca   : > { %v2393_v19 = vmul.f32 %v4418_v18, %v2372_v1 }
 0x7cc   : > { %v4428_v7 = vsub.f32 %v2360_v53, %v2393_v19 }
 0x7ce   : > { %v2405_v2 = vmul.f32 %v4428_v7, %v4428_v7 }
 0x7d0   : > { %v2413_v27 = vsel %vm1156_vm3, %v2405_v2, 0.0 }
 0x7d1   : > { %2414 = vadd.xlane.f32.xlu1 %v2413_v27 }
 0x7fc   : > { %v2375_v13 = vpop.xlane.xlu2 %2374 }
 0x7fd   : > { %v2394_v9 = vmul.f32 %v4418_v18, %v2375_v13 }
 0x7ff   : > { %v4434_v26 = vsub.f32 %v2361_v24, %v2394_v9 }
 0x801   : > { %v2406_v38 = vmul.f32 %v4434_v26, %v4434_v26 }
 0x803   : > { %v2416_v58 = vsel %vm1156_vm3, %v2406_v38, 0.0 }
 0x804   : > { %v2378_v61 = vpop.xlane.xlu0 %2377  ;;  %2417 = vadd.xlane.f32.xlu0 %v2416_v58 }
 0x805   : > { %v2395_v50 = vmul.f32 %v4418_v18, %v2378_v61 }
 0x807   : > { %v4440_v11 = vsub.f32 %v2362_v49, %v2395_v50 }
 0x809   : > { %v2407_v59 = vmul.f32 %v4440_v11, %v4440_v11 }
 0x80b   : > { %v2419_v37 = vsel %vm1156_vm3, %v2407_v59, 0.0 }
 0x80c   : > { %2420 = vadd.xlane.f32.xlu2 %v2419_v37 }
 0x82c   : > { %v2381_v3 = vpop.xlane.xlu1 %2380 }
 0x82d   : > { %v2396_v8 = vmul.f32 %v4418_v18, %v2381_v3 }
 0x82f   : > { %v4446_v43 = vsub.f32 %v2363_v20, %v2396_v8  ;;  %v4474_v20 = vld [vmem:[%s4740_s22] ss:$0 sm:$0xff] }
 0x831   : > { %v2408_v10 = vmul.f32 %v4446_v43, %v4446_v43 }
 0x833   : > { %v2422_v14 = vsel %vm1156_vm3, %v2408_v10, 0.0 }
 0x834   : > { %v2384_v16 = vpop.xlane.xlu0 %2383  ;;  %2423 = vadd.xlane.f32.xlu1 %v2422_v14 }
 0x835   : > { %v2397_v44 = vmul.f32 %v4418_v18, %v2384_v16 }
 0x837   : > { %v4452_v31 = vsub.f32 %v2364_v39, %v2397_v44 }
 0x839   : > { %v2409_v29 = vmul.f32 %v4452_v31, %v4452_v31 }
 0x83b   : > { %v2425_v0 = vsel %vm1156_vm3, %v2409_v29, 0.0 }
 0x83c   : > { %v2412_v12 = vpop.xlane.xlu2 %2411  ;;  %2426 = vadd.xlane.f32.xlu0 %v2425_v0 }
 0x83d   : > { %v2428_v15 = vmul.f32 %v2412_v12, %v4418_v18 }
 0x83f   : > { %v2434_v36 = vadd.f32 1e-05, %v2428_v15 }
 0x841   : > { %3504 = vrsqrt.f32 %v2434_v36  ;;  %vm2446_vm9 = vweird.f32 %v2434_v36 }
 0x844   : > { %v2415_v53 = vpop.xlane.xlu1 %2414 }
 0x845   : > { %v2429_v23 = vmul.f32 %v2415_v53, %v4418_v18 }
 0x847   : > { %v3505_v21 = vpop.eup %3504  ;;  %v2435_v6 = vadd.f32 1e-05, %v2429_v23 }
 0x848   : > { %v2441_v22 = vmul.f32 %v3505_v21, %v2434_v36  ;;  %vm2447_vm8 = vweird.f32 %v3505_v21 }
 0x849   : > { %3506 = vrsqrt.f32 %v2435_v6  ;;  %vm2448_vm10 = vmor %vm2446_vm9, %vm2447_vm8  ;;  %vm2456_vm12 = vweird.f32 %v2435_v6 }
 0x84a   : > { %v2442_v24 = vmul.f32 %v3505_v21, %v2441_v22 }
 0x84c   : > { %v2443_v48 = vmul.f32 0.5, %v2442_v24 }
 0x84e   : > { %v2444_v30 = vsub.f32 1.5, %v2443_v48 }
 0x84f   : > { %v3507_v41 = vpop.eup %3506 }
 0x850   : > { %v2445_v52 = vmul.f32 %v3505_v21, %v2444_v30  ;;  %v2451_v49 = vmul.f32 %v3507_v41, %v2435_v6  ;;  %vm2457_vm11 = vweird.f32 %v3507_v41 }
 0x851   : > { %vm2458_vm13 = vmor %vm2456_vm12, %vm2457_vm11 }
 0x852   : > { %v2452_v25 = vmul.f32 %v3507_v41, %v2451_v49  ;;  %v2449_v42 = vsel %vm2448_vm10, %v3505_v21, %v2445_v52 }
 0x853   : > { %v2500_v28 = vmul.f32 %v2449_v42, %v4422_v5 }
 0x854   : > { %v2453_v45 = vmul.f32 0.5, %v2452_v25 }
 0x855   : > { %v2509_v32 = vmul.f32 %v4466_v35, %v2500_v28  ;;  %v3254_v28 = vld [vmem:[%s3746_s0 + $0x18] sm:$0xff] }
 0x856   : > { %v2454_v63 = vsub.f32 1.5, %v2453_v45  ;;  %2638 = vmatpush.bf16.msra.mxu2 %v3254_v28 }
 0x857   : > { %v4480_v55 = vadd.f32 %v4474_v20, %v2509_v32 }
 0x858   : > { %v2455_v46 = vmul.f32 %v3507_v41, %v2454_v63 }
 0x85a   : > { %v2459_v47 = vsel %vm2458_vm13, %v3507_v41, %v2455_v46 }
 0x85b   : > { %v2501_v51 = vmul.f32 %v2459_v47, %v4428_v7  ;;  %v3253_v47 = vld [vmem:[%s3746_s0 + $0x10] sm:$0xff] }
 0x85c   : > { %2639 = vmatpush.bf16.msra.mxu2 %v3253_v47 }
 0x85d   : > { %v2510_v34 = vmul.f32 %v4466_v35, %v2501_v51 }
 0x85f   : > { %v4483_v56 = vadd.f32 %v4474_v20, %v2510_v34  ;;  %v3252_v34 = vld [vmem:[%s3746_s0 + $0x8] sm:$0xff] }
 0x860   : > { %2640 = vmatpush.bf16.msra.mxu2 %v3252_v34 }
 0x861   : > { %v2524_v40 = vpack.c.bf16 %v4483_v56, %v4480_v55 }
 0x863   : > { %3205 = vmatmul.msk.bf16.vlgmr.msra.gmra.mxu3 %vm1156_vm3, %v2524_v40  ;;  %v3251_v40 = vld [vmem:[%s3746_s0] sm:$0xff] }
 0x864   : > { %2641 = vmatpush.bf16.msra.mxu2 %v3251_v40 }
 0x877   : > { %v2418_v39 = vpop.xlane.xlu0 %2417 }
 0x878   : > { %v2430_v57 = vmul.f32 %v2418_v39, %v4418_v18 }
 0x87a   : > { %v2436_v60 = vadd.f32 1e-05, %v2430_v57 }
 0x87c   : > { %3508 = vrsqrt.f32 %v2436_v60  ;;  %vm2466_vm15 = vweird.f32 %v2436_v60 }
 0x87f   : > { %v2421_v62 = vpop.xlane.xlu2 %2420 }
 0x880   : > { %v2431_v5 = vmul.f32 %v2421_v62, %v4418_v18 }
 0x882   : > { %v3509_v54 = vpop.eup %3508  ;;  %v2437_v33 = vadd.f32 1e-05, %v2431_v5 }
 0x883   : > { %v2461_v1 = vmul.f32 %v3509_v54, %v2436_v60  ;;  %vm2467_vm14 = vweird.f32 %v3509_v54 }
 0x884   : > { %3510 = vrsqrt.f32 %v2437_v33  ;;  %vm2468_vm1 = vmor %vm2466_vm15, %vm2467_vm14  ;;  %vm2476_vm4 = vweird.f32 %v2437_v33 }
 0x885   : > { %v2462_v19 = vmul.f32 %v3509_v54, %v2461_v1 }
 0x887   : > { %v2463_v7 = vmul.f32 0.5, %v2462_v19 }
 0x889   : > { %v2464_v2 = vsub.f32 1.5, %v2463_v7 }
 0x88a   : > { %v3511_v27 = vpop.eup %3510 }
 0x88b   : > { %v2465_v13 = vmul.f32 %v3509_v54, %v2464_v2  ;;  %v2471_v9 = vmul.f32 %v3511_v27, %v2437_v33  ;;  %vm2477_vm2 = vweird.f32 %v3511_v27 }
 0x88c   : > { %vm2478_vm5 = vmor %vm2476_vm4, %vm2477_vm2 }
 0x88d   : > { %v2472_v38 = vmul.f32 %v3511_v27, %v2471_v9  ;;  %v2469_v58 = vsel %vm2468_vm1, %v3509_v54, %v2465_v13 }
 0x88e   : > { %v2502_v59 = vmul.f32 %v2469_v58, %v4434_v26 }
 0x88f   : > { %v2473_v61 = vmul.f32 0.5, %v2472_v38 }
 0x890   : > { %v2511_v10 = vmul.f32 %v4466_v35, %v2502_v59 }
 0x891   : > { %v2474_v50 = vsub.f32 1.5, %v2473_v61 }
 0x892   : > { %v4495_v16 = vadd.f32 %v4474_v20, %v2511_v10 }
 0x893   : > { %v2475_v37 = vmul.f32 %v3511_v27, %v2474_v50 }
 0x895   : > { %v2479_v3 = vsel %vm2478_vm5, %v3511_v27, %v2475_v37  ;;  %v3403_v37 = vld [vmem:[%s4741_s24] ss:$0 sm:$0xff] }
 0x896   : > { %v2503_v8 = vmul.f32 %v2479_v3, %v4440_v11 }
 0x898   : > { %v2512_v14 = vmul.f32 %v4466_v35, %v2503_v8 }
 0x89a   : > { %v4498_v44 = vadd.f32 %v4474_v20, %v2512_v14 }
 0x89c   : > { %v2525_v29 = vpack.c.bf16 %v4498_v44, %v4495_v16 }
 0x89e   : > { %3206 = vmatmul.msk.bf16.gmra.mxu3 %vm1156_vm3, %v2525_v29 }
 0x8a7   : > { %v2424_v26 = vpop.xlane.xlu1 %2423 }
 0x8a8   : > { %v2432_v0 = vmul.f32 %v2424_v26, %v4418_v18 }
 0x8aa   : > { %v2438_v12 = vadd.f32 1e-05, %v2432_v0 }
 0x8ac   : > { %3512 = vrsqrt.f32 %v2438_v12  ;;  %vm2486_vm7 = vweird.f32 %v2438_v12 }
 0x8af   : > { %v2427_v11 = vpop.xlane.xlu0 %2426 }
 0x8b0   : > { %v2433_v4 = vmul.f32 %v2427_v11, %v4418_v18 }
 0x8b2   : > { %v3513_v15 = vpop.eup %3512  ;;  %v2439_v36 = vadd.f32 1e-05, %v2433_v4 }
 0x8b3   : > { %v2481_v17 = vmul.f32 %v3513_v15, %v2438_v12  ;;  %vm2487_vm6 = vweird.f32 %v3513_v15 }
 0x8b4   : > { %3514 = vrsqrt.f32 %v2439_v36  ;;  %vm2488_vm8 = vmor %vm2486_vm7, %vm2487_vm6  ;;  %vm2496_vm10 = vweird.f32 %v2439_v36 }
 0x8b5   : > { %v2482_v53 = vmul.f32 %v3513_v15, %v2481_v17 }
 0x8b7   : > { %v2483_v23 = vmul.f32 0.5, %v2482_v53 }
 0x8b9   : > { %v2484_v21 = vsub.f32 1.5, %v2483_v23 }
 0x8ba   : > { %v3515_v6 = vpop.eup %3514 }
 0x8bb   : > { %v2485_v22 = vmul.f32 %v3513_v15, %v2484_v21  ;;  %v2491_v24 = vmul.f32 %v3515_v6, %v2439_v36  ;;  %vm2497_vm9 = vweird.f32 %v3515_v6 }
 0x8bc   : > { %vm2498_vm11 = vmor %vm2496_vm10, %vm2497_vm9 }
 0x8bd   : > { %v2492_v48 = vmul.f32 %v3515_v6, %v2491_v24  ;;  %v2489_v30 = vsel %vm2488_vm8, %v3513_v15, %v2485_v22 }
 0x8be   : > { %v2504_v49 = vmul.f32 %v2489_v30, %v4446_v43 }
 0x8bf   : > { %v2493_v41 = vmul.f32 0.5, %v2492_v48 }
 0x8c0   : > { %v2513_v63 = vmul.f32 %v4466_v35, %v2504_v49 }
 0x8c1   : > { %v2494_v52 = vsub.f32 1.5, %v2493_v41 }
 0x8c2   : > { %v2522_v32 = vadd.f32 %v4474_v20, %v2513_v63 }
 0x8c3   : > { %v2495_v25 = vmul.f32 %v3515_v6, %v2494_v52 }
 0x8c5   : > { %v2499_v42 = vsel %vm2498_vm11, %v3515_v6, %v2495_v25 }
 0x8c6   : > { %v2505_v45 = vmul.f32 %v2499_v42, %v4452_v31 }
 0x8c8   : > { %v2514_v46 = vmul.f32 %v4466_v35, %v2505_v45  ;;  %v3402_v35 = vld [vmem:[%s916_s28] ss:$0 sm:$0xff] }
 0x8ca   : > { %v2523_v43 = vadd.f32 %v4474_v20, %v2514_v46 }
 0x8cc   : > { %v2526_v51 = vpack.c.bf16 %v2523_v43, %v2522_v32 }
 0x8ce   : > { %3207 = vmatmul.msk.bf16.gmra.mxu3 %vm1156_vm3, %v2526_v51 }
 0x8e6   : > { %v2565_v31 = vpop.f32.mrf.mxu3 }
 0x8e7   : > { %v2566_v39 = vadd.f32 %v3402_v35, %v2565_v31 }
 0x8e9   : > { %v2580_v62 = vmax.f32 %v2566_v39, 0.0 }
 0x8ee   : > { %v2567_v57 = vpop.f32.mrf.mxu3 }
 0x8ef   : > { %v2568_v60 = vadd.f32 %v3402_v35, %v2567_v57 }
 0x8f1   : > { %v2581_v5 = vmax.f32 %v2568_v60, 0.0 }
 0x8f3   : > { %v2586_v20 = vpack.c.bf16 %v2581_v5, %v2580_v62 }
 0x8f5   : > { %3224 = vmatmul.msk.bf16.vlgmr.msra.gmra.mxu2 %vm978_vm0, %v2586_v20 }
 0x921   : > { %v2570_v54 = vpop.f32.mrf.mxu3 }
 0x922   : > { %v2571_v33 = vadd.f32 %v3402_v35, %v2570_v54 }
 0x924   : > { %v2582_v7 = vmax.f32 %v2571_v33, 0.0 }
 0x929   : > { %v2572_v1 = vpop.f32.mrf.mxu3 }
 0x92a   : > { %v2573_v19 = vadd.f32 %v3402_v35, %v2572_v1 }
 0x92c   : > { %v2583_v2 = vmax.f32 %v2573_v19, 0.0 }
 0x92e   : > { %v2587_v27 = vpack.c.bf16 %v2583_v2, %v2582_v7 }
 0x930   : > { %3225 = vmatmul.msk.bf16.gmra.mxu2 %vm978_vm0, %v2587_v27 }
 0x951   : > { %v2575_v13 = vpop.f32.mrf.mxu3 }
 0x952   : > { %v2576_v9 = vadd.f32 %v3402_v35, %v2575_v13 }
 0x954   : > { %v2584_v61 = vmax.f32 %v2576_v9, 0.0 }
 0x959   : > { %v2577_v38 = vpop.f32.mrf.mxu3 }
 0x95a   : > { %v2578_v58 = vadd.f32 %v3402_v35, %v2577_v38 }
 0x95c   : > { %v2585_v50 = vmax.f32 %v2578_v58, 0.0 }
 0x95e   : > { %v2588_v59 = vpack.c.bf16 %v2585_v50, %v2584_v61 }
 0x960   : > { %3226 = vmatmul.msk.bf16.gmra.mxu2 %vm978_vm0, %v2588_v59 }
 0x978   : > { %v2643_v3 = vpop.f32.mrf.mxu2 }
 0x979   : > { %v2644_v8 = vadd.f32 %v3403_v37, %v2643_v3 }
 0x97b   : > { %v2658_v10 = vadd.f32 %v2644_v8, %v4480_v55 }
 0x97d   : > { %v2666_v14 = vsel %vm1156_vm3, %v2658_v10, 0.0 }
 0x97e   : > { %2667 = vadd.xlane.f32.xlu2 %v2666_v14 }
 0x980   : > { %v2645_v29 = vpop.f32.mrf.mxu2 }
 0x981   : > { %v2646_v26 = vadd.f32 %v3403_v37, %v2645_v29 }
 0x983   : > { %v2659_v0 = vadd.f32 %v2646_v26, %v4483_v56  ;;  %v4578_v26 = vld [vmem:[%s927_s5] ss:$0 sm:$0xff] }
 0x985   : > { %v2669_v12 = vsel %vm1156_vm3, %v2659_v0, 0.0 }
 0x986   : > { %2670 = vadd.xlane.f32.xlu1 %v2669_v12 }
 0x9b3   : > { %v2648_v11 = vpop.f32.mrf.mxu2 }
 0x9b4   : > { %v2649_v4 = vadd.f32 %v3403_v37, %v2648_v11  ;;  %v4585_v11 = vld [vmem:[%s930_s15] ss:$0 sm:$0xff]  ;;  %s4742_s15 = sld [smem:[#allocation5_spill]] }
 0x9b6   : > { %v2660_v15 = vadd.f32 %v2649_v4, %v4495_v16 }
 0x9b8   : > { %v2672_v36 = vsel %vm1156_vm3, %v2660_v15, 0.0 }
 0x9b9   : > { %2673 = vadd.xlane.f32.xlu0 %v2672_v36 }
 0x9ba   : > { %p3227_p7 = scmp.ne.s32.totalorder %s4742_s15, 2 }
 0x9bb   : > { %v2650_v17 = vpop.f32.mrf.mxu2  ;;  %s4743_s9 = sld [smem:[#allocation18_spill]] (!%p3227_p7) }
 0x9bc   : > { %v2651_v53 = vadd.f32 %v3403_v37, %v2650_v17  ;;  %s4744_s28 = sld [smem:[#allocation19_spill]] (!%p3227_p7) }
 0x9be   : > { %v2661_v55 = vadd.f32 %v2651_v53, %v4498_v44 }
 0x9c0   : > { %v2675_v23 = vsel %vm1156_vm3, %v2661_v55, 0.0 }
 0x9c1   : > { %2676 = vadd.xlane.f32.xlu2 %v2675_v23 }
 0x9e3   : > { %v2653_v21 = vpop.f32.mrf.mxu2 }
 0x9e4   : > { %v2654_v6 = vadd.f32 %v3403_v37, %v2653_v21 }
 0x9e6   : > { %v2662_v56 = vadd.f32 %v2654_v6, %v2522_v32 }
 0x9e8   : > { %v2678_v22 = vsel %vm1156_vm3, %v2662_v56, 0.0 }
 0x9e9   : > { %2679 = vadd.xlane.f32.xlu1 %v2678_v22 }
 0x9eb   : > { %v2655_v24 = vpop.f32.mrf.mxu2 }
 0x9ec   : > { %v2656_v48 = vadd.f32 %v3403_v37, %v2655_v24 }
 0x9ee   : > { %v2663_v30 = vadd.f32 %v2656_v48, %v2523_v43 }
 0x9f0   : > { %v2681_v16 = vsel %vm1156_vm3, %v2663_v30, 0.0 }
 0x9f1   : > { %v2668_v41 = vpop.xlane.xlu2 %2667  ;;  %2682 = vadd.xlane.f32.xlu0 %v2681_v16 }
 0x9f2   : > { %v2684_v52 = vmul.f32 %v2668_v41, %v4418_v18 }
 0x9f4   : > { %v2690_v49 = vsub.f32 %v2658_v10, %v2684_v52 }
 0x9f6   : > { %v2696_v44 = vmul.f32 %v2690_v49, %v2690_v49 }
 0x9f8   : > { %v2702_v25 = vsel %vm1156_vm3, %v2696_v44, 0.0 }
 0x9f9   : > { %2703 = vadd.xlane.f32.xlu2 %v2702_v25  ;;  %v2671_v42 = vpop.xlane.xlu1 %2670 }
 0x9fa   : > { %v2685_v45 = vmul.f32 %v2671_v42, %v4418_v18 }
 0x9fc   : > { %v4542_v63 = vsub.f32 %v2659_v0, %v2685_v45 }
 0x9fe   : > { %v2697_v28 = vmul.f32 %v4542_v63, %v4542_v63 }
 0xa00   : > { %v2705_v46 = vsel %vm1156_vm3, %v2697_v28, 0.0 }
 0xa01   : > { %2706 = vadd.xlane.f32.xlu1 %v2705_v46 }
 0xa2c   : > { %v2674_v47 = vpop.xlane.xlu0 %2673 }
 0xa2d   : > { %v2686_v32 = vmul.f32 %v2674_v47, %v4418_v18 }
 0xa2f   : > { %v4548_v43 = vsub.f32 %v2660_v15, %v2686_v32 }
 0xa31   : > { %v2698_v51 = vmul.f32 %v4548_v43, %v4548_v43 }
 0xa33   : > { %v2708_v34 = vsel %vm1156_vm3, %v2698_v51, 0.0 }
 0xa34   : > { %v2677_v40 = vpop.xlane.xlu2 %2676  ;;  %2709 = vadd.xlane.f32.xlu0 %v2708_v34 }
 0xa35   : > { %v2687_v31 = vmul.f32 %v2677_v40, %v4418_v18 }
 0xa37   : > { %v4554_v35 = vsub.f32 %v2661_v55, %v2687_v31 }
 0xa39   : > { %v2699_v39 = vmul.f32 %v4554_v35, %v4554_v35 }
 0xa3b   : > { %v2711_v57 = vsel %vm1156_vm3, %v2699_v39, 0.0 }
 0xa3c   : > { %2712 = vadd.xlane.f32.xlu2 %v2711_v57 }
 0xa5c   : > { %v2680_v60 = vpop.xlane.xlu1 %2679 }
 0xa5d   : > { %v2688_v62 = vmul.f32 %v2680_v60, %v4418_v18 }
 0xa5f   : > { %v4560_v5 = vsub.f32 %v2662_v56, %v2688_v62 }
 0xa61   : > { %v2700_v20 = vmul.f32 %v4560_v5, %v4560_v5 }
 0xa63   : > { %v2714_v54 = vsel %vm1156_vm3, %v2700_v20, 0.0 }
 0xa64   : > { %v2683_v33 = vpop.xlane.xlu0 %2682  ;;  %2715 = vadd.xlane.f32.xlu1 %v2714_v54 }
 0xa65   : > { %v2689_v1 = vmul.f32 %v2683_v33, %v4418_v18 }
 0xa67   : > { %v4566_v19 = vsub.f32 %v2663_v30, %v2689_v1 }
 0xa69   : > { %v2701_v7 = vmul.f32 %v4566_v19, %v4566_v19 }
 0xa6b   : > { %v2717_v2 = vsel %vm1156_vm3, %v2701_v7, 0.0 }
 0xa6c   : > { %v2704_v27 = vpop.xlane.xlu2 %2703  ;;  %2718 = vadd.xlane.f32.xlu0 %v2717_v2 }
 0xa6d   : > { %v2720_v13 = vmul.f32 %v2704_v27, %v4418_v18 }
 0xa6f   : > { %v2726_v9 = vadd.f32 1e-05, %v2720_v13 }
 0xa71   : > { %3516 = vrsqrt.f32 %v2726_v9  ;;  %vm2738_vm13 = vweird.f32 %v2726_v9 }
 0xa74   : > { %v2707_v38 = vpop.xlane.xlu1 %2706 }
 0xa75   : > { %v2721_v58 = vmul.f32 %v2707_v38, %v4418_v18 }
 0xa77   : > { %v3517_v61 = vpop.eup %3516  ;;  %v2727_v50 = vadd.f32 1e-05, %v2721_v58 }
 0xa78   : > { %v2733_v59 = vmul.f32 %v3517_v61, %v2726_v9  ;;  %vm2739_vm12 = vweird.f32 %v3517_v61 }
 0xa79   : > { %3518 = vrsqrt.f32 %v2727_v50  ;;  %vm2740_vm14 = vmor %vm2738_vm13, %vm2739_vm12  ;;  %vm2748_vm1 = vweird.f32 %v2727_v50 }
 0xa7a   : > { %v2734_v37 = vmul.f32 %v3517_v61, %v2733_v59 }
 0xa7c   : > { %v2735_v3 = vmul.f32 0.5, %v2734_v37 }
 0xa7e   : > { %v2736_v8 = vsub.f32 1.5, %v2735_v3 }
 0xa7f   : > { %v3519_v10 = vpop.eup %3518 }
 0xa80   : > { %v2737_v14 = vmul.f32 %v3517_v61, %v2736_v8  ;;  %v2743_v29 = vmul.f32 %v3519_v10, %v2727_v50  ;;  %vm2749_vm15 = vweird.f32 %v3519_v10 }
 0xa81   : > { %vm2750_vm2 = vmor %vm2748_vm1, %vm2749_vm15 }
 0xa82   : > { %v2741_v0 = vsel %vm2740_vm14, %v3517_v61, %v2737_v14  ;;  %v2744_v12 = vmul.f32 %v3519_v10, %v2743_v29 }
 0xa83   : > { %v2792_v4 = vmul.f32 %v2741_v0, %v2690_v49 }
 0xa84   : > { %v2745_v15 = vmul.f32 0.5, %v2744_v12 }
 0xa85   : > { %v2801_v36 = vmul.f32 %v4578_v26, %v2792_v4 }
 0xa86   : > { %v2746_v17 = vsub.f32 1.5, %v2745_v15 }
 0xa87   : > { %v4589_v53 = vadd.f32 %v4585_v11, %v2801_v36 }
 0xa88   : > { %v2747_v55 = vmul.f32 %v3519_v10, %v2746_v17 }
 0xa89   : > { %2816 = vst.msk [vmem:[#allocation2] sm:$0xff] %vm1156_vm3, %v4589_v53 }
 0xa8a   : > { %v2751_v23 = vsel %vm2750_vm2, %v3519_v10, %v2747_v55 }
 0xa8b   : > { %v2793_v21 = vmul.f32 %v2751_v23, %v4542_v63 }
 0xa8d   : > { %v2802_v6 = vmul.f32 %v4578_v26, %v2793_v21 }
 0xa8f   : > { %v4596_v56 = vadd.f32 %v4585_v11, %v2802_v6 }
 0xa91   : > { %2817 = vst.msk [vmem:[#allocation2 + $0x8] sm:$0xff] %vm1156_vm3, %v4596_v56 }
 0xaa7   : > { %v2710_v22 = vpop.xlane.xlu0 %2709 }
 0xaa8   : > { %v2722_v24 = vmul.f32 %v2710_v22, %v4418_v18 }
 0xaaa   : > { %v2728_v48 = vadd.f32 1e-05, %v2722_v24 }
 0xaac   : > { %3520 = vrsqrt.f32 %v2728_v48  ;;  %vm2758_vm5 = vweird.f32 %v2728_v48 }
 0xaaf   : > { %v2713_v30 = vpop.xlane.xlu2 %2712 }
 0xab0   : > { %v2723_v16 = vmul.f32 %v2713_v30, %v4418_v18 }
 0xab2   : > { %v3521_v41 = vpop.eup %3520  ;;  %v2729_v52 = vadd.f32 1e-05, %v2723_v16 }
 0xab3   : > { %v2753_v49 = vmul.f32 %v3521_v41, %v2728_v48  ;;  %vm2759_vm4 = vweird.f32 %v3521_v41 }
 0xab4   : > { %3522 = vrsqrt.f32 %v2729_v52  ;;  %vm2760_vm6 = vmor %vm2758_vm5, %vm2759_vm4  ;;  %vm2768_vm8 = vweird.f32 %v2729_v52 }
 0xab5   : > { %v2754_v44 = vmul.f32 %v3521_v41, %v2753_v49 }
 0xab7   : > { %v2755_v25 = vmul.f32 0.5, %v2754_v44 }
 0xab9   : > { %v2756_v42 = vsub.f32 1.5, %v2755_v25 }
 0xaba   : > { %v3523_v45 = vpop.eup %3522 }
 0xabb   : > { %v2757_v63 = vmul.f32 %v3521_v41, %v2756_v42  ;;  %v2763_v28 = vmul.f32 %v3523_v45, %v2729_v52  ;;  %vm2769_vm7 = vweird.f32 %v3523_v45 }
 0xabc   : > { %vm2770_vm9 = vmor %vm2768_vm8, %vm2769_vm7 }
 0xabd   : > { %v2761_v46 = vsel %vm2760_vm6, %v3521_v41, %v2757_v63  ;;  %v2764_v47 = vmul.f32 %v3523_v45, %v2763_v28 }
 0xabe   : > { %v2794_v32 = vmul.f32 %v2761_v46, %v4548_v43 }
 0xabf   : > { %v2765_v51 = vmul.f32 0.5, %v2764_v47 }
 0xac0   : > { %v2803_v34 = vmul.f32 %v4578_v26, %v2794_v32 }
 0xac1   : > { %v2766_v40 = vsub.f32 1.5, %v2765_v51 }
 0xac2   : > { %v4605_v31 = vadd.f32 %v4585_v11, %v2803_v34 }
 0xac3   : > { %v2767_v39 = vmul.f32 %v3523_v45, %v2766_v40 }
 0xac4   : > { %2818 = vst.msk [vmem:[#allocation2 + $0x10] sm:$0xff] %vm1156_vm3, %v4605_v31 }
 0xac5   : > { %v2771_v57 = vsel %vm2770_vm9, %v3523_v45, %v2767_v39 }
 0xac6   : > { %v2795_v60 = vmul.f32 %v2771_v57, %v4554_v35 }
 0xac8   : > { %v2804_v62 = vmul.f32 %v4578_v26, %v2795_v60 }
 0xaca   : > { %v4612_v43 = vadd.f32 %v4585_v11, %v2804_v62 }
 0xacc   : > { %2819 = vst.msk [vmem:[#allocation2 + $0x18] sm:$0xff] %vm1156_vm3, %v4612_v43 }
 0xad7   : > { %v2716_v20 = vpop.xlane.xlu1 %2715 }
 0xad8   : > { %v2724_v54 = vmul.f32 %v2716_v20, %v4418_v18 }
 0xada   : > { %v2730_v33 = vadd.f32 1e-05, %v2724_v54 }
 0xadc   : > { %3524 = vrsqrt.f32 %v2730_v33  ;;  %vm2778_vm11 = vweird.f32 %v2730_v33 }
 0xadf   : > { %v2719_v1 = vpop.xlane.xlu0 %2718 }
 0xae0   : > { %v2725_v7 = vmul.f32 %v2719_v1, %v4418_v18 }
 0xae2   : > { %v3525_v2 = vpop.eup %3524  ;;  %v2731_v27 = vadd.f32 1e-05, %v2725_v7 }
 0xae3   : > { %v2773_v13 = vmul.f32 %v3525_v2, %v2730_v33  ;;  %vm2779_vm10 = vweird.f32 %v3525_v2 }
 0xae4   : > { %3526 = vrsqrt.f32 %v2731_v27  ;;  %vm2780_vm12 = vmor %vm2778_vm11, %vm2779_vm10  ;;  %vm2788_vm14 = vweird.f32 %v2731_v27 }
 0xae5   : > { %v2774_v35 = vmul.f32 %v3525_v2, %v2773_v13 }
 0xae7   : > { %v2775_v9 = vmul.f32 0.5, %v2774_v35 }
 0xae9   : > { %v2776_v38 = vsub.f32 1.5, %v2775_v9 }
 0xaea   : > { %v3527_v58 = vpop.eup %3526 }
 0xaeb   : > { %v2777_v61 = vmul.f32 %v3525_v2, %v2776_v38  ;;  %v2783_v50 = vmul.f32 %v3527_v58, %v2731_v27  ;;  %vm2789_vm13 = vweird.f32 %v3527_v58 }
 0xaec   : > { %vm2790_vm15 = vmor %vm2788_vm14, %vm2789_vm13 }
 0xaed   : > { %v2781_v59 = vsel %vm2780_vm12, %v3525_v2, %v2777_v61  ;;  %v2784_v37 = vmul.f32 %v3527_v58, %v2783_v50 }
 0xaee   : > { %v2796_v3 = vmul.f32 %v2781_v59, %v4560_v5 }
 0xaef   : > { %v2785_v8 = vmul.f32 0.5, %v2784_v37 }
 0xaf0   : > { %v2805_v18 = vmul.f32 %v4578_v26, %v2796_v3 }
 0xaf1   : > { %v2786_v10 = vsub.f32 1.5, %v2785_v8 }
 0xaf2   : > { %v2814_v14 = vadd.f32 %v4585_v11, %v2805_v18 }
 0xaf3   : > { %v2787_v29 = vmul.f32 %v3527_v58, %v2786_v10 }
 0xaf4   : > { %2820 = vst.msk [vmem:[#allocation2 + $0x20] sm:$0xff] %vm1156_vm3, %v2814_v14 }
 0xaf5   : > { %v2791_v0 = vsel %vm2790_vm15, %v3527_v58, %v2787_v29 }
 0xaf6   : > { %v2797_v12 = vmul.f32 %v2791_v0, %v4566_v19 }
 0xaf8   : > { %v2806_v4 = vmul.f32 %v4578_v26, %v2797_v12  ;;  %2825 = sbr.rel (%p3227_p7) target bundleno = 2964 (0xb94), region = 124 }
 0xafa   : > { %v2815_v15 = vadd.f32 %v4585_v11, %v2806_v4 }
 0xafc   : > { %2821 = vst.msk [vmem:[#allocation2 + $0x28] sm:$0xff] %vm1156_vm3, %v2815_v15 }
 0xafd   : > { %v2829_v5 = vld [vmem:[%s4743_s9 + $0x18] sm:$0xff]  ;;  %v2828_v36 = vld [vmem:[%s4743_s9 + $0x10] sm:$0xff]  ;;  %v2827_v19 = vld [vmem:[%s4743_s9 + $0x8] sm:$0xff]  ;;  %v3559_v17 = vmov 0  }
 0xafe   : > { %3265 = vmatpush.msra.mxu3 %v2829_v5  ;;  %3263 = vmatpush.msra.mxu1 %v2829_v5  ;;  %v2826_v26 = vld [vmem:[%s4743_s9] sm:$0xff]  ;;  %v3535_v11 = vld [vmem:[#allocation3] ss:$0 sm:$0xff] }
 0xaff   : > { %3264 = vmatpush.msra.mxu2 %v2829_v5  ;;  %2867 = vmatpush.msra.mxu0 %v2829_v5 }
 0xb00   : > { %3268 = vmatpush.msra.mxu3 %v2828_v36  ;;  %3266 = vmatpush.msra.mxu1 %v2828_v36 }
 0xb01   : > { %3267 = vmatpush.msra.mxu2 %v2828_v36  ;;  %2868 = vmatpush.msra.mxu0 %v2828_v36 }
 0xb02   : > { %3271 = vmatpush.msra.mxu3 %v2827_v19  ;;  %3269 = vmatpush.msra.mxu1 %v2827_v19 }
 0xb03   : > { %3270 = vmatpush.msra.mxu2 %v2827_v19  ;;  %2869 = vmatpush.msra.mxu0 %v2827_v19 }
 0xb04   : > { %3274 = vmatpush.msra.mxu3 %v2826_v26  ;;  %3272 = vmatpush.msra.mxu1 %v2826_v26 }
 0xb05   : > { %3232 = vmatmul.msk.f32.vlgmr.msra.gmra.mxu3 %vm1156_vm3, %v2814_v14  ;;  %3229 = vmatmul.msk.f32.vlgmr.msra.gmra.mxu1 %vm1156_vm3, %v4596_v56 }
 0xb06   : > { %3273 = vmatpush.msra.mxu2 %v2826_v26  ;;  %2870 = vmatpush.msra.mxu0 %v2826_v26 }
 0xb07   : > { %3231 = vmatmul.msk.f32.vlgmr.msra.gmra.mxu2 %vm1156_vm3, %v4612_v43  ;;  %3228 = vmatmul.msk.f32.vlgmr.msra.gmra.mxu0 %vm1156_vm3, %v4589_v53 }
 0xb08   : > { %3534 = vset.pattern.permute.xlu0 %v3559_v17 }
 0xb09   : > { %2834 = vperm.xlu0 %3534, %v3535_v11  }
 0xb0d   : > { %3233 = vmatmul.msk.f32.gmra.mxu3 %vm1156_vm3, %v2815_v15  ;;  %3230 = vmatmul.msk.f32.gmra.mxu1 %vm1156_vm3, %v4605_v31 }
 0xb7b   : > { %v2835_v55 = vpop.permute.xlu0 %2834 }
 0xb82   : > { %v2875_v23 = vpop.f32.mrf.mxu1 }
 0xb83   : > { %v2876_v21 = vadd.f32 %v2875_v23, %v2835_v55 }
 0xb84   : > { %v2872_v6 = vpop.f32.mrf.mxu0 }
 0xb85   : > { %2891 = vst.msk [vmem:[%s4744_s28 + $0x8] sm:$0xff] %vm978_vm0, %v2876_v21  ;;  %v2873_v56 = vadd.f32 %v2872_v6, %v2835_v55 }
 0xb87   : > { %2890 = vst.msk [vmem:[%s4744_s28] sm:$0xff] %vm978_vm0, %v2873_v56 }
 0xb88   : > { %v2884_v53 = vpop.f32.mrf.mxu3 }
 0xb89   : > { %v2885_v22 = vadd.f32 %v2884_v53, %v2835_v55 }
 0xb8a   : > { %v2878_v24 = vpop.f32.mrf.mxu1  ;;  %v2881_v48 = vpop.f32.mrf.mxu2 }
 0xb8b   : > { %2894 = vst.msk [vmem:[%s4744_s28 + $0x20] sm:$0xff] %vm978_vm0, %v2885_v22  ;;  %v2879_v30 = vadd.f32 %v2878_v24, %v2835_v55  ;;  %v2882_v16 = vadd.f32 %v2881_v48, %v2835_v55 }
 0xb8d   : > { %2892 = vst.msk [vmem:[%s4744_s28 + $0x10] sm:$0xff] %vm978_vm0, %v2879_v30 }
 0xb8e   : > { %2893 = vst.msk [vmem:[%s4744_s28 + $0x18] sm:$0xff] %vm978_vm0, %v2882_v16 }
 0xb90   : > { %v2887_v41 = vpop.f32.mrf.mxu3 }
 0xb91   : > { %v2888_v52 = vadd.f32 %v2887_v41, %v2835_v55 }
 0xb93   : > { %2895 = vst.msk [vmem:[%s4744_s28 + $0x28] sm:$0xff] %vm978_vm0, %v2888_v52 }
 0xb94 PF: > { %s4745_s30 = sld [smem:[#allocation4_spill]] }
 0xb9a   : > { %s35_s24 = sadd.s32 1, %s4745_s30  }
 0xb9b   : > { %p32_p8 = scmp.ge.s32.totalorder %s35_s24, 5  }
 0xb9d   :  { %34 = sbr.rel (!%p32_p8) target bundleno = 14 (0xe), region = 192 }

// kernel: clip_dense_pred_t_forward.2
= control target key start
LH: loop header
LB: loop body
LE: loop exit
PB: predicated region body
PF: predicated region fallthrough
CT: control target
= control target key end

     0   :  { %s4324_s27 = smov 0   ;;  %s5572_s0 = inlined_call_operand.vmem [shape: f32[2,24,192], index: 0, kind: input, shape index: {}]   ;;  %s5573_s1 = inlined_call_operand.vmem [shape: bf16[192,64], index: 1, kind: input, shape index: {}]   ;;  %s5574_s2 = inlined_call_operand.vmem [shape: f32[24,64], index: 2, kind: input, shape index: {}]   ;;  %s5575_s3 = inlined_call_operand.vmem [shape: f32[1,64], index: 3, kind: input, shape index: {}]   ;;  %s5576_s4 = inlined_call_operand.vmem [shape: f32[1,64], index: 4, kind: input, shape index: {}]   ;;  %s5577_s5 = inlined_call_operand.vmem [shape: f32[1,24], index: 5, kind: input, shape index: {}]   ;;  %s5578_s6 = inlined_call_operand.vmem [shape: f32[4,1,64], index: 6, kind: input, shape index: {}]   ;;  %s5579_s7 = inlined_call_operand.vmem [shape: f32[4,1,64], index: 7, kind: input, shape index: {}]   ;;  %s5580_s8 = inlined_call_operand.vmem [shape: bf16[4,64,192], index: 8, kind: input, shape index: {}]   ;;  %s5581_s9 = inlined_call_operand.vmem [shape: f32[4,1,192], index: 9, kind: input, shape index: {}]   ;;  %s5582_s10 = inlined_call_operand.vmem [shape: bf16[4,64,64], index: 10, kind: input, shape index: {}]   ;;  %s5583_s11 = inlined_call_operand.vmem [shape: f32[4,1,64], index: 11, kind: input, shape index: {}]   ;;  %s5584_s12 = inlined_call_operand.vmem [shape: f32[4,1,64], index: 12, kind: input, shape index: {}]   ;;  %s5585_s13 = inlined_call_operand.vmem [shape: f32[4,1,64], index: 13, kind: input, shape index: {}]   ;;  %s5586_s14 = inlined_call_operand.vmem [shape: bf16[4,64,256], index: 14, kind: input, shape index: {}]   ;;  %s5587_s15 = inlined_call_operand.vmem [shape: f32[4,1,256], index: 15, kind: input, shape index: {}]   ;;  %s5588_s16 = inlined_call_operand.vmem [shape: bf16[4,256,64], index: 16, kind: input, shape index: {}]   ;;  %s5589_s17 = inlined_call_operand.vmem [shape: f32[4,1,64], index: 17, kind: input, shape index: {}]   ;;  %s5590_s18 = inlined_call_operand.vmem [shape: f32[3,2,24,64], index: 18, kind: output, shape index: {}]  }
   0x1   :  { %5597 = sst [smem:[#allocation6_spill]] %s5572_s0 }
   0x2   :  { %5598 = sst [smem:[#allocation7_spill]] %s5573_s1 }
   0x3   :  { %5599 = sst [smem:[#allocation8_spill]] %s5574_s2 }
   0x4   :  { %5600 = sst [smem:[#allocation9_spill]] %s5575_s3 }
   0x5   :  { %5601 = sst [smem:[#allocation10_spill]] %s5576_s4 }
   0x6   :  { %5602 = sst [smem:[#allocation11_spill]] %s5577_s5 }
   0x7   :  { %5603 = sst [smem:[#allocation12_spill]] %s5578_s6 }
   0x8   :  { %5604 = sst [smem:[#allocation13_spill]] %s5579_s7 }
   0x9   :  { %5605 = sst [smem:[#allocation14_spill]] %s5580_s8 }
   0xa   :  { %5606 = sst [smem:[#allocation15_spill]] %s5581_s9 }
   0xb LB: > { %5607 = sst [smem:[#allocation3_spill]] %s4218_s27  ;;  %s4330_s28 = sadd.s32 4294967295, %s4218_s27   ;;  %s4218_s27 = sphi %s4324_s27, %s28_s27  }
   0xc   : > { %5608 = sst [smem:[#allocation4_spill]] %s4330_s28  ;;  %p3524_p0 = scmp.ge.s32.totalorder %s4218_s27, 1 }
   0xd   : > { %p618_p1 = scmp.lt.s32.totalorder %s4218_s27, 5 }
   0xf   : > { %p619_p2 = pnand %p3524_p0, %p618_p1 }
  0x11   : > { %622 = sbr.rel (%p619_p2) target bundleno = 2926 (0xb6e), region = 92 }
  0x16   : > { %p718_p3 = scmp.lt.s32.totalorder %s4330_s28, 3  ;;  %s3535_s29 = sadd.s32 4294967295, %s4330_s28 }
  0x17   : > { %p765_p4 = scmp.gt.s32.totalorder %s3535_s29, 0  ;;  %p3536_p5 = scmp.lt.s32.totalorder %s3535_s29, 2 }
  0x18   : > { %s4337_s30 = scalar_select %p718_p3, %s4330_s28, 3 }
  0x19   : > { %s766_s0 = scalar_select %p765_p4, %s3535_s29, 0 }
  0x1a   : > { %s3843_s23 = sshll.u32 %s4337_s30, 6  ;;  %s3527_s24 = sshll.u32 %s4337_s30, 1 }
  0x1b   : > { %s5611_s8 = sld [smem:[#allocation14_spill]]  ;;  %s3844_s28 = sshll.u32 %s4337_s30, 5 }
  0x1c   : > { %s5612_s9 = sld [smem:[#allocation15_spill]]  ;;  %s4367_s22 = scalar_lea.vmem %s5582_s10, %s3844_s28 }
  0x1d   : > { %s746_s4 = scalar_lea.vmem %s5585_s13, %s4337_s30  ;;  %s4385_s20 = scalar_lea.vmem %s5587_s15, %s3527_s24 }
  0x1e   : > { %s3846_s6 = sshll.u32 %s4337_s30, 7  ;;  %s5642_s0 = smov (!%p3536_p5, %s766_s0), 2 }
  0x1f   : > { %s4391_s7 = scalar_lea.vmem %s5588_s16, %s3846_s6  ;;  %p769_p6 = scmp.lt.s32.totalorder %s5642_s0, 2 }
  0x20   : > { %s5614_s5 = sld [smem:[#allocation4_spill]] }
  0x21   : > { %s4352_s27 = scalar_lea.vmem %s5611_s8, %s3843_s23  ;;  %s763_s8 = scalar_lea.vmem %s5589_s17, %s4337_s30 }
  0x22   : > { %s4357_s3 = scalar_lea.vmem %s5612_s9, %s3527_s24  ;;  %s5644_s0 = smov (!%p769_p6, %s5642_s0), 2 }
  0x23   : > { %5613 = sst [smem:[#allocation5_spill]] %s4357_s3  ;;  %s4380_s3 = scalar_lea.vmem %s5586_s14, %s3843_s23 }
  0x24   : > { %s3915_s9 = smul.u32 48, %s5644_s0 }
  0x26   : > { %s4401_s24 = scalar_lea.vmem %s5590_s18, %s3915_s9  ;;  %p3542_p7 = scmp.ne.s32.totalorder %s5614_s5, 0 }
  0x27   : > { %s5615_s6 = sld [smem:[#allocation7_spill]] (!%p3542_p7) }
  0x28   : > { %783 = sbr.rel (%p3542_p7) target bundleno = 506 (0x1fa), region = 96  ;;  %s5616_s21 = sld [smem:[#allocation6_spill]] (!%p3542_p7) }
  0x29   : > { %s5617_s0 = sld [smem:[#allocation8_spill]] (!%p3542_p7) }
  0x2a   : > { %s5618_s1 = sld [smem:[#allocation9_spill]] (!%p3542_p7) }
  0x2b   : > { %s5619_s29 = sld [smem:[#allocation10_spill]] (!%p3542_p7) }
  0x2d   : > { %v3856_v0 = vld [vmem:[%s5615_s6 + $0x38] sm:$0xff]  ;;  %v3855_v2 = vld [vmem:[%s5615_s6 + $0x30] sm:$0xff]  ;;  %v3854_v4 = vld [vmem:[%s5615_s6 + $0x28] sm:$0xff]  ;;  %vm901_vm0 = vcmask 523264   ;;  %v4220_v63 = vmov 64.0  }
  0x2e   : > { %v3860_v1 = vld [vmem:[%s5615_s6 + $0x58] sm:$0xff]  ;;  %911 = vmatpush.bf16.msra.mxu0 %v3856_v0  ;;  %3897 = vmatpush.bf16.msra.mxu2 %v3856_v0  ;;  %v3859_v3 = vld [vmem:[%s5615_s6 + $0x50] sm:$0xff]  ;;  %v3858_v5 = vld [vmem:[%s5615_s6 + $0x48] sm:$0xff]  ;;  %3935 = vrcp.f32 %v4220_v63 }
  0x2f   : > { %3905 = vmatpush.bf16.msra.mxu3 %v3860_v1  ;;  %939 = vmatpush.bf16.msra.mxu1 %v3860_v1  ;;  %v3853_v6 = vld [vmem:[%s5615_s6 + $0x20] sm:$0xff]  ;;  %v789_v8 = vld [vmem:[%s5616_s21 + $0x28] sm:$0xff]  ;;  %v791_v9 = vld [vmem:[%s5616_s21 + $0x38] sm:$0xff] }
  0x30   : > { %v3857_v7 = vld [vmem:[%s5615_s6 + $0x40] sm:$0xff]  ;;  %v785_v10 = vld [vmem:[%s5616_s21 + $0x8] sm:$0xff]  ;;  %v787_v11 = vld [vmem:[%s5616_s21 + $0x18] sm:$0xff]  ;;  %v799_v13 = vpack.c.bf16 %v791_v9, %v789_v8 }
  0x31   : > { %v3852_v12 = vld [vmem:[%s5615_s6 + $0x18] sm:$0xff]  ;;  %v797_v14 = vpack.c.bf16 %v787_v11, %v785_v10  ;;  %v3851_v15 = vld [vmem:[%s5615_s6 + $0x10] sm:$0xff]  ;;  %v3850_v16 = vld [vmem:[%s5615_s6 + $0x8] sm:$0xff] }
  0x32   : > { %912 = vmatpush.bf16.msra.mxu0 %v3855_v2  ;;  %3898 = vmatpush.bf16.msra.mxu2 %v3855_v2  ;;  %v3849_v17 = vld [vmem:[%s5615_s6] sm:$0xff]  ;;  %v786_v19 = vld [vmem:[%s5616_s21 + $0x10] sm:$0xff]  ;;  %v793_v22 = vld [vmem:[%s5616_s21 + $0x48] sm:$0xff] }
  0x33   : > { %3906 = vmatpush.bf16.msra.mxu3 %v3859_v3  ;;  %940 = vmatpush.bf16.msra.mxu1 %v3859_v3  ;;  %v784_v18 = vld [vmem:[%s5616_s21] sm:$0xff]  ;;  %v790_v21 = vld [vmem:[%s5616_s21 + $0x30] sm:$0xff]  ;;  %v795_v23 = vld [vmem:[%s5616_s21 + $0x58] sm:$0xff] }
  0x34   : > { %v788_v20 = vld [vmem:[%s5616_s21 + $0x20] sm:$0xff]  ;;  %v796_v24 = vpack.c.bf16 %v786_v19, %v784_v18  ;;  %v801_v26 = vpack.c.bf16 %v795_v23, %v793_v22  ;;  %v794_v28 = vld [vmem:[%s5616_s21 + $0x50] sm:$0xff]  ;;  %v827_v39 = vld [vmem:[%s5617_s0 + $0x8] sm:$0xff]  ;;  %v3936_v0 = vpop.eup %3935 }
  0x35   : > { %v798_v25 = vpack.c.bf16 %v790_v21, %v788_v20  ;;  %v792_v27 = vld [vmem:[%s5616_s21 + $0x40] sm:$0xff]  ;;  %v828_v36 = vld [vmem:[%s5617_s0 + $0x10] sm:$0xff]  ;;  %v980_v1 = vmul.f32 64.0, %v3936_v0  ;;  %vm984_vm1 = vweird.f32 %v3936_v0 }
  0x36   : > { %913 = vmatpush.bf16.msra.mxu0 %v3854_v4  ;;  %3899 = vmatpush.bf16.msra.mxu2 %v3854_v4  ;;  %v800_v29 = vpack.c.bf16 %v794_v28, %v792_v27  ;;  %v826_v30 = vld [vmem:[%s5617_s0] sm:$0xff] }
  0x37   : > { %3907 = vmatpush.bf16.msra.mxu3 %v3858_v5  ;;  %941 = vmatpush.bf16.msra.mxu1 %v3858_v5  ;;  %v981_v2 = vsub.f32 1.0, %v980_v1 }
  0x39   : > { %v982_v3 = vmul.f32 %v3936_v0, %v981_v2 }
  0x3a   : > { %914 = vmatpush.bf16.msra.mxu0 %v3853_v6  ;;  %3900 = vmatpush.bf16.msra.mxu2 %v3853_v6 }
  0x3b   : > { %3908 = vmatpush.bf16.msra.mxu3 %v3857_v7  ;;  %942 = vmatpush.bf16.msra.mxu1 %v3857_v7  ;;  %v983_v4 = vadd.f32 %v3936_v0, %v982_v3 }
  0x3d   : > { %v4494_v5 = vsel %vm984_vm1, %v3936_v0, %v983_v4  ;;  %v4544_v0 = vld [vmem:[%s5619_s29] ss:$0 sm:$0xff] }
  0x3e   : > { %915 = vmatpush.bf16.msra.mxu0 %v3852_v12  ;;  %3901 = vmatpush.bf16.msra.mxu2 %v3852_v12 }
  0x3f   : > { %3592 = vmatmul.msk.bf16.vlgmr.msra.gmra.mxu3 %vm901_vm0, %v799_v13  ;;  %3591 = vmatmul.msk.bf16.vlgmr.msra.gmra.mxu1 %vm901_vm0, %v797_v14 }
  0x42   : > { %916 = vmatpush.bf16.msra.mxu0 %v3851_v15  ;;  %3902 = vmatpush.bf16.msra.mxu2 %v3851_v15 }
  0x46   : > { %917 = vmatpush.bf16.msra.mxu0 %v3850_v16  ;;  %3903 = vmatpush.bf16.msra.mxu2 %v3850_v16 }
  0x4a   : > { %918 = vmatpush.bf16.msra.mxu0 %v3849_v17  ;;  %3904 = vmatpush.bf16.msra.mxu2 %v3849_v17 }
  0x4d   : > { %919 = vmatmul.bf16.vlgmr.msra.gmra.mxu0 %v796_v24  ;;  %924 = vmatmul.bf16.vlgmr.msra.gmra.mxu2 %v798_v25 }
  0x4f   : > { %3593 = vmatmul.msk.bf16.gmra.mxu3 %vm901_vm0, %v801_v26 }
  0x5d   : > { %929 = vmatmul.bf16.gmra.mxu2 %v800_v29 }
  0xbc   : > { %v944_v31 = vpop.f32.mrf.mxu1 }
  0xc2   : > { %v949_v34 = vpop.f32.mrf.mxu3 }
  0xc4   : > { %v946_v42 = vpop.f32.mrf.mxu1 }
  0xca   : > { %v920_v32 = vpop.f32.mrf.mxu0  ;;  %v951_v47 = vpop.f32.mrf.mxu3 }
  0xcb   : > { %v921_v33 = vadd.f32 %v920_v32, %v826_v30 }
  0xcd   : > { %v945_v35 = vadd.f32 %v944_v31, %v921_v33 }
  0xcf   : > { %v961_v37 = vsel %vm901_vm0, %v945_v35, 0.0 }
  0xd0   : > { %v925_v38 = vpop.f32.mrf.mxu2  ;;  %962 = vadd.xlane.f32.xlu0 %v961_v37 }
  0xd1   : > { %v926_v40 = vadd.f32 %v925_v38, %v828_v36 }
  0xd2   : > { %v922_v41 = vpop.f32.mrf.mxu0  ;;  %v954_v53 = vpop.f32.mrf.mxu3 }
  0xd3   : > { %v923_v43 = vadd.f32 %v922_v41, %v827_v39  ;;  %v950_v44 = vadd.f32 %v949_v34, %v926_v40 }
  0xd5   : > { %v947_v45 = vadd.f32 %v946_v42, %v923_v43  ;;  %v967_v46 = vsel %vm901_vm0, %v950_v44, 0.0 }
  0xd6   : > { %968 = vadd.xlane.f32.xlu1 %v967_v46 }
  0xd7   : > { %v964_v48 = vsel %vm901_vm0, %v947_v45, 0.0 }
  0xd8   : > { %v927_v49 = vpop.f32.mrf.mxu2  ;;  %965 = vadd.xlane.f32.xlu0 %v964_v48 }
  0xd9   : > { %v928_v50 = vadd.f32 %v927_v49, %v826_v30 }
  0xda   : > { %v956_v60 = vpop.f32.mrf.mxu3 }
  0xdb   : > { %v952_v51 = vadd.f32 %v951_v47, %v928_v50 }
  0xdd   : > { %v970_v52 = vsel %vm901_vm0, %v952_v51, 0.0 }
  0xde   : > { %971 = vadd.xlane.f32.xlu1 %v970_v52 }
  0xe0   : > { %v930_v54 = vpop.f32.mrf.mxu2 }
  0xe1   : > { %v931_v55 = vadd.f32 %v930_v54, %v827_v39 }
  0xe3   : > { %v955_v56 = vadd.f32 %v954_v53, %v931_v55 }
  0xe5   : > { %v973_v57 = vsel %vm901_vm0, %v955_v56, 0.0 }
  0xe6   : > { %974 = vadd.xlane.f32.xlu2 %v973_v57 }
  0xe8   : > { %v932_v58 = vpop.f32.mrf.mxu2 }
  0xe9   : > { %v933_v59 = vadd.f32 %v932_v58, %v828_v36 }
  0xeb   : > { %v957_v61 = vadd.f32 %v956_v60, %v933_v59  ;;  %v4539_v59 = vld [vmem:[%s5618_s1] ss:$0 sm:$0xff] }
  0xed   : > { %v976_v62 = vsel %vm901_vm0, %v957_v61, 0.0 }
  0xee   : > { %977 = vadd.xlane.f32.xlu2 %v976_v62 }
 0x143   : > { %v963_v6 = vpop.xlane.xlu0 %962 }
 0x144   : > { %v986_v7 = vmul.f32 %v4494_v5, %v963_v6 }
 0x146   : > { %v4497_v8 = vsub.f32 %v945_v35, %v986_v7 }
 0x148   : > { %v998_v9 = vmul.f32 %v4497_v8, %v4497_v8 }
 0x149   : > { %v969_v10 = vpop.xlane.xlu1 %968 }
 0x14a   : > { %v988_v11 = vmul.f32 %v4494_v5, %v969_v10  ;;  %v1004_v12 = vsel %vm901_vm0, %v998_v9, 0.0 }
 0x14b   : > { %1005 = vadd.xlane.f32.xlu0 %v1004_v12  ;;  %v966_v13 = vpop.xlane.xlu0 %965 }
 0x14c   : > { %v4503_v14 = vsub.f32 %v950_v44, %v988_v11  ;;  %v987_v15 = vmul.f32 %v4494_v5, %v966_v13 }
 0x14e   : > { %v4506_v16 = vsub.f32 %v947_v45, %v987_v15  ;;  %v1000_v17 = vmul.f32 %v4503_v14, %v4503_v14 }
 0x150   : > { %v1010_v18 = vsel %vm901_vm0, %v1000_v17, 0.0  ;;  %v999_v19 = vmul.f32 %v4506_v16, %v4506_v16 }
 0x151   : > { %1011 = vadd.xlane.f32.xlu2 %v1010_v18  ;;  %v972_v20 = vpop.xlane.xlu1 %971 }
 0x152   : > { %v989_v21 = vmul.f32 %v4494_v5, %v972_v20  ;;  %v1007_v22 = vsel %vm901_vm0, %v999_v19, 0.0 }
 0x153   : > { %1008 = vadd.xlane.f32.xlu1 %v1007_v22 }
 0x154   : > { %v4515_v23 = vsub.f32 %v952_v51, %v989_v21 }
 0x156   : > { %v1001_v24 = vmul.f32 %v4515_v23, %v4515_v23 }
 0x158   : > { %v1013_v25 = vsel %vm901_vm0, %v1001_v24, 0.0 }
 0x159   : > { %v975_v26 = vpop.xlane.xlu2 %974  ;;  %1014 = vadd.xlane.f32.xlu0 %v1013_v25 }
 0x15a   : > { %v990_v27 = vmul.f32 %v4494_v5, %v975_v26 }
 0x15c   : > { %v4521_v28 = vsub.f32 %v955_v56, %v990_v27 }
 0x15e   : > { %v1002_v29 = vmul.f32 %v4521_v28, %v4521_v28 }
 0x160   : > { %v1016_v30 = vsel %vm901_vm0, %v1002_v29, 0.0 }
 0x161   : > { %v978_v31 = vpop.xlane.xlu2 %977  ;;  %1017 = vadd.xlane.f32.xlu1 %v1016_v30 }
 0x162   : > { %v991_v32 = vmul.f32 %v4494_v5, %v978_v31 }
 0x164   : > { %v4527_v33 = vsub.f32 %v957_v61, %v991_v32 }
 0x166   : > { %v1003_v34 = vmul.f32 %v4527_v33, %v4527_v33 }
 0x168   : > { %v1019_v35 = vsel %vm901_vm0, %v1003_v34, 0.0 }
 0x169   : > { %1020 = vadd.xlane.f32.xlu2 %v1019_v35 }
 0x1be   : > { %v1006_v36 = vpop.xlane.xlu0 %1005 }
 0x1bf   : > { %v1022_v37 = vmul.f32 %v1006_v36, %v4494_v5 }
 0x1c1   : > { %v1028_v38 = vadd.f32 1e-05, %v1022_v37 }
 0x1c3   : > { %3937 = vrsqrt.f32 %v1028_v38  ;;  %vm1040_vm3 = vweird.f32 %v1028_v38 }
 0x1c4   : > { %v1012_v39 = vpop.xlane.xlu2 %1011 }
 0x1c5   : > { %v1024_v40 = vmul.f32 %v1012_v39, %v4494_v5 }
 0x1c6   : > { %v1009_v41 = vpop.xlane.xlu1 %1008 }
 0x1c7   : > { %v1030_v42 = vadd.f32 1e-05, %v1024_v40  ;;  %v1023_v43 = vmul.f32 %v1009_v41, %v4494_v5 }
 0x1c9   : > { %v3938_v44 = vpop.eup %3937  ;;  %3939 = vrsqrt.f32 %v1030_v42  ;;  %v1029_v45 = vadd.f32 1e-05, %v1023_v43  ;;  %vm1060_vm6 = vweird.f32 %v1030_v42 }
 0x1ca   : > { %v1035_v46 = vmul.f32 %v3938_v44, %v1028_v38  ;;  %vm1041_vm2 = vweird.f32 %v3938_v44 }
 0x1cb   : > { %3941 = vrsqrt.f32 %v1029_v45  ;;  %vm1042_vm4 = vmor %vm1040_vm3, %vm1041_vm2  ;;  %vm1050_vm9 = vweird.f32 %v1029_v45 }
 0x1cc   : > { %v1036_v47 = vmul.f32 %v3938_v44, %v1035_v46  ;;  %v1015_v48 = vpop.xlane.xlu0 %1014 }
 0x1cd   : > { %v1025_v49 = vmul.f32 %v1015_v48, %v4494_v5 }
 0x1ce   : > { %v1037_v50 = vmul.f32 0.5, %v1036_v47 }
 0x1cf   : > { %v3940_v51 = vpop.eup %3939  ;;  %v1031_v52 = vadd.f32 1e-05, %v1025_v49 }
 0x1d0   : > { %v1038_v53 = vsub.f32 1.5, %v1037_v50  ;;  %v1055_v54 = vmul.f32 %v3940_v51, %v1030_v42  ;;  %vm1061_vm5 = vweird.f32 %v3940_v51 }
 0x1d1   : > { %v3942_v55 = vpop.eup %3941  ;;  %3943 = vrsqrt.f32 %v1031_v52  ;;  %vm1062_vm8 = vmor %vm1060_vm6, %vm1061_vm5  ;;  %vm1070_vm12 = vweird.f32 %v1031_v52 }
 0x1d2   : > { %v1039_v56 = vmul.f32 %v3938_v44, %v1038_v53  ;;  %v1056_v57 = vmul.f32 %v3940_v51, %v1055_v54  ;;  %v1045_v58 = vmul.f32 %v3942_v55, %v1029_v45  ;;  %vm1051_vm7 = vweird.f32 %v3942_v55 }
 0x1d3   : > { %vm1052_vm10 = vmor %vm1050_vm9, %vm1051_vm7 }
 0x1d4   : > { %v1043_v60 = vsel %vm1042_vm4, %v3938_v44, %v1039_v56  ;;  %v1057_v61 = vmul.f32 0.5, %v1056_v57  ;;  %v1046_v62 = vmul.f32 %v3942_v55, %v1045_v58  ;;  %v1018_v63 = vpop.xlane.xlu1 %1017 }
 0x1d5   : > { %v1094_v1 = vmul.f32 %v1043_v60, %v4497_v8  ;;  %v1026_v2 = vmul.f32 %v1018_v63, %v4494_v5 }
 0x1d6   : > { %v1058_v3 = vsub.f32 1.5, %v1057_v61  ;;  %v1047_v4 = vmul.f32 0.5, %v1046_v62 }
 0x1d7   : > { %v3944_v6 = vpop.eup %3943  ;;  %v1103_v7 = vmul.f32 %v4539_v59, %v1094_v1  ;;  %v1032_v9 = vadd.f32 1e-05, %v1026_v2 }
 0x1d8   : > { %v1059_v10 = vmul.f32 %v3940_v51, %v1058_v3  ;;  %v1048_v11 = vsub.f32 1.5, %v1047_v4  ;;  %v1065_v12 = vmul.f32 %v3944_v6, %v1031_v52  ;;  %vm1071_vm11 = vweird.f32 %v3944_v6 }
 0x1d9   : > { %v1112_v13 = vadd.f32 %v4544_v0, %v1103_v7  ;;  %3945 = vrsqrt.f32 %v1032_v9  ;;  %vm1072_vm13 = vmor %vm1070_vm12, %vm1071_vm11  ;;  %vm1080_vm15 = vweird.f32 %v1032_v9 }
 0x1da   : > { %v1063_v15 = vsel %vm1062_vm8, %v3940_v51, %v1059_v10  ;;  %v1049_v8 = vmul.f32 %v3942_v55, %v1048_v11  ;;  %v1066_v17 = vmul.f32 %v3944_v6, %v1065_v12 }
 0x1db   : > { %1118 = vst.msk [vmem:[#allocation2] sm:$0xff] %vm901_vm0, %v1112_v13  ;;  %v1096_v18 = vmul.f32 %v1063_v15, %v4503_v14 }
 0x1dc   : > { %v1053_v19 = vsel %vm1052_vm10, %v3942_v55, %v1049_v8  ;;  %v1067_v20 = vmul.f32 0.5, %v1066_v17  ;;  %v1021_v21 = vpop.xlane.xlu2 %1020 }
 0x1dd   : > { %v1105_v22 = vmul.f32 %v4539_v59, %v1096_v18  ;;  %v1095_v24 = vmul.f32 %v1053_v19, %v4506_v16  ;;  %v1027_v25 = vmul.f32 %v1021_v21, %v4494_v5 }
 0x1de   : > { %v1068_v26 = vsub.f32 1.5, %v1067_v20 }
 0x1df   : > { %v3946_v27 = vpop.eup %3945  ;;  %v1114_v29 = vadd.f32 %v4544_v0, %v1105_v22  ;;  %v1104_v30 = vmul.f32 %v4539_v59, %v1095_v24  ;;  %v1033_v31 = vadd.f32 1e-05, %v1027_v25 }
 0x1e0   : > { %v1069_v32 = vmul.f32 %v3944_v6, %v1068_v26  ;;  %v1075_v14 = vmul.f32 %v3946_v27, %v1032_v9  ;;  %vm1081_vm14 = vweird.f32 %v3946_v27 }
 0x1e1   : > { %1120 = vst.msk [vmem:[#allocation2 + $0x10] sm:$0xff] %vm901_vm0, %v1114_v29  ;;  %v1113_v34 = vadd.f32 %v4544_v0, %v1104_v30  ;;  %3947 = vrsqrt.f32 %v1033_v31  ;;  %vm1082_vm1 = vmor %vm1080_vm15, %vm1081_vm14  ;;  %vm1090_vm3 = vweird.f32 %v1033_v31 }
 0x1e2   : > { %v1073_v16 = vsel %vm1072_vm13, %v3944_v6, %v1069_v32  ;;  %v1076_v35 = vmul.f32 %v3946_v27, %v1075_v14 }
 0x1e3   : > { %1119 = vst.msk [vmem:[#allocation2 + $0x8] sm:$0xff] %vm901_vm0, %v1113_v34  ;;  %v1097_v5 = vmul.f32 %v1073_v16, %v4515_v23 }
 0x1e4   : > { %v1077_v36 = vmul.f32 0.5, %v1076_v35 }
 0x1e5   : > { %v1106_v37 = vmul.f32 %v4539_v59, %v1097_v5 }
 0x1e6   : > { %v1078_v38 = vsub.f32 1.5, %v1077_v36 }
 0x1e7   : > { %v3948_v39 = vpop.eup %3947  ;;  %v1115_v40 = vadd.f32 %v4544_v0, %v1106_v37 }
 0x1e8   : > { %v1079_v41 = vmul.f32 %v3946_v27, %v1078_v38  ;;  %v1085_v42 = vmul.f32 %v3948_v39, %v1033_v31  ;;  %vm1091_vm2 = vweird.f32 %v3948_v39 }
 0x1e9   : > { %1121 = vst.msk [vmem:[#allocation2 + $0x18] sm:$0xff] %vm901_vm0, %v1115_v40  ;;  %vm1092_vm4 = vmor %vm1090_vm3, %vm1091_vm2 }
 0x1ea   : > { %v1083_v43 = vsel %vm1082_vm1, %v3946_v27, %v1079_v41  ;;  %v1086_v44 = vmul.f32 %v3948_v39, %v1085_v42 }
 0x1eb   : > { %v1098_v45 = vmul.f32 %v1083_v43, %v4521_v28 }
 0x1ec   : > { %v1087_v46 = vmul.f32 0.5, %v1086_v44 }
 0x1ed   : > { %v1107_v23 = vmul.f32 %v4539_v59, %v1098_v45 }
 0x1ee   : > { %v1088_v47 = vsub.f32 1.5, %v1087_v46 }
 0x1ef   : > { %v1116_v48 = vadd.f32 %v4544_v0, %v1107_v23 }
 0x1f0   : > { %v1089_v49 = vmul.f32 %v3948_v39, %v1088_v47 }
 0x1f1   : > { %1122 = vst.msk [vmem:[#allocation2 + $0x20] sm:$0xff] %vm901_vm0, %v1116_v48 }
 0x1f2   : > { %v1093_v50 = vsel %vm1092_vm4, %v3948_v39, %v1089_v49 }
 0x1f3   : > { %v1099_v51 = vmul.f32 %v1093_v50, %v4527_v33 }
 0x1f5   : > { %v1108_v52 = vmul.f32 %v4539_v59, %v1099_v51 }
 0x1f7   : > { %v1117_v53 = vadd.f32 %v4544_v0, %v1108_v52 }
 0x1f9   : > { %1123 = vst.msk [vmem:[#allocation2 + $0x28] sm:$0xff] %vm901_vm0, %v1117_v53 }
 0x1fa PF: > { %v1127_v28 = vld [vmem:[#allocation2 + $0x10] sm:$0xff]  ;;  %vm1133_vm5 = vcmask 523264   ;;  %v1125_v54 = vld [vmem:[#allocation2] sm:$0xff]  ;;  %v1128_v57 = vld [vmem:[#allocation2 + $0x18] sm:$0xff]  ;;  %v4221_v0 = vmov 64.0   ;;  %s5620_s9 = sld [smem:[#allocation12_spill]] }
 0x1fb   : > { %v1140_v55 = vsel %vm1133_vm5, %v1127_v28, 0.0  ;;  %v1134_v56 = vsel %vm1133_vm5, %v1125_v54, 0.0  ;;  %v1126_v58 = vld [vmem:[#allocation2 + $0x8] sm:$0xff]  ;;  %v1143_v33 = vsel %vm1133_vm5, %v1128_v57, 0.0  ;;  %v1129_v60 = vld [vmem:[#allocation2 + $0x20] sm:$0xff]  ;;  %4036 = vrcp.f32 %v4221_v0  ;;  %s5622_s19 = sld [smem:[#allocation13_spill]] }
 0x1fc   : > { %1141 = vadd.xlane.f32.xlu1 %v1140_v55  ;;  %1135 = vadd.xlane.f32.xlu0 %v1134_v56  ;;  %v1137_v59 = vsel %vm1133_vm5, %v1126_v58, 0.0  ;;  %v1146_v62 = vsel %vm1133_vm5, %v1129_v60, 0.0  ;;  %v3620_v40 = vld [vmem:[%s4352_s27 + $0x30] sm:$0xf]  ;;  %v3868_v41 = vld [vmem:[%s4352_s27 + $0x34] sm:$0xf0] }
 0x1fd   : > { %v3867_v42 = vld [vmem:[%s4352_s27 + $0x34] sm:$0xf]  ;;  %v3621_v43 = vor.u32 %v3868_v41, %v3620_v40  ;;  %v3622_v44 = vld [vmem:[%s4352_s27 + $0x38] sm:$0xf0]  ;;  %v3612_v46 = vld [vmem:[%s4352_s27 + $0x20] sm:$0xf] }
 0x1fe   : > { %v3625_v45 = vor.u32 %v3867_v42, %v3622_v44  ;;  %v3866_v23 = vld [vmem:[%s4352_s27 + $0x24] sm:$0xf0]  ;;  %v3865_v47 = vld [vmem:[%s4352_s27 + $0x24] sm:$0xf]  ;;  %v3614_v49 = vld [vmem:[%s4352_s27 + $0x28] sm:$0xf0] }
 0x1ff   : > { %1370 = vmatpush.bf16.msra.mxu0 %v3621_v43  ;;  %v3613_v48 = vor.u32 %v3866_v23, %v3612_v46  ;;  %v3617_v50 = vor.u32 %v3865_v47, %v3614_v49  ;;  %v3604_v51 = vld [vmem:[%s4352_s27 + $0x10] sm:$0xf]  ;;  %v3864_v52 = vld [vmem:[%s4352_s27 + $0x14] sm:$0xf0]  ;;  %v3863_v53 = vld [vmem:[%s4352_s27 + $0x14] sm:$0xf] }
 0x200   : > { %v1130_v61 = vld [vmem:[#allocation2 + $0x28] sm:$0xff]  ;;  %1394 = vmatpush.bf16.msra.mxu1 %v3625_v45  ;;  %s5621_s23 = scalar_lea.vmem %s5620_s9, %s4337_s30  ;;  %s5624_s28 = sld [smem:[#allocation5_spill]] }
 0x201   : > { %v1149_v63 = vsel %vm1133_vm5, %v1130_v61, 0.0  ;;  %v4037_v1 = vpop.eup %4036  ;;  %v4647_v42 = vld [vmem:[%s5621_s23] ss:$0 sm:$0xff]  ;;  %s5623_s1 = scalar_lea.vmem %s5622_s19, %s4337_s30  ;;  %s4222_s25 = smov 48  }
 0x202   : > { %v1153_v2 = vmul.f32 64.0, %v4037_v1  ;;  %vm1157_vm0 = vweird.f32 %v4037_v1  ;;  %s4223_s29 = smov 32   ;;  %s4225_s2 = smov 96  }
 0x203   : > { %1371 = vmatpush.bf16.msra.mxu0 %v3613_v48  ;;  %v4030_v48 = vld [vmem:[%s5623_s1] ss:$0 sm:$0xff]  ;;  %s4226_s9 = smov 64   ;;  %s4227_s23 = smov 16  }
 0x204   : > { %1144 = vadd.xlane.f32.xlu1 %v1143_v33  ;;  %1138 = vadd.xlane.f32.xlu0 %v1137_v59  ;;  %v1154_v3 = vsub.f32 1.0, %v1153_v2  ;;  %v3862_v33 = vld [vmem:[%s4352_s27 + $0x4] sm:$0xf0]  ;;  %v3861_v59 = vld [vmem:[%s4352_s27 + $0x4] sm:$0xf]  ;;  %s4228_s26 = smov 80  }
 0x205   : > { %1395 = vmatpush.bf16.msra.mxu1 %v3617_v50  ;;  %s5625_s1 = sld [smem:[#allocation11_spill]] }
 0x206   : > { %v1155_v4 = vmul.f32 %v4037_v1, %v1154_v3 }
 0x208   : > { %v1156_v6 = vadd.f32 %v4037_v1, %v1155_v4 }
 0x20a   : > { %v4578_v7 = vsel %vm1157_vm0, %v4037_v1, %v1156_v6 }
 0x20c   : > { %1147 = vadd.xlane.f32.xlu0 %v1146_v62  ;;  %1150 = vadd.xlane.f32.xlu1 %v1149_v63  ;;  %v3598_v62 = vld [vmem:[%s4352_s27 + $0x8] sm:$0xf0] }
 0x20d   : > { %v3601_v63 = vor.u32 %v3861_v59, %v3598_v62 }
 0x26f   : > { %v1142_v9 = vpop.xlane.xlu1 %1141  ;;  %v1136_v10 = vpop.xlane.xlu0 %1135 }
 0x270   : > { %v1159_v11 = vmul.f32 %v4578_v7, %v1136_v10  ;;  %v1161_v18 = vmul.f32 %v4578_v7, %v1142_v9 }
 0x272   : > { %v4581_v12 = vsub.f32 %v1125_v54, %v1159_v11  ;;  %v4593_v24 = vsub.f32 %v1127_v28, %v1161_v18  ;;  %v3605_v28 = vor.u32 %v3864_v52, %v3604_v51  ;;  %v3606_v54 = vld [vmem:[%s4352_s27 + $0x18] sm:$0xf0] }
 0x273   : > { %v3609_v56 = vor.u32 %v3863_v53, %v3606_v54 }
 0x274   : > { %v1171_v13 = vmul.f32 %v4581_v12, %v4581_v12  ;;  %v1173_v34 = vmul.f32 %v4593_v24, %v4593_v24  ;;  %1372 = vmatpush.bf16.msra.mxu0 %v3605_v28 }
 0x275   : > { %1396 = vmatpush.bf16.msra.mxu1 %v3609_v56 }
 0x276   : > { %v1177_v15 = vsel %vm1133_vm5, %v1171_v13, 0.0  ;;  %v1183_v5 = vsel %vm1133_vm5, %v1173_v34, 0.0 }
 0x277   : > { %v1145_v8 = vpop.xlane.xlu1 %1144  ;;  %1178 = vadd.xlane.f32.xlu2 %v1177_v15  ;;  %v1139_v17 = vpop.xlane.xlu0 %1138 }
 0x278   : > { %v1162_v19 = vmul.f32 %v4578_v7, %v1145_v8  ;;  %v1160_v20 = vmul.f32 %v4578_v7, %v1139_v17 }
 0x279   : > { %1397 = vmatpush.bf16.msra.mxu1 %v3601_v63 }
 0x27a   : > { %v4589_v21 = vsub.f32 %v1128_v57, %v1162_v19  ;;  %v4591_v22 = vsub.f32 %v1126_v58, %v1160_v20  ;;  %v3596_v58 = vld [vmem:[%s4352_s27] sm:$0xf]  ;;  %s4224_s27 = smov 112  }
 0x27c   : > { %v1174_v25 = vmul.f32 %v4589_v21, %v4589_v21  ;;  %v1172_v26 = vmul.f32 %v4591_v22, %v4591_v22 }
 0x27e   : > { %v1186_v27 = vsel %vm1133_vm5, %v1174_v25, 0.0  ;;  %v1180_v29 = vsel %vm1133_vm5, %v1172_v26, 0.0 }
 0x27f   : > { %1187 = vadd.xlane.f32.xlu0 %v1186_v27  ;;  %1181 = vadd.xlane.f32.xlu2 %v1180_v29  ;;  %v1148_v30 = vpop.xlane.xlu0 %1147  ;;  %v1151_v31 = vpop.xlane.xlu1 %1150 }
 0x280   : > { %v1163_v32 = vmul.f32 %v4578_v7, %v1148_v30  ;;  %v1164_v14 = vmul.f32 %v4578_v7, %v1151_v31 }
 0x282   : > { %v4605_v16 = vsub.f32 %v1129_v60, %v1163_v32  ;;  %v4607_v35 = vsub.f32 %v1130_v61, %v1164_v14  ;;  %v3597_v61 = vor.u32 %v3862_v33, %v3596_v58 }
 0x284   : > { %v1175_v36 = vmul.f32 %v4605_v16, %v4605_v16  ;;  %v1176_v38 = vmul.f32 %v4607_v35, %v4607_v35  ;;  %1373 = vmatpush.bf16.msra.mxu0 %v3597_v61 }
 0x286   : > { %v1189_v37 = vsel %vm1133_vm5, %v1175_v36, 0.0  ;;  %v1192_v39 = vsel %vm1133_vm5, %v1176_v38, 0.0 }
 0x287   : > { %1184 = vadd.xlane.f32.xlu2 %v1183_v5  ;;  %1190 = vadd.xlane.f32.xlu1 %v1189_v37 }
 0x28f   : > { %1193 = vadd.xlane.f32.xlu2 %v1192_v39 }
 0x2ea   : > { %v1179_v55 = vpop.xlane.xlu2 %1178 }
 0x2eb   : > { %v1195_v57 = vmul.f32 %v1179_v55, %v4578_v7 }
 0x2ed   : > { %v1201_v60 = vadd.f32 1e-05, %v1195_v57 }
 0x2ef   : > { %4038 = vrsqrt.f32 %v1201_v60  ;;  %vm1213_vm7 = vweird.f32 %v1201_v60 }
 0x2f2   : > { %v1182_v0 = vpop.xlane.xlu2 %1181  ;;  %v1188_v1 = vpop.xlane.xlu0 %1187 }
 0x2f3   : > { %v1196_v2 = vmul.f32 %v1182_v0, %v4578_v7  ;;  %v1198_v3 = vmul.f32 %v1188_v1, %v4578_v7 }
 0x2f5   : > { %v4039_v4 = vpop.eup %4038  ;;  %v1202_v6 = vadd.f32 1e-05, %v1196_v2  ;;  %v1204_v9 = vadd.f32 1e-05, %v1198_v3 }
 0x2f6   : > { %v1208_v10 = vmul.f32 %v4039_v4, %v1201_v60  ;;  %vm1214_vm6 = vweird.f32 %v4039_v4 }
 0x2f7   : > { %4040 = vrsqrt.f32 %v1202_v6  ;;  %vm1215_vm8 = vmor %vm1213_vm7, %vm1214_vm6  ;;  %vm1223_vm10 = vweird.f32 %v1202_v6  ;;  %vm1243_vm12 = vweird.f32 %v1204_v9 }
 0x2f8   : > { %v1209_v11 = vmul.f32 %v4039_v4, %v1208_v10  ;;  %4042 = vrsqrt.f32 %v1204_v9 }
 0x2fa   : > { %v1210_v13 = vmul.f32 0.5, %v1209_v11  ;;  %v1185_v15 = vpop.xlane.xlu2 %1184  ;;  %v1191_v8 = vpop.xlane.xlu1 %1190 }
 0x2fb   : > { %v1197_v17 = vmul.f32 %v1185_v15, %v4578_v7  ;;  %v1199_v25 = vmul.f32 %v1191_v8, %v4578_v7 }
 0x2fc   : > { %v1211_v18 = vsub.f32 1.5, %v1210_v13 }
 0x2fd   : > { %v4041_v19 = vpop.eup %4040  ;;  %v1203_v20 = vadd.f32 1e-05, %v1197_v17  ;;  %v4637_v32 = vadd.f32 1e-05, %v1199_v25 }
 0x2fe   : > { %v4043_v26 = vpop.eup %4042  ;;  %v1212_v27 = vmul.f32 %v4039_v4, %v1211_v18  ;;  %v1218_v29 = vmul.f32 %v4041_v19, %v1202_v6  ;;  %vm1224_vm9 = vweird.f32 %v4041_v19 }
 0x2ff   : > { %v1238_v30 = vmul.f32 %v4043_v26, %v1204_v9  ;;  %4044 = vrsqrt.f32 %v1203_v20  ;;  %vm1225_vm11 = vmor %vm1223_vm10, %vm1224_vm9  ;;  %vm1244_vm13 = vweird.f32 %v4043_v26  ;;  %vm1233_vm15 = vweird.f32 %v1203_v20 }
 0x300   : > { %v1219_v31 = vmul.f32 %v4041_v19, %v1218_v29  ;;  %v1216_v14 = vsel %vm1215_vm8, %v4039_v4, %v1212_v27  ;;  %4046 = vrsqrt.f32 %v4637_v32  ;;  %vm1245_vm1 = vmor %vm1243_vm12, %vm1244_vm13  ;;  %vm1253_vm0 = vweird.f32 %v4637_v32  ;;  %v1299_v29 = vld [vmem:[%s5624_s28] sm:$0x3] }
 0x301   : > { %v1239_v5 = vmul.f32 %v4043_v26, %v1238_v30  ;;  %v1267_v40 = vmul.f32 %v1216_v14, %v4581_v12  ;;  %v1313_v30 = vperm.slane %v1299_v29, 0  ;;  %vm1429_vm9 = vcmask 130048  }
 0x302   : > { %v1220_v34 = vmul.f32 0.5, %v1219_v31  ;;  %v1194_v36 = vpop.xlane.xlu2 %1193  ;;  %v4674_v31 = vperm.slane %v1299_v29, 1  ;;  %vm1471_vm10 = vcmask 195584   ;;  %vm1967_vm12 = vcmask 392192  }
 0x303   : > { %v1200_v37 = vmul.f32 %v1194_v36, %v4578_v7  ;;  %v1240_v44 = vmul.f32 0.5, %v1239_v5  ;;  %v1276_v12 = vmul.f32 %v4647_v42, %v1267_v40 }
 0x304   : > { %v1221_v38 = vsub.f32 1.5, %v1220_v34 }
 0x305   : > { %v4045_v39 = vpop.eup %4044  ;;  %v1206_v41 = vadd.f32 1e-05, %v1200_v37  ;;  %v1241_v49 = vsub.f32 1.5, %v1240_v44  ;;  %v1285_v54 = vadd.f32 %v4030_v48, %v1276_v12 }
 0x306   : > { %v1222_v43 = vmul.f32 %v4041_v19, %v1221_v38  ;;  %v1228_v45 = vmul.f32 %v4045_v39, %v1203_v20  ;;  %v4047_v51 = vpop.eup %4046  ;;  %vm1234_vm14 = vweird.f32 %v4045_v39 }
 0x307   : > { %4048 = vrsqrt.f32 %v1206_v41  ;;  %v1242_v55 = vmul.f32 %v4043_v26, %v1241_v49  ;;  %v1248_v57 = vmul.f32 %v4047_v51, %v4637_v32  ;;  %vm1235_vm2 = vmor %vm1233_vm15, %vm1234_vm14  ;;  %vm1263_vm3 = vweird.f32 %v1206_v41 }
 0x308   : > { %v1226_v46 = vsel %vm1225_vm11, %v4041_v19, %v1222_v43  ;;  %v1229_v23 = vmul.f32 %v4045_v39, %v1228_v45  ;;  %vm1254_vm6 = vweird.f32 %v4047_v51  ;;  %vm1963_vm11 = vcmask 261120  }
 0x309   : > { %v1268_v47 = vmul.f32 %v1226_v46, %v4591_v22  ;;  %v1246_v61 = vsel %vm1245_vm1, %v4043_v26, %v1242_v55  ;;  %v1249_v62 = vmul.f32 %v4047_v51, %v1248_v57  ;;  %vm1255_vm8 = vmor %vm1253_vm0, %vm1254_vm6 }
 0x30a   : > { %v1230_v50 = vmul.f32 0.5, %v1229_v23  ;;  %v1270_v1 = vmul.f32 %v1246_v61, %v4589_v21 }
 0x30b   : > { %v1277_v52 = vmul.f32 %v4647_v42, %v1268_v47  ;;  %v1250_v2 = vmul.f32 0.5, %v1249_v62 }
 0x30c   : > { %v1231_v53 = vsub.f32 1.5, %v1230_v50  ;;  %v1279_v6 = vmul.f32 %v4647_v42, %v1270_v1 }
 0x30d   : > { %v4049_v28 = vpop.eup %4048  ;;  %v1286_v22 = vadd.f32 %v4030_v48, %v1277_v52  ;;  %v1251_v9 = vsub.f32 1.5, %v1250_v2 }
 0x30e   : > { %v1232_v56 = vmul.f32 %v4045_v39, %v1231_v53  ;;  %v1258_v58 = vmul.f32 %v4049_v28, %v1206_v41  ;;  %vm1264_vm4 = vweird.f32 %v4049_v28  ;;  %v1288_v13 = vadd.f32 %v4030_v48, %v1279_v6 }
 0x30f   : > { %v1309_v33 = vpack.c.bf16 %v1286_v22, %v1285_v54  ;;  %vm1265_vm7 = vmor %vm1263_vm3, %vm1264_vm4 }
 0x310   : > { %v1236_v59 = vsel %vm1235_vm2, %v4045_v39, %v1232_v56  ;;  %v1259_v60 = vmul.f32 %v4049_v28, %v1258_v58 }
 0x311   : > { %3626 = vmatmul.msk.bf16.vlgmr.msra.gmra.mxu0 %vm1133_vm5, %v1309_v33  ;;  %3629 = vmatmul.msk.bf16.vlgmr.msra.gmra.mxu1 %vm1133_vm5, %v1309_v33  ;;  %v1269_v63 = vmul.f32 %v1236_v59, %v4593_v24  ;;  %v1252_v24 = vmul.f32 %v4047_v51, %v1251_v9 }
 0x312   : > { %v1260_v0 = vmul.f32 0.5, %v1259_v60 }
 0x313   : > { %v1278_v3 = vmul.f32 %v4647_v42, %v1269_v63  ;;  %v1256_v8 = vsel %vm1255_vm8, %v4047_v51, %v1252_v24 }
 0x314   : > { %v1261_v4 = vsub.f32 1.5, %v1260_v0  ;;  %v1271_v18 = vmul.f32 %v1256_v8, %v4605_v16 }
 0x315   : > { %v1287_v10 = vadd.f32 %v4030_v48, %v1278_v3 }
 0x316   : > { %v1262_v11 = vmul.f32 %v4049_v28, %v1261_v4  ;;  %v1280_v20 = vmul.f32 %v4647_v42, %v1271_v18 }
 0x317   : > { %v1310_v21 = vpack.c.bf16 %v1288_v13, %v1287_v10 }
 0x318   : > { %v1266_v15 = vsel %vm1265_vm7, %v4049_v28, %v1262_v11  ;;  %v1289_v26 = vadd.f32 %v4030_v48, %v1280_v20 }
 0x319   : > { %v1272_v17 = vmul.f32 %v1266_v15, %v4607_v35 }
 0x31b   : > { %v1281_v19 = vmul.f32 %v4647_v42, %v1272_v17 }
 0x31d   : > { %v1290_v25 = vadd.f32 %v4030_v48, %v1281_v19 }
 0x31f   : > { %v1311_v27 = vpack.c.bf16 %v1290_v25, %v1289_v26 }
 0x321   : > { %3627 = vmatmul.msk.bf16.gmra.mxu0 %vm1133_vm5, %v1310_v21  ;;  %3630 = vmatmul.msk.bf16.gmra.mxu1 %vm1133_vm5, %v1310_v21 }
 0x331   : > { %3628 = vmatmul.msk.bf16.gmra.mxu0 %vm1133_vm5, %v1311_v27  ;;  %3631 = vmatmul.msk.bf16.gmra.mxu1 %vm1133_vm5, %v1311_v27 }
 0x38e   : > { %v1375_v32 = vpop.f32.mrf.mxu0  ;;  %v1399_v14 = vpop.f32.mrf.mxu1 }
 0x38f   : > { %v1376_v35 = vadd.f32 %v1375_v32, %v1313_v30  ;;  %v4677_v16 = vadd.f32 %v1399_v14, %v4674_v31 }
 0x391   : > { %1546 = vrot.lane.b32.xlu2 %v1376_v35, %s4222_s25  ;;  %v4698_v45 = vmul.f32 0.25, %v1376_v35 }
 0x396   : > { %v1377_v34 = vpop.f32.mrf.mxu0  ;;  %v1401_v5 = vpop.f32.mrf.mxu1 }
 0x397   : > { %v1378_v36 = vadd.f32 %v1377_v34, %v1313_v30  ;;  %v4681_v37 = vadd.f32 %v1401_v5, %v4674_v31 }
 0x399   : > { %1548 = vrot.lane.b32.xlu1 %v1378_v36, %s4222_s25  ;;  %v4693_v44 = vmul.f32 0.25, %v1378_v36 }
 0x39e   : > { %v1380_v38 = vpop.f32.mrf.mxu0  ;;  %v1404_v39 = vpop.f32.mrf.mxu1 }
 0x39f   : > { %v1381_v40 = vadd.f32 %v1380_v38, %v1313_v30  ;;  %v4685_v41 = vadd.f32 %v1404_v39, %v4674_v31 }
 0x3a1   : > { %1680 = vrot.lane.b32.xlu2 %v1381_v40, %s4223_s29  ;;  %1550 = vrot.lane.b32.xlu0 %v1381_v40, %s4222_s25  ;;  %v4689_v42 = vmul.f32 0.25, %v1381_v40 }
 0x3a3   : > { %1544 = vrot.lane.b32.xlu1 %v4689_v42, %s4224_s27 }
 0x3a6   : > { %v1382_v43 = vpop.f32.mrf.mxu0  ;;  %v1406_v50 = vpop.f32.mrf.mxu1 }
 0x3a7   : > { %v1383_v12 = vadd.f32 %v1382_v43, %v1313_v30  ;;  %v4735_v52 = vadd.f32 %v1406_v50, %v4674_v31 }
 0x3a9   : > { %1676 = vrot.lane.b32.xlu2 %v1376_v35, %s4223_s29  ;;  %1542 = vrot.lane.b32.xlu0 %v4693_v44, %s4224_s27  ;;  %v4708_v49 = vmul.f32 0.25, %v1383_v12 }
 0x3ab   : > { %1670 = vrot.lane.b32.xlu1 %v4698_v45, %s4225_s2 }
 0x3ae   : > { %v1385_v46 = vpop.f32.mrf.mxu0  ;;  %v1409_v53 = vpop.f32.mrf.mxu1 }
 0x3af   : > { %v1386_v48 = vadd.f32 %v1385_v46, %v1313_v30  ;;  %v4747_v56 = vadd.f32 %v1409_v53, %v4674_v31 }
 0x3b1   : > { %1678 = vrot.lane.b32.xlu0 %v1378_v36, %s4223_s29  ;;  %v4730_v51 = vmul.f32 0.25, %v1386_v48 }
 0x3b3   : > { %1674 = vrot.lane.b32.xlu1 %v4689_v42, %s4225_s2 }
 0x3b6   : > { %v1387_v23 = vpop.f32.mrf.mxu0  ;;  %v1411_v28 = vpop.f32.mrf.mxu1 }
 0x3b7   : > { %v1388_v47 = vadd.f32 %v1387_v23, %v1313_v30  ;;  %v4744_v54 = vadd.f32 %v1411_v28, %v4674_v31 }
 0x3b9   : > { %1981 = vrot.lane.b32.xlu2 %v1388_v47, %s4226_s9  ;;  %1672 = vrot.lane.b32.xlu0 %v4693_v44, %s4225_s2  ;;  %v4753_v57 = vpack.i.bf16 %v4747_v56, %v4744_v54  ;;  %v1973_v60 = vmul.f32 0.25, %v1388_v47 }
 0x3bb   : > { %2232 = vrot.lane.b32.xlu1 %v1388_v47, %s4223_s29 }
 0x3c1   : > { %1977 = vrot.lane.b32.xlu2 %v1383_v12, %s4226_s9  ;;  %1979 = vrot.lane.b32.xlu0 %v1386_v48, %s4226_s9 }
 0x3c3   : > { %2222 = vrot.lane.b32.xlu1 %v4708_v49, %s4225_s2 }
 0x3c9   : > { %2228 = vrot.lane.b32.xlu2 %v1383_v12, %s4223_s29  ;;  %2230 = vrot.lane.b32.xlu0 %v1386_v48, %s4223_s29 }
 0x3cb   : > { %1423 = vrot.lane.b32.xlu1 %v1376_v35, %s4226_s9 }
 0x3d1   : > { %1425 = vrot.lane.b32.xlu2 %v1378_v36, %s4226_s9  ;;  %1427 = vrot.lane.b32.xlu0 %v1381_v40, %s4226_s9 }
 0x3d3   : > { %1807 = vrot.lane.b32.xlu1 %v1381_v40, %s4227_s23 }
 0x3d9   : > { %2359 = vrot.lane.b32.xlu2 %v1388_v47, %s4227_s23  ;;  %1540 = vrot.lane.b32.xlu0 %v4698_v45, %s4224_s27 }
 0x3db   : > { %1803 = vrot.lane.b32.xlu1 %v1376_v35, %s4227_s23 }
 0x3e1   : > { %1805 = vrot.lane.b32.xlu0 %v1378_v36, %s4227_s23 }
 0x3e3   : > { %1799 = vrot.lane.b32.xlu1 %v4693_v44, %s4228_s26 }
 0x3e9   : > { %1797 = vrot.lane.b32.xlu0 %v4698_v45, %s4228_s26 }
 0x3eb   : > { %1801 = vrot.lane.b32.xlu1 %v4689_v42, %s4228_s26  ;;  %v1547_v55 = vpop.permute.xlu2 %1546 }
 0x3f1   : > { %2100 = vrot.lane.b32.xlu0 %v1386_v48, %s4222_s25 }
 0x3f3   : > { %2098 = vrot.lane.b32.xlu1 %v1383_v12, %s4222_s25 }
 0x3f9   : > { %2092 = vrot.lane.b32.xlu0 %v4708_v49, %s4224_s27 }
 0x3fb   : > { %2094 = vrot.lane.b32.xlu1 %v4730_v51, %s4224_s27  ;;  %v1681_v59 = vpop.permute.xlu2 %1680 }
 0x401   : > { %2305 = vrot.lane.b32.xlu0 %v4735_v52, %s4225_s2 }
 0x403   : > { %2357 = vrot.lane.b32.xlu1 %v1386_v48, %s4227_s23  ;;  %v1677_v63 = vpop.permute.xlu2 %1676 }
 0x409   : > { %2224 = vrot.lane.b32.xlu0 %v4730_v51, %s4225_s2 }
 0x40b   : > { %2355 = vrot.lane.b32.xlu1 %v1383_v12, %s4227_s23  ;;  %v1549_v22 = vpop.permute.xlu1 %1548 }
 0x411   : > { %2349 = vrot.lane.b32.xlu0 %v4708_v49, %s4228_s26 }
 0x413   : > { %v1551_v58 = vpop.permute.xlu0 %1550  ;;  %3950 = vrot.lane.b32.xlu1 %v4753_v57, %s4225_s2  ;;  %v1982_v2 = vpop.permute.xlu2 %1981 }
 0x414   : > { %3641 = vmatpush.xpose.msk.msrb.mxu1 %vm1429_vm9, %v1551_v58  ;;  %3909 = vmatpush.xpose.msk.msra.mxu3 %vm1429_vm9, %v1551_v58 }
 0x415   : > { %v1545_v33 = vpop.permute.xlu1 %1544 }
 0x418   : > { %3642 = vmatpush.xpose.msk.msrb.mxu1 %vm1429_vm9, %v1549_v22  ;;  %3910 = vmatpush.xpose.msk.msra.mxu3 %vm1429_vm9, %v1549_v22 }
 0x419   : > { %2102 = vrot.lane.b32.xlu0 %v1388_v47, %s4222_s25 }
 0x41b   : > { %v1543_v61 = vpop.permute.xlu0 %1542  ;;  %2226 = vrot.lane.b32.xlu1 %v1973_v60, %s4225_s2  ;;  %v1978_v6 = vpop.permute.xlu2 %1977 }
 0x41c   : > { %3643 = vmatpush.xpose.msk.msrb.mxu1 %vm1429_vm9, %v1547_v55  ;;  %3911 = vmatpush.xpose.msk.msra.mxu3 %vm1429_vm9, %v1547_v55 }
 0x41d   : > { %v1671_v62 = vpop.permute.xlu1 %1670 }
 0x41f   : > { %3645 = vmatmul.msk.f32.vlgmr.msra.gmra.mxu3 %vm1429_vm9, %v1543_v61 }
 0x420   : > { %3650 = vmatpush.xpose.msk.msrb.mxu3 %vm1429_vm9, %v1681_v59 }
 0x421   : > { %2096 = vrot.lane.b32.xlu0 %v1973_v60, %s4224_s27 }
 0x423   : > { %v1679_v0 = vpop.permute.xlu0 %1678  ;;  %v2229_v13 = vpop.permute.xlu2 %2228 }
 0x424   : > { %3651 = vmatpush.xpose.msk.msrb.mxu3 %vm1429_vm9, %v1679_v0 }
 0x425   : > { %v1675_v1 = vpop.permute.xlu1 %1674 }
 0x427   : > { %3646 = vmatmul.msk.f32.gmra.mxu3 %vm1429_vm9, %v1545_v33 }
 0x428   : > { %3652 = vmatpush.xpose.msk.msrb.mxu3 %vm1429_vm9, %v1677_v63 }
 0x429   : > { %2353 = vrot.lane.b32.xlu0 %v1973_v60, %s4228_s26 }
 0x42b   : > { %v1673_v3 = vpop.permute.xlu0 %1672  ;;  %v1426_v8 = vpop.permute.xlu2 %1425 }
 0x42c   : > { %3668 = vmatpush.xpose.msk.msra.mxu3 %vm1429_vm9, %v1982_v2 }
 0x42d   : > { %v2233_v4 = vpop.permute.xlu1 %2232 }
 0x42f   : > { %3653 = vmatmul.msk.f32.vlgmr.msrb.gmra.mxu3 %vm1429_vm9, %v1671_v62 }
 0x433   : > { %v1980_v9 = vpop.permute.xlu0 %1979  ;;  %v2360_v43 = vpop.permute.xlu2 %2359 }
 0x434   : > { %3669 = vmatpush.xpose.msk.msra.mxu3 %vm1429_vm9, %v1980_v9 }
 0x435   : > { %v2223_v10 = vpop.permute.xlu1 %2222 }
 0x437   : > { %3654 = vmatmul.msk.f32.gmra.mxu3 %vm1429_vm9, %v1673_v3 }
 0x438   : > { %3670 = vmatpush.xpose.msk.msra.mxu3 %vm1429_vm9, %v1978_v6 }
 0x43b   : > { %v2231_v11 = vpop.permute.xlu0 %2230 }
 0x43c   : > { %3686 = vmatpush.xpose.msk.msrb.mxu3 %vm1429_vm9, %v2233_v4 }
 0x43d   : > { %v1424_v24 = vpop.permute.xlu1 %1423 }
 0x43f   : > { %3655 = vmatmul.msk.f32.gmra.mxu3 %vm1429_vm9, %v1675_v1 }
 0x440   : > { %3687 = vmatpush.xpose.msk.msrb.mxu3 %vm1429_vm9, %v2231_v11 }
 0x443   : > { %v1428_v21 = vpop.permute.xlu0 %1427 }
 0x444   : > { %3688 = vmatpush.xpose.msk.msrb.mxu3 %vm1429_vm9, %v2229_v13  ;;  %3632 = vmatpush.xpose.msk.msra.mxu2 %vm1429_vm9, %v1428_v21 }
 0x445   : > { %v1808_v15 = vpop.permute.xlu1 %1807 }
 0x446   : > { %3659 = vmatpush.xpose.msk.msrb.mxu0 %vm1429_vm9, %v1808_v15 }
 0x447   : > { %3671 = vmatmul.msk.f32.vlgmr.msra.gmra.mxu3 %vm1429_vm9, %v4708_v49  ;;  %v4833_v49 = vld [vmem:[%s5625_s1] ss:$0 sm:$0xff] }
 0x448   : > { %3633 = vmatpush.xpose.msk.msra.mxu2 %vm1429_vm9, %v1426_v8 }
 0x44b   : > { %v1541_v17 = vpop.permute.xlu0 %1540 }
 0x44c   : > { %3634 = vmatpush.xpose.msk.msra.mxu2 %vm1429_vm9, %v1424_v24  ;;  %3644 = vmatmul.msk.f32.vlgmr.msrb.gmra.mxu1 %vm1429_vm9, %v1541_v17  ;;  %v3959_v17 = vpack.i.bf16 %v4744_v54, %v4677_v16 }
 0x44d   : > { %v1804_v18 = vpop.permute.xlu1 %1803 }
 0x44f   : > { %3635 = vmatmul.msk.f32.vlgmr.msra.gmra.mxu2 %vm1429_vm9, %v4698_v45  ;;  %3672 = vmatmul.msk.f32.gmra.mxu3 %vm1429_vm9, %v4730_v51 }
 0x450   : > { %1527 = vmatpush.msrb.mxu2 %v4685_v41 }
 0x452   : > { %1528 = vmatpush.msrb.mxu2 %v4681_v37 }
 0x453   : > { %v1806_v19 = vpop.permute.xlu0 %1805 }
 0x454   : > { %1529 = vmatpush.msrb.mxu2 %v4677_v16  ;;  %3660 = vmatpush.xpose.msk.msrb.mxu0 %vm1429_vm9, %v1806_v19 }
 0x455   : > { %v1800_v20 = vpop.permute.xlu1 %1799 }
 0x457   : > { %3636 = vmatmul.msk.f32.gmra.mxu2 %vm1429_vm9, %v4693_v44  ;;  %3673 = vmatmul.msk.f32.gmra.mxu3 %vm1429_vm9, %v1973_v60 }
 0x458   : > { %3661 = vmatpush.xpose.msk.msrb.mxu0 %vm1429_vm9, %v1804_v18 }
 0x45b   : > { %v1798_v25 = vpop.permute.xlu0 %1797 }
 0x45c   : > { %3662 = vmatmul.msk.f32.vlgmr.msrb.gmra.mxu0 %vm1429_vm9, %v1798_v25 }
 0x45d   : > { %v1802_v26 = vpop.permute.xlu1 %1801 }
 0x45f   : > { %3637 = vmatmul.msk.f32.gmra.mxu2 %vm1429_vm9, %v4689_v42  ;;  %3689 = vmatmul.msk.f32.vlgmr.msrb.gmra.mxu3 %vm1429_vm9, %v2223_v10 }
 0x463   : > { %v2101_v27 = vpop.permute.xlu0 %2100 }
 0x464   : > { %3663 = vmatmul.msk.f32.gmra.mxu0 %vm1429_vm9, %v1800_v20 }
 0x465   : > { %v2099_v29 = vpop.permute.xlu1 %2098 }
 0x46b   : > { %v2093_v30 = vpop.permute.xlu0 %2092 }
 0x46c   : > { %3664 = vmatmul.msk.f32.gmra.mxu0 %vm1429_vm9, %v1802_v26 }
 0x46d   : > { %v2095_v31 = vpop.permute.xlu1 %2094 }
 0x473   : > { %v4806_v32 = vpop.permute.xlu0 %2305 }
 0x475   : > { %v2358_v14 = vpop.permute.xlu1 %2357 }
 0x47b   : > { %v2225_v35 = vpop.permute.xlu0 %2224 }
 0x47c   : > { %3690 = vmatmul.msk.f32.gmra.mxu3 %vm1429_vm9, %v2225_v35 }
 0x47d   : > { %v2356_v34 = vpop.permute.xlu1 %2355 }
 0x483   : > { %v4809_v5 = vpop.permute.xlu0 %2349 }
 0x485   : > { %v4811_v36 = vpop.permute.xlu1 %3950 }
 0x486   : > { %v3952_v40 = vunpack.i.l.bf16 %v4811_v36  ;;  %v3953_v42 = vunpack.i.h.bf16 %v4811_v36 }
 0x48b   : > { %v2103_v38 = vpop.permute.xlu0 %2102 }
 0x48c   : > { %3677 = vmatpush.xpose.msk.msra.mxu0 %vm1429_vm9, %v2103_v38 }
 0x48d   : > { %v2227_v39 = vpop.permute.xlu1 %2226 }
 0x48e   : > { %3691 = vmatmul.msk.f32.gmra.mxu3 %vm1429_vm9, %v2227_v39 }
 0x490   : > { %3678 = vmatpush.xpose.msk.msra.mxu0 %vm1429_vm9, %v2101_v27 }
 0x493   : > { %v2097_v45 = vpop.permute.xlu0 %2096 }
 0x494   : > { %3679 = vmatpush.xpose.msk.msra.mxu0 %vm1429_vm9, %v2099_v29 }
 0x497   : > { %3680 = vmatmul.msk.f32.vlgmr.msra.gmra.mxu0 %vm1429_vm9, %v2093_v30 }
 0x498   : > { %2336 = vmatpush.msrb.mxu0 %v3952_v40 }
 0x49a   : > { %2337 = vmatpush.msrb.mxu0 %v3953_v42 }
 0x49c   : > { %2338 = vmatpush.msrb.mxu0 %v4806_v32 }
 0x49e   : > { %3695 = vmatpush.xpose.msk.msra.mxu0 %vm1429_vm9, %v2360_v43 }
 0x49f   : > { %3681 = vmatmul.msk.f32.gmra.mxu0 %vm1429_vm9, %v2095_v31 }
 0x4a2   : > { %3696 = vmatpush.xpose.msk.msra.mxu0 %vm1429_vm9, %v2358_v14  ;;  %v1584_v44 = vpop.f32.mrf.mxu3 }
 0x4a3   : > { %v4838_v55 = vadd.f32 %v4833_v49, %v1584_v44 }
 0x4a5   : > { %v1593_v59 = vsel %vm1471_vm10, %v4838_v55, -inf }
 0x4a6   : > { %3697 = vmatpush.xpose.msk.msra.mxu0 %vm1429_vm9, %v2356_v34 }
 0x4a7   : > { %3682 = vmatmul.msk.f32.gmra.mxu0 %vm1429_vm9, %v2097_v45 }
 0x4aa   : > { %v1587_v46 = vpop.f32.mrf.mxu3 }
 0x4ab   : > { %v4857_v4 = vadd.f32 %v4833_v49, %v1587_v46 }
 0x4ad   : > { %v1596_v9 = vsel %vm1471_vm10, %v4857_v4, -inf }
 0x4b2   : > { %v1711_v23 = vpop.f32.mrf.mxu3 }
 0x4b3   : > { %v4845_v60 = vadd.f32 %v4833_v49, %v1711_v23 }
 0x4b5   : > { %v1720_v3 = vsel %vm1471_vm10, %v4845_v60, -inf }
 0x4ba   : > { %v1714_v47 = vpop.f32.mrf.mxu3 }
 0x4bb   : > { %v4860_v6 = vadd.f32 %v4833_v49, %v1714_v47 }
 0x4bd   : > { %v1723_v10 = vsel %vm1471_vm10, %v4860_v6, -inf }
 0x4c2   : > { %v1717_v12 = vpop.f32.mrf.mxu3 }
 0x4c3   : > { %v4867_v11 = vadd.f32 %v4833_v49, %v1717_v12 }
 0x4c5   : > { %v1726_v13 = vsel %vm1471_vm10, %v4867_v11, -inf }
 0x4c9   : > { %v1581_v19 = vpop.f32.mrf.mxu1 }
 0x4ca   : > { %v2015_v48 = vpop.f32.mrf.mxu3  ;;  %v4892_v20 = vadd.f32 %v4833_v49, %v1581_v19 }
 0x4cb   : > { %v4872_v24 = vadd.f32 %v4833_v49, %v2015_v48 }
 0x4cc   : > { %v1590_v25 = vsel %vm1471_vm10, %v4892_v20, -inf }
 0x4cd   : > { %v2024_v21 = vsel %vm1471_vm10, %v4872_v24, -inf }
 0x4d2   : > { %v1462_v50 = vpop.f32.mrf.mxu2  ;;  %v2018_v53 = vpop.f32.mrf.mxu3 }
 0x4d3   : > { %v1463_v28 = vadd.f32 %v4833_v49, %v1462_v50  ;;  %v4879_v15 = vadd.f32 %v4833_v49, %v2018_v53 }
 0x4d5   : > { %v1472_v22 = vsel %vm1471_vm10, %v1463_v28, -inf  ;;  %v2027_v8 = vsel %vm1471_vm10, %v4879_v15, -inf }
 0x4d6   : > { %1473 = vmax.xlane.f32.xlu1 %v1472_v22 }
 0x4d9   : > { %v1838_v26 = vpop.f32.mrf.mxu0 }
 0x4da   : > { %v1465_v58 = vpop.f32.mrf.mxu2  ;;  %v4840_v33 = vpop.f32.mrf.mxu3  ;;  %v4897_v27 = vadd.f32 %v4833_v49, %v1838_v26 }
 0x4db   : > { %v4887_v18 = vadd.f32 %v4833_v49, %v1465_v58 }
 0x4dc   : > { %v1847_v29 = vsel %vm1471_vm10, %v4897_v27, -inf }
 0x4de   : > { %1594 = vmax.xlane.f32.xlu1 %v1593_v59  ;;  %v4924_v59 = vpop.permute.xlu0 %2353 }
 0x4e1   : > { %v1841_v23 = vpop.f32.mrf.mxu0 }
 0x4e2   : > { %v1468_v61 = vpop.f32.mrf.mxu2  ;;  %v2263_v62 = vpop.f32.mrf.mxu3  ;;  %v4915_v48 = vadd.f32 %v4833_v49, %v1841_v23 }
 0x4e3   : > { %v4848_v63 = vadd.f32 %v4833_v49, %v1468_v61  ;;  %v2264_v0 = vadd.f32 %v4833_v49, %v2263_v62 }
 0x4e4   : > { %v1850_v53 = vsel %vm1471_vm10, %v4915_v48, -inf }
 0x4e5   : > { %v2272_v1 = vsel %vm1471_vm10, %v2264_v0, -inf  ;;  %v1478_v2 = vsel %vm1471_vm10, %v4848_v63, -inf }
 0x4e6   : > { %2273 = vmax.xlane.f32.xlu2 %v2272_v1  ;;  %1479 = vmax.xlane.f32.xlu0 %v1478_v2 }
 0x4e7   : > { %1721 = vmax.xlane.f32.xlu1 %v1720_v3 }
 0x4e9   : > { %v1844_v50 = vpop.f32.mrf.mxu0 }
 0x4ee   : > { %1597 = vmax.xlane.f32.xlu0 %v1596_v9 }
 0x4ef   : > { %1724 = vmax.xlane.f32.xlu1 %v1723_v10 }
 0x4f7   : > { %1727 = vmax.xlane.f32.xlu1 %v1726_v13 }
 0x4fe   : > { %2351 = vrot.lane.b32.xlu2 %v4730_v51, %s4228_s26  ;;  %v1475_v51 = vsel %vm1471_vm10, %v4887_v18, -inf }
 0x4ff   : > { %2025 = vmax.xlane.f32.xlu1 %v2024_v21  ;;  %v2266_v30 = vpop.f32.mrf.mxu3 }
 0x500   : > { %v4902_v31 = vadd.f32 %v4833_v49, %v2266_v30 }
 0x502   : > { %v2275_v14 = vsel %vm1471_vm10, %v4902_v31, -inf }
 0x507   : > { %2028 = vmax.xlane.f32.xlu1 %v2027_v8 }
 0x514   : > { %v2133_v22 = vpop.f32.mrf.mxu0 }
 0x515   : > { %v4927_v61 = vadd.f32 %v4833_v49, %v2133_v22 }
 0x517   : > { %v2142_v1 = vsel %vm1471_vm10, %v4927_v61, -inf }
 0x51c   : > { %v2136_v2 = vpop.f32.mrf.mxu0 }
 0x51d   : > { %v4933_v10 = vadd.f32 %v4833_v49, %v2136_v2 }
 0x51f   : > { %v2145_v13 = vsel %vm1471_vm10, %v4933_v10, -inf }
 0x520   : > { %3960 = vrot.lane.b32.xlu1 %v3959_v17, %s4224_s27 }
 0x527   : > { %1476 = vmax.xlane.f32.xlu2 %v1475_v51  ;;  %v2139_v51 = vpop.f32.mrf.mxu0 }
 0x52f   : > { %1591 = vmax.xlane.f32.xlu2 %v1590_v25  ;;  %v4943_v25 = vadd.f32 %v4833_v49, %v2139_v51 }
 0x537   : > { %1848 = vmax.xlane.f32.xlu2 %v1847_v29  ;;  %v2148_v29 = vsel %vm1471_vm10, %v4943_v25, -inf }
 0x549   : > { %v1474_v35 = vpop.xlane.xlu1 %1473 }
 0x54a   : > { %2276 = vmax.xlane.f32.xlu1 %v2275_v14  ;;  %v1481_v34 = vsub.f32 %v1463_v28, %v1474_v35  ;;  %v4920_v28 = vadd.f32 %v4833_v49, %v1844_v50 }
 0x54c   : > { %v1484_v38 = vmul.f32 1.442695, %v1481_v34  ;;  %v1853_v58 = vsel %vm1471_vm10, %v4920_v28, -inf }
 0x54e   : > { %4050 = vpow2.f32 %v1484_v38 }
 0x551   : > { %v1595_v62 = vpop.xlane.xlu1 %1594 }
 0x554   : > { %v4906_v39 = vpop.eup %4050 }
 0x555   : > { %v1490_v43 = vsel %vm1471_vm10, %v4906_v39, 0.0 }
 0x556   : > { %1491 = vadd.xlane.f32.xlu0 %v1490_v43 }
 0x559   : > { %v2274_v44 = vpop.xlane.xlu2 %2273  ;;  %v1480_v3 = vpop.xlane.xlu0 %1479 }
 0x55a   : > { %v2281_v45 = vsub.f32 %v2264_v0, %v2274_v44  ;;  %v1600_v0 = vsub.f32 %v4838_v55, %v1595_v62  ;;  %v1483_v35 = vsub.f32 %v4848_v63, %v1480_v3 }
 0x55c   : > { %v2284_v46 = vmul.f32 1.442695, %v2281_v45  ;;  %v1604_v9 = vmul.f32 1.442695, %v1600_v0  ;;  %v1488_v43 = vmul.f32 1.442695, %v1483_v35 }
 0x55e   : > { %4052 = vpow2.f32 %v2284_v46 }
 0x55f   : > { %4054 = vpow2.f32 %v1604_v9 }
 0x561   : > { %v1598_v21 = vpop.xlane.xlu0 %1597  ;;  %v4945_v26 = vpop.permute.xlu2 %2351 }
 0x562   : > { %v1601_v55 = vsub.f32 %v4857_v4, %v1598_v21 }
 0x564   : > { %v4910_v47 = vpop.eup %4052  ;;  %v1606_v19 = vmul.f32 1.442695, %v1601_v55 }
 0x565   : > { %v2290_v12 = vsel %vm1471_vm10, %v4910_v47, 0.0  ;;  %v4937_v8 = vpop.eup %4054 }
 0x566   : > { %2291 = vadd.xlane.f32.xlu2 %v2290_v12  ;;  %v1611_v17 = vsel %vm1471_vm10, %v4937_v8, 0.0  ;;  %4056 = vpow2.f32 %v1606_v19  ;;  %v1722_v12 = vpop.xlane.xlu1 %1721 }
 0x567   : > { %v1729_v22 = vsub.f32 %v4845_v60, %v1722_v12 }
 0x56c   : > { %v4949_v30 = vpop.eup %4056 }
 0x56d   : > { %v1614_v38 = vsel %vm1471_vm10, %v4949_v30, 0.0 }
 0x56e   : > { %1851 = vmax.xlane.f32.xlu2 %v1850_v53  ;;  %v1725_v19 = vpop.xlane.xlu1 %1724 }
 0x576   : > { %1854 = vmax.xlane.f32.xlu2 %v1853_v58 }
 0x57e   : > { %2143 = vmax.xlane.f32.xlu2 %v2142_v1 }
 0x586   : > { %2146 = vmax.xlane.f32.xlu2 %v2145_v13  ;;  %v3954_v13 = vpack.i.bf16 %v4681_v37, %v4685_v41 }
 0x58e   : > { %1612 = vadd.xlane.f32.xlu2 %v1611_v17 }
 0x596   : > { %2149 = vmax.xlane.f32.xlu2 %v2148_v29 }
 0x59a   : > { %v1477_v14 = vpop.xlane.xlu2 %1476 }
 0x59b   : > { %v1482_v4 = vsub.f32 %v4887_v18, %v1477_v14 }
 0x59d   : > { %v1486_v34 = vmul.f32 1.442695, %v1482_v4 }
 0x59e   : > { %1615 = vadd.xlane.f32.xlu2 %v1614_v38  ;;  %v1728_v38 = vpop.xlane.xlu1 %1727 }
 0x59f   : > { %4058 = vpow2.f32 %v1486_v34 }
 0x5a0   : > { %4060 = vpow2.f32 %v1488_v43  ;;  %v2269_v43 = vpop.f32.mrf.mxu3 }
 0x5a2   : > { %v1592_v44 = vpop.xlane.xlu2 %1591 }
 0x5a3   : > { %v1599_v46 = vsub.f32 %v4892_v20, %v1592_v44  ;;  %v1732_v20 = vmul.f32 1.442695, %v1729_v22 }
 0x5a5   : > { %v4955_v45 = vpop.eup %4058  ;;  %v1602_v18 = vmul.f32 1.442695, %v1599_v46 }
 0x5a6   : > { %v1493_v23 = vsel %vm1471_vm10, %v4955_v45, 0.0  ;;  %v4960_v50 = vpop.eup %4060  ;;  %v2026_v12 = vpop.xlane.xlu1 %2025 }
 0x5a7   : > { %1494 = vadd.xlane.f32.xlu0 %v1493_v23  ;;  %4062 = vpow2.f32 %v1602_v18  ;;  %v1496_v62 = vsel %vm1471_vm10, %v4960_v50, 0.0 }
 0x5aa   : > { %v1849_v63 = vpop.xlane.xlu2 %1848 }
 0x5ab   : > { %v1856_v53 = vsub.f32 %v4897_v27, %v1849_v63  ;;  %v2033_v63 = vsub.f32 %v4872_v24, %v2026_v12 }
 0x5ad   : > { %v1859_v58 = vmul.f32 1.442695, %v1856_v53  ;;  %v4966_v0 = vpop.eup %4062  ;;  %v2036_v53 = vmul.f32 1.442695, %v2033_v63 }
 0x5ae   : > { %v1608_v2 = vsel %vm1471_vm10, %v4966_v0, 0.0 }
 0x5af   : > { %4064 = vpow2.f32 %v1859_v58  ;;  %1497 = vadd.xlane.f32.xlu0 %v1496_v62 }
 0x5b0   : > { %4066 = vpow2.f32 %v1732_v20 }
 0x5b5   : > { %v4968_v1 = vpop.eup %4064 }
 0x5b6   : > { %v1865_v27 = vsel %vm1471_vm10, %v4968_v1, 0.0  ;;  %v4974_v60 = vpop.eup %4066 }
 0x5b7   : > { %1609 = vadd.xlane.f32.xlu0 %v1608_v2  ;;  %1866 = vadd.xlane.f32.xlu2 %v1865_v27  ;;  %v1738_v3 = vsel %vm1471_vm10, %v4974_v60, 0.0 }
 0x5bf   : > { %1739 = vadd.xlane.f32.xlu2 %v1738_v3 }
 0x5c9   : > { %v1492_v9 = vpop.xlane.xlu0 %1491 }
 0x5ca   : > { %4068 = vrcp.f32 %v1492_v9 }
 0x5cb   : > { %3955 = vrot.lane.b32.xlu0 %v3954_v13, %s4224_s27 }
 0x5d0   : > { %v4069_v21 = vpop.eup %4068 }
 0x5d1   : > { %v1502_v55 = vmul.f32 %v4069_v21, %v4906_v39  ;;  %v1730_v39 = vsub.f32 %v4860_v6, %v1725_v19 }
 0x5d3   : > { %3638 = vmatmul.msk.f32.vlgmr.msrb.gmra.mxu2 %vm1471_vm10, %v1502_v55  ;;  %v1734_v4 = vmul.f32 1.442695, %v1730_v39  ;;  %v5033_v55 = vpop.xlane.xlu1 %2028 }
 0x5d7   : > { %3965 = vrot.lane.b32.xlu2 %v3954_v13, %s4228_s26 }
 0x5d9   : > { %v2292_v17 = vpop.xlane.xlu2 %2291 }
 0x5da   : > { %4070 = vrcp.f32 %v2292_v17 }
 0x5df   : > { %1880 = vrot.lane.b32.xlu2 %v4677_v16, %s4228_s26 }
 0x5e0   : > { %v4071_v51 = vpop.eup %4070 }
 0x5e1   : > { %v2302_v29 = vmul.f32 %v4071_v51, %v4910_v47  ;;  %v1852_v37 = vpop.xlane.xlu2 %1851  ;;  %v4998_v47 = vadd.f32 %v4833_v49, %v4840_v33  ;;  %v5010_v33 = vadd.f32 %v4833_v49, %v2269_v43 }
 0x5e2   : > { %v1857_v41 = vsub.f32 %v4915_v48, %v1852_v37  ;;  %v3961_v37 = vpop.permute.xlu1 %3960 }
 0x5e3   : > { %3692 = vmatmul.msk.f32.vlgmr.msrb.gmra.mxu0 %vm1471_vm10, %v2302_v29 }
 0x5e4   : > { %v1861_v14 = vmul.f32 1.442695, %v1857_v41 }
 0x5e6   : > { %4072 = vpow2.f32 %v1861_v14 }
 0x5e7   : > { %4074 = vpow2.f32 %v1734_v4 }
 0x5e9   : > { %v1855_v48 = vpop.xlane.xlu2 %1854 }
 0x5ea   : > { %v1858_v46 = vsub.f32 %v4920_v28, %v1855_v48  ;;  %v2277_v4 = vpop.xlane.xlu1 %2276 }
 0x5eb   : > { %3698 = vmatmul.msk.f32.vlgmr.msra.gmra.mxu0 %vm1429_vm9, %v4809_v5  ;;  %v2030_v5 = vsel %vm1471_vm10, %v4998_v47, -inf }
 0x5ec   : > { %v4992_v35 = vpop.eup %4072  ;;  %v1863_v23 = vmul.f32 1.442695, %v1858_v46 }
 0x5ed   : > { %v1868_v34 = vsel %vm1471_vm10, %v4992_v35, 0.0  ;;  %v5000_v6 = vpop.eup %4074 }
 0x5ee   : > { %1869 = vadd.xlane.f32.xlu1 %v1868_v34  ;;  %v1741_v44 = vsel %vm1471_vm10, %v5000_v6, 0.0  ;;  %4076 = vpow2.f32 %v1863_v23 }
 0x5ef   : > { %4078 = vpow2.f32 %v2036_v53  ;;  %v3962_v53 = vunpack.i.l.bf16 %v3961_v37 }
 0x5f1   : > { %v2144_v18 = vpop.xlane.xlu2 %2143 }
 0x5f2   : > { %v2151_v51 = vsub.f32 %v4927_v61, %v2144_v18 }
 0x5f3   : > { %3699 = vmatmul.msk.f32.gmra.mxu0 %vm1429_vm9, %v4945_v26  ;;  %v2278_v26 = vsel %vm1471_vm10, %v5010_v33, -inf }
 0x5f4   : > { %v5017_v22 = vpop.eup %4076  ;;  %v2154_v41 = vmul.f32 1.442695, %v2151_v51 }
 0x5f5   : > { %2031 = vmax.xlane.f32.xlu0 %v2030_v5  ;;  %v1871_v58 = vsel %vm1471_vm10, %v5017_v22, 0.0  ;;  %v5023_v62 = vpop.eup %4078 }
 0x5f6   : > { %1742 = vadd.xlane.f32.xlu1 %v1741_v44  ;;  %v2042_v24 = vsel %vm1471_vm10, %v5023_v62, 0.0 }
 0x5f9   : > { %v5019_v28 = vpop.xlane.xlu2 %2146 }
 0x5fb   : > { %3700 = vmatmul.msk.f32.gmra.mxu0 %vm1429_vm9, %v4924_v59 }
 0x5fd   : > { %2279 = vmax.xlane.f32.xlu0 %v2278_v26 }
 0x601   : > { %v1613_v59 = vpop.xlane.xlu2 %1612 }
 0x608   : > { %1872 = vadd.xlane.f32.xlu2 %v1871_v58 }
 0x609   : > { %v2150_v20 = vpop.xlane.xlu2 %2149 }
 0x60f   : > { %1753 = vrot.lane.b32.xlu1 %v4677_v16, %s4225_s2  ;;  %v1731_v16 = vsub.f32 %v4867_v11, %v1728_v38 }
 0x610   : > { %2043 = vadd.xlane.f32.xlu2 %v2042_v24 }
 0x611   : > { %3970 = vrot.lane.b32.xlu0 %v3954_v13, %s4225_s2  ;;  %v5030_v3 = vpop.xlane.xlu2 %1615  ;;  %v1736_v29 = vmul.f32 1.442695, %v1731_v16 }
 0x61a   : > { %v1495_v2 = vpop.xlane.xlu0 %1494 }
 0x61b   : > { %4080 = vrcp.f32 %v1495_v2 }
 0x621   : > { %v4081_v27 = vpop.eup %4080 }
 0x622   : > { %v1498_v9 = vpop.xlane.xlu0 %1497  ;;  %v1503_v21 = vmul.f32 %v4081_v27, %v4955_v45  ;;  %v2153_v45 = vsub.f32 %v4943_v25, %v2150_v20  ;;  %v3963_v20 = vunpack.i.h.bf16 %v3961_v37 }
 0x623   : > { %4082 = vrcp.f32 %v1498_v9 }
 0x624   : > { %3639 = vmatmul.msk.f32.gmra.mxu2 %vm1471_vm10, %v1503_v21  ;;  %4084 = vpow2.f32 %v1736_v29  ;;  %v2158_v14 = vmul.f32 1.442695, %v2153_v45 }
 0x625   : > { %4086 = vpow2.f32 %v2154_v41 }
 0x626   : > { %4088 = vpow2.f32 %v2158_v14 }
 0x629   : > { %v4083_v17 = vpop.eup %4082 }
 0x62a   : > { %v1867_v13 = vpop.xlane.xlu2 %1866  ;;  %v1504_v19 = vmul.f32 %v4083_v17, %v4960_v50  ;;  %v5043_v11 = vpop.eup %4084  ;;  %v2282_v50 = vsub.f32 %v4902_v31, %v2277_v4 }
 0x62b   : > { %v1610_v34 = vpop.xlane.xlu0 %1609  ;;  %v5045_v61 = vpop.eup %4086  ;;  %v1744_v48 = vsel %vm1471_vm10, %v5043_v11, 0.0  ;;  %4090 = vrcp.f32 %v1867_v13 }
 0x62c   : > { %3640 = vmatmul.msk.f32.gmra.mxu2 %vm1471_vm10, %v1504_v19  ;;  %4092 = vrcp.f32 %v1610_v34  ;;  %v2160_v38 = vsel %vm1471_vm10, %v5045_v61, 0.0  ;;  %v2286_v5 = vmul.f32 1.442695, %v2282_v50  ;;  %v5052_v44 = vpop.eup %4088 }
 0x62d   : > { %v2166_v63 = vsel %vm1471_vm10, %v5052_v44, 0.0 }
 0x62e   : > { %4094 = vpow2.f32 %v2286_v5 }
 0x62f   : > { %4096 = vrcp.f32 %v1613_v59 }
 0x630   : > { %4098 = vrcp.f32 %v5030_v3 }
 0x631   : > { %v4091_v18 = vpop.eup %4090 }
 0x632   : > { %v5041_v39 = vpop.xlane.xlu2 %1739  ;;  %v4093_v12 = vpop.eup %4092  ;;  %v1877_v58 = vmul.f32 %v4091_v18, %v4968_v1 }
 0x633   : > { %v1620_v2 = vmul.f32 %v4093_v12, %v4966_v0 }
 0x634   : > { %v5059_v27 = vpop.eup %4094 }
 0x635   : > { %v4097_v9 = vpop.eup %4096  ;;  %v2293_v59 = vsel %vm1471_vm10, %v5059_v27, 0.0 }
 0x636   : > { %v1621_v1 = vmul.f32 %v4097_v9, %v4937_v8  ;;  %v4099_v0 = vpop.eup %4098  ;;  %v2152_v8 = vsub.f32 %v4933_v10, %v5019_v28 }
 0x637   : > { %v1622_v21 = vmul.f32 %v4099_v0, %v4949_v30 }
 0x638   : > { %v2156_v37 = vmul.f32 1.442695, %v2152_v8 }
 0x639   : > { %1745 = vadd.xlane.f32.xlu1 %v1744_v48 }
 0x63a   : > { %v3966_v25 = vpop.permute.xlu2 %3965 }
 0x63b   : > { %v3967_v43 = vunpack.i.l.bf16 %v3966_v25  ;;  %2161 = vadd.xlane.f32.xlu0 %v2160_v38  ;;  %v3968_v46 = vunpack.i.h.bf16 %v3966_v25 }
 0x63d   : > { %v3956_v23 = vpop.permute.xlu0 %3955  ;;  %1911 = vmatpush.msra.mxu1 %v3967_v43 }
 0x63e   : > { %v3957_v31 = vunpack.i.l.bf16 %v3956_v23  ;;  %v3958_v26 = vunpack.i.h.bf16 %v3956_v23 }
 0x63f   : > { %1912 = vmatpush.msra.mxu1 %v3968_v46 }
 0x640   : > { %1657 = vmatpush.msra.mxu2 %v3957_v31 }
 0x641   : > { %2167 = vadd.xlane.f32.xlu1 %v2166_v63 }
 0x642   : > { %1658 = vmatpush.msra.mxu2 %v3958_v26  ;;  %v1881_v24 = vpop.permute.xlu2 %1880 }
 0x643   : > { %1913 = vmatpush.msra.mxu1 %v1881_v24 }
 0x644   : > { %1659 = vmatpush.msra.mxu2 %v3962_v53  ;;  %3665 = vmatmul.msk.f32.vlgmr.msra.gmra.mxu1 %vm1471_vm10, %v1877_v58 }
 0x645   : > { %2209 = vmatpush.msrb.mxu1 %v3963_v20  ;;  %3647 = vmatmul.msk.f32.vlgmr.msra.gmra.mxu2 %vm1471_vm10, %v1620_v2  ;;  %v3974_v20 = vpack.i.bf16 %v4735_v52, %v4747_v56 }
 0x649   : > { %2294 = vadd.xlane.f32.xlu1 %v2293_v59 }
 0x64d   : > { %3648 = vmatmul.msk.f32.gmra.mxu2 %vm1471_vm10, %v1621_v1 }
 0x655   : > { %3649 = vmatmul.msk.f32.gmra.mxu2 %vm1471_vm10, %v1622_v21 }
 0x660   : > { %v5069_v16 = vpop.f32.mrf.mxu0 }
 0x661   : > { %v1870_v17 = vpop.xlane.xlu1 %1869 }
 0x662   : > { %4100 = vrcp.f32 %v1870_v17 }
 0x663   : > { %4102 = vpow2.f32 %v2156_v37 }
 0x668   : > { %v4101_v51 = vpop.eup %4100  ;;  %v2390_v13 = vpop.f32.mrf.mxu0 }
 0x669   : > { %v2032_v19 = vpop.xlane.xlu0 %2031  ;;  %v5072_v29 = vadd.f32 %v4833_v49, %v2390_v13  ;;  %v1878_v3 = vmul.f32 %v4101_v51, %v4992_v35  ;;  %v2034_v35 = vsub.f32 %v4879_v15, %v5033_v55  ;;  %v5088_v50 = vpop.eup %4102 }
 0x66a   : > { %v2163_v5 = vsel %vm1471_vm10, %v5088_v50, 0.0 }
 0x66b   : > { %3666 = vmatmul.msk.f32.gmra.mxu1 %vm1471_vm10, %v1878_v3  ;;  %v2399_v30 = vsel %vm1471_vm10, %v5072_v29, -inf  ;;  %v2038_v28 = vmul.f32 1.442695, %v2034_v35 }
 0x66c   : > { %2400 = vmax.xlane.f32.xlu2 %v2399_v30 }
 0x670   : > { %v2393_v41 = vpop.f32.mrf.mxu0 }
 0x671   : > { %v2280_v45 = vpop.xlane.xlu0 %2279  ;;  %v5081_v14 = vadd.f32 %v4833_v49, %v2393_v41 }
 0x672   : > { %v2283_v4 = vsub.f32 %v5010_v33, %v2280_v45  ;;  %v2035_v33 = vsub.f32 %v4998_v47, %v2032_v19  ;;  %v1743_v47 = vpop.xlane.xlu1 %1742 }
 0x673   : > { %v2402_v10 = vsel %vm1471_vm10, %v5081_v14, -inf }
 0x674   : > { %v2288_v34 = vmul.f32 1.442695, %v2283_v4  ;;  %2403 = vmax.xlane.f32.xlu2 %v2402_v10 }
 0x676   : > { %4104 = vpow2.f32 %v2288_v34 }
 0x677   : > { %4106 = vpow2.f32 %v2038_v28 }
 0x678   : > { %v2396_v48 = vpop.f32.mrf.mxu0 }
 0x679   : > { %v5091_v25 = vadd.f32 %v4833_v49, %v2396_v48  ;;  %v2040_v49 = vmul.f32 1.442695, %v2035_v33 }
 0x67b   : > { %v1873_v15 = vpop.xlane.xlu2 %1872  ;;  %v2405_v55 = vsel %vm1471_vm10, %v5091_v25, -inf }
 0x67c   : > { %v5094_v38 = vpop.eup %4104  ;;  %4108 = vrcp.f32 %v1873_v15  ;;  %2406 = vmax.xlane.f32.xlu0 %v2405_v55  ;;  %2164 = vadd.xlane.f32.xlu2 %v2163_v5 }
 0x67d   : > { %v2296_v43 = vsel %vm1471_vm10, %v5094_v38, 0.0  ;;  %v5102_v46 = vpop.eup %4106  ;;  %4110 = vrcp.f32 %v5041_v39 }
 0x67e   : > { %2297 = vadd.xlane.f32.xlu1 %v2296_v43  ;;  %4112 = vpow2.f32 %v2040_v49  ;;  %v2045_v18 = vsel %vm1471_vm10, %v5102_v46, 0.0 }
 0x67f   : > { %4114 = vrcp.f32 %v1743_v47 }
 0x681   : > { %v1754_v24 = vpop.permute.xlu1 %1753 }
 0x682   : > { %v4109_v23 = vpop.eup %4108 }
 0x683   : > { %v3971_v31 = vpop.permute.xlu0 %3970  ;;  %v1879_v12 = vmul.f32 %v4109_v23, %v5017_v22  ;;  %v4111_v63 = vpop.eup %4110 }
 0x684   : > { %v3972_v26 = vunpack.i.l.bf16 %v3971_v31  ;;  %2046 = vadd.xlane.f32.xlu2 %v2045_v18  ;;  %v3973_v53 = vunpack.i.h.bf16 %v3971_v31  ;;  %v5109_v58 = vpop.eup %4112  ;;  %v1750_v39 = vmul.f32 %v4111_v63, %v4974_v60 }
 0x685   : > { %3667 = vmatmul.msk.f32.gmra.mxu1 %vm1471_vm10, %v1879_v12  ;;  %v2048_v22 = vsel %vm1471_vm10, %v5109_v58, 0.0  ;;  %v4115_v2 = vpop.eup %4114 }
 0x686   : > { %1784 = vmatpush.msrb.mxu2 %v3972_v26  ;;  %v1751_v60 = vmul.f32 %v4115_v2, %v5000_v6 }
 0x688   : > { %1785 = vmatpush.msrb.mxu2 %v3973_v53 }
 0x68a   : > { %1786 = vmatpush.msrb.mxu2 %v1754_v24 }
 0x68b   : > { %3656 = vmatmul.msk.f32.vlgmr.msrb.gmra.mxu2 %vm1471_vm10, %v1750_v39 }
 0x68c   : > { %2079 = vmatpush.msra.mxu2 %v4744_v54  ;;  %2049 = vadd.xlane.f32.xlu2 %v2048_v22 }
 0x68e   : > { %2080 = vmatpush.msra.mxu2 %v4747_v56  ;;  %v2044_v56 = vpop.xlane.xlu2 %2043 }
 0x690   : > { %2081 = vmatpush.msra.mxu2 %v4735_v52  ;;  %3975 = vrot.lane.b32.xlu0 %v3974_v20, %s4224_s27  ;;  %s5626_s27 = scalar_lea.vmem %s5583_s11, %s4337_s30 }
 0x692   : > { %3912 = vmatpush.msrb.mxu2 %v3952_v40 }
 0x693   : > { %3657 = vmatmul.msk.f32.gmra.mxu2 %vm1471_vm10, %v1751_v60 }
 0x694   : > { %3913 = vmatpush.msrb.mxu2 %v3953_v42  ;;  %v5134_v42 = vpop.f32.mrf.mxu2 }
 0x696   : > { %3914 = vmatpush.msrb.mxu2 %v4806_v32 }
 0x6a4   : > { %3980 = vrot.lane.b32.xlu2 %v4753_v57, %s4228_s26 }
 0x6a7   : > { %v5136_v32 = vpop.f32.mrf.mxu2 }
 0x6ac   : > { %v1746_v54 = vpop.xlane.xlu1 %1745 }
 0x6ad   : > { %4116 = vrcp.f32 %v1746_v54 }
 0x6ae   : > { %4118 = vrcp.f32 %v2044_v56  ;;  %v2162_v0 = vpop.xlane.xlu0 %2161 }
 0x6af   : > { %v5140_v17 = vpop.f32.mrf.mxu2 }
 0x6b3   : > { %v4117_v9 = vpop.eup %4116 }
 0x6b4   : > { %v1752_v59 = vmul.f32 %v4117_v9, %v5043_v11  ;;  %v4119_v40 = vpop.eup %4118 }
 0x6b5   : > { %v2054_v36 = vmul.f32 %v4119_v40, %v5023_v62 }
 0x6b6   : > { %3658 = vmatmul.msk.f32.gmra.mxu2 %vm1471_vm10, %v1752_v59  ;;  %v3870_v59 = vld [vmem:[%s4367_s22 + $0x8] sm:$0xff] }
 0x6be   : > { %3674 = vmatmul.msk.f32.vlgmr.msra.gmra.mxu2 %vm1471_vm10, %v2054_v36  ;;  %v3869_v36 = vld [vmem:[%s4367_s22] sm:$0xff] }
 0x6c1   : > { %v1915_v20 = vpop.f32.mrf.mxu1 }
 0x6c8   : > { %v1661_v8 = vpop.f32.mrf.mxu2 }
 0x6d0   : > { %v1664_v35 = vpop.f32.mrf.mxu2 }
 0x6d1   : > { %v3984_v28 = vpack.i.bf16 %v1664_v35, %v1661_v8 }
 0x6d8   : > { %v5159_v23 = vpop.f32.mrf.mxu2 }
 0x6df   : > { %v2401_v6 = vpop.xlane.xlu2 %2400 }
 0x6e0   : > { %v2408_v57 = vsub.f32 %v5072_v29, %v2401_v6 }
 0x6e2   : > { %v2411_v1 = vmul.f32 1.442695, %v2408_v57 }
 0x6e4   : > { %4120 = vpow2.f32 %v2411_v1 }
 0x6e7   : > { %v2404_v21 = vpop.xlane.xlu2 %2403 }
 0x6e8   : > { %v2409_v11 = vsub.f32 %v5081_v14, %v2404_v21  ;;  %v2168_v14 = vpop.xlane.xlu1 %2167 }
 0x6ea   : > { %v5142_v51 = vpop.eup %4120  ;;  %v2413_v62 = vmul.f32 1.442695, %v2409_v11 }
 0x6eb   : > { %v2417_v13 = vsel %vm1471_vm10, %v5142_v51, 0.0 }
 0x6ec   : > { %4122 = vpow2.f32 %v2413_v62  ;;  %2418 = vadd.xlane.f32.xlu0 %v2417_v13 }
 0x6ef   : > { %v2407_v19 = vpop.xlane.xlu0 %2406  ;;  %v2165_v3 = vpop.xlane.xlu2 %2164 }
 0x6f0   : > { %v2410_v29 = vsub.f32 %v5091_v25, %v2407_v19  ;;  %v2295_v55 = vpop.xlane.xlu1 %2294 }
 0x6f2   : > { %v5147_v30 = vpop.eup %4122  ;;  %v2415_v37 = vmul.f32 1.442695, %v2410_v29 }
 0x6f3   : > { %v2420_v41 = vsel %vm1471_vm10, %v5147_v30, 0.0 }
 0x6f4   : > { %4124 = vpow2.f32 %v2415_v37  ;;  %2421 = vadd.xlane.f32.xlu1 %v2420_v41 }
 0x6f7   : > { %v2047_v45 = vpop.xlane.xlu2 %2046 }
 0x6f8   : > { %4126 = vrcp.f32 %v2047_v45  ;;  %v2298_v63 = vpop.xlane.xlu1 %2297 }
 0x6f9   : > { %4128 = vrcp.f32 %v2162_v0 }
 0x6fa   : > { %v5151_v4 = vpop.eup %4124 }
 0x6fb   : > { %v2423_v34 = vsel %vm1471_vm10, %v5151_v4, 0.0 }
 0x6fc   : > { %2424 = vadd.xlane.f32.xlu2 %v2423_v34 }
 0x6fe   : > { %v4127_v10 = vpop.eup %4126 }
 0x6ff   : > { %v2050_v48 = vpop.xlane.xlu2 %2049  ;;  %v2055_v25 = vmul.f32 %v4127_v10, %v5102_v46  ;;  %v4129_v15 = vpop.eup %4128 }
 0x700   : > { %4130 = vrcp.f32 %v2050_v48  ;;  %3985 = vrot.lane.b32.xlu0 %v3984_v28, %s4227_s23  ;;  %v2172_v47 = vmul.f32 %v4129_v15, %v5045_v61 }
 0x701   : > { %3675 = vmatmul.msk.f32.gmra.mxu2 %vm1471_vm10, %v2055_v25  ;;  %4132 = vrcp.f32 %v2165_v3 }
 0x702   : > { %v3976_v33 = vpop.permute.xlu0 %3975  ;;  %4134 = vrcp.f32 %v2295_v55 }
 0x703   : > { %v3977_v5 = vunpack.i.l.bf16 %v3976_v33  ;;  %v3978_v43 = vunpack.i.h.bf16 %v3976_v33  ;;  %4136 = vrcp.f32 %v2168_v14 }
 0x704   : > { %4138 = vrcp.f32 %v2298_v63 }
 0x705   : > { %2210 = vmatpush.msrb.mxu1 %v3977_v5 }
 0x706   : > { %v4131_v49 = vpop.eup %4130 }
 0x707   : > { %v3981_v31 = vpop.permute.xlu2 %3980  ;;  %2211 = vmatpush.msrb.mxu1 %v3978_v43  ;;  %v2056_v46 = vmul.f32 %v4131_v49, %v5109_v58  ;;  %v4133_v26 = vpop.eup %4132 }
 0x708   : > { %v3982_v18 = vunpack.i.l.bf16 %v3981_v31  ;;  %3683 = vmatmul.msk.f32.vlgmr.msrb.gmra.mxu1 %vm1471_vm10, %v2172_v47  ;;  %v3983_v12 = vunpack.i.h.bf16 %v3981_v31  ;;  %v4135_v53 = vpop.eup %4134  ;;  %v2173_v39 = vmul.f32 %v4133_v26, %v5088_v50 }
 0x709   : > { %3676 = vmatmul.msk.f32.gmra.mxu2 %vm1471_vm10, %v2056_v46  ;;  %v2303_v58 = vmul.f32 %v4135_v53, %v5059_v27  ;;  %v4137_v24 = vpop.eup %4136  ;;  %v1918_v27 = vpop.f32.mrf.mxu1  ;;  %v5214_v53 = vld [vmem:[%s5626_s27] ss:$0 sm:$0xff] }
 0x70a   : > { %2463 = vmatpush.msra.mxu1 %v3982_v18  ;;  %v4139_v22 = vpop.eup %4138  ;;  %v2174_v2 = vmul.f32 %v4137_v24, %v5052_v44  ;;  %v3994_v50 = vpack.i.bf16 %v1918_v27, %v1915_v20  ;;  %v3872_v44 = vld [vmem:[%s4367_s22 + $0x18] sm:$0xff] }
 0x70b   : > { %2564 = vmatpush.bf16.msra.mxu3 %v3872_v44 }
 0x70c   : > { %2464 = vmatpush.msra.mxu1 %v3983_v12 }
 0x70d   : > { %2432 = vrot.lane.b32.xlu1 %v4735_v52, %s4228_s26  ;;  %v2304_v52 = vmul.f32 %v4139_v22, %v5094_v38  ;;  %v3871_v38 = vld [vmem:[%s4367_s22 + $0x10] sm:$0xff] }
 0x70e   : > { %v1788_v61 = vpop.f32.mrf.mxu2 }
 0x70f   : > { %2565 = vmatpush.bf16.msra.mxu3 %v3871_v38 }
 0x710   : > { %3684 = vmatmul.msk.f32.gmra.mxu1 %vm1471_vm10, %v2173_v39 }
 0x711   : > { %3693 = vmatmul.msk.f32.vlgmr.msrb.gmra.mxu2 %vm1471_vm10, %v2303_v58  ;;  %v1921_v0 = vpop.f32.mrf.mxu1  ;;  %v4206_v58 = vld [vmem:[#allocation2] sm:$0xff] }
 0x713   : > { %2566 = vmatpush.bf16.msra.mxu3 %v3870_v59 }
 0x716   : > { %v1791_v60 = vpop.f32.mrf.mxu2 }
 0x717   : > { %v3989_v54 = vpack.i.bf16 %v1791_v60, %v1788_v61  ;;  %2567 = vmatpush.bf16.msra.mxu3 %v3869_v36  ;;  %v4207_v60 = vld [vmem:[#allocation2 + $0x8] sm:$0xff] }
 0x718   : > { %3685 = vmatmul.msk.f32.gmra.mxu1 %vm1471_vm10, %v2174_v2 }
 0x719   : > { %3694 = vmatmul.msk.f32.gmra.mxu2 %vm1471_vm10, %v2304_v52  ;;  %3990 = vrot.lane.b32.xlu1 %v3989_v54, %s4223_s29 }
 0x721   : > { %3995 = vrot.lane.b32.xlu1 %v3994_v50, %s4222_s25 }
 0x739   : > { %v1794_v56 = vpop.f32.mrf.mxu2 }
 0x73a   : > { %v4004_v9 = vpack.i.bf16 %v5069_v16, %v1794_v56 }
 0x73c   : > { %4005 = vrot.lane.b32.xlu1 %v4004_v9, %s4223_s29 }
 0x741   : > { %v5182_v1 = vpop.f32.mrf.mxu2 }
 0x75f   : > { %v2419_v40 = vpop.xlane.xlu0 %2418 }
 0x760   : > { %4140 = vrcp.f32 %v2419_v40 }
 0x766   : > { %v4141_v57 = vpop.eup %4140 }
 0x767   : > { %v2422_v6 = vpop.xlane.xlu1 %2421  ;;  %v2429_v16 = vmul.f32 %v4141_v57, %v5142_v51 }
 0x768   : > { %4142 = vrcp.f32 %v2422_v6 }
 0x76e   : > { %v4143_v62 = vpop.eup %4142 }
 0x76f   : > { %v2425_v11 = vpop.xlane.xlu2 %2424  ;;  %v2430_v29 = vmul.f32 %v4143_v62, %v5147_v30 }
 0x770   : > { %4144 = vrcp.f32 %v2425_v11 }
 0x772   : > { %v3986_v45 = vpop.permute.xlu0 %3985 }
 0x773   : > { %v3988_v35 = vunpack.i.h.bf16 %v3986_v45  ;;  %v3987_v34 = vunpack.i.l.bf16 %v3986_v45 }
 0x775   : > { %v1961_v25 = vsel %vm1429_vm9, %v5136_v32, %v3988_v35  ;;  %v1960_v33 = vsel %vm1429_vm9, %v5134_v42, %v3987_v34 }
 0x776   : > { %v4145_v8 = vpop.eup %4144 }
 0x777   : > { %v2431_v14 = vmul.f32 %v4145_v8, %v5151_v4 }
 0x77f   : > { %v2433_v21 = vpop.permute.xlu1 %2432 }
 0x780   : > { %2465 = vmatpush.msra.mxu1 %v2433_v21 }
 0x781   : > { %3701 = vmatmul.msk.f32.vlgmr.msra.gmra.mxu1 %vm1471_vm10, %v2429_v16 }
 0x784   : > { %v5186_v13 = vpop.f32.mrf.mxu2 }
 0x785   : > { %v2213_v19 = vpop.f32.mrf.mxu1 }
 0x786   : > { %v3999_v3 = vpack.i.bf16 %v2213_v19, %v5159_v23 }
 0x788   : > { %4000 = vrot.lane.b32.xlu0 %v3999_v3, %s4227_s23 }
 0x789   : > { %3702 = vmatmul.msk.f32.gmra.mxu1 %vm1471_vm10, %v2430_v29 }
 0x78b   : > { %v3991_v51 = vpop.permute.xlu1 %3990 }
 0x78c   : > { %v5192_v37 = vpop.f32.mrf.mxu2  ;;  %v3993_v10 = vunpack.i.h.bf16 %v3991_v51  ;;  %v3992_v28 = vunpack.i.l.bf16 %v3991_v51 }
 0x78d   : > { %v2216_v41 = vpop.f32.mrf.mxu1 }
 0x78e   : > { %v1965_v4 = vsel %vm1963_vm11, %v1961_v25, %v3993_v10  ;;  %v1964_v43 = vsel %vm1963_vm11, %v1960_v33, %v3992_v28 }
 0x791   : > { %3703 = vmatmul.msk.f32.gmra.mxu1 %vm1471_vm10, %v2431_v14 }
 0x793   : > { %v3996_v30 = vpop.permute.xlu1 %3995 }
 0x794   : > { %v2343_v48 = vpop.f32.mrf.mxu2  ;;  %v3998_v15 = vunpack.i.h.bf16 %v3996_v30  ;;  %v3997_v55 = vunpack.i.l.bf16 %v3996_v30 }
 0x795   : > { %v2219_v5 = vpop.f32.mrf.mxu1 }
 0x796   : > { %v4014_v49 = vpack.i.bf16 %v2219_v5, %v2216_v41  ;;  %v1968_v47 = vsel %vm1967_vm12, %v1964_v43, %v3997_v55  ;;  %v1969_v23 = vsel %vm1967_vm12, %v1965_v4, %v3998_v15 }
 0x797   : > { %v2521_v31 = vpack.c.bf16 %v1969_v23, %v1968_v47  ;;  %v4209_v23 = vld [vmem:[#allocation2 + $0x18] sm:$0xff] }
 0x798   : > { %4015 = vrot.lane.b32.xlu2 %v4014_v49, %s4227_s23 }
 0x799   : > { %3720 = vmatmul.msk.bf16.vlgmr.msra.gmra.mxu3 %vm1133_vm5, %v2521_v31 }
 0x79c   : > { %v2346_v32 = vpop.f32.mrf.mxu2 }
 0x79d   : > { %v4019_v42 = vpack.i.bf16 %v2346_v32, %v2343_v48 }
 0x79f   : > { %4020 = vrot.lane.b32.xlu1 %v4019_v42, %s4223_s29  ;;  %s5627_s29 = scalar_lea.vmem %s5584_s12, %s4337_s30 }
 0x7ae   : > { %v4006_v9 = vpop.permute.xlu1 %4005 }
 0x7af   : > { %v4008_v59 = vunpack.i.h.bf16 %v4006_v9  ;;  %v4007_v40 = vunpack.i.l.bf16 %v4006_v9 }
 0x7fa   : > { %v4001_v27 = vpop.permute.xlu0 %4000 }
 0x7fb   : > { %v4003_v50 = vunpack.i.h.bf16 %v4001_v27  ;;  %v4002_v56 = vunpack.i.l.bf16 %v4001_v27 }
 0x7fd   : > { %v1962_v44 = vsel %vm1429_vm9, %v5140_v17, %v4002_v56  ;;  %v2512_v38 = vsel %vm1429_vm9, %v5182_v1, %v4003_v50  ;;  %v4016_v17 = vpop.permute.xlu2 %4015 }
 0x7fe   : > { %v2467_v46 = vpop.f32.mrf.mxu1  ;;  %v2515_v16 = vsel %vm1963_vm11, %v2512_v38, %v4008_v59  ;;  %v4018_v3 = vunpack.i.h.bf16 %v4016_v17  ;;  %v4017_v1 = vunpack.i.l.bf16 %v4016_v17  ;;  %v3749_v59 = vld [vmem:[%s4380_s3 + $0x30] sm:$0xf] }
 0x7ff   : > { %v4009_v18 = vpack.i.bf16 %v2467_v46, %v1921_v0  ;;  %v1966_v0 = vsel %vm1963_vm11, %v1962_v44, %v4007_v40  ;;  %v3880_v40 = vld [vmem:[%s4380_s3 + $0x34] sm:$0xf0] }
 0x800   : > { %v2513_v41 = vsel %vm1429_vm9, %v5186_v13, %v4017_v1  ;;  %v2514_v45 = vsel %vm1429_vm9, %v5192_v37, %v4018_v3  ;;  %v4208_v37 = vld [vmem:[#allocation2 + $0x10] sm:$0xff]  ;;  %v3741_v3 = vld [vmem:[%s4380_s3 + $0x20] sm:$0xf]  ;;  %v3878_v1 = vld [vmem:[%s4380_s3 + $0x24] sm:$0xf0] }
 0x801   : > { %4010 = vrot.lane.b32.xlu0 %v4009_v18, %s4222_s25 }
 0x806   : > { %v2470_v12 = vpop.f32.mrf.mxu1 }
 0x80e   : > { %v2473_v26 = vpop.f32.mrf.mxu1 }
 0x80f   : > { %v4024_v63 = vpack.i.bf16 %v2473_v26, %v2470_v12 }
 0x811   : > { %4025 = vrot.lane.b32.xlu0 %v4024_v63, %s4222_s25  ;;  %v4021_v19 = vpop.permute.xlu1 %4020  ;;  %v4210_v63 = vld [vmem:[#allocation2 + $0x20] sm:$0xff] }
 0x812   : > { %v4023_v29 = vunpack.i.h.bf16 %v4021_v19  ;;  %v4022_v8 = vunpack.i.l.bf16 %v4021_v19 }
 0x814   : > { %v2517_v34 = vsel %vm1963_vm11, %v2514_v45, %v4023_v29  ;;  %v2516_v10 = vsel %vm1963_vm11, %v2513_v41, %v4022_v8  ;;  %v3742_v29 = vor.u32 %v3878_v1, %v3741_v3  ;;  %v3877_v8 = vld [vmem:[%s4380_s3 + $0x24] sm:$0xf] }
 0x81c   : > { %v2569_v61 = vpop.f32.mrf.mxu3 }
 0x81d   : > { %v2570_v39 = vadd.f32 %v5214_v53, %v2569_v61 }
 0x81f   : > { %v5217_v24 = vadd.f32 %v4206_v58, %v2570_v39 }
 0x821   : > { %v2592_v22 = vsel %vm1133_vm5, %v5217_v24, 0.0 }
 0x822   : > { %2593 = vadd.xlane.f32.xlu1 %v2592_v22 }
 0x824   : > { %v2571_v20 = vpop.f32.mrf.mxu3 }
 0x825   : > { %v2572_v2 = vadd.f32 %v5214_v53, %v2571_v20 }
 0x827   : > { %v5222_v52 = vadd.f32 %v4207_v60, %v2572_v2  ;;  %v4211_v60 = vld [vmem:[#allocation2 + $0x28] sm:$0xff] }
 0x829   : > { %v2595_v54 = vsel %vm1133_vm5, %v5222_v52, 0.0 }
 0x83b   : > { %2596 = vadd.xlane.f32.xlu0 %v2595_v54 }
 0x873   : > { %v4011_v36 = vpop.permute.xlu0 %4010 }
 0x874   : > { %v4013_v6 = vunpack.i.h.bf16 %v4011_v36  ;;  %v4012_v57 = vunpack.i.l.bf16 %v4011_v36 }
 0x876   : > { %v1970_v21 = vsel %vm1967_vm12, %v1966_v0, %v4012_v57  ;;  %v2518_v11 = vsel %vm1967_vm12, %v2515_v16, %v4013_v6  ;;  %v3750_v57 = vor.u32 %v3880_v40, %v3749_v59  ;;  %v3879_v0 = vld [vmem:[%s4380_s3 + $0x34] sm:$0xf]  ;;  %v3751_v16 = vld [vmem:[%s4380_s3 + $0x38] sm:$0xf0] }
 0x877   : > { %v2522_v62 = vpack.c.bf16 %v2518_v11, %v1970_v21 }
 0x878   : > { %2812 = vmatpush.bf16.msra.mxu2 %v3750_v57 }
 0x879   : > { %3721 = vmatmul.msk.bf16.gmra.mxu3 %vm1133_vm5, %v2522_v62  ;;  %v3754_v62 = vor.u32 %v3879_v0, %v3751_v16 }
 0x87b   : > { %2836 = vmatpush.bf16.msrb.mxu0 %v3754_v62 }
 0x87c   : > { %2813 = vmatpush.bf16.msra.mxu2 %v3742_v29 }
 0x883   : > { %v4026_v51 = vpop.permute.xlu0 %4025 }
 0x884   : > { %v4028_v14 = vunpack.i.h.bf16 %v4026_v51  ;;  %v4027_v35 = vunpack.i.l.bf16 %v4026_v51  ;;  %v3743_v51 = vld [vmem:[%s4380_s3 + $0x28] sm:$0xf0] }
 0x885   : > { %v3746_v45 = vor.u32 %v3877_v8, %v3743_v51 }
 0x886   : > { %v2519_v28 = vsel %vm1967_vm12, %v2516_v10, %v4027_v35  ;;  %v2520_v30 = vsel %vm1967_vm12, %v2517_v34, %v4028_v14  ;;  %v3733_v35 = vld [vmem:[%s4380_s3 + $0x10] sm:$0xf]  ;;  %v3876_v34 = vld [vmem:[%s4380_s3 + $0x14] sm:$0xf0] }
 0x887   : > { %v2523_v48 = vpack.c.bf16 %v2520_v30, %v2519_v28  ;;  %2837 = vmatpush.bf16.msrb.mxu0 %v3746_v45  ;;  %v3734_v28 = vor.u32 %v3876_v34, %v3733_v35  ;;  %v3875_v30 = vld [vmem:[%s4380_s3 + $0x14] sm:$0xf] }
 0x889   : > { %3722 = vmatmul.msk.bf16.gmra.mxu3 %vm1133_vm5, %v2523_v48  ;;  %v3735_v48 = vld [vmem:[%s4380_s3 + $0x18] sm:$0xf0]  ;;  %2814 = vmatpush.bf16.msra.mxu2 %v3734_v28 }
 0x895   : > { %v2594_v25 = vpop.xlane.xlu1 %2593 }
 0x896   : > { %v2610_v13 = vmul.f32 %v2594_v25, %v4578_v7 }
 0x898   : > { %v5249_v5 = vsub.f32 %v5217_v24, %v2610_v13 }
 0x89a   : > { %v2622_v47 = vmul.f32 %v5249_v5, %v5249_v5 }
 0x89c   : > { %v2628_v42 = vsel %vm1133_vm5, %v2622_v47, 0.0 }
 0x8ae   : > { %v2597_v46 = vpop.xlane.xlu0 %2596 }
 0x8af   : > { %v2611_v12 = vmul.f32 %v2597_v46, %v4578_v7 }
 0x8b1   : > { %v5266_v39 = vsub.f32 %v5222_v52, %v2611_v12 }
 0x8b3   : > { %v2623_v2 = vmul.f32 %v5266_v39, %v5266_v39 }
 0x8b5   : > { %v2631_v50 = vsel %vm1133_vm5, %v2623_v2, 0.0 }
 0x8fc   : > { %v2574_v33 = vpop.f32.mrf.mxu3 }
 0x8fd   : > { %v2575_v15 = vadd.f32 %v5214_v53, %v2574_v33  ;;  %v3738_v33 = vor.u32 %v3875_v30, %v3735_v48 }
 0x8ff   : > { %v5246_v55 = vadd.f32 %v4208_v37, %v2575_v15  ;;  %2838 = vmatpush.bf16.msrb.mxu0 %v3738_v33  ;;  %v3725_v37 = vld [vmem:[%s4380_s3] sm:$0xf] }
 0x901   : > { %v2598_v4 = vsel %vm1133_vm5, %v5246_v55, 0.0 }
 0x902   : > { %2599 = vadd.xlane.f32.xlu2 %v2598_v4  ;;  %v3874_v4 = vld [vmem:[%s4380_s3 + $0x4] sm:$0xf0] }
 0x903   : > { %v3726_v47 = vor.u32 %v3874_v4, %v3725_v37 }
 0x904   : > { %v2576_v43 = vpop.f32.mrf.mxu3 }
 0x905   : > { %v2577_v49 = vadd.f32 %v5214_v53, %v2576_v43  ;;  %v3873_v43 = vld [vmem:[%s4380_s3 + $0x4] sm:$0xf]  ;;  %2815 = vmatpush.bf16.msra.mxu2 %v3726_v47 }
 0x907   : > { %v5256_v31 = vadd.f32 %v4209_v23, %v2577_v49  ;;  %v3727_v23 = vld [vmem:[%s4380_s3 + $0x8] sm:$0xf0] }
 0x909   : > { %v2601_v32 = vsel %vm1133_vm5, %v5256_v31, 0.0 }
 0x90a   : > { %2602 = vadd.xlane.f32.xlu1 %v2601_v32  ;;  %2629 = vadd.xlane.f32.xlu2 %v2628_v42  ;;  %v3730_v42 = vor.u32 %v3873_v43, %v3727_v23 }
 0x90c   : > { %v2579_v18 = vpop.f32.mrf.mxu3  ;;  %2839 = vmatpush.bf16.msrb.mxu0 %v3730_v42 }
 0x90d   : > { %v2580_v26 = vadd.f32 %v5214_v53, %v2579_v18 }
 0x90f   : > { %v5263_v61 = vadd.f32 %v4210_v63, %v2580_v26 }
 0x911   : > { %v2604_v58 = vsel %vm1133_vm5, %v5263_v61, 0.0 }
 0x912   : > { %2605 = vadd.xlane.f32.xlu0 %v2604_v58 }
 0x914   : > { %v2581_v22 = vpop.f32.mrf.mxu3 }
 0x915   : > { %v2582_v20 = vadd.f32 %v5214_v53, %v2581_v22 }
 0x917   : > { %v5273_v54 = vadd.f32 %v4211_v60, %v2582_v20 }
 0x919   : > { %v2607_v27 = vsel %vm1133_vm5, %v5273_v54, 0.0 }
 0x91a   : > { %2608 = vadd.xlane.f32.xlu1 %v2607_v27  ;;  %2632 = vadd.xlane.f32.xlu0 %v2631_v50 }
 0x975   : > { %v2600_v56 = vpop.xlane.xlu2 %2599 }
 0x976   : > { %v2612_v9 = vmul.f32 %v2600_v56, %v4578_v7 }
 0x978   : > { %v5280_v53 = vsub.f32 %v5246_v55, %v2612_v9 }
 0x97a   : > { %v2624_v44 = vmul.f32 %v5280_v53, %v5280_v53 }
 0x97c   : > { %v2634_v38 = vsel %vm1133_vm5, %v2624_v44, 0.0 }
 0x97d   : > { %v2630_v36 = vpop.xlane.xlu2 %2629  ;;  %v2603_v6 = vpop.xlane.xlu1 %2602  ;;  %2635 = vadd.xlane.f32.xlu1 %v2634_v38 }
 0x97e   : > { %v2646_v21 = vmul.f32 %v2630_v36, %v4578_v7  ;;  %v2613_v11 = vmul.f32 %v2603_v6, %v4578_v7  ;;  %v5329_v6 = vld [vmem:[%s5627_s29] ss:$0 sm:$0xff] }
 0x980   : > { %v2652_v17 = vadd.f32 1e-05, %v2646_v21  ;;  %v5292_v19 = vsub.f32 %v5256_v31, %v2613_v11  ;;  %v5337_v21 = vld [vmem:[%s746_s4] ss:$0 sm:$0xff] }
 0x982   : > { %4146 = vrsqrt.f32 %v2652_v17  ;;  %v2625_v41 = vmul.f32 %v5292_v19, %v5292_v19  ;;  %vm2664_vm14 = vweird.f32 %v2652_v17 }
 0x984   : > { %v2637_v14 = vsel %vm1133_vm5, %v2625_v41, 0.0 }
 0x985   : > { %2638 = vadd.xlane.f32.xlu2 %v2637_v14  ;;  %v2606_v10 = vpop.xlane.xlu0 %2605 }
 0x986   : > { %v2614_v25 = vmul.f32 %v2606_v10, %v4578_v7 }
 0x988   : > { %v4147_v13 = vpop.eup %4146  ;;  %v5307_v15 = vsub.f32 %v5263_v61, %v2614_v25 }
 0x989   : > { %v2659_v49 = vmul.f32 %v4147_v13, %v2652_v17  ;;  %vm2665_vm13 = vweird.f32 %v4147_v13 }
 0x98a   : > { %v2626_v32 = vmul.f32 %v5307_v15, %v5307_v15  ;;  %vm2666_vm15 = vmor %vm2664_vm14, %vm2665_vm13 }
 0x98b   : > { %v2660_v18 = vmul.f32 %v4147_v13, %v2659_v49 }
 0x98c   : > { %v2640_v46 = vsel %vm1133_vm5, %v2626_v32, 0.0 }
 0x98d   : > { %v2609_v12 = vpop.xlane.xlu1 %2608  ;;  %2641 = vadd.xlane.f32.xlu0 %v2640_v46  ;;  %v2633_v26 = vpop.xlane.xlu0 %2632  ;;  %v2661_v2 = vmul.f32 0.5, %v2660_v18 }
 0x98e   : > { %v2615_v63 = vmul.f32 %v2609_v12, %v4578_v7  ;;  %v2647_v58 = vmul.f32 %v2633_v26, %v4578_v7 }
 0x98f   : > { %v2662_v50 = vsub.f32 1.5, %v2661_v2 }
 0x990   : > { %v5319_v22 = vsub.f32 %v5273_v54, %v2615_v63  ;;  %v2653_v20 = vadd.f32 1e-05, %v2647_v58 }
 0x991   : > { %v2663_v9 = vmul.f32 %v4147_v13, %v2662_v50 }
 0x992   : > { %4148 = vrsqrt.f32 %v2653_v20  ;;  %v2627_v60 = vmul.f32 %v5319_v22, %v5319_v22  ;;  %vm2674_vm2 = vweird.f32 %v2653_v20 }
 0x993   : > { %v2667_v59 = vsel %vm2666_vm15, %v4147_v13, %v2663_v9 }
 0x994   : > { %v2643_v27 = vsel %vm1133_vm5, %v2627_v60, 0.0  ;;  %v2718_v57 = vmul.f32 %v2667_v59, %v5249_v5 }
 0x995   : > { %2644 = vadd.xlane.f32.xlu1 %v2643_v27 }
 0x996   : > { %v2727_v11 = vmul.f32 %v5329_v6, %v2718_v57 }
 0x998   : > { %v4149_v56 = vpop.eup %4148  ;;  %v2736_v3 = vadd.f32 %v5337_v21, %v2727_v11 }
 0x999   : > { %v2669_v44 = vmul.f32 %v4149_v56, %v2653_v20  ;;  %vm2675_vm1 = vweird.f32 %v4149_v56 }
 0x99a   : > { %vm2676_vm3 = vmor %vm2674_vm2, %vm2675_vm1 }
 0x99b   : > { %v2670_v38 = vmul.f32 %v4149_v56, %v2669_v44 }
 0x99d   : > { %v2671_v40 = vmul.f32 0.5, %v2670_v38 }
 0x99f   : > { %v2672_v36 = vsub.f32 1.5, %v2671_v40 }
 0x9a1   : > { %v2673_v0 = vmul.f32 %v4149_v56, %v2672_v36 }
 0x9a3   : > { %v2677_v16 = vsel %vm2676_vm3, %v4149_v56, %v2673_v0 }
 0x9a4   : > { %v2719_v62 = vmul.f32 %v2677_v16, %v5266_v39  ;;  %v3895_v16 = vld [vmem:[%s4391_s7 + $0x70] sm:$0xff] }
 0x9a6   : > { %v2728_v17 = vmul.f32 %v5329_v6, %v2719_v62  ;;  %v3888_v62 = vld [vmem:[%s4391_s7 + $0x38] sm:$0xff] }
 0x9a7   : > { %3242 = vmatpush.bf16.msrb.mxu1 %v3888_v62 }
 0x9a8   : > { %v2737_v5 = vadd.f32 %v5337_v21, %v2728_v17 }
 0x9aa   : > { %v2742_v1 = vpack.c.bf16 %v2737_v5, %v2736_v3 }
 0x9ac   : > { %3755 = vmatmul.msk.bf16.vlgmr.msra.gmra.mxu2 %vm1133_vm5, %v2742_v1  ;;  %3758 = vmatmul.msk.bf16.vlgmr.msrb.gmra.mxu0 %vm1133_vm5, %v2742_v1  ;;  %v3894_v1 = vld [vmem:[%s4391_s7 + $0x68] sm:$0xff] }
 0x9f0   : > { %v2636_v29 = vpop.xlane.xlu1 %2635 }
 0x9f1   : > { %v2648_v8 = vmul.f32 %v2636_v29, %v4578_v7 }
 0x9f3   : > { %v2654_v51 = vadd.f32 1e-05, %v2648_v8 }
 0x9f5   : > { %4150 = vrsqrt.f32 %v2654_v51  ;;  %vm2684_vm0 = vweird.f32 %v2654_v51 }
 0x9f8   : > { %v2639_v41 = vpop.xlane.xlu2 %2638 }
 0x9f9   : > { %v2649_v45 = vmul.f32 %v2639_v41, %v4578_v7  ;;  %v2753_v41 = vld [vmem:[%s4385_s20] sm:$0x3]  ;;  %s5638_s20 = sld [smem:[#allocation4_spill]] }
 0x9fb   : > { %v4151_v39 = vpop.eup %4150  ;;  %v2655_v14 = vadd.f32 1e-05, %v2649_v45  ;;  %v3893_v45 = vld [vmem:[%s4391_s7 + $0x60] sm:$0xff] }
 0x9fc   : > { %v2679_v35 = vmul.f32 %v4151_v39, %v2654_v51  ;;  %vm2685_vm4 = vweird.f32 %v4151_v39 }
 0x9fd   : > { %4152 = vrsqrt.f32 %v2655_v14  ;;  %vm2686_vm6 = vmor %vm2684_vm0, %vm2685_vm4  ;;  %vm2694_vm8 = vweird.f32 %v2655_v14 }
 0x9fe   : > { %v2680_v34 = vmul.f32 %v4151_v39, %v2679_v35 }
 0x9ff   : > { %p3312_p8 = scmp.ge.s32.totalorder %s5638_s20, 1  ;;  %p3313_p9 = scmp.le.s32.totalorder %s5638_s20, 3 }
 0xa00   : > { %v2681_v10 = vmul.f32 0.5, %v2680_v34  ;;  %v2642_v28 = vpop.xlane.xlu0 %2641 }
 0xa01   : > { %v2650_v30 = vmul.f32 %v2642_v28, %v4578_v7  ;;  %p5543_p10 = pnand %p3313_p9, %p3312_p8 }
 0xa02   : > { %v2682_v48 = vsub.f32 1.5, %v2681_v10  ;;  %v3891_v10 = vld [vmem:[%s4391_s7 + $0x50] sm:$0xff] }
 0xa03   : > { %v4153_v25 = vpop.eup %4152  ;;  %v2656_v33 = vadd.f32 1e-05, %v2650_v30  ;;  %v5383_v30 = vperm.slane %v2753_v41, 0 }
 0xa04   : > { %v2683_v13 = vmul.f32 %v4151_v39, %v2682_v48  ;;  %v2689_v37 = vmul.f32 %v4153_v25, %v2655_v14  ;;  %vm2695_vm7 = vweird.f32 %v4153_v25  ;;  %v5372_v14 = vperm.slane %v2753_v41, 1  ;;  %v3884_v48 = vld [vmem:[%s4391_s7 + $0x18] sm:$0xff] }
 0xa05   : > { %4154 = vrsqrt.f32 %v2656_v33  ;;  %vm2696_vm9 = vmor %vm2694_vm8, %vm2695_vm7  ;;  %vm2704_vm11 = vweird.f32 %v2656_v33 }
 0xa06   : > { %v2690_v4 = vmul.f32 %v4153_v25, %v2689_v37  ;;  %v2687_v43 = vsel %vm2686_vm6, %v4151_v39, %v2683_v13  ;;  %v3890_v13 = vld [vmem:[%s4391_s7 + $0x48] sm:$0xff] }
 0xa07   : > { %v2720_v46 = vmul.f32 %v2687_v43, %v5280_v53  ;;  %v3883_v43 = vld [vmem:[%s4391_s7 + $0x10] sm:$0xff] }
 0xa08   : > { %v2691_v49 = vmul.f32 0.5, %v2690_v4  ;;  %v2645_v47 = vpop.xlane.xlu1 %2644 }
 0xa09   : > { %v2651_v23 = vmul.f32 %v2645_v47, %v4578_v7  ;;  %v2729_v2 = vmul.f32 %v5329_v6, %v2720_v46  ;;  %v3882_v46 = vld [vmem:[%s4391_s7 + $0x8] sm:$0xff] }
 0xa0a   : > { %v2692_v32 = vsub.f32 1.5, %v2691_v49 }
 0xa0b   : > { %v4155_v42 = vpop.eup %4154  ;;  %v2657_v18 = vadd.f32 1e-05, %v2651_v23  ;;  %v2738_v53 = vadd.f32 %v5337_v21, %v2729_v2  ;;  %v3889_v23 = vld [vmem:[%s4391_s7 + $0x40] sm:$0xff] }
 0xa0c   : > { %v2693_v12 = vmul.f32 %v4153_v25, %v2692_v32  ;;  %v2699_v26 = vmul.f32 %v4155_v42, %v2656_v33  ;;  %vm2705_vm10 = vweird.f32 %v4155_v42 }
 0xa0d   : > { %4156 = vrsqrt.f32 %v2657_v18  ;;  %vm2706_vm12 = vmor %vm2704_vm11, %vm2705_vm10  ;;  %vm2714_vm14 = vweird.f32 %v2657_v18 }
 0xa0e   : > { %v2697_v63 = vsel %vm2696_vm9, %v4153_v25, %v2693_v12  ;;  %v2700_v58 = vmul.f32 %v4155_v42, %v2699_v26 }
 0xa0f   : > { %v2721_v20 = vmul.f32 %v2697_v63, %v5292_v19  ;;  %v3896_v19 = vld [vmem:[%s4391_s7 + $0x78] sm:$0xff] }
 0xa10   : > { %v2701_v60 = vmul.f32 0.5, %v2700_v58  ;;  %3266 = vmatpush.bf16.msrb.mxu3 %v3896_v19 }
 0xa11   : > { %v2730_v7 = vmul.f32 %v5329_v6, %v2721_v20  ;;  %v3881_v20 = vld [vmem:[%s4391_s7] sm:$0xff] }
 0xa12   : > { %v2702_v27 = vsub.f32 1.5, %v2701_v60 }
 0xa13   : > { %v4157_v50 = vpop.eup %4156  ;;  %v2739_v56 = vadd.f32 %v5337_v21, %v2730_v7 }
 0xa14   : > { %v2703_v9 = vmul.f32 %v4155_v42, %v2702_v27  ;;  %v2709_v44 = vmul.f32 %v4157_v50, %v2657_v18  ;;  %vm2715_vm13 = vweird.f32 %v4157_v50  ;;  %3267 = vmatpush.bf16.msrb.mxu3 %v3895_v16 }
 0xa15   : > { %v2743_v38 = vpack.c.bf16 %v2739_v56, %v2738_v53  ;;  %vm2716_vm15 = vmor %vm2714_vm14, %vm2715_vm13 }
 0xa16   : > { %v2710_v59 = vmul.f32 %v4157_v50, %v2709_v44  ;;  %v2707_v40 = vsel %vm2706_vm12, %v4155_v42, %v2703_v9 }
 0xa17   : > { %3756 = vmatmul.msk.bf16.gmra.mxu2 %vm1133_vm5, %v2743_v38  ;;  %3759 = vmatmul.msk.bf16.gmra.mxu0 %vm1133_vm5, %v2743_v38  ;;  %v2722_v0 = vmul.f32 %v2707_v40, %v5307_v15  ;;  %v3887_v15 = vld [vmem:[%s4391_s7 + $0x30] sm:$0xff] }
 0xa18   : > { %v2711_v36 = vmul.f32 0.5, %v2710_v59  ;;  %3268 = vmatpush.bf16.msrb.mxu3 %v3894_v1  ;;  %3243 = vmatpush.bf16.msrb.mxu1 %v3887_v15 }
 0xa19   : > { %v2731_v5 = vmul.f32 %v5329_v6, %v2722_v0 }
 0xa1a   : > { %v2712_v57 = vsub.f32 1.5, %v2711_v36 }
 0xa1b   : > { %v2740_v8 = vadd.f32 %v5337_v21, %v2731_v5 }
 0xa1c   : > { %v2713_v11 = vmul.f32 %v4157_v50, %v2712_v57  ;;  %3269 = vmatpush.bf16.msrb.mxu3 %v3893_v45 }
 0xa1e   : > { %v2717_v17 = vsel %vm2716_vm15, %v4157_v50, %v2713_v11 }
 0xa1f   : > { %v2723_v3 = vmul.f32 %v2717_v17, %v5319_v22  ;;  %v3886_v22 = vld [vmem:[%s4391_s7 + $0x28] sm:$0xff] }
 0xa20   : > { %3244 = vmatpush.bf16.msrb.mxu1 %v3886_v22 }
 0xa21   : > { %v2732_v29 = vmul.f32 %v5329_v6, %v2723_v3  ;;  %v3892_v6 = vld [vmem:[%s4391_s7 + $0x58] sm:$0xff] }
 0xa22   : > { %3270 = vmatpush.bf16.msrb.mxu3 %v3892_v6 }
 0xa23   : > { %v2741_v51 = vadd.f32 %v5337_v21, %v2732_v29  ;;  %v3885_v21 = vld [vmem:[%s4391_s7 + $0x20] sm:$0xff] }
 0xa24   : > { %3245 = vmatpush.bf16.msrb.mxu1 %v3885_v21 }
 0xa25   : > { %v2744_v39 = vpack.c.bf16 %v2741_v51, %v2740_v8 }
 0xa26   : > { %3271 = vmatpush.bf16.msrb.mxu3 %v3891_v10 }
 0xa27   : > { %3757 = vmatmul.msk.bf16.gmra.mxu2 %vm1133_vm5, %v2744_v39  ;;  %3760 = vmatmul.msk.bf16.gmra.mxu0 %vm1133_vm5, %v2744_v39 }
 0xa28   : > { %3246 = vmatpush.bf16.msrb.mxu1 %v3884_v48 }
 0xa29   : > { %v2841_v35 = vpop.f32.mrf.mxu0 }
 0xa2a   : > { %v5379_v34 = vadd.f32 %v2841_v35, %v5372_v14  ;;  %3272 = vmatpush.bf16.msrb.mxu3 %v3890_v13 }
 0xa2c   : > { %v3762_v28 = vmul.f32 -1.702, %v5379_v34  ;;  %3247 = vmatpush.bf16.msrb.mxu1 %v3883_v43 }
 0xa2e   : > { %v2882_v25 = vmul.f32 1.442695, %v3762_v28  ;;  %3273 = vmatpush.bf16.msrb.mxu3 %v3889_v23 }
 0xa2f   : > { %v2817_v33 = vpop.f32.mrf.mxu2 }
 0xa30   : > { %4158 = vpow2.f32 %v2882_v25  ;;  %v5388_v37 = vadd.f32 %v2817_v33, %v5383_v30  ;;  %3248 = vmatpush.bf16.msrb.mxu1 %v3882_v46 }
 0xa31   : > { %v2843_v4 = vpop.f32.mrf.mxu0 }
 0xa32   : > { %v3761_v49 = vmul.f32 -1.702, %v5388_v37  ;;  %v5393_v47 = vadd.f32 %v2843_v4, %v5372_v14 }
 0xa34   : > { %v2880_v32 = vmul.f32 1.442695, %v3761_v49  ;;  %v3764_v42 = vmul.f32 -1.702, %v5393_v47  ;;  %3249 = vmatpush.bf16.msrb.mxu1 %v3881_v20 }
 0xa36   : > { %v4159_v18 = vpop.eup %4158  ;;  %4160 = vpow2.f32 %v2880_v32  ;;  %v2886_v12 = vmul.f32 1.442695, %v3764_v42 }
 0xa37   : > { %v2905_v26 = vadd.f32 1.0, %v4159_v18  ;;  %v2819_v63 = vpop.f32.mrf.mxu2 }
 0xa38   : > { %4162 = vpow2.f32 %v2886_v12  ;;  %v5399_v58 = vadd.f32 %v2819_v63, %v5383_v30 }
 0xa39   : > { %4164 = vrcp.f32 %v2905_v26  ;;  %v2940_v0 = vand.u32 2147483647, %v2905_v26  ;;  %v2942_v17 = vand.u32 2147483648, %v2905_v26  ;;  %vm2936_vm2 = vweird.f32 %v2905_v26 }
 0xa3a   : > { %v3763_v2 = vmul.f32 -1.702, %v5399_v58 }
 0xa3b   : > { %vm2941_vm4 = vcmp.eq.f32.partialorder %v2940_v0, 8.507059e+37  ;;  %v2943_v45 = vor.u32 1.1754944e-38, %v2942_v17 }
 0xa3c   : > { %v4161_v60 = vpop.eup %4160  ;;  %v2884_v7 = vmul.f32 1.442695, %v3763_v2 }
 0xa3d   : > { %v2904_v27 = vadd.f32 1.0, %v4161_v60 }
 0xa3e   : > { %v4163_v50 = vpop.eup %4162  ;;  %4166 = vpow2.f32 %v2884_v7 }
 0xa3f   : > { %v4165_v53 = vpop.eup %4164  ;;  %4168 = vrcp.f32 %v2904_v27  ;;  %v2907_v9 = vadd.f32 1.0, %v4163_v50  ;;  %vm2921_vm7 = vweird.f32 %v2904_v27  ;;  %v2927_v6 = vand.u32 2147483648, %v2904_v27 }
 0xa40   : > { %v2932_v56 = vmul.f32 %v4165_v53, %v2905_v26  ;;  %vm2937_vm1 = vweird.f32 %v4165_v53  ;;  %v2925_v10 = vand.u32 2147483647, %v2904_v27 }
 0xa41   : > { %4170 = vrcp.f32 %v2907_v9  ;;  %vm5403_vm3 = vmor %vm2936_vm2, %vm2937_vm1  ;;  %v2972_v29 = vand.u32 2147483648, %v2907_v9  ;;  %v2970_v41 = vand.u32 2147483647, %v2907_v9  ;;  %vm2966_vm8 = vweird.f32 %v2907_v9 }
 0xa42   : > { %v2933_v44 = vsub.f32 1.0, %v2932_v56  ;;  %v2928_v42 = vor.u32 1.1754944e-38, %v2927_v6  ;;  %vm2926_vm13 = vcmp.eq.f32.partialorder %v2925_v10, 8.507059e+37 }
 0xa43   : > { %v2973_v28 = vor.u32 1.1754944e-38, %v2972_v29  ;;  %vm2971_vm11 = vcmp.eq.f32.partialorder %v2970_v41, 8.507059e+37 }
 0xa44   : > { %v4167_v38 = vpop.eup %4166  ;;  %v2934_v19 = vmul.f32 %v4165_v53, %v2933_v44 }
 0xa45   : > { %v4169_v59 = vpop.eup %4168  ;;  %v2906_v40 = vadd.f32 1.0, %v4167_v38 }
 0xa46   : > { %v2917_v36 = vmul.f32 %v4169_v59, %v2904_v27  ;;  %v2935_v11 = vadd.f32 %v4165_v53, %v2934_v19  ;;  %vm2922_vm6 = vweird.f32 %v4169_v59 }
 0xa47   : > { %4172 = vrcp.f32 %v2906_v40  ;;  %v4171_v57 = vpop.eup %4170  ;;  %vm5409_vm10 = vmor %vm2921_vm7, %vm2922_vm6  ;;  %v2955_v13 = vand.u32 2147483647, %v2906_v40  ;;  %v2957_v4 = vand.u32 2147483648, %v2906_v40  ;;  %vm2951_vm14 = vweird.f32 %v2906_v40 }
 0xa48   : > { %v2918_v16 = vsub.f32 1.0, %v2917_v36  ;;  %v2962_v62 = vmul.f32 %v4171_v57, %v2907_v9  ;;  %v2939_v8 = vsel %vm5403_vm3, %v4165_v53, %v2935_v11  ;;  %vm2967_vm0 = vweird.f32 %v4171_v57 }
 0xa49   : > { %v2944_v21 = vsel %vm2941_vm4, %v2943_v45, %v2939_v8  ;;  %vm2968_vm9 = vmor %vm2966_vm8, %vm2967_vm0  ;;  %v2958_v63 = vor.u32 1.1754944e-38, %v2957_v4  ;;  %vm2956_vm1 = vcmp.eq.f32.partialorder %v2955_v13, 8.507059e+37 }
 0xa4a   : > { %v2919_v3 = vmul.f32 %v4169_v59, %v2918_v16  ;;  %v2963_v5 = vsub.f32 1.0, %v2962_v62  ;;  %v3097_v32 = vmul.f32 %v2944_v21, %v5379_v34 }
 0xa4c   : > { %v2964_v51 = vmul.f32 %v4171_v57, %v2963_v5  ;;  %v2920_v39 = vadd.f32 %v4169_v59, %v2919_v3 }
 0xa4d   : > { %v4173_v15 = vpop.eup %4172 }
 0xa4e   : > { %v2947_v22 = vmul.f32 %v4173_v15, %v2906_v40  ;;  %v2965_v35 = vadd.f32 %v4171_v57, %v2964_v51  ;;  %v2924_v43 = vsel %vm5409_vm10, %v4169_v59, %v2920_v39  ;;  %vm2952_vm12 = vweird.f32 %v4173_v15 }
 0xa4f   : > { %v2929_v12 = vsel %vm2926_vm13, %v2928_v42, %v2924_v43  ;;  %vm2953_vm15 = vmor %vm2951_vm14, %vm2952_vm12 }
 0xa50   : > { %v2948_v48 = vsub.f32 1.0, %v2947_v22  ;;  %v2969_v33 = vsel %vm2968_vm9, %v4171_v57, %v2965_v35  ;;  %v3096_v60 = vmul.f32 %v2929_v12, %v5388_v37 }
 0xa51   : > { %v2974_v49 = vsel %vm2971_vm11, %v2973_v28, %v2969_v33 }
 0xa52   : > { %v2949_v23 = vmul.f32 %v4173_v15, %v2948_v48  ;;  %v3099_v46 = vmul.f32 %v2974_v49, %v5393_v47 }
 0xa54   : > { %v2950_v18 = vadd.f32 %v4173_v15, %v2949_v23  ;;  %v3109_v26 = vpack.c.bf16 %v3099_v46, %v3097_v32 }
 0xa56   : > { %v2954_v20 = vsel %vm2953_vm15, %v4173_v15, %v2950_v18  ;;  %3274 = vmatmul.bf16.vlgmr.msrb.gmra.mxu3 %v3109_v26 }
 0xa57   : > { %v2959_v2 = vsel %vm2956_vm1, %v2958_v63, %v2954_v20 }
 0xa58   : > { %v3098_v7 = vmul.f32 %v2959_v2, %v5399_v58 }
 0xa5a   : > { %v3108_v27 = vpack.c.bf16 %v3098_v7, %v3096_v60 }
 0xa5c   : > { %3250 = vmatmul.bf16.vlgmr.msrb.gmra.mxu1 %v3108_v27 }
 0xa94   : > { %v2846_v34 = vpop.f32.mrf.mxu0 }
 0xa95   : > { %v5420_v47 = vadd.f32 %v2846_v34, %v5372_v14 }
 0xa97   : > { %v3766_v50 = vmul.f32 -1.702, %v5420_v47 }
 0xa99   : > { %v2890_v53 = vmul.f32 1.442695, %v3766_v50 }
 0xa9a   : > { %v2822_v56 = vpop.f32.mrf.mxu2 }
 0xa9b   : > { %4174 = vpow2.f32 %v2890_v53  ;;  %v5424_v9 = vadd.f32 %v2822_v56, %v5383_v30 }
 0xa9c   : > { %v2848_v44 = vpop.f32.mrf.mxu0 }
 0xa9d   : > { %v3765_v38 = vmul.f32 -1.702, %v5424_v9  ;;  %v5428_v37 = vadd.f32 %v2848_v44, %v5372_v14 }
 0xa9f   : > { %v2888_v58 = vmul.f32 1.442695, %v3765_v38  ;;  %v3768_v59 = vmul.f32 -1.702, %v5428_v37 }
 0xaa1   : > { %v4175_v19 = vpop.eup %4174  ;;  %4176 = vpow2.f32 %v2888_v58  ;;  %v2894_v40 = vmul.f32 1.442695, %v3768_v59 }
 0xaa2   : > { %v2909_v36 = vadd.f32 1.0, %v4175_v19  ;;  %v2824_v57 = vpop.f32.mrf.mxu2 }
 0xaa3   : > { %4178 = vpow2.f32 %v2894_v40  ;;  %v5432_v0 = vadd.f32 %v2824_v57, %v5383_v30 }
 0xaa4   : > { %4180 = vrcp.f32 %v2909_v36  ;;  %v2851_v16 = vpop.f32.mrf.mxu0  ;;  %v3000_v48 = vand.u32 2147483647, %v2909_v36  ;;  %v3002_v25 = vand.u32 2147483648, %v2909_v36  ;;  %vm2996_vm2 = vweird.f32 %v2909_v36 }
 0xaa5   : > { %v3767_v11 = vmul.f32 -1.702, %v5432_v0  ;;  %v5436_v62 = vadd.f32 %v2851_v16, %v5372_v14 }
 0xaa6   : > { %vm5463_vm3 = vcmp.eq.f32.partialorder %v3000_v48, 8.507059e+37  ;;  %v3003_v18 = vor.u32 1.1754944e-38, %v3002_v25 }
 0xaa7   : > { %v4177_v17 = vpop.eup %4176  ;;  %v2892_v3 = vmul.f32 1.442695, %v3767_v11  ;;  %v3770_v5 = vmul.f32 -1.702, %v5436_v62 }
 0xaa8   : > { %v5439_v1 = vadd.f32 1.0, %v4177_v17 }
 0xaa9   : > { %v4179_v29 = vpop.eup %4178  ;;  %4182 = vpow2.f32 %v2892_v3  ;;  %v2898_v15 = vmul.f32 1.442695, %v3770_v5 }
 0xaaa   : > { %v5441_v8 = vpop.eup %4180  ;;  %4184 = vrcp.f32 %v5439_v1  ;;  %v2827_v51 = vpop.f32.mrf.mxu2  ;;  %v2911_v45 = vadd.f32 1.0, %v4179_v29  ;;  %vm2981_vm0 = vweird.f32 %v5439_v1  ;;  %v2985_v2 = vand.u32 2147483647, %v5439_v1 }
 0xaab   : > { %v2992_v41 = vmul.f32 %v5441_v8, %v2909_v36  ;;  %4186 = vpow2.f32 %v2898_v15  ;;  %v5446_v39 = vadd.f32 %v2827_v51, %v5383_v30  ;;  %vm2997_vm4 = vweird.f32 %v5441_v8 }
 0xaac   : > { %v2853_v22 = vpop.f32.mrf.mxu0  ;;  %4188 = vrcp.f32 %v2911_v45  ;;  %v3030_v7 = vand.u32 2147483647, %v2911_v45  ;;  %v3032_v27 = vand.u32 2147483648, %v2911_v45  ;;  %vm5478_vm7 = vmor %vm2996_vm2, %vm2997_vm4  ;;  %v2987_v38 = vand.u32 2147483648, %v5439_v1 }
 0xaad   : > { %v2993_v6 = vsub.f32 1.0, %v2992_v41  ;;  %v3769_v35 = vmul.f32 -1.702, %v5446_v39  ;;  %v5450_v10 = vadd.f32 %v2853_v22, %v5372_v14  ;;  %vm3026_vm9 = vweird.f32 %v2911_v45 }
 0xaae   : > { %vm3031_vm11 = vcmp.eq.f32.partialorder %v3030_v7, 8.507059e+37  ;;  %v3033_v17 = vor.u32 1.1754944e-38, %v3032_v27  ;;  %v2988_v22 = vor.u32 1.1754944e-38, %v2987_v38  ;;  %vm2986_vm14 = vcmp.eq.f32.partialorder %v2985_v2, 8.507059e+37 }
 0xaaf   : > { %v4183_v21 = vpop.eup %4182  ;;  %v2896_v13 = vmul.f32 1.442695, %v3769_v35  ;;  %v2994_v43 = vmul.f32 %v5441_v8, %v2993_v6  ;;  %v3772_v14 = vmul.f32 -1.702, %v5450_v10 }
 0xab0   : > { %v5452_v28 = vpop.eup %4184  ;;  %v5454_v33 = vadd.f32 1.0, %v4183_v21 }
 0xab1   : > { %v4187_v4 = vpop.eup %4186  ;;  %v2977_v49 = vmul.f32 %v5452_v28, %v5439_v1  ;;  %v2995_v63 = vadd.f32 %v5441_v8, %v2994_v43  ;;  %vm2982_vm6 = vweird.f32 %v5452_v28  ;;  %v2902_v34 = vmul.f32 1.442695, %v3772_v14 }
 0xab2   : > { %4190 = vrcp.f32 %v5454_v33  ;;  %v4189_v23 = vpop.eup %4188  ;;  %v5460_v42 = vadd.f32 1.0, %v4187_v4  ;;  %v2829_v26 = vpop.f32.mrf.mxu2  ;;  %vm5492_vm10 = vmor %vm2981_vm0, %vm2982_vm6  ;;  %v3015_v5 = vand.u32 2147483647, %v5454_v33  ;;  %v3017_v29 = vand.u32 2147483648, %v5454_v33 }
 0xab3   : > { %v2978_v32 = vsub.f32 1.0, %v2977_v49  ;;  %4192 = vpow2.f32 %v2896_v13  ;;  %v3022_v12 = vmul.f32 %v4189_v23, %v2911_v45  ;;  %v5475_v50 = vadd.f32 %v2829_v26, %v5383_v30 }
 0xab4   : > { %4194 = vrcp.f32 %v5460_v42  ;;  %vm3027_vm8 = vweird.f32 %v4189_v23  ;;  %v2999_v19 = vsel %vm5478_vm7, %v5441_v8, %v2995_v63  ;;  %vm3011_vm15 = vweird.f32 %v5454_v33 }
 0xab5   : > { %v2979_v20 = vmul.f32 %v5452_v28, %v2978_v32  ;;  %v3023_v60 = vsub.f32 1.0, %v3022_v12  ;;  %4196 = vpow2.f32 %v2902_v34  ;;  %v3771_v16 = vmul.f32 -1.702, %v5475_v50  ;;  %vm3028_vm12 = vmor %vm3026_vm9, %vm3027_vm8 }
 0xab6   : > { %v3004_v1 = vsel %vm5463_vm3, %v3003_v18, %v2999_v19  ;;  %v3018_v13 = vor.u32 1.1754944e-38, %v3017_v29  ;;  %vm3016_vm2 = vcmp.eq.f32.partialorder %v3015_v5, 8.507059e+37  ;;  %vm3056_vm4 = vweird.f32 %v5460_v42 }
 0xab7   : > { %v2980_v44 = vadd.f32 %v5452_v28, %v2979_v20  ;;  %v3024_v58 = vmul.f32 %v4189_v23, %v3023_v60  ;;  %v2900_v35 = vmul.f32 1.442695, %v3771_v16  ;;  %v3101_v48 = vmul.f32 %v3004_v1, %v5420_v47 }
 0xab8   : > { %v4191_v53 = vpop.eup %4190 }
 0xab9   : > { %v4193_v59 = vpop.eup %4192  ;;  %v3007_v30 = vmul.f32 %v4191_v53, %v5454_v33  ;;  %v3025_v36 = vadd.f32 %v4189_v23, %v3024_v58  ;;  %v2984_v15 = vsel %vm5492_vm10, %v5452_v28, %v2980_v44  ;;  %vm3012_vm13 = vweird.f32 %v4191_v53 }
 0xaba   : > { %v5496_v57 = vadd.f32 1.0, %v4193_v59  ;;  %v5499_v11 = vpop.eup %4194  ;;  %v2989_v28 = vsel %vm2986_vm14, %v2988_v22, %v2984_v15  ;;  %vm3013_vm1 = vmor %vm3011_vm15, %vm3012_vm13 }
 0xabb   : > { %v3008_v3 = vsub.f32 1.0, %v3007_v30  ;;  %v3029_v8 = vsel %vm3028_vm12, %v4189_v23, %v3025_v36  ;;  %v3052_v45 = vmul.f32 %v5499_v11, %v5460_v42  ;;  %v4197_v21 = vpop.eup %4196  ;;  %vm3057_vm3 = vweird.f32 %v5499_v11 }
 0xabc   : > { %4198 = vrcp.f32 %v5496_v57  ;;  %v3034_v51 = vsel %vm3031_vm11, %v3033_v17, %v3029_v8  ;;  %v2915_v4 = vadd.f32 1.0, %v4197_v21  ;;  %vm3058_vm0 = vmor %vm3056_vm4, %vm3057_vm3  ;;  %v3047_v36 = vand.u32 2147483648, %v5496_v57 }
 0xabd   : > { %v3009_v41 = vmul.f32 %v4191_v53, %v3008_v3  ;;  %v3103_v6 = vmul.f32 %v3034_v51, %v5428_v37  ;;  %4200 = vpow2.f32 %v2900_v35  ;;  %v3053_v49 = vsub.f32 1.0, %v3052_v45 }
 0xabe   : > { %4202 = vrcp.f32 %v2915_v4  ;;  %v3100_v37 = vmul.f32 %v2989_v28, %v5424_v9  ;;  %v3062_v9 = vand.u32 2147483648, %v5460_v42  ;;  %v3092_v34 = vand.u32 2147483648, %v2915_v4 }
 0xabf   : > { %v3010_v25 = vadd.f32 %v4191_v53, %v3009_v41  ;;  %v3111_v23 = vpack.c.bf16 %v3103_v6, %v3101_v48  ;;  %v3054_v33 = vmul.f32 %v5499_v11, %v3053_v49  ;;  %v3090_v44 = vand.u32 2147483647, %v2915_v4 }
 0xac0   : > { %v3063_v38 = vor.u32 1.1754944e-38, %v3062_v9  ;;  %vm3086_vm9 = vweird.f32 %v2915_v4  ;;  %v3093_v40 = vor.u32 1.1754944e-38, %v3092_v34  ;;  %vm3041_vm12 = vweird.f32 %v5496_v57 }
 0xac1   : > { %v3014_v43 = vsel %vm3013_vm1, %v4191_v53, %v3010_v25  ;;  %3279 = vmatmul.bf16.gmra.mxu3 %v3111_v23  ;;  %v3055_v2 = vadd.f32 %v5499_v11, %v3054_v33  ;;  %vm3091_vm11 = vcmp.eq.f32.partialorder %v3090_v44, 8.507059e+37  ;;  %v3048_v41 = vor.u32 1.1754944e-38, %v3047_v36 }
 0xac2   : > { %v4199_v32 = vpop.eup %4198  ;;  %v3019_v14 = vsel %vm3016_vm2, %v3018_v13, %v3014_v43  ;;  %v4035_v13 = vld [vmem:[%s763_s8] ss:$0 sm:$0xff] }
 0xac3   : > { %v3102_v47 = vmul.f32 %v3019_v14, %v5432_v0  ;;  %v3037_v46 = vmul.f32 %v4199_v32, %v5496_v57  ;;  %v4201_v12 = vpop.eup %4200  ;;  %v3060_v0 = vand.u32 2147483647, %v5460_v42  ;;  %v3059_v53 = vsel %vm3058_vm0, %v5499_v11, %v3055_v2 }
 0xac4   : > { %v2914_v26 = vadd.f32 1.0, %v4201_v12  ;;  %v4203_v63 = vpop.eup %4202  ;;  %vm3042_vm8 = vweird.f32 %v4199_v32  ;;  %v3045_v11 = vand.u32 2147483647, %v5496_v57 }
 0xac5   : > { %v3110_v18 = vpack.c.bf16 %v3102_v47, %v3100_v37  ;;  %v3038_v20 = vsub.f32 1.0, %v3037_v46  ;;  %v3082_v60 = vmul.f32 %v4203_v63, %v2915_v4  ;;  %vm3087_vm6 = vweird.f32 %v4203_v63  ;;  %vm3043_vm13 = vmor %vm3041_vm12, %vm3042_vm8 }
 0xac6   : > { %4204 = vrcp.f32 %v2914_v26  ;;  %vm3061_vm7 = vcmp.eq.f32.partialorder %v3060_v0, 8.507059e+37  ;;  %vm3088_vm10 = vmor %vm3086_vm9, %vm3087_vm6  ;;  %v3077_v1 = vand.u32 2147483648, %v2914_v26  ;;  %v3075_v51 = vand.u32 2147483647, %v2914_v26 }
 0xac7   : > { %3255 = vmatmul.bf16.gmra.mxu1 %v3110_v18  ;;  %v3083_v7 = vsub.f32 1.0, %v3082_v60  ;;  %v3039_v27 = vmul.f32 %v4199_v32, %v3038_v20  ;;  %v3064_v19 = vsel %vm3061_vm7, %v3063_v38, %v3059_v53  ;;  %vm3046_vm15 = vcmp.eq.f32.partialorder %v3045_v11, 8.507059e+37 }
 0xac8   : > { %v3105_v5 = vmul.f32 %v3064_v19, %v5436_v62  ;;  %vm3071_vm1 = vweird.f32 %v2914_v26  ;;  %v3078_v6 = vor.u32 1.1754944e-38, %v3077_v1  ;;  %vm3076_vm3 = vcmp.eq.f32.partialorder %v3075_v51, 8.507059e+37 }
 0xac9   : > { %v3084_v56 = vmul.f32 %v4203_v63, %v3083_v7  ;;  %v3040_v30 = vadd.f32 %v4199_v32, %v3039_v27 }
 0xacb   : > { %v3085_v59 = vadd.f32 %v4203_v63, %v3084_v56  ;;  %v3044_v15 = vsel %vm3043_vm13, %v4199_v32, %v3040_v30 }
 0xacc   : > { %v4205_v58 = vpop.eup %4204  ;;  %v3049_v57 = vsel %vm3046_vm15, %v3048_v41, %v3044_v15 }
 0xacd   : > { %v3067_v42 = vmul.f32 %v4205_v58, %v2914_v26  ;;  %v3089_v16 = vsel %vm3088_vm10, %v4203_v63, %v3085_v59  ;;  %vm3072_vm14 = vweird.f32 %v4205_v58 }
 0xace   : > { %v3094_v17 = vsel %vm3091_vm11, %v3093_v40, %v3089_v16  ;;  %vm3073_vm2 = vmor %vm3071_vm1, %vm3072_vm14 }
 0xacf   : > { %v3068_v3 = vsub.f32 1.0, %v3067_v42  ;;  %v3107_v29 = vmul.f32 %v3094_v17, %v5450_v10  ;;  %v3104_v10 = vmul.f32 %v3049_v57, %v5446_v39 }
 0xad1   : > { %v3069_v8 = vmul.f32 %v4205_v58, %v3068_v3  ;;  %v3113_v45 = vpack.c.bf16 %v3107_v29, %v3105_v5 }
 0xad3   : > { %v3070_v22 = vadd.f32 %v4205_v58, %v3069_v8  ;;  %3284 = vmatmul.bf16.gmra.mxu3 %v3113_v45 }
 0xad5   : > { %v3074_v62 = vsel %vm3073_vm2, %v4205_v58, %v3070_v22 }
 0xad6   : > { %v3079_v35 = vsel %vm3076_vm3, %v3078_v6, %v3074_v62 }
 0xad7   : > { %v3106_v48 = vmul.f32 %v3079_v35, %v5475_v50 }
 0xad9   : > { %v3251_v21 = vpop.f32.mrf.mxu1  ;;  %v3275_v25 = vpop.f32.mrf.mxu3  ;;  %v3112_v4 = vpack.c.bf16 %v3106_v48, %v3104_v10 }
 0xada   : > { %v3276_v28 = vadd.f32 %v3275_v25, %v3251_v21 }
 0xadb   : > { %3260 = vmatmul.bf16.gmra.mxu1 %v3112_v4 }
 0xadc   : > { %v3290_v43 = vadd.f32 %v3276_v28, %v5217_v24 }
 0xade   : > { %v3300_v49 = vadd.f32 %v4035_v13, %v3290_v43 }
 0xae0   : > { %3306 = vst.msk [vmem:[#allocation2] sm:$0xff] %vm1133_vm5, %v3300_v49 }
 0xae1   : > { %v3253_v23 = vpop.f32.mrf.mxu1  ;;  %v3277_v39 = vpop.f32.mrf.mxu3 }
 0xae2   : > { %v3278_v32 = vadd.f32 %v3277_v39, %v3253_v23 }
 0xae4   : > { %v3291_v50 = vadd.f32 %v3278_v32, %v5222_v52 }
 0xae6   : > { %v3301_v14 = vadd.f32 %v4035_v13, %v3291_v50 }
 0xae8   : > { %3307 = vst.msk [vmem:[#allocation2 + $0x8] sm:$0xff] %vm1133_vm5, %v3301_v14 }
 0xb44   : > { %v3256_v37 = vpop.f32.mrf.mxu1  ;;  %v3280_v24 = vpop.f32.mrf.mxu3 }
 0xb45   : > { %v3281_v47 = vadd.f32 %v3280_v24, %v3256_v37 }
 0xb47   : > { %v3292_v46 = vadd.f32 %v3281_v47, %v5246_v55 }
 0xb49   : > { %v3302_v33 = vadd.f32 %v4035_v13, %v3292_v46 }
 0xb4b   : > { %3308 = vst.msk [vmem:[#allocation2 + $0x10] sm:$0xff] %vm1133_vm5, %v3302_v33 }
 0xb4c   : > { %v3258_v18 = vpop.f32.mrf.mxu1  ;;  %v3282_v12 = vpop.f32.mrf.mxu3 }
 0xb4d   : > { %v3283_v52 = vadd.f32 %v3282_v12, %v3258_v18 }
 0xb4f   : > { %v3293_v26 = vadd.f32 %v3283_v52, %v5256_v31 }
 0xb51   : > { %v3303_v63 = vadd.f32 %v4035_v13, %v3293_v26 }
 0xb53   : > { %3309 = vst.msk [vmem:[#allocation2 + $0x18] sm:$0xff] %vm1133_vm5, %v3303_v63 }
 0xb56   : > { %v3285_v20 = vpop.f32.mrf.mxu3 }
 0xb58   : > { %v3261_v2 = vpop.f32.mrf.mxu1 }
 0xb59   : > { %v3286_v60 = vadd.f32 %v3285_v20, %v3261_v2 }
 0xb5b   : > { %v3294_v9 = vadd.f32 %v3286_v60, %v5263_v61 }
 0xb5d   : > { %v3304_v0 = vadd.f32 %v4035_v13, %v3294_v9 }
 0xb5e   : > { %v3287_v55 = vpop.f32.mrf.mxu3 }
 0xb5f   : > { %3310 = vst.msk [vmem:[#allocation2 + $0x20] sm:$0xff] %vm1133_vm5, %v3304_v0 }
 0xb60   : > { %v3263_v7 = vpop.f32.mrf.mxu1 }
 0xb61   : > { %v3288_v27 = vadd.f32 %v3287_v55, %v3263_v7 }
 0xb63   : > { %v3295_v34 = vadd.f32 %v3288_v27, %v5273_v54  ;;  %3317 = sbr.rel (%p5543_p10) target bundleno = 2926 (0xb6e), region = 100 }
 0xb65   : > { %v3305_v53 = vadd.f32 %v4035_v13, %v3295_v34 }
 0xb67   : > { %3311 = vst.msk [vmem:[#allocation2 + $0x28] sm:$0xff] %vm1133_vm5, %v3305_v53 }
 0xb68   : > { %3318 = vst.msk [vmem:[%s4401_s24] sm:$0xff] %vm1133_vm5, %v3300_v49 }
 0xb69   : > { %3319 = vst.msk [vmem:[%s4401_s24 + $0x8] sm:$0xff] %vm1133_vm5, %v3301_v14 }
 0xb6a   : > { %3320 = vst.msk [vmem:[%s4401_s24 + $0x10] sm:$0xff] %vm1133_vm5, %v3302_v33 }
 0xb6b   : > { %3321 = vst.msk [vmem:[%s4401_s24 + $0x18] sm:$0xff] %vm1133_vm5, %v3303_v63 }
 0xb6c   : > { %3322 = vst.msk [vmem:[%s4401_s24 + $0x20] sm:$0xff] %vm1133_vm5, %v3304_v0 }
 0xb6d   : > { %3323 = vst.msk [vmem:[%s4401_s24 + $0x28] sm:$0xff] %vm1133_vm5, %v3305_v53 }
 0xb6e PF: > { %s5640_s8 = sld [smem:[#allocation3_spill]] }
 0xb74   : > { %s28_s27 = sadd.s32 1, %s5640_s8  }
 0xb75   : > { %p25_p11 = scmp.ge.s32.totalorder %s28_s27, 6  }
 0xb77   :  { %27 = sbr.rel (!%p25_p11) target bundleno = 11 (0xb), region = 163 }

</bundles_post_ra>
